<compile_context>
chip_gen: v6e
topology: v6e:2x2x1
jax: 0.10.0
libtpu: 0.0.40
codegen_flags: <defaults>
</compile_context>

<pallas_src>
import functools
import math

import jax
import jax.numpy as jnp
from jax.experimental import pallas as pl
from jax.experimental.pallas import tpu as pltpu

# ----------------------------- small synthetic config -----------------------
B = 2
IMG = 16
C_IN = 3
PATCH = 4
GRID = IMG // PATCH                  # 4
L = GRID * GRID                      # 16 patch tokens
N_TOK = L + 1                        # +CLS
D = 32                               # ViT embed dim (num_features)
HEADS = 4
HD = D // HEADS
MLP_HID = 4 * D
NUM_BLOCKS = 4                       # blocks in the (tiny) ViT backbone
DEPTH = 4                            # SideAdapterNetwork depth -> runs blocks[:3]
C_CLIP = 48                          # stands in for the 768 CLIP channels
HC = WC = 8                          # clip feature spatial size
FUSION_MAP = {0: 0, 2: 1}            # built from ["0->0", "1->2"]  ("src->tgt")
FUSION_TARGETS = tuple(sorted(FUSION_MAP))
HYDRA_IDXS = (0,) + tuple(i for i in range(1, DEPTH) if i in FUSION_MAP)
DEEP_SUPERVISION_IDXS = (3,)
LN_EPS = 1e-6                        # timm ViT / SAN LayerNorm eps
KP = C_IN * PATCH * PATCH            # patch row width (48)

# ----------------------------- packed-slab layout ---------------------------
SLAB_W = 128                         # lane width of both constant slabs

# f32 "vector" slab (row offsets multiples of 8)
V_INIT = 0                           # [N_TOK, D]   cls+cls_pos | pos+conv_bias
V_POS = 24                           # [N_TOK, D]   cls_pos | pos
V_INTERP = 48                        # [N_TOK, HC*WC] bilinear matrix (row0 = 0)
V_BLK = 72                           # per-block section, 16 rows each:
V_BLK_STRIDE = 16                    #  0 ln1_g 1 ln1_b 2 ln2_g 3 ln2_b 4 bq*s
                                     #  5 bk 6 bv 7 bproj 8 b1(MLP) 9 b2
V_FUS = V_BLK + (DEPTH - 1) * V_BLK_STRIDE       # per-fusion section, 8 rows:
V_FUS_STRIDE = 8                     #  0 ln_g(C_CLIP) 1 ln_b 2 proj_b(D)
V_ROWS = V_FUS + len(FUSION_TARGETS) * V_FUS_STRIDE          # 136

# bf16 weight slab (row offsets multiples of 16)
W_PATCH = 0                          # [KP, D]
W_BLK = 48                           # per-block: wq,wk,wv,wproj (D rows each),
W_BLK_STRIDE = 5 * D + MLP_HID       #            w1 (D rows), w2 (MLP_HID rows)
W_FUS = W_BLK + (DEPTH - 1) * W_BLK_STRIDE
W_FUS_STRIDE = C_CLIP                # fusion 1x1 conv [C_CLIP, D]
W_ROWS = W_FUS + len(FUSION_TARGETS) * W_FUS_STRIDE          # 1008

# packed output: [deep-supervision | hydra_0 | hydra_1 | zero pad] along lanes
N_PACK = 1 + len(HYDRA_IDXS)
PACK_COLS = -(-(N_PACK * D) // 128) * 128                    # 128 (lane-dense)


# ----------------------------- the fused Pallas kernel ----------------------
def _san_fused_kernel(patches_ref, clip_ref, vslab_ref, wslab_ref, out_ref, *,
                      per_step):
    f32 = jnp.float32
    bf16 = jnp.bfloat16

    def mm(a, b):
        # bf16 MXU operands, f32 accumulate (review: K=32 -> MXU far from bound).
        return jnp.dot(a.astype(bf16), b.astype(bf16), preferred_element_type=f32)

    def ln(v, g, b):
        v = v.astype(f32)
        mu = jnp.mean(v, axis=-1, keepdims=True)
        var = jnp.mean(jnp.square(v - mu), axis=-1, keepdims=True)
        return (v - mu) * jax.lax.rsqrt(var + LN_EPS) * g + b

    def gelu(h):
        # TODO(synk): torch nn.GELU defaults to exact erf; tanh approximation kept for TPU-safe lowering.
        c = math.sqrt(2.0 / math.pi)
        return 0.5 * h * (1.0 + jnp.tanh(c * (h + 0.044715 * (h * h * h))))

    # static-slice views into the two constant slabs (zero-cost)
    def vrow(row, width=D):
        return vslab_ref[row, :width]

    def vblk(off, rows, width):
        return vslab_ref[off:off + rows, :width]

    def w_d(off, rows=D):                       # [rows, D] bf16 weight
        return wslab_ref[off:off + rows, :D]

    def w_h(off):                               # [D, MLP_HID] bf16 weight
        return wslab_ref[off:off + D, :MLP_HID]

    # hoisted constants (built once per kernel invocation, reused by every
    # block / head / batch item — JAX does not CSE the iota compares).
    lane = jax.lax.broadcasted_iota(jnp.int32, (N_TOK, D), 1)
    head_masks = [((lane >= h * HD) & (lane < (h + 1) * HD)).astype(f32)
                  for h in range(HEADS)]
    init = vblk(V_INIT, N_TOK, D)               # cls+cls_pos | pos+conv_bias
    pos = vblk(V_POS, N_TOK, D)
    interp = vblk(V_INTERP, N_TOK, HC * WC)     # bilinear resize as a matmul

    def fused_clip(slot, src, bb):
        # AddFusion: channels-LayerNorm + 1x1 conv at (Hc,Wc), then bilinear
        # resize to the token grid as a matmul (row 0 = 0 keeps CLS unchanged).
        base = V_FUS + slot * V_FUS_STRIDE
        y = ln(clip_ref[src, bb], vrow(base + 0, C_CLIP), vrow(base + 1, C_CLIP))
        y = mm(y, w_d(W_FUS + slot * W_FUS_STRIDE, C_CLIP)) + vrow(base + 2, D)
        return mm(interp, y)                                        # [N_TOK, D]

    def vit_block(x, i):
        bv = V_BLK + i * V_BLK_STRIDE
        bw = W_BLK + i * W_BLK_STRIDE
        # ---- pre-norm multi-head self-attention ----
        xn = ln(x, vrow(bv + 0), vrow(bv + 1))
        q = mm(xn, w_d(bw + 0 * D)) + vrow(bv + 4)   # 1/sqrt(hd) folded into W_q/b_q
        k = mm(xn, w_d(bw + 1 * D)) + vrow(bv + 5)
        v = mm(xn, w_d(bw + 2 * D)) + vrow(bv + 6)
        k_bf = k.astype(jnp.bfloat16)
        attn = jnp.zeros((N_TOK, D), f32)            # heads side-by-side in lanes
        for hm in head_masks:                        # static, tiny head count
            qh = (q * hm).astype(jnp.bfloat16)       # zero other heads' columns
            vh = (v * hm).astype(jnp.bfloat16)
            logits = jax.lax.dot_general(qh, k_bf, (((1,), (1,)), ((), ())),
                                         preferred_element_type=f32)   # [N, N]
            lmax = jnp.max(logits, axis=-1, keepdims=True)
            e = jnp.exp(logits - lmax)
            # TODO(synk): approx reciprocal (EUP) — tiny deviation vs exact softmax divide.
            p = e * pl.reciprocal(jnp.sum(e, axis=-1, keepdims=True), approx=True)
            attn = attn + mm(p, vh)
        x = x + mm(attn, w_d(bw + 3 * D)) + vrow(bv + 7)

        # ---- pre-norm MLP ----
        xn2 = ln(x, vrow(bv + 2), vrow(bv + 3))
        h1 = gelu(mm(xn2, w_h(bw + 4 * D)) + vrow(bv + 8, MLP_HID))
        return x + mm(h1, w_d(bw + 5 * D, MLP_HID)) + vrow(bv + 9)

    # static in-kernel loop over the batch items handled by this grid step
    for bb in range(per_step):
        # patch embed (Conv2d k=p stride=p as matmul); init row 0 = cls+cls_pos,
        # rows 1..L = pos_embed + conv bias (folded on host); patch row 0 is 0.
        x = mm(patches_ref[bb], w_d(W_PATCH, KP)) + init              # [N_TOK, D]

        if 0 in FUSION_MAP:
            x = x + fused_clip(FUSION_TARGETS.index(0), FUSION_MAP[0], bb)
        hydras = [x]                              # unconditional first hydra entry
        outs_x = None

        for i in range(1, DEPTH):                 # blocks[:DEPTH-1], start=1
            x = vit_block(x, i - 1)
            if i in FUSION_MAP:
                x = x + fused_clip(FUSION_TARGETS.index(i), FUSION_MAP[i], bb)
                hydras.append(x)
            if i in DEEP_SUPERVISION_IDXS:
                outs_x = x
            # pos re-add only when another block will consume it (the reference's
            # final `x = x + pos_embed` is dead code — removed per review)
            if i < DEPTH - 1 and i < NUM_BLOCKS:
                x = x + pos
        if outs_x is None:
            outs_x = x

        # merged, lane-dense store: [deep-sup | hydra... | zero pad] -> 128 lanes
        slabs = [outs_x] + hydras
        pad_cols = PACK_COLS - len(slabs) * D
        if pad_cols > 0:
            slabs.append(jnp.zeros((N_TOK, pad_cols), f32))
        out_ref[bb] = jnp.concatenate(slabs, axis=-1).astype(out_ref.dtype)


# ----------------------------- host-side glue --------------------------------
def im2patches(image, p):
    """NCHW image -> [B, L, C*p*p] rows matching Conv2d(k=p, stride=p)."""
    Bn, C, H, W = image.shape
    h, w = H // p, W // p
    x = image.reshape(Bn, C, h, p, w, p)
    x = jnp.transpose(x, (0, 2, 4, 1, 3, 5))          # B, h, w, C, p, p
    return x.reshape(Bn, h * w, C * p * p), (h, w)


def bilinear_matrix(in_h, in_w, out_h, out_w):
    """[out_h*out_w, in_h*in_w] matrix == F.interpolate(bilinear, align_corners=False)."""
    def coords(n_in, n_out):
        o = jnp.arange(n_out, dtype=jnp.float32)
        src = jnp.maximum((o + 0.5) * (n_in / n_out) - 0.5, 0.0)
        i0 = jnp.clip(jnp.floor(src).astype(jnp.int32), 0, n_in - 1)
        i1 = jnp.clip(i0 + 1, 0, n_in - 1)
        w1 = src - i0.astype(jnp.float32)
        return i0, i1, w1

    r0, r1, rw = coords(in_h, out_h)
    c0, c1, cw = coords(in_w, out_w)
    wr = (1.0 - rw)[:, None] * jax.nn.one_hot(r0, in_h) + rw[:, None] * jax.nn.one_hot(r1, in_h)
    wc = (1.0 - cw)[:, None] * jax.nn.one_hot(c0, in_w) + cw[:, None] * jax.nn.one_hot(c1, in_w)
    m = jnp.einsum('oi,pj->opij', wr, wc)             # bilinear is separable
    return m.reshape(out_h * out_w, in_h * in_w)


def prepare_side_adapter(params):
    """One-time host prep: pack everything into the f32 vslab + bf16 wslab."""
    f32 = jnp.float32
    scale = float(HD) ** -0.5

    def pad(a, rows, cols=SLAB_W):
        a = jnp.asarray(a, f32)
        if a.ndim == 1:
            a = a[None, :]
        r, c = a.shape
        return jnp.pad(a, ((0, rows - r), (0, cols - c)))

    def rows_section(vecs, total_rows):
        sec = jnp.concatenate([pad(v, 1) for v in vecs], axis=0)
        return jnp.pad(sec, ((0, total_rows - sec.shape[0]), (0, 0)))

    used = params['blocks'][:DEPTH - 1]

    # ---- f32 vector slab ----
    init_full = jnp.concatenate([params['cls_embed'] + params['cls_pos_embed'],
                                 params['pos_embed'] + params['patch_b']], axis=1)[0]
    pos_full = jnp.concatenate([params['cls_pos_embed'], params['pos_embed']], axis=1)[0]
    # TODO(synk): bicubic pos-embed resize branch untaken since grid sizes match (same branch torch takes).
    interp = jnp.concatenate([jnp.zeros((1, HC * WC), f32),
                              bilinear_matrix(HC, WC, GRID, GRID)], axis=0)

    vparts = [pad(init_full, V_POS - V_INIT),
              pad(pos_full, V_INTERP - V_POS),
              pad(interp, V_BLK - V_INTERP)]
    for p in used:
        vparts.append(rows_section(
            [p['ln1_g'], p['ln1_b'], p['ln2_g'], p['ln2_b'],
             p['bq'] * scale, p['bk'], p['bv'], p['bproj'],
             p['b1'], p['b2']], V_BLK_STRIDE))
    for t in FUSION_TARGETS:
        fp = params['fusion'][t]
        vparts.append(rows_section([fp['ln_g'], fp['ln_b'], fp['proj_b']],
                                   V_FUS_STRIDE))
    vslab = jnp.concatenate(vparts, axis=0)
    assert vslab.shape == (V_ROWS, SLAB_W), vslab.shape

    # ---- bf16 weight slab ----
    wparts = [pad(params['patch_w'], W_BLK - W_PATCH)]
    for p in used:
        wparts += [pad(p['wq'] * scale, D), pad(p['wk'], D), pad(p['wv'], D),
                   pad(p['wproj'], D), pad(p['w1'], D), pad(p['w2'], MLP_HID)]
    for t in FUSION_TARGETS:
        wparts.append(pad(params['fusion'][t]['proj_w'], W_FUS_STRIDE))
    wslab = jnp.concatenate(wparts, axis=0).astype(jnp.bfloat16)
    assert wslab.shape == (W_ROWS, SLAB_W), wslab.shape

    return vslab, wslab


def _cores_per_chip():
    """2 on multi-TensorCore chips (v7x / v4 / v5p), else 1 (v5e / v6e)."""
    try:
        kind = jax.devices()[0].device_kind.lower()
    except Exception:
        return 1
    return 2 if any(t in kind for t in ("v7", "tpu7", "v5p", "v4")) else 1


def side_adapter_forward(image, clip_feats, vslab, wslab):
    patches, _ = im2patches(image, PATCH)
    Bn = patches.shape[0]
    # row 0 reserved for CLS (zero patch contributes nothing; CLS comes from vslab)
    patches17 = jnp.concatenate([jnp.zeros((Bn, 1, KP), patches.dtype), patches], axis=1)
    n_src = clip_feats.shape[0]
    clip_flat = jnp.transpose(clip_feats, (0, 1, 3, 4, 2)).reshape(n_src, Bn, HC * WC, C_CLIP)

    cores = _cores_per_chip()
    grid_b = cores if (cores > 1 and Bn % cores == 0) else 1
    per_step = Bn // grid_b

    in_specs = [
        pl.BlockSpec((per_step, N_TOK, KP), lambda b: (b, 0, 0)),
        pl.BlockSpec((n_src, per_step, HC * WC, C_CLIP), lambda b: (0, b, 0, 0)),
        pl.BlockSpec((V_ROWS, SLAB_W), lambda b: (0, 0)),
        pl.BlockSpec((W_ROWS, SLAB_W), lambda b: (0, 0)),
    ]
    out_specs = pl.BlockSpec((per_step, N_TOK, PACK_COLS), lambda b: (b, 0, 0))

    packed = pl.pallas_call(
        functools.partial(_san_fused_kernel, per_step=per_step),
        out_shape=jax.ShapeDtypeStruct((Bn, N_TOK, PACK_COLS), jnp.float32),
        grid=(grid_b,),
        in_specs=in_specs,
        out_specs=out_specs,
        compiler_params=pltpu.CompilerParams(dimension_semantics=("parallel",)),
    )(patches17, clip_flat, vslab, wslab)

    features = packed[..., :D]                                        # deep supervision
    hydra = jnp.stack([packed[..., (1 + j) * D:(2 + j) * D]
                       for j in range(len(HYDRA_IDXS))], axis=0)
    return features, hydra


# ----------------------------- params ----------------------------------------
def init_params(key):
    ks = iter(jax.random.split(key, 64))
    nrm = lambda shape, std=0.02: std * jax.random.normal(next(ks), shape, jnp.float32)
    params = {
        'patch_w': nrm((KP, D)),
        'patch_b': jnp.zeros((D,), jnp.float32),
        'pos_embed': nrm((1, L, D)),
        'cls_embed': nrm((1, 1, D)),
        'cls_pos_embed': nrm((1, 1, D)),
    }
    blocks = []
    for _ in range(NUM_BLOCKS):
        blocks.append(dict(
            ln1_g=jnp.ones((D,), jnp.float32), ln1_b=jnp.zeros((D,), jnp.float32),
            wq=nrm((D, D)), wk=nrm((D, D)), wv=nrm((D, D)),
            bq=jnp.zeros((D,), jnp.float32), bk=jnp.zeros((D,), jnp.float32),
            bv=jnp.zeros((D,), jnp.float32),
            wproj=nrm((D, D)), bproj=jnp.zeros((D,), jnp.float32),
            ln2_g=jnp.ones((D,), jnp.float32), ln2_b=jnp.zeros((D,), jnp.float32),
            w1=nrm((D, MLP_HID)), b1=jnp.zeros((MLP_HID,), jnp.float32),
            w2=nrm((MLP_HID, D)), b2=jnp.zeros((D,), jnp.float32),
        ))
    params['blocks'] = blocks
    fusion = {}
    for tgt in FUSION_MAP:
        fusion[tgt] = dict(
            ln_g=jnp.ones((C_CLIP,), jnp.float32),
            ln_b=jnp.zeros((C_CLIP,), jnp.float32),
            proj_w=nrm((C_CLIP, D)),
            proj_b=jnp.zeros((D,), jnp.float32),
        )
    params['fusion'] = fusion
    return params


# ----------------------------- main -------------------------------------------
if __name__ == "__main__":
    root = jax.random.PRNGKey(0)
    k_params, k_img, k_clip = jax.random.split(root, 3)

    params = init_params(k_params)
    image = jax.random.normal(k_img, (B, C_IN, IMG, IMG), jnp.float32)            # NCHW
    n_src = len(set(FUSION_MAP.values()))
    clip_features = jax.random.normal(k_clip, (n_src, B, C_CLIP, HC, WC), jnp.float32)

    # one-time host prep (weight packing + bilinear matrix) — outside the per-call path
    vslab, wslab = prepare_side_adapter(params)
    forward = jax.jit(side_adapter_forward)

    features, hydra = forward(image, clip_features, vslab, wslab)
    features = jax.block_until_ready(features)
    hydra = jax.block_until_ready(hydra)

    assert features.shape == (B, L + 1, D), features.shape
    assert hydra.shape == (len(HYDRA_IDXS), B, L + 1, D), hydra.shape
    assert bool(jnp.all(jnp.isfinite(features))) and bool(jnp.all(jnp.isfinite(hydra)))
    print("KERNEL_OK")
</pallas_src>

<mosaic_0001>
module attributes {stable_mosaic.version = 11 : i64} {
  func.func @_san_fused_kernel(%arg0: i32, %arg1: memref<2x17x48xf32, #tpu.memory_space<vmem>>, %arg2: memref<2x2x64x48xf32, #tpu.memory_space<vmem>>, %arg3: memref<136x128xf32, #tpu.memory_space<vmem>>, %arg4: memref<1008x128xbf16, #tpu.memory_space<vmem>>, %arg5: memref<2x17x128xf32, #tpu.memory_space<vmem>>) attributes {dimension_semantics = [#tpu.dimension_semantics<parallel>], iteration_bounds = array<i64: 1>, scalar_prefetch = 0 : i64, scratch_operands = 0 : i64, tpu.core_type = #tpu.core_type<tc>, window_params = [{transform_indices = @transform_0, window_bounds = array<i64: 2, 17, 48>}, {transform_indices = @transform_1, window_bounds = array<i64: 2, 2, 64, 48>}, {pipeline_mode = #tpu.pipeline_mode<synchronous>, transform_indices = @transform_2, window_bounds = array<i64: 136, 128>}, {pipeline_mode = #tpu.pipeline_mode<synchronous>, transform_indices = @transform_3, window_bounds = array<i64: 1008, 128>}, {transform_indices = @transform_4, window_bounds = array<i64: 2, 17, 128>}]} {
    %0 = tpu.iota {dimensions = array<i32: 1>} : vector<17x32xi32>
    %c0_i32 = arith.constant 0 : i32
    %1 = vector.broadcast %c0_i32 : i32 to vector<17x32xi32>
    %2 = arith.cmpi sge, %0, %1 : vector<17x32xi32>
    %c8_i32 = arith.constant 8 : i32
    %3 = vector.broadcast %c8_i32 : i32 to vector<17x32xi32>
    %4 = arith.cmpi slt, %0, %3 : vector<17x32xi32>
    %5 = arith.andi %2, %4 : vector<17x32xi1>
    %6 = arith.extui %5 : vector<17x32xi1> to vector<17x32xi32>
    %7 = arith.sitofp %6 : vector<17x32xi32> to vector<17x32xf32>
    %c8_i32_0 = arith.constant 8 : i32
    %8 = vector.broadcast %c8_i32_0 : i32 to vector<17x32xi32>
    %9 = arith.cmpi sge, %0, %8 : vector<17x32xi32>
    %c16_i32 = arith.constant 16 : i32
    %10 = vector.broadcast %c16_i32 : i32 to vector<17x32xi32>
    %11 = arith.cmpi slt, %0, %10 : vector<17x32xi32>
    %12 = arith.andi %9, %11 : vector<17x32xi1>
    %13 = arith.extui %12 : vector<17x32xi1> to vector<17x32xi32>
    %14 = arith.sitofp %13 : vector<17x32xi32> to vector<17x32xf32>
    %c16_i32_1 = arith.constant 16 : i32
    %15 = vector.broadcast %c16_i32_1 : i32 to vector<17x32xi32>
    %16 = arith.cmpi sge, %0, %15 : vector<17x32xi32>
    %c24_i32 = arith.constant 24 : i32
    %17 = vector.broadcast %c24_i32 : i32 to vector<17x32xi32>
    %18 = arith.cmpi slt, %0, %17 : vector<17x32xi32>
    %19 = arith.andi %16, %18 : vector<17x32xi1>
    %20 = arith.extui %19 : vector<17x32xi1> to vector<17x32xi32>
    %21 = arith.sitofp %20 : vector<17x32xi32> to vector<17x32xf32>
    %c24_i32_2 = arith.constant 24 : i32
    %22 = vector.broadcast %c24_i32_2 : i32 to vector<17x32xi32>
    %23 = arith.cmpi sge, %0, %22 : vector<17x32xi32>
    %c32_i32 = arith.constant 32 : i32
    %24 = vector.broadcast %c32_i32 : i32 to vector<17x32xi32>
    %25 = arith.cmpi slt, %0, %24 : vector<17x32xi32>
    %26 = arith.andi %23, %25 : vector<17x32xi1>
    %27 = arith.extui %26 : vector<17x32xi1> to vector<17x32xi32>
    %28 = arith.sitofp %27 : vector<17x32xi32> to vector<17x32xf32>
    %c0 = arith.constant 0 : index
    %c0_3 = arith.constant 0 : index
    %29 = vector.load %arg3[%c0, %c0_3] : memref<136x128xf32, #tpu.memory_space<vmem>>, vector<17x32xf32>
    %c24 = arith.constant 24 : index
    %c0_4 = arith.constant 0 : index
    %30 = vector.load %arg3[%c24, %c0_4] : memref<136x128xf32, #tpu.memory_space<vmem>>, vector<17x32xf32>
    %c48 = arith.constant 48 : index
    %c0_5 = arith.constant 0 : index
    %31 = vector.load %arg3[%c48, %c0_5] : memref<136x128xf32, #tpu.memory_space<vmem>>, vector<17x64xf32>
    %c0_6 = arith.constant 0 : index
    %c0_7 = arith.constant 0 : index
    %c0_8 = arith.constant 0 : index
    %32 = vector.load %arg1[%c0_6, %c0_7, %c0_8] : memref<2x17x48xf32, #tpu.memory_space<vmem>>, vector<1x17x48xf32>
    %33 = vector.shape_cast %32 : vector<1x17x48xf32> to vector<17x48xf32>
    %c0_9 = arith.constant 0 : index
    %c0_10 = arith.constant 0 : index
    %34 = vector.load %arg4[%c0_9, %c0_10] : memref<1008x128xbf16, #tpu.memory_space<vmem>>, vector<48x32xbf16>
    %35 = arith.truncf %33 : vector<17x48xf32> to vector<17x48xbf16>
    %cst = arith.constant dense<0.000000e+00> : vector<17x32xf32>
    %36 = tpu.matmul %35, %34, %cst {dimension_numbers = #tpu.dot_dimension_numbers<[1], [0], [0], [1], [0, 0, 1, 1], [], []>} : vector<17x48xbf16>, vector<48x32xbf16>, vector<17x32xf32> -> vector<17x32xf32>
    %37 = arith.addf %36, %29 : vector<17x32xf32>
    %c0_11 = arith.constant 0 : index
    %c0_12 = arith.constant 0 : index
    %c0_13 = arith.constant 0 : index
    %c0_14 = arith.constant 0 : index
    %38 = vector.load %arg2[%c0_11, %c0_12, %c0_13, %c0_14] : memref<2x2x64x48xf32, #tpu.memory_space<vmem>>, vector<1x1x64x48xf32>
    %39 = vector.shape_cast %38 : vector<1x1x64x48xf32> to vector<64x48xf32>
    %c120 = arith.constant 120 : index
    %c0_15 = arith.constant 0 : index
    %40 = vector.load %arg3[%c120, %c0_15] : memref<136x128xf32, #tpu.memory_space<vmem>>, vector<1x48xf32>
    %41 = vector.shape_cast %40 : vector<1x48xf32> to vector<48xf32>
    %c121 = arith.constant 121 : index
    %c0_16 = arith.constant 0 : index
    %42 = vector.load %arg3[%c121, %c0_16] : memref<136x128xf32, #tpu.memory_space<vmem>>, vector<1x48xf32>
    %43 = vector.shape_cast %42 : vector<1x48xf32> to vector<48xf32>
    %cst_17 = arith.constant dense<0.000000e+00> : vector<64xf32>
    %44 = vector.multi_reduction <add>, %39, %cst_17 [1] : vector<64x48xf32> to vector<64xf32>
    %45 = vector.shape_cast %44 : vector<64xf32> to vector<64x1xf32>
    %cst_18 = arith.constant 4.800000e+01 : f32
    %46 = vector.broadcast %cst_18 : f32 to vector<64x1xf32>
    %47 = arith.divf %45, %46 : vector<64x1xf32>
    %48 = vector.broadcast %47 : vector<64x1xf32> to vector<64x48xf32>
    %49 = arith.subf %39, %48 : vector<64x48xf32>
    %50 = arith.mulf %49, %49 : vector<64x48xf32>
    %cst_19 = arith.constant dense<0.000000e+00> : vector<64xf32>
    %51 = vector.multi_reduction <add>, %50, %cst_19 [1] : vector<64x48xf32> to vector<64xf32>
    %52 = vector.shape_cast %51 : vector<64xf32> to vector<64x1xf32>
    %cst_20 = arith.constant 4.800000e+01 : f32
    %53 = vector.broadcast %cst_20 : f32 to vector<64x1xf32>
    %54 = arith.divf %52, %53 : vector<64x1xf32>
    %55 = vector.broadcast %47 : vector<64x1xf32> to vector<64x48xf32>
    %56 = arith.subf %39, %55 : vector<64x48xf32>
    %cst_21 = arith.constant 9.99999997E-7 : f32
    %57 = vector.broadcast %cst_21 : f32 to vector<64x1xf32>
    %58 = arith.addf %54, %57 : vector<64x1xf32>
    %59 = math.rsqrt %58 : vector<64x1xf32>
    %60 = vector.broadcast %59 : vector<64x1xf32> to vector<64x48xf32>
    %61 = arith.mulf %56, %60 : vector<64x48xf32>
    %62 = vector.shape_cast %41 : vector<48xf32> to vector<1x48xf32>
    %63 = vector.broadcast %62 : vector<1x48xf32> to vector<64x48xf32>
    %64 = arith.mulf %61, %63 : vector<64x48xf32>
    %65 = vector.shape_cast %43 : vector<48xf32> to vector<1x48xf32>
    %66 = vector.broadcast %65 : vector<1x48xf32> to vector<64x48xf32>
    %67 = arith.addf %64, %66 : vector<64x48xf32>
    %c912 = arith.constant 912 : index
    %c0_22 = arith.constant 0 : index
    %68 = vector.load %arg4[%c912, %c0_22] : memref<1008x128xbf16, #tpu.memory_space<vmem>>, vector<48x32xbf16>
    %69 = arith.truncf %67 : vector<64x48xf32> to vector<64x48xbf16>
    %cst_23 = arith.constant dense<0.000000e+00> : vector<64x32xf32>
    %70 = tpu.matmul %69, %68, %cst_23 {dimension_numbers = #tpu.dot_dimension_numbers<[1], [0], [0], [1], [0, 0, 1, 1], [], []>} : vector<64x48xbf16>, vector<48x32xbf16>, vector<64x32xf32> -> vector<64x32xf32>
    %c122 = arith.constant 122 : index
    %c0_24 = arith.constant 0 : index
    %71 = vector.load %arg3[%c122, %c0_24] : memref<136x128xf32, #tpu.memory_space<vmem>>, vector<1x32xf32>
    %72 = vector.shape_cast %71 : vector<1x32xf32> to vector<32xf32>
    %73 = vector.shape_cast %72 : vector<32xf32> to vector<1x32xf32>
    %74 = vector.broadcast %73 : vector<1x32xf32> to vector<64x32xf32>
    %75 = arith.addf %70, %74 : vector<64x32xf32>
    %76 = arith.truncf %31 : vector<17x64xf32> to vector<17x64xbf16>
    %77 = arith.truncf %75 : vector<64x32xf32> to vector<64x32xbf16>
    %cst_25 = arith.constant dense<0.000000e+00> : vector<17x32xf32>
    %78 = tpu.matmul %76, %77, %cst_25 {dimension_numbers = #tpu.dot_dimension_numbers<[1], [0], [0], [1], [0, 0, 1, 1], [], []>} : vector<17x64xbf16>, vector<64x32xbf16>, vector<17x32xf32> -> vector<17x32xf32>
    %79 = arith.addf %37, %78 : vector<17x32xf32>
    %c72 = arith.constant 72 : index
    %c0_26 = arith.constant 0 : index
    %80 = vector.load %arg3[%c72, %c0_26] : memref<136x128xf32, #tpu.memory_space<vmem>>, vector<1x32xf32>
    %81 = vector.shape_cast %80 : vector<1x32xf32> to vector<32xf32>
    %c73 = arith.constant 73 : index
    %c0_27 = arith.constant 0 : index
    %82 = vector.load %arg3[%c73, %c0_27] : memref<136x128xf32, #tpu.memory_space<vmem>>, vector<1x32xf32>
    %83 = vector.shape_cast %82 : vector<1x32xf32> to vector<32xf32>
    %cst_28 = arith.constant dense<0.000000e+00> : vector<17xf32>
    %84 = vector.multi_reduction <add>, %79, %cst_28 [1] : vector<17x32xf32> to vector<17xf32>
    %85 = vector.shape_cast %84 : vector<17xf32> to vector<17x1xf32>
    %cst_29 = arith.constant 3.200000e+01 : f32
    %86 = vector.broadcast %cst_29 : f32 to vector<17x1xf32>
    %87 = arith.divf %85, %86 : vector<17x1xf32>
    %88 = vector.broadcast %87 : vector<17x1xf32> to vector<17x32xf32>
    %89 = arith.subf %79, %88 : vector<17x32xf32>
    %90 = arith.mulf %89, %89 : vector<17x32xf32>
    %cst_30 = arith.constant dense<0.000000e+00> : vector<17xf32>
    %91 = vector.multi_reduction <add>, %90, %cst_30 [1] : vector<17x32xf32> to vector<17xf32>
    %92 = vector.shape_cast %91 : vector<17xf32> to vector<17x1xf32>
    %cst_31 = arith.constant 3.200000e+01 : f32
    %93 = vector.broadcast %cst_31 : f32 to vector<17x1xf32>
    %94 = arith.divf %92, %93 : vector<17x1xf32>
    %95 = vector.broadcast %87 : vector<17x1xf32> to vector<17x32xf32>
    %96 = arith.subf %79, %95 : vector<17x32xf32>
    %cst_32 = arith.constant 9.99999997E-7 : f32
    %97 = vector.broadcast %cst_32 : f32 to vector<17x1xf32>
    %98 = arith.addf %94, %97 : vector<17x1xf32>
    %99 = math.rsqrt %98 : vector<17x1xf32>
    %100 = vector.broadcast %99 : vector<17x1xf32> to vector<17x32xf32>
    %101 = arith.mulf %96, %100 : vector<17x32xf32>
    %102 = vector.shape_cast %81 : vector<32xf32> to vector<1x32xf32>
    %103 = vector.broadcast %102 : vector<1x32xf32> to vector<17x32xf32>
    %104 = arith.mulf %101, %103 : vector<17x32xf32>
    %105 = vector.shape_cast %83 : vector<32xf32> to vector<1x32xf32>
    %106 = vector.broadcast %105 : vector<1x32xf32> to vector<17x32xf32>
    %107 = arith.addf %104, %106 : vector<17x32xf32>
    %c48_33 = arith.constant 48 : index
    %c0_34 = arith.constant 0 : index
    %108 = vector.load %arg4[%c48_33, %c0_34] : memref<1008x128xbf16, #tpu.memory_space<vmem>>, vector<32x32xbf16>
    %109 = arith.truncf %107 : vector<17x32xf32> to vector<17x32xbf16>
    %cst_35 = arith.constant dense<0.000000e+00> : vector<17x32xf32>
    %110 = tpu.matmul %109, %108, %cst_35 {dimension_numbers = #tpu.dot_dimension_numbers<[1], [0], [0], [1], [0, 0, 1, 1], [], []>} : vector<17x32xbf16>, vector<32x32xbf16>, vector<17x32xf32> -> vector<17x32xf32>
    %c76 = arith.constant 76 : index
    %c0_36 = arith.constant 0 : index
    %111 = vector.load %arg3[%c76, %c0_36] : memref<136x128xf32, #tpu.memory_space<vmem>>, vector<1x32xf32>
    %112 = vector.shape_cast %111 : vector<1x32xf32> to vector<32xf32>
    %113 = vector.shape_cast %112 : vector<32xf32> to vector<1x32xf32>
    %114 = vector.broadcast %113 : vector<1x32xf32> to vector<17x32xf32>
    %115 = arith.addf %110, %114 : vector<17x32xf32>
    %c80 = arith.constant 80 : index
    %c0_37 = arith.constant 0 : index
    %116 = vector.load %arg4[%c80, %c0_37] : memref<1008x128xbf16, #tpu.memory_space<vmem>>, vector<32x32xbf16>
    %117 = arith.truncf %107 : vector<17x32xf32> to vector<17x32xbf16>
    %cst_38 = arith.constant dense<0.000000e+00> : vector<17x32xf32>
    %118 = tpu.matmul %117, %116, %cst_38 {dimension_numbers = #tpu.dot_dimension_numbers<[1], [0], [0], [1], [0, 0, 1, 1], [], []>} : vector<17x32xbf16>, vector<32x32xbf16>, vector<17x32xf32> -> vector<17x32xf32>
    %c77 = arith.constant 77 : index
    %c0_39 = arith.constant 0 : index
    %119 = vector.load %arg3[%c77, %c0_39] : memref<136x128xf32, #tpu.memory_space<vmem>>, vector<1x32xf32>
    %120 = vector.shape_cast %119 : vector<1x32xf32> to vector<32xf32>
    %121 = vector.shape_cast %120 : vector<32xf32> to vector<1x32xf32>
    %122 = vector.broadcast %121 : vector<1x32xf32> to vector<17x32xf32>
    %123 = arith.addf %118, %122 : vector<17x32xf32>
    %c112 = arith.constant 112 : index
    %c0_40 = arith.constant 0 : index
    %124 = vector.load %arg4[%c112, %c0_40] : memref<1008x128xbf16, #tpu.memory_space<vmem>>, vector<32x32xbf16>
    %125 = arith.truncf %107 : vector<17x32xf32> to vector<17x32xbf16>
    %cst_41 = arith.constant dense<0.000000e+00> : vector<17x32xf32>
    %126 = tpu.matmul %125, %124, %cst_41 {dimension_numbers = #tpu.dot_dimension_numbers<[1], [0], [0], [1], [0, 0, 1, 1], [], []>} : vector<17x32xbf16>, vector<32x32xbf16>, vector<17x32xf32> -> vector<17x32xf32>
    %c78 = arith.constant 78 : index
    %c0_42 = arith.constant 0 : index
    %127 = vector.load %arg3[%c78, %c0_42] : memref<136x128xf32, #tpu.memory_space<vmem>>, vector<1x32xf32>
    %128 = vector.shape_cast %127 : vector<1x32xf32> to vector<32xf32>
    %129 = vector.shape_cast %128 : vector<32xf32> to vector<1x32xf32>
    %130 = vector.broadcast %129 : vector<1x32xf32> to vector<17x32xf32>
    %131 = arith.addf %126, %130 : vector<17x32xf32>
    %132 = arith.truncf %123 : vector<17x32xf32> to vector<17x32xbf16>
    %cst_43 = arith.constant 0.000000e+00 : f32
    %133 = vector.broadcast %cst_43 : f32 to vector<17x32xf32>
    %134 = arith.mulf %115, %7 : vector<17x32xf32>
    %135 = arith.truncf %134 : vector<17x32xf32> to vector<17x32xbf16>
    %136 = arith.mulf %131, %7 : vector<17x32xf32>
    %137 = arith.truncf %136 : vector<17x32xf32> to vector<17x32xbf16>
    %cst_44 = arith.constant dense<0.000000e+00> : vector<17x17xf32>
    %138 = tpu.matmul %135, %132, %cst_44 {dimension_numbers = #tpu.dot_dimension_numbers<[1], [1], [0], [0], [0, 0, 1, 0], [], []>} : vector<17x32xbf16>, vector<17x32xbf16>, vector<17x17xf32> -> vector<17x17xf32>
    %cst_45 = arith.constant dense<0xFF800000> : vector<17xf32>
    %139 = vector.multi_reduction <maximumf>, %138, %cst_45 [1] : vector<17x17xf32> to vector<17xf32>
    %140 = vector.shape_cast %139 : vector<17xf32> to vector<17x1xf32>
    %141 = vector.broadcast %140 : vector<17x1xf32> to vector<17x17xf32>
    %142 = arith.subf %138, %141 : vector<17x17xf32>
    %143 = math.exp %142 : vector<17x17xf32>
    %cst_46 = arith.constant dense<0.000000e+00> : vector<17xf32>
    %144 = vector.multi_reduction <add>, %143, %cst_46 [1] : vector<17x17xf32> to vector<17xf32>
    %145 = vector.shape_cast %144 : vector<17xf32> to vector<17x1xf32>
    %146 = tpu.reciprocal %145 {approx = true} : vector<17x1xf32> -> vector<17x1xf32>
    %147 = vector.broadcast %146 : vector<17x1xf32> to vector<17x17xf32>
    %148 = arith.mulf %143, %147 : vector<17x17xf32>
    %149 = arith.truncf %148 : vector<17x17xf32> to vector<17x17xbf16>
    %cst_47 = arith.constant dense<0.000000e+00> : vector<17x32xf32>
    %150 = tpu.matmul %149, %137, %cst_47 {dimension_numbers = #tpu.dot_dimension_numbers<[1], [0], [0], [1], [0, 0, 1, 1], [], []>} : vector<17x17xbf16>, vector<17x32xbf16>, vector<17x32xf32> -> vector<17x32xf32>
    %151 = arith.addf %133, %150 : vector<17x32xf32>
    %152 = arith.mulf %115, %14 : vector<17x32xf32>
    %153 = arith.truncf %152 : vector<17x32xf32> to vector<17x32xbf16>
    %154 = arith.mulf %131, %14 : vector<17x32xf32>
    %155 = arith.truncf %154 : vector<17x32xf32> to vector<17x32xbf16>
    %cst_48 = arith.constant dense<0.000000e+00> : vector<17x17xf32>
    %156 = tpu.matmul %153, %132, %cst_48 {dimension_numbers = #tpu.dot_dimension_numbers<[1], [1], [0], [0], [0, 0, 1, 0], [], []>} : vector<17x32xbf16>, vector<17x32xbf16>, vector<17x17xf32> -> vector<17x17xf32>
    %cst_49 = arith.constant dense<0xFF800000> : vector<17xf32>
    %157 = vector.multi_reduction <maximumf>, %156, %cst_49 [1] : vector<17x17xf32> to vector<17xf32>
    %158 = vector.shape_cast %157 : vector<17xf32> to vector<17x1xf32>
    %159 = vector.broadcast %158 : vector<17x1xf32> to vector<17x17xf32>
    %160 = arith.subf %156, %159 : vector<17x17xf32>
    %161 = math.exp %160 : vector<17x17xf32>
    %cst_50 = arith.constant dense<0.000000e+00> : vector<17xf32>
    %162 = vector.multi_reduction <add>, %161, %cst_50 [1] : vector<17x17xf32> to vector<17xf32>
    %163 = vector.shape_cast %162 : vector<17xf32> to vector<17x1xf32>
    %164 = tpu.reciprocal %163 {approx = true} : vector<17x1xf32> -> vector<17x1xf32>
    %165 = vector.broadcast %164 : vector<17x1xf32> to vector<17x17xf32>
    %166 = arith.mulf %161, %165 : vector<17x17xf32>
    %167 = arith.truncf %166 : vector<17x17xf32> to vector<17x17xbf16>
    %cst_51 = arith.constant dense<0.000000e+00> : vector<17x32xf32>
    %168 = tpu.matmul %167, %155, %cst_51 {dimension_numbers = #tpu.dot_dimension_numbers<[1], [0], [0], [1], [0, 0, 1, 1], [], []>} : vector<17x17xbf16>, vector<17x32xbf16>, vector<17x32xf32> -> vector<17x32xf32>
    %169 = arith.addf %151, %168 : vector<17x32xf32>
    %170 = arith.mulf %115, %21 : vector<17x32xf32>
    %171 = arith.truncf %170 : vector<17x32xf32> to vector<17x32xbf16>
    %172 = arith.mulf %131, %21 : vector<17x32xf32>
    %173 = arith.truncf %172 : vector<17x32xf32> to vector<17x32xbf16>
    %cst_52 = arith.constant dense<0.000000e+00> : vector<17x17xf32>
    %174 = tpu.matmul %171, %132, %cst_52 {dimension_numbers = #tpu.dot_dimension_numbers<[1], [1], [0], [0], [0, 0, 1, 0], [], []>} : vector<17x32xbf16>, vector<17x32xbf16>, vector<17x17xf32> -> vector<17x17xf32>
    %cst_53 = arith.constant dense<0xFF800000> : vector<17xf32>
    %175 = vector.multi_reduction <maximumf>, %174, %cst_53 [1] : vector<17x17xf32> to vector<17xf32>
    %176 = vector.shape_cast %175 : vector<17xf32> to vector<17x1xf32>
    %177 = vector.broadcast %176 : vector<17x1xf32> to vector<17x17xf32>
    %178 = arith.subf %174, %177 : vector<17x17xf32>
    %179 = math.exp %178 : vector<17x17xf32>
    %cst_54 = arith.constant dense<0.000000e+00> : vector<17xf32>
    %180 = vector.multi_reduction <add>, %179, %cst_54 [1] : vector<17x17xf32> to vector<17xf32>
    %181 = vector.shape_cast %180 : vector<17xf32> to vector<17x1xf32>
    %182 = tpu.reciprocal %181 {approx = true} : vector<17x1xf32> -> vector<17x1xf32>
    %183 = vector.broadcast %182 : vector<17x1xf32> to vector<17x17xf32>
    %184 = arith.mulf %179, %183 : vector<17x17xf32>
    %185 = arith.truncf %184 : vector<17x17xf32> to vector<17x17xbf16>
    %cst_55 = arith.constant dense<0.000000e+00> : vector<17x32xf32>
    %186 = tpu.matmul %185, %173, %cst_55 {dimension_numbers = #tpu.dot_dimension_numbers<[1], [0], [0], [1], [0, 0, 1, 1], [], []>} : vector<17x17xbf16>, vector<17x32xbf16>, vector<17x32xf32> -> vector<17x32xf32>
    %187 = arith.addf %169, %186 : vector<17x32xf32>
    %188 = arith.mulf %115, %28 : vector<17x32xf32>
    %189 = arith.truncf %188 : vector<17x32xf32> to vector<17x32xbf16>
    %190 = arith.mulf %131, %28 : vector<17x32xf32>
    %191 = arith.truncf %190 : vector<17x32xf32> to vector<17x32xbf16>
    %cst_56 = arith.constant dense<0.000000e+00> : vector<17x17xf32>
    %192 = tpu.matmul %189, %132, %cst_56 {dimension_numbers = #tpu.dot_dimension_numbers<[1], [1], [0], [0], [0, 0, 1, 0], [], []>} : vector<17x32xbf16>, vector<17x32xbf16>, vector<17x17xf32> -> vector<17x17xf32>
    %cst_57 = arith.constant dense<0xFF800000> : vector<17xf32>
    %193 = vector.multi_reduction <maximumf>, %192, %cst_57 [1] : vector<17x17xf32> to vector<17xf32>
    %194 = vector.shape_cast %193 : vector<17xf32> to vector<17x1xf32>
    %195 = vector.broadcast %194 : vector<17x1xf32> to vector<17x17xf32>
    %196 = arith.subf %192, %195 : vector<17x17xf32>
    %197 = math.exp %196 : vector<17x17xf32>
    %cst_58 = arith.constant dense<0.000000e+00> : vector<17xf32>
    %198 = vector.multi_reduction <add>, %197, %cst_58 [1] : vector<17x17xf32> to vector<17xf32>
    %199 = vector.shape_cast %198 : vector<17xf32> to vector<17x1xf32>
    %200 = tpu.reciprocal %199 {approx = true} : vector<17x1xf32> -> vector<17x1xf32>
    %201 = vector.broadcast %200 : vector<17x1xf32> to vector<17x17xf32>
    %202 = arith.mulf %197, %201 : vector<17x17xf32>
    %203 = arith.truncf %202 : vector<17x17xf32> to vector<17x17xbf16>
    %cst_59 = arith.constant dense<0.000000e+00> : vector<17x32xf32>
    %204 = tpu.matmul %203, %191, %cst_59 {dimension_numbers = #tpu.dot_dimension_numbers<[1], [0], [0], [1], [0, 0, 1, 1], [], []>} : vector<17x17xbf16>, vector<17x32xbf16>, vector<17x32xf32> -> vector<17x32xf32>
    %205 = arith.addf %187, %204 : vector<17x32xf32>
    %c144 = arith.constant 144 : index
    %c0_60 = arith.constant 0 : index
    %206 = vector.load %arg4[%c144, %c0_60] : memref<1008x128xbf16, #tpu.memory_space<vmem>>, vector<32x32xbf16>
    %207 = arith.truncf %205 : vector<17x32xf32> to vector<17x32xbf16>
    %cst_61 = arith.constant dense<0.000000e+00> : vector<17x32xf32>
    %208 = tpu.matmul %207, %206, %cst_61 {dimension_numbers = #tpu.dot_dimension_numbers<[1], [0], [0], [1], [0, 0, 1, 1], [], []>} : vector<17x32xbf16>, vector<32x32xbf16>, vector<17x32xf32> -> vector<17x32xf32>
    %209 = arith.addf %79, %208 : vector<17x32xf32>
    %c79 = arith.constant 79 : index
    %c0_62 = arith.constant 0 : index
    %210 = vector.load %arg3[%c79, %c0_62] : memref<136x128xf32, #tpu.memory_space<vmem>>, vector<1x32xf32>
    %211 = vector.shape_cast %210 : vector<1x32xf32> to vector<32xf32>
    %212 = vector.shape_cast %211 : vector<32xf32> to vector<1x32xf32>
    %213 = vector.broadcast %212 : vector<1x32xf32> to vector<17x32xf32>
    %214 = arith.addf %209, %213 : vector<17x32xf32>
    %c74 = arith.constant 74 : index
    %c0_63 = arith.constant 0 : index
    %215 = vector.load %arg3[%c74, %c0_63] : memref<136x128xf32, #tpu.memory_space<vmem>>, vector<1x32xf32>
    %216 = vector.shape_cast %215 : vector<1x32xf32> to vector<32xf32>
    %c75 = arith.constant 75 : index
    %c0_64 = arith.constant 0 : index
    %217 = vector.load %arg3[%c75, %c0_64] : memref<136x128xf32, #tpu.memory_space<vmem>>, vector<1x32xf32>
    %218 = vector.shape_cast %217 : vector<1x32xf32> to vector<32xf32>
    %cst_65 = arith.constant dense<0.000000e+00> : vector<17xf32>
    %219 = vector.multi_reduction <add>, %214, %cst_65 [1] : vector<17x32xf32> to vector<17xf32>
    %220 = vector.shape_cast %219 : vector<17xf32> to vector<17x1xf32>
    %cst_66 = arith.constant 3.200000e+01 : f32
    %221 = vector.broadcast %cst_66 : f32 to vector<17x1xf32>
    %222 = arith.divf %220, %221 : vector<17x1xf32>
    %223 = vector.broadcast %222 : vector<17x1xf32> to vector<17x32xf32>
    %224 = arith.subf %214, %223 : vector<17x32xf32>
    %225 = arith.mulf %224, %224 : vector<17x32xf32>
    %cst_67 = arith.constant dense<0.000000e+00> : vector<17xf32>
    %226 = vector.multi_reduction <add>, %225, %cst_67 [1] : vector<17x32xf32> to vector<17xf32>
    %227 = vector.shape_cast %226 : vector<17xf32> to vector<17x1xf32>
    %cst_68 = arith.constant 3.200000e+01 : f32
    %228 = vector.broadcast %cst_68 : f32 to vector<17x1xf32>
    %229 = arith.divf %227, %228 : vector<17x1xf32>
    %230 = vector.broadcast %222 : vector<17x1xf32> to vector<17x32xf32>
    %231 = arith.subf %214, %230 : vector<17x32xf32>
    %cst_69 = arith.constant 9.99999997E-7 : f32
    %232 = vector.broadcast %cst_69 : f32 to vector<17x1xf32>
    %233 = arith.addf %229, %232 : vector<17x1xf32>
    %234 = math.rsqrt %233 : vector<17x1xf32>
    %235 = vector.broadcast %234 : vector<17x1xf32> to vector<17x32xf32>
    %236 = arith.mulf %231, %235 : vector<17x32xf32>
    %237 = vector.shape_cast %216 : vector<32xf32> to vector<1x32xf32>
    %238 = vector.broadcast %237 : vector<1x32xf32> to vector<17x32xf32>
    %239 = arith.mulf %236, %238 : vector<17x32xf32>
    %240 = vector.shape_cast %218 : vector<32xf32> to vector<1x32xf32>
    %241 = vector.broadcast %240 : vector<1x32xf32> to vector<17x32xf32>
    %242 = arith.addf %239, %241 : vector<17x32xf32>
    %c176 = arith.constant 176 : index
    %c0_70 = arith.constant 0 : index
    %243 = vector.load %arg4[%c176, %c0_70] : memref<1008x128xbf16, #tpu.memory_space<vmem>>, vector<32x128xbf16>
    %244 = arith.truncf %242 : vector<17x32xf32> to vector<17x32xbf16>
    %cst_71 = arith.constant dense<0.000000e+00> : vector<17x128xf32>
    %245 = tpu.matmul %244, %243, %cst_71 {dimension_numbers = #tpu.dot_dimension_numbers<[1], [0], [0], [1], [0, 0, 1, 1], [], []>} : vector<17x32xbf16>, vector<32x128xbf16>, vector<17x128xf32> -> vector<17x128xf32>
    %c80_72 = arith.constant 80 : index
    %c0_73 = arith.constant 0 : index
    %246 = vector.load %arg3[%c80_72, %c0_73] : memref<136x128xf32, #tpu.memory_space<vmem>>, vector<1x128xf32>
    %247 = vector.shape_cast %246 : vector<1x128xf32> to vector<128xf32>
    %248 = vector.shape_cast %247 : vector<128xf32> to vector<1x128xf32>
    %249 = vector.broadcast %248 : vector<1x128xf32> to vector<17x128xf32>
    %250 = arith.addf %245, %249 : vector<17x128xf32>
    %cst_74 = arith.constant 5.000000e-01 : f32
    %251 = vector.broadcast %cst_74 : f32 to vector<17x128xf32>
    %252 = arith.mulf %251, %250 : vector<17x128xf32>
    %253 = arith.mulf %250, %250 : vector<17x128xf32>
    %254 = arith.mulf %253, %250 : vector<17x128xf32>
    %cst_75 = arith.constant 4.471500e-02 : f32
    %255 = vector.broadcast %cst_75 : f32 to vector<17x128xf32>
    %256 = arith.mulf %255, %254 : vector<17x128xf32>
    %257 = arith.addf %250, %256 : vector<17x128xf32>
    %cst_76 = arith.constant 0.797884583 : f32
    %258 = vector.broadcast %cst_76 : f32 to vector<17x128xf32>
    %259 = arith.mulf %258, %257 : vector<17x128xf32>
    %260 = math.tanh %259 : vector<17x128xf32>
    %cst_77 = arith.constant 1.000000e+00 : f32
    %261 = vector.broadcast %cst_77 : f32 to vector<17x128xf32>
    %262 = arith.addf %261, %260 : vector<17x128xf32>
    %263 = arith.mulf %252, %262 : vector<17x128xf32>
    %c208 = arith.constant 208 : index
    %c0_78 = arith.constant 0 : index
    %264 = vector.load %arg4[%c208, %c0_78] : memref<1008x128xbf16, #tpu.memory_space<vmem>>, vector<128x32xbf16>
    %265 = arith.truncf %263 : vector<17x128xf32> to vector<17x128xbf16>
    %cst_79 = arith.constant dense<0.000000e+00> : vector<17x32xf32>
    %266 = tpu.matmul %265, %264, %cst_79 {dimension_numbers = #tpu.dot_dimension_numbers<[1], [0], [0], [1], [0, 0, 1, 1], [], []>} : vector<17x128xbf16>, vector<128x32xbf16>, vector<17x32xf32> -> vector<17x32xf32>
    %267 = arith.addf %214, %266 : vector<17x32xf32>
    %c81 = arith.constant 81 : index
    %c0_80 = arith.constant 0 : index
    %268 = vector.load %arg3[%c81, %c0_80] : memref<136x128xf32, #tpu.memory_space<vmem>>, vector<1x32xf32>
    %269 = vector.shape_cast %268 : vector<1x32xf32> to vector<32xf32>
    %270 = vector.shape_cast %269 : vector<32xf32> to vector<1x32xf32>
    %271 = vector.broadcast %270 : vector<1x32xf32> to vector<17x32xf32>
    %272 = arith.addf %267, %271 : vector<17x32xf32>
    %273 = arith.addf %272, %30 : vector<17x32xf32>
    %c88 = arith.constant 88 : index
    %c0_81 = arith.constant 0 : index
    %274 = vector.load %arg3[%c88, %c0_81] : memref<136x128xf32, #tpu.memory_space<vmem>>, vector<1x32xf32>
    %275 = vector.shape_cast %274 : vector<1x32xf32> to vector<32xf32>
    %c89 = arith.constant 89 : index
    %c0_82 = arith.constant 0 : index
    %276 = vector.load %arg3[%c89, %c0_82] : memref<136x128xf32, #tpu.memory_space<vmem>>, vector<1x32xf32>
    %277 = vector.shape_cast %276 : vector<1x32xf32> to vector<32xf32>
    %cst_83 = arith.constant dense<0.000000e+00> : vector<17xf32>
    %278 = vector.multi_reduction <add>, %273, %cst_83 [1] : vector<17x32xf32> to vector<17xf32>
    %279 = vector.shape_cast %278 : vector<17xf32> to vector<17x1xf32>
    %cst_84 = arith.constant 3.200000e+01 : f32
    %280 = vector.broadcast %cst_84 : f32 to vector<17x1xf32>
    %281 = arith.divf %279, %280 : vector<17x1xf32>
    %282 = vector.broadcast %281 : vector<17x1xf32> to vector<17x32xf32>
    %283 = arith.subf %273, %282 : vector<17x32xf32>
    %284 = arith.mulf %283, %283 : vector<17x32xf32>
    %cst_85 = arith.constant dense<0.000000e+00> : vector<17xf32>
    %285 = vector.multi_reduction <add>, %284, %cst_85 [1] : vector<17x32xf32> to vector<17xf32>
    %286 = vector.shape_cast %285 : vector<17xf32> to vector<17x1xf32>
    %cst_86 = arith.constant 3.200000e+01 : f32
    %287 = vector.broadcast %cst_86 : f32 to vector<17x1xf32>
    %288 = arith.divf %286, %287 : vector<17x1xf32>
    %289 = vector.broadcast %281 : vector<17x1xf32> to vector<17x32xf32>
    %290 = arith.subf %273, %289 : vector<17x32xf32>
    %cst_87 = arith.constant 9.99999997E-7 : f32
    %291 = vector.broadcast %cst_87 : f32 to vector<17x1xf32>
    %292 = arith.addf %288, %291 : vector<17x1xf32>
    %293 = math.rsqrt %292 : vector<17x1xf32>
    %294 = vector.broadcast %293 : vector<17x1xf32> to vector<17x32xf32>
    %295 = arith.mulf %290, %294 : vector<17x32xf32>
    %296 = vector.shape_cast %275 : vector<32xf32> to vector<1x32xf32>
    %297 = vector.broadcast %296 : vector<1x32xf32> to vector<17x32xf32>
    %298 = arith.mulf %295, %297 : vector<17x32xf32>
    %299 = vector.shape_cast %277 : vector<32xf32> to vector<1x32xf32>
    %300 = vector.broadcast %299 : vector<1x32xf32> to vector<17x32xf32>
    %301 = arith.addf %298, %300 : vector<17x32xf32>
    %c336 = arith.constant 336 : index
    %c0_88 = arith.constant 0 : index
    %302 = vector.load %arg4[%c336, %c0_88] : memref<1008x128xbf16, #tpu.memory_space<vmem>>, vector<32x32xbf16>
    %303 = arith.truncf %301 : vector<17x32xf32> to vector<17x32xbf16>
    %cst_89 = arith.constant dense<0.000000e+00> : vector<17x32xf32>
    %304 = tpu.matmul %303, %302, %cst_89 {dimension_numbers = #tpu.dot_dimension_numbers<[1], [0], [0], [1], [0, 0, 1, 1], [], []>} : vector<17x32xbf16>, vector<32x32xbf16>, vector<17x32xf32> -> vector<17x32xf32>
    %c92 = arith.constant 92 : index
    %c0_90 = arith.constant 0 : index
    %305 = vector.load %arg3[%c92, %c0_90] : memref<136x128xf32, #tpu.memory_space<vmem>>, vector<1x32xf32>
    %306 = vector.shape_cast %305 : vector<1x32xf32> to vector<32xf32>
    %307 = vector.shape_cast %306 : vector<32xf32> to vector<1x32xf32>
    %308 = vector.broadcast %307 : vector<1x32xf32> to vector<17x32xf32>
    %309 = arith.addf %304, %308 : vector<17x32xf32>
    %c368 = arith.constant 368 : index
    %c0_91 = arith.constant 0 : index
    %310 = vector.load %arg4[%c368, %c0_91] : memref<1008x128xbf16, #tpu.memory_space<vmem>>, vector<32x32xbf16>
    %311 = arith.truncf %301 : vector<17x32xf32> to vector<17x32xbf16>
    %cst_92 = arith.constant dense<0.000000e+00> : vector<17x32xf32>
    %312 = tpu.matmul %311, %310, %cst_92 {dimension_numbers = #tpu.dot_dimension_numbers<[1], [0], [0], [1], [0, 0, 1, 1], [], []>} : vector<17x32xbf16>, vector<32x32xbf16>, vector<17x32xf32> -> vector<17x32xf32>
    %c93 = arith.constant 93 : index
    %c0_93 = arith.constant 0 : index
    %313 = vector.load %arg3[%c93, %c0_93] : memref<136x128xf32, #tpu.memory_space<vmem>>, vector<1x32xf32>
    %314 = vector.shape_cast %313 : vector<1x32xf32> to vector<32xf32>
    %315 = vector.shape_cast %314 : vector<32xf32> to vector<1x32xf32>
    %316 = vector.broadcast %315 : vector<1x32xf32> to vector<17x32xf32>
    %317 = arith.addf %312, %316 : vector<17x32xf32>
    %c400 = arith.constant 400 : index
    %c0_94 = arith.constant 0 : index
    %318 = vector.load %arg4[%c400, %c0_94] : memref<1008x128xbf16, #tpu.memory_space<vmem>>, vector<32x32xbf16>
    %319 = arith.truncf %301 : vector<17x32xf32> to vector<17x32xbf16>
    %cst_95 = arith.constant dense<0.000000e+00> : vector<17x32xf32>
    %320 = tpu.matmul %319, %318, %cst_95 {dimension_numbers = #tpu.dot_dimension_numbers<[1], [0], [0], [1], [0, 0, 1, 1], [], []>} : vector<17x32xbf16>, vector<32x32xbf16>, vector<17x32xf32> -> vector<17x32xf32>
    %c94 = arith.constant 94 : index
    %c0_96 = arith.constant 0 : index
    %321 = vector.load %arg3[%c94, %c0_96] : memref<136x128xf32, #tpu.memory_space<vmem>>, vector<1x32xf32>
    %322 = vector.shape_cast %321 : vector<1x32xf32> to vector<32xf32>
    %323 = vector.shape_cast %322 : vector<32xf32> to vector<1x32xf32>
    %324 = vector.broadcast %323 : vector<1x32xf32> to vector<17x32xf32>
    %325 = arith.addf %320, %324 : vector<17x32xf32>
    %326 = arith.truncf %317 : vector<17x32xf32> to vector<17x32xbf16>
    %cst_97 = arith.constant 0.000000e+00 : f32
    %327 = vector.broadcast %cst_97 : f32 to vector<17x32xf32>
    %328 = arith.mulf %309, %7 : vector<17x32xf32>
    %329 = arith.truncf %328 : vector<17x32xf32> to vector<17x32xbf16>
    %330 = arith.mulf %325, %7 : vector<17x32xf32>
    %331 = arith.truncf %330 : vector<17x32xf32> to vector<17x32xbf16>
    %cst_98 = arith.constant dense<0.000000e+00> : vector<17x17xf32>
    %332 = tpu.matmul %329, %326, %cst_98 {dimension_numbers = #tpu.dot_dimension_numbers<[1], [1], [0], [0], [0, 0, 1, 0], [], []>} : vector<17x32xbf16>, vector<17x32xbf16>, vector<17x17xf32> -> vector<17x17xf32>
    %cst_99 = arith.constant dense<0xFF800000> : vector<17xf32>
    %333 = vector.multi_reduction <maximumf>, %332, %cst_99 [1] : vector<17x17xf32> to vector<17xf32>
    %334 = vector.shape_cast %333 : vector<17xf32> to vector<17x1xf32>
    %335 = vector.broadcast %334 : vector<17x1xf32> to vector<17x17xf32>
    %336 = arith.subf %332, %335 : vector<17x17xf32>
    %337 = math.exp %336 : vector<17x17xf32>
    %cst_100 = arith.constant dense<0.000000e+00> : vector<17xf32>
    %338 = vector.multi_reduction <add>, %337, %cst_100 [1] : vector<17x17xf32> to vector<17xf32>
    %339 = vector.shape_cast %338 : vector<17xf32> to vector<17x1xf32>
    %340 = tpu.reciprocal %339 {approx = true} : vector<17x1xf32> -> vector<17x1xf32>
    %341 = vector.broadcast %340 : vector<17x1xf32> to vector<17x17xf32>
    %342 = arith.mulf %337, %341 : vector<17x17xf32>
    %343 = arith.truncf %342 : vector<17x17xf32> to vector<17x17xbf16>
    %cst_101 = arith.constant dense<0.000000e+00> : vector<17x32xf32>
    %344 = tpu.matmul %343, %331, %cst_101 {dimension_numbers = #tpu.dot_dimension_numbers<[1], [0], [0], [1], [0, 0, 1, 1], [], []>} : vector<17x17xbf16>, vector<17x32xbf16>, vector<17x32xf32> -> vector<17x32xf32>
    %345 = arith.addf %327, %344 : vector<17x32xf32>
    %346 = arith.mulf %309, %14 : vector<17x32xf32>
    %347 = arith.truncf %346 : vector<17x32xf32> to vector<17x32xbf16>
    %348 = arith.mulf %325, %14 : vector<17x32xf32>
    %349 = arith.truncf %348 : vector<17x32xf32> to vector<17x32xbf16>
    %cst_102 = arith.constant dense<0.000000e+00> : vector<17x17xf32>
    %350 = tpu.matmul %347, %326, %cst_102 {dimension_numbers = #tpu.dot_dimension_numbers<[1], [1], [0], [0], [0, 0, 1, 0], [], []>} : vector<17x32xbf16>, vector<17x32xbf16>, vector<17x17xf32> -> vector<17x17xf32>
    %cst_103 = arith.constant dense<0xFF800000> : vector<17xf32>
    %351 = vector.multi_reduction <maximumf>, %350, %cst_103 [1] : vector<17x17xf32> to vector<17xf32>
    %352 = vector.shape_cast %351 : vector<17xf32> to vector<17x1xf32>
    %353 = vector.broadcast %352 : vector<17x1xf32> to vector<17x17xf32>
    %354 = arith.subf %350, %353 : vector<17x17xf32>
    %355 = math.exp %354 : vector<17x17xf32>
    %cst_104 = arith.constant dense<0.000000e+00> : vector<17xf32>
    %356 = vector.multi_reduction <add>, %355, %cst_104 [1] : vector<17x17xf32> to vector<17xf32>
    %357 = vector.shape_cast %356 : vector<17xf32> to vector<17x1xf32>
    %358 = tpu.reciprocal %357 {approx = true} : vector<17x1xf32> -> vector<17x1xf32>
    %359 = vector.broadcast %358 : vector<17x1xf32> to vector<17x17xf32>
    %360 = arith.mulf %355, %359 : vector<17x17xf32>
    %361 = arith.truncf %360 : vector<17x17xf32> to vector<17x17xbf16>
    %cst_105 = arith.constant dense<0.000000e+00> : vector<17x32xf32>
    %362 = tpu.matmul %361, %349, %cst_105 {dimension_numbers = #tpu.dot_dimension_numbers<[1], [0], [0], [1], [0, 0, 1, 1], [], []>} : vector<17x17xbf16>, vector<17x32xbf16>, vector<17x32xf32> -> vector<17x32xf32>
    %363 = arith.addf %345, %362 : vector<17x32xf32>
    %364 = arith.mulf %309, %21 : vector<17x32xf32>
    %365 = arith.truncf %364 : vector<17x32xf32> to vector<17x32xbf16>
    %366 = arith.mulf %325, %21 : vector<17x32xf32>
    %367 = arith.truncf %366 : vector<17x32xf32> to vector<17x32xbf16>
    %cst_106 = arith.constant dense<0.000000e+00> : vector<17x17xf32>
    %368 = tpu.matmul %365, %326, %cst_106 {dimension_numbers = #tpu.dot_dimension_numbers<[1], [1], [0], [0], [0, 0, 1, 0], [], []>} : vector<17x32xbf16>, vector<17x32xbf16>, vector<17x17xf32> -> vector<17x17xf32>
    %cst_107 = arith.constant dense<0xFF800000> : vector<17xf32>
    %369 = vector.multi_reduction <maximumf>, %368, %cst_107 [1] : vector<17x17xf32> to vector<17xf32>
    %370 = vector.shape_cast %369 : vector<17xf32> to vector<17x1xf32>
    %371 = vector.broadcast %370 : vector<17x1xf32> to vector<17x17xf32>
    %372 = arith.subf %368, %371 : vector<17x17xf32>
    %373 = math.exp %372 : vector<17x17xf32>
    %cst_108 = arith.constant dense<0.000000e+00> : vector<17xf32>
    %374 = vector.multi_reduction <add>, %373, %cst_108 [1] : vector<17x17xf32> to vector<17xf32>
    %375 = vector.shape_cast %374 : vector<17xf32> to vector<17x1xf32>
    %376 = tpu.reciprocal %375 {approx = true} : vector<17x1xf32> -> vector<17x1xf32>
    %377 = vector.broadcast %376 : vector<17x1xf32> to vector<17x17xf32>
    %378 = arith.mulf %373, %377 : vector<17x17xf32>
    %379 = arith.truncf %378 : vector<17x17xf32> to vector<17x17xbf16>
    %cst_109 = arith.constant dense<0.000000e+00> : vector<17x32xf32>
    %380 = tpu.matmul %379, %367, %cst_109 {dimension_numbers = #tpu.dot_dimension_numbers<[1], [0], [0], [1], [0, 0, 1, 1], [], []>} : vector<17x17xbf16>, vector<17x32xbf16>, vector<17x32xf32> -> vector<17x32xf32>
    %381 = arith.addf %363, %380 : vector<17x32xf32>
    %382 = arith.mulf %309, %28 : vector<17x32xf32>
    %383 = arith.truncf %382 : vector<17x32xf32> to vector<17x32xbf16>
    %384 = arith.mulf %325, %28 : vector<17x32xf32>
    %385 = arith.truncf %384 : vector<17x32xf32> to vector<17x32xbf16>
    %cst_110 = arith.constant dense<0.000000e+00> : vector<17x17xf32>
    %386 = tpu.matmul %383, %326, %cst_110 {dimension_numbers = #tpu.dot_dimension_numbers<[1], [1], [0], [0], [0, 0, 1, 0], [], []>} : vector<17x32xbf16>, vector<17x32xbf16>, vector<17x17xf32> -> vector<17x17xf32>
    %cst_111 = arith.constant dense<0xFF800000> : vector<17xf32>
    %387 = vector.multi_reduction <maximumf>, %386, %cst_111 [1] : vector<17x17xf32> to vector<17xf32>
    %388 = vector.shape_cast %387 : vector<17xf32> to vector<17x1xf32>
    %389 = vector.broadcast %388 : vector<17x1xf32> to vector<17x17xf32>
    %390 = arith.subf %386, %389 : vector<17x17xf32>
    %391 = math.exp %390 : vector<17x17xf32>
    %cst_112 = arith.constant dense<0.000000e+00> : vector<17xf32>
    %392 = vector.multi_reduction <add>, %391, %cst_112 [1] : vector<17x17xf32> to vector<17xf32>
    %393 = vector.shape_cast %392 : vector<17xf32> to vector<17x1xf32>
    %394 = tpu.reciprocal %393 {approx = true} : vector<17x1xf32> -> vector<17x1xf32>
    %395 = vector.broadcast %394 : vector<17x1xf32> to vector<17x17xf32>
    %396 = arith.mulf %391, %395 : vector<17x17xf32>
    %397 = arith.truncf %396 : vector<17x17xf32> to vector<17x17xbf16>
    %cst_113 = arith.constant dense<0.000000e+00> : vector<17x32xf32>
    %398 = tpu.matmul %397, %385, %cst_113 {dimension_numbers = #tpu.dot_dimension_numbers<[1], [0], [0], [1], [0, 0, 1, 1], [], []>} : vector<17x17xbf16>, vector<17x32xbf16>, vector<17x32xf32> -> vector<17x32xf32>
    %399 = arith.addf %381, %398 : vector<17x32xf32>
    %c432 = arith.constant 432 : index
    %c0_114 = arith.constant 0 : index
    %400 = vector.load %arg4[%c432, %c0_114] : memref<1008x128xbf16, #tpu.memory_space<vmem>>, vector<32x32xbf16>
    %401 = arith.truncf %399 : vector<17x32xf32> to vector<17x32xbf16>
    %cst_115 = arith.constant dense<0.000000e+00> : vector<17x32xf32>
    %402 = tpu.matmul %401, %400, %cst_115 {dimension_numbers = #tpu.dot_dimension_numbers<[1], [0], [0], [1], [0, 0, 1, 1], [], []>} : vector<17x32xbf16>, vector<32x32xbf16>, vector<17x32xf32> -> vector<17x32xf32>
    %403 = arith.addf %273, %402 : vector<17x32xf32>
    %c95 = arith.constant 95 : index
    %c0_116 = arith.constant 0 : index
    %404 = vector.load %arg3[%c95, %c0_116] : memref<136x128xf32, #tpu.memory_space<vmem>>, vector<1x32xf32>
    %405 = vector.shape_cast %404 : vector<1x32xf32> to vector<32xf32>
    %406 = vector.shape_cast %405 : vector<32xf32> to vector<1x32xf32>
    %407 = vector.broadcast %406 : vector<1x32xf32> to vector<17x32xf32>
    %408 = arith.addf %403, %407 : vector<17x32xf32>
    %c90 = arith.constant 90 : index
    %c0_117 = arith.constant 0 : index
    %409 = vector.load %arg3[%c90, %c0_117] : memref<136x128xf32, #tpu.memory_space<vmem>>, vector<1x32xf32>
    %410 = vector.shape_cast %409 : vector<1x32xf32> to vector<32xf32>
    %c91 = arith.constant 91 : index
    %c0_118 = arith.constant 0 : index
    %411 = vector.load %arg3[%c91, %c0_118] : memref<136x128xf32, #tpu.memory_space<vmem>>, vector<1x32xf32>
    %412 = vector.shape_cast %411 : vector<1x32xf32> to vector<32xf32>
    %cst_119 = arith.constant dense<0.000000e+00> : vector<17xf32>
    %413 = vector.multi_reduction <add>, %408, %cst_119 [1] : vector<17x32xf32> to vector<17xf32>
    %414 = vector.shape_cast %413 : vector<17xf32> to vector<17x1xf32>
    %cst_120 = arith.constant 3.200000e+01 : f32
    %415 = vector.broadcast %cst_120 : f32 to vector<17x1xf32>
    %416 = arith.divf %414, %415 : vector<17x1xf32>
    %417 = vector.broadcast %416 : vector<17x1xf32> to vector<17x32xf32>
    %418 = arith.subf %408, %417 : vector<17x32xf32>
    %419 = arith.mulf %418, %418 : vector<17x32xf32>
    %cst_121 = arith.constant dense<0.000000e+00> : vector<17xf32>
    %420 = vector.multi_reduction <add>, %419, %cst_121 [1] : vector<17x32xf32> to vector<17xf32>
    %421 = vector.shape_cast %420 : vector<17xf32> to vector<17x1xf32>
    %cst_122 = arith.constant 3.200000e+01 : f32
    %422 = vector.broadcast %cst_122 : f32 to vector<17x1xf32>
    %423 = arith.divf %421, %422 : vector<17x1xf32>
    %424 = vector.broadcast %416 : vector<17x1xf32> to vector<17x32xf32>
    %425 = arith.subf %408, %424 : vector<17x32xf32>
    %cst_123 = arith.constant 9.99999997E-7 : f32
    %426 = vector.broadcast %cst_123 : f32 to vector<17x1xf32>
    %427 = arith.addf %423, %426 : vector<17x1xf32>
    %428 = math.rsqrt %427 : vector<17x1xf32>
    %429 = vector.broadcast %428 : vector<17x1xf32> to vector<17x32xf32>
    %430 = arith.mulf %425, %429 : vector<17x32xf32>
    %431 = vector.shape_cast %410 : vector<32xf32> to vector<1x32xf32>
    %432 = vector.broadcast %431 : vector<1x32xf32> to vector<17x32xf32>
    %433 = arith.mulf %430, %432 : vector<17x32xf32>
    %434 = vector.shape_cast %412 : vector<32xf32> to vector<1x32xf32>
    %435 = vector.broadcast %434 : vector<1x32xf32> to vector<17x32xf32>
    %436 = arith.addf %433, %435 : vector<17x32xf32>
    %c464 = arith.constant 464 : index
    %c0_124 = arith.constant 0 : index
    %437 = vector.load %arg4[%c464, %c0_124] : memref<1008x128xbf16, #tpu.memory_space<vmem>>, vector<32x128xbf16>
    %438 = arith.truncf %436 : vector<17x32xf32> to vector<17x32xbf16>
    %cst_125 = arith.constant dense<0.000000e+00> : vector<17x128xf32>
    %439 = tpu.matmul %438, %437, %cst_125 {dimension_numbers = #tpu.dot_dimension_numbers<[1], [0], [0], [1], [0, 0, 1, 1], [], []>} : vector<17x32xbf16>, vector<32x128xbf16>, vector<17x128xf32> -> vector<17x128xf32>
    %c96 = arith.constant 96 : index
    %c0_126 = arith.constant 0 : index
    %440 = vector.load %arg3[%c96, %c0_126] : memref<136x128xf32, #tpu.memory_space<vmem>>, vector<1x128xf32>
    %441 = vector.shape_cast %440 : vector<1x128xf32> to vector<128xf32>
    %442 = vector.shape_cast %441 : vector<128xf32> to vector<1x128xf32>
    %443 = vector.broadcast %442 : vector<1x128xf32> to vector<17x128xf32>
    %444 = arith.addf %439, %443 : vector<17x128xf32>
    %cst_127 = arith.constant 5.000000e-01 : f32
    %445 = vector.broadcast %cst_127 : f32 to vector<17x128xf32>
    %446 = arith.mulf %445, %444 : vector<17x128xf32>
    %447 = arith.mulf %444, %444 : vector<17x128xf32>
    %448 = arith.mulf %447, %444 : vector<17x128xf32>
    %cst_128 = arith.constant 4.471500e-02 : f32
    %449 = vector.broadcast %cst_128 : f32 to vector<17x128xf32>
    %450 = arith.mulf %449, %448 : vector<17x128xf32>
    %451 = arith.addf %444, %450 : vector<17x128xf32>
    %cst_129 = arith.constant 0.797884583 : f32
    %452 = vector.broadcast %cst_129 : f32 to vector<17x128xf32>
    %453 = arith.mulf %452, %451 : vector<17x128xf32>
    %454 = math.tanh %453 : vector<17x128xf32>
    %cst_130 = arith.constant 1.000000e+00 : f32
    %455 = vector.broadcast %cst_130 : f32 to vector<17x128xf32>
    %456 = arith.addf %455, %454 : vector<17x128xf32>
    %457 = arith.mulf %446, %456 : vector<17x128xf32>
    %c496 = arith.constant 496 : index
    %c0_131 = arith.constant 0 : index
    %458 = vector.load %arg4[%c496, %c0_131] : memref<1008x128xbf16, #tpu.memory_space<vmem>>, vector<128x32xbf16>
    %459 = arith.truncf %457 : vector<17x128xf32> to vector<17x128xbf16>
    %cst_132 = arith.constant dense<0.000000e+00> : vector<17x32xf32>
    %460 = tpu.matmul %459, %458, %cst_132 {dimension_numbers = #tpu.dot_dimension_numbers<[1], [0], [0], [1], [0, 0, 1, 1], [], []>} : vector<17x128xbf16>, vector<128x32xbf16>, vector<17x32xf32> -> vector<17x32xf32>
    %461 = arith.addf %408, %460 : vector<17x32xf32>
    %c97 = arith.constant 97 : index
    %c0_133 = arith.constant 0 : index
    %462 = vector.load %arg3[%c97, %c0_133] : memref<136x128xf32, #tpu.memory_space<vmem>>, vector<1x32xf32>
    %463 = vector.shape_cast %462 : vector<1x32xf32> to vector<32xf32>
    %464 = vector.shape_cast %463 : vector<32xf32> to vector<1x32xf32>
    %465 = vector.broadcast %464 : vector<1x32xf32> to vector<17x32xf32>
    %466 = arith.addf %461, %465 : vector<17x32xf32>
    %c1 = arith.constant 1 : index
    %c0_134 = arith.constant 0 : index
    %c0_135 = arith.constant 0 : index
    %c0_136 = arith.constant 0 : index
    %467 = vector.load %arg2[%c1, %c0_134, %c0_135, %c0_136] : memref<2x2x64x48xf32, #tpu.memory_space<vmem>>, vector<1x1x64x48xf32>
    %468 = vector.shape_cast %467 : vector<1x1x64x48xf32> to vector<64x48xf32>
    %c128 = arith.constant 128 : index
    %c0_137 = arith.constant 0 : index
    %469 = vector.load %arg3[%c128, %c0_137] : memref<136x128xf32, #tpu.memory_space<vmem>>, vector<1x48xf32>
    %470 = vector.shape_cast %469 : vector<1x48xf32> to vector<48xf32>
    %c129 = arith.constant 129 : index
    %c0_138 = arith.constant 0 : index
    %471 = vector.load %arg3[%c129, %c0_138] : memref<136x128xf32, #tpu.memory_space<vmem>>, vector<1x48xf32>
    %472 = vector.shape_cast %471 : vector<1x48xf32> to vector<48xf32>
    %cst_139 = arith.constant dense<0.000000e+00> : vector<64xf32>
    %473 = vector.multi_reduction <add>, %468, %cst_139 [1] : vector<64x48xf32> to vector<64xf32>
    %474 = vector.shape_cast %473 : vector<64xf32> to vector<64x1xf32>
    %cst_140 = arith.constant 4.800000e+01 : f32
    %475 = vector.broadcast %cst_140 : f32 to vector<64x1xf32>
    %476 = arith.divf %474, %475 : vector<64x1xf32>
    %477 = vector.broadcast %476 : vector<64x1xf32> to vector<64x48xf32>
    %478 = arith.subf %468, %477 : vector<64x48xf32>
    %479 = arith.mulf %478, %478 : vector<64x48xf32>
    %cst_141 = arith.constant dense<0.000000e+00> : vector<64xf32>
    %480 = vector.multi_reduction <add>, %479, %cst_141 [1] : vector<64x48xf32> to vector<64xf32>
    %481 = vector.shape_cast %480 : vector<64xf32> to vector<64x1xf32>
    %cst_142 = arith.constant 4.800000e+01 : f32
    %482 = vector.broadcast %cst_142 : f32 to vector<64x1xf32>
    %483 = arith.divf %481, %482 : vector<64x1xf32>
    %484 = vector.broadcast %476 : vector<64x1xf32> to vector<64x48xf32>
    %485 = arith.subf %468, %484 : vector<64x48xf32>
    %cst_143 = arith.constant 9.99999997E-7 : f32
    %486 = vector.broadcast %cst_143 : f32 to vector<64x1xf32>
    %487 = arith.addf %483, %486 : vector<64x1xf32>
    %488 = math.rsqrt %487 : vector<64x1xf32>
    %489 = vector.broadcast %488 : vector<64x1xf32> to vector<64x48xf32>
    %490 = arith.mulf %485, %489 : vector<64x48xf32>
    %491 = vector.shape_cast %470 : vector<48xf32> to vector<1x48xf32>
    %492 = vector.broadcast %491 : vector<1x48xf32> to vector<64x48xf32>
    %493 = arith.mulf %490, %492 : vector<64x48xf32>
    %494 = vector.shape_cast %472 : vector<48xf32> to vector<1x48xf32>
    %495 = vector.broadcast %494 : vector<1x48xf32> to vector<64x48xf32>
    %496 = arith.addf %493, %495 : vector<64x48xf32>
    %c960 = arith.constant 960 : index
    %c0_144 = arith.constant 0 : index
    %497 = vector.load %arg4[%c960, %c0_144] : memref<1008x128xbf16, #tpu.memory_space<vmem>>, vector<48x32xbf16>
    %498 = arith.truncf %496 : vector<64x48xf32> to vector<64x48xbf16>
    %cst_145 = arith.constant dense<0.000000e+00> : vector<64x32xf32>
    %499 = tpu.matmul %498, %497, %cst_145 {dimension_numbers = #tpu.dot_dimension_numbers<[1], [0], [0], [1], [0, 0, 1, 1], [], []>} : vector<64x48xbf16>, vector<48x32xbf16>, vector<64x32xf32> -> vector<64x32xf32>
    %c130 = arith.constant 130 : index
    %c0_146 = arith.constant 0 : index
    %500 = vector.load %arg3[%c130, %c0_146] : memref<136x128xf32, #tpu.memory_space<vmem>>, vector<1x32xf32>
    %501 = vector.shape_cast %500 : vector<1x32xf32> to vector<32xf32>
    %502 = vector.shape_cast %501 : vector<32xf32> to vector<1x32xf32>
    %503 = vector.broadcast %502 : vector<1x32xf32> to vector<64x32xf32>
    %504 = arith.addf %499, %503 : vector<64x32xf32>
    %505 = arith.truncf %31 : vector<17x64xf32> to vector<17x64xbf16>
    %506 = arith.truncf %504 : vector<64x32xf32> to vector<64x32xbf16>
    %cst_147 = arith.constant dense<0.000000e+00> : vector<17x32xf32>
    %507 = tpu.matmul %505, %506, %cst_147 {dimension_numbers = #tpu.dot_dimension_numbers<[1], [0], [0], [1], [0, 0, 1, 1], [], []>} : vector<17x64xbf16>, vector<64x32xbf16>, vector<17x32xf32> -> vector<17x32xf32>
    %508 = arith.addf %466, %507 : vector<17x32xf32>
    %509 = arith.addf %508, %30 : vector<17x32xf32>
    %c104 = arith.constant 104 : index
    %c0_148 = arith.constant 0 : index
    %510 = vector.load %arg3[%c104, %c0_148] : memref<136x128xf32, #tpu.memory_space<vmem>>, vector<1x32xf32>
    %511 = vector.shape_cast %510 : vector<1x32xf32> to vector<32xf32>
    %c105 = arith.constant 105 : index
    %c0_149 = arith.constant 0 : index
    %512 = vector.load %arg3[%c105, %c0_149] : memref<136x128xf32, #tpu.memory_space<vmem>>, vector<1x32xf32>
    %513 = vector.shape_cast %512 : vector<1x32xf32> to vector<32xf32>
    %cst_150 = arith.constant dense<0.000000e+00> : vector<17xf32>
    %514 = vector.multi_reduction <add>, %509, %cst_150 [1] : vector<17x32xf32> to vector<17xf32>
    %515 = vector.shape_cast %514 : vector<17xf32> to vector<17x1xf32>
    %cst_151 = arith.constant 3.200000e+01 : f32
    %516 = vector.broadcast %cst_151 : f32 to vector<17x1xf32>
    %517 = arith.divf %515, %516 : vector<17x1xf32>
    %518 = vector.broadcast %517 : vector<17x1xf32> to vector<17x32xf32>
    %519 = arith.subf %509, %518 : vector<17x32xf32>
    %520 = arith.mulf %519, %519 : vector<17x32xf32>
    %cst_152 = arith.constant dense<0.000000e+00> : vector<17xf32>
    %521 = vector.multi_reduction <add>, %520, %cst_152 [1] : vector<17x32xf32> to vector<17xf32>
    %522 = vector.shape_cast %521 : vector<17xf32> to vector<17x1xf32>
    %cst_153 = arith.constant 3.200000e+01 : f32
    %523 = vector.broadcast %cst_153 : f32 to vector<17x1xf32>
    %524 = arith.divf %522, %523 : vector<17x1xf32>
    %525 = vector.broadcast %517 : vector<17x1xf32> to vector<17x32xf32>
    %526 = arith.subf %509, %525 : vector<17x32xf32>
    %cst_154 = arith.constant 9.99999997E-7 : f32
    %527 = vector.broadcast %cst_154 : f32 to vector<17x1xf32>
    %528 = arith.addf %524, %527 : vector<17x1xf32>
    %529 = math.rsqrt %528 : vector<17x1xf32>
    %530 = vector.broadcast %529 : vector<17x1xf32> to vector<17x32xf32>
    %531 = arith.mulf %526, %530 : vector<17x32xf32>
    %532 = vector.shape_cast %511 : vector<32xf32> to vector<1x32xf32>
    %533 = vector.broadcast %532 : vector<1x32xf32> to vector<17x32xf32>
    %534 = arith.mulf %531, %533 : vector<17x32xf32>
    %535 = vector.shape_cast %513 : vector<32xf32> to vector<1x32xf32>
    %536 = vector.broadcast %535 : vector<1x32xf32> to vector<17x32xf32>
    %537 = arith.addf %534, %536 : vector<17x32xf32>
    %c624 = arith.constant 624 : index
    %c0_155 = arith.constant 0 : index
    %538 = vector.load %arg4[%c624, %c0_155] : memref<1008x128xbf16, #tpu.memory_space<vmem>>, vector<32x32xbf16>
    %539 = arith.truncf %537 : vector<17x32xf32> to vector<17x32xbf16>
    %cst_156 = arith.constant dense<0.000000e+00> : vector<17x32xf32>
    %540 = tpu.matmul %539, %538, %cst_156 {dimension_numbers = #tpu.dot_dimension_numbers<[1], [0], [0], [1], [0, 0, 1, 1], [], []>} : vector<17x32xbf16>, vector<32x32xbf16>, vector<17x32xf32> -> vector<17x32xf32>
    %c108 = arith.constant 108 : index
    %c0_157 = arith.constant 0 : index
    %541 = vector.load %arg3[%c108, %c0_157] : memref<136x128xf32, #tpu.memory_space<vmem>>, vector<1x32xf32>
    %542 = vector.shape_cast %541 : vector<1x32xf32> to vector<32xf32>
    %543 = vector.shape_cast %542 : vector<32xf32> to vector<1x32xf32>
    %544 = vector.broadcast %543 : vector<1x32xf32> to vector<17x32xf32>
    %545 = arith.addf %540, %544 : vector<17x32xf32>
    %c656 = arith.constant 656 : index
    %c0_158 = arith.constant 0 : index
    %546 = vector.load %arg4[%c656, %c0_158] : memref<1008x128xbf16, #tpu.memory_space<vmem>>, vector<32x32xbf16>
    %547 = arith.truncf %537 : vector<17x32xf32> to vector<17x32xbf16>
    %cst_159 = arith.constant dense<0.000000e+00> : vector<17x32xf32>
    %548 = tpu.matmul %547, %546, %cst_159 {dimension_numbers = #tpu.dot_dimension_numbers<[1], [0], [0], [1], [0, 0, 1, 1], [], []>} : vector<17x32xbf16>, vector<32x32xbf16>, vector<17x32xf32> -> vector<17x32xf32>
    %c109 = arith.constant 109 : index
    %c0_160 = arith.constant 0 : index
    %549 = vector.load %arg3[%c109, %c0_160] : memref<136x128xf32, #tpu.memory_space<vmem>>, vector<1x32xf32>
    %550 = vector.shape_cast %549 : vector<1x32xf32> to vector<32xf32>
    %551 = vector.shape_cast %550 : vector<32xf32> to vector<1x32xf32>
    %552 = vector.broadcast %551 : vector<1x32xf32> to vector<17x32xf32>
    %553 = arith.addf %548, %552 : vector<17x32xf32>
    %c688 = arith.constant 688 : index
    %c0_161 = arith.constant 0 : index
    %554 = vector.load %arg4[%c688, %c0_161] : memref<1008x128xbf16, #tpu.memory_space<vmem>>, vector<32x32xbf16>
    %555 = arith.truncf %537 : vector<17x32xf32> to vector<17x32xbf16>
    %cst_162 = arith.constant dense<0.000000e+00> : vector<17x32xf32>
    %556 = tpu.matmul %555, %554, %cst_162 {dimension_numbers = #tpu.dot_dimension_numbers<[1], [0], [0], [1], [0, 0, 1, 1], [], []>} : vector<17x32xbf16>, vector<32x32xbf16>, vector<17x32xf32> -> vector<17x32xf32>
    %c110 = arith.constant 110 : index
    %c0_163 = arith.constant 0 : index
    %557 = vector.load %arg3[%c110, %c0_163] : memref<136x128xf32, #tpu.memory_space<vmem>>, vector<1x32xf32>
    %558 = vector.shape_cast %557 : vector<1x32xf32> to vector<32xf32>
    %559 = vector.shape_cast %558 : vector<32xf32> to vector<1x32xf32>
    %560 = vector.broadcast %559 : vector<1x32xf32> to vector<17x32xf32>
    %561 = arith.addf %556, %560 : vector<17x32xf32>
    %562 = arith.truncf %553 : vector<17x32xf32> to vector<17x32xbf16>
    %cst_164 = arith.constant 0.000000e+00 : f32
    %563 = vector.broadcast %cst_164 : f32 to vector<17x32xf32>
    %564 = arith.mulf %545, %7 : vector<17x32xf32>
    %565 = arith.truncf %564 : vector<17x32xf32> to vector<17x32xbf16>
    %566 = arith.mulf %561, %7 : vector<17x32xf32>
    %567 = arith.truncf %566 : vector<17x32xf32> to vector<17x32xbf16>
    %cst_165 = arith.constant dense<0.000000e+00> : vector<17x17xf32>
    %568 = tpu.matmul %565, %562, %cst_165 {dimension_numbers = #tpu.dot_dimension_numbers<[1], [1], [0], [0], [0, 0, 1, 0], [], []>} : vector<17x32xbf16>, vector<17x32xbf16>, vector<17x17xf32> -> vector<17x17xf32>
    %cst_166 = arith.constant dense<0xFF800000> : vector<17xf32>
    %569 = vector.multi_reduction <maximumf>, %568, %cst_166 [1] : vector<17x17xf32> to vector<17xf32>
    %570 = vector.shape_cast %569 : vector<17xf32> to vector<17x1xf32>
    %571 = vector.broadcast %570 : vector<17x1xf32> to vector<17x17xf32>
    %572 = arith.subf %568, %571 : vector<17x17xf32>
    %573 = math.exp %572 : vector<17x17xf32>
    %cst_167 = arith.constant dense<0.000000e+00> : vector<17xf32>
    %574 = vector.multi_reduction <add>, %573, %cst_167 [1] : vector<17x17xf32> to vector<17xf32>
    %575 = vector.shape_cast %574 : vector<17xf32> to vector<17x1xf32>
    %576 = tpu.reciprocal %575 {approx = true} : vector<17x1xf32> -> vector<17x1xf32>
    %577 = vector.broadcast %576 : vector<17x1xf32> to vector<17x17xf32>
    %578 = arith.mulf %573, %577 : vector<17x17xf32>
    %579 = arith.truncf %578 : vector<17x17xf32> to vector<17x17xbf16>
    %cst_168 = arith.constant dense<0.000000e+00> : vector<17x32xf32>
    %580 = tpu.matmul %579, %567, %cst_168 {dimension_numbers = #tpu.dot_dimension_numbers<[1], [0], [0], [1], [0, 0, 1, 1], [], []>} : vector<17x17xbf16>, vector<17x32xbf16>, vector<17x32xf32> -> vector<17x32xf32>
    %581 = arith.addf %563, %580 : vector<17x32xf32>
    %582 = arith.mulf %545, %14 : vector<17x32xf32>
    %583 = arith.truncf %582 : vector<17x32xf32> to vector<17x32xbf16>
    %584 = arith.mulf %561, %14 : vector<17x32xf32>
    %585 = arith.truncf %584 : vector<17x32xf32> to vector<17x32xbf16>
    %cst_169 = arith.constant dense<0.000000e+00> : vector<17x17xf32>
    %586 = tpu.matmul %583, %562, %cst_169 {dimension_numbers = #tpu.dot_dimension_numbers<[1], [1], [0], [0], [0, 0, 1, 0], [], []>} : vector<17x32xbf16>, vector<17x32xbf16>, vector<17x17xf32> -> vector<17x17xf32>
    %cst_170 = arith.constant dense<0xFF800000> : vector<17xf32>
    %587 = vector.multi_reduction <maximumf>, %586, %cst_170 [1] : vector<17x17xf32> to vector<17xf32>
    %588 = vector.shape_cast %587 : vector<17xf32> to vector<17x1xf32>
    %589 = vector.broadcast %588 : vector<17x1xf32> to vector<17x17xf32>
    %590 = arith.subf %586, %589 : vector<17x17xf32>
    %591 = math.exp %590 : vector<17x17xf32>
    %cst_171 = arith.constant dense<0.000000e+00> : vector<17xf32>
    %592 = vector.multi_reduction <add>, %591, %cst_171 [1] : vector<17x17xf32> to vector<17xf32>
    %593 = vector.shape_cast %592 : vector<17xf32> to vector<17x1xf32>
    %594 = tpu.reciprocal %593 {approx = true} : vector<17x1xf32> -> vector<17x1xf32>
    %595 = vector.broadcast %594 : vector<17x1xf32> to vector<17x17xf32>
    %596 = arith.mulf %591, %595 : vector<17x17xf32>
    %597 = arith.truncf %596 : vector<17x17xf32> to vector<17x17xbf16>
    %cst_172 = arith.constant dense<0.000000e+00> : vector<17x32xf32>
    %598 = tpu.matmul %597, %585, %cst_172 {dimension_numbers = #tpu.dot_dimension_numbers<[1], [0], [0], [1], [0, 0, 1, 1], [], []>} : vector<17x17xbf16>, vector<17x32xbf16>, vector<17x32xf32> -> vector<17x32xf32>
    %599 = arith.addf %581, %598 : vector<17x32xf32>
    %600 = arith.mulf %545, %21 : vector<17x32xf32>
    %601 = arith.truncf %600 : vector<17x32xf32> to vector<17x32xbf16>
    %602 = arith.mulf %561, %21 : vector<17x32xf32>
    %603 = arith.truncf %602 : vector<17x32xf32> to vector<17x32xbf16>
    %cst_173 = arith.constant dense<0.000000e+00> : vector<17x17xf32>
    %604 = tpu.matmul %601, %562, %cst_173 {dimension_numbers = #tpu.dot_dimension_numbers<[1], [1], [0], [0], [0, 0, 1, 0], [], []>} : vector<17x32xbf16>, vector<17x32xbf16>, vector<17x17xf32> -> vector<17x17xf32>
    %cst_174 = arith.constant dense<0xFF800000> : vector<17xf32>
    %605 = vector.multi_reduction <maximumf>, %604, %cst_174 [1] : vector<17x17xf32> to vector<17xf32>
    %606 = vector.shape_cast %605 : vector<17xf32> to vector<17x1xf32>
    %607 = vector.broadcast %606 : vector<17x1xf32> to vector<17x17xf32>
    %608 = arith.subf %604, %607 : vector<17x17xf32>
    %609 = math.exp %608 : vector<17x17xf32>
    %cst_175 = arith.constant dense<0.000000e+00> : vector<17xf32>
    %610 = vector.multi_reduction <add>, %609, %cst_175 [1] : vector<17x17xf32> to vector<17xf32>
    %611 = vector.shape_cast %610 : vector<17xf32> to vector<17x1xf32>
    %612 = tpu.reciprocal %611 {approx = true} : vector<17x1xf32> -> vector<17x1xf32>
    %613 = vector.broadcast %612 : vector<17x1xf32> to vector<17x17xf32>
    %614 = arith.mulf %609, %613 : vector<17x17xf32>
    %615 = arith.truncf %614 : vector<17x17xf32> to vector<17x17xbf16>
    %cst_176 = arith.constant dense<0.000000e+00> : vector<17x32xf32>
    %616 = tpu.matmul %615, %603, %cst_176 {dimension_numbers = #tpu.dot_dimension_numbers<[1], [0], [0], [1], [0, 0, 1, 1], [], []>} : vector<17x17xbf16>, vector<17x32xbf16>, vector<17x32xf32> -> vector<17x32xf32>
    %617 = arith.addf %599, %616 : vector<17x32xf32>
    %618 = arith.mulf %545, %28 : vector<17x32xf32>
    %619 = arith.truncf %618 : vector<17x32xf32> to vector<17x32xbf16>
    %620 = arith.mulf %561, %28 : vector<17x32xf32>
    %621 = arith.truncf %620 : vector<17x32xf32> to vector<17x32xbf16>
    %cst_177 = arith.constant dense<0.000000e+00> : vector<17x17xf32>
    %622 = tpu.matmul %619, %562, %cst_177 {dimension_numbers = #tpu.dot_dimension_numbers<[1], [1], [0], [0], [0, 0, 1, 0], [], []>} : vector<17x32xbf16>, vector<17x32xbf16>, vector<17x17xf32> -> vector<17x17xf32>
    %cst_178 = arith.constant dense<0xFF800000> : vector<17xf32>
    %623 = vector.multi_reduction <maximumf>, %622, %cst_178 [1] : vector<17x17xf32> to vector<17xf32>
    %624 = vector.shape_cast %623 : vector<17xf32> to vector<17x1xf32>
    %625 = vector.broadcast %624 : vector<17x1xf32> to vector<17x17xf32>
    %626 = arith.subf %622, %625 : vector<17x17xf32>
    %627 = math.exp %626 : vector<17x17xf32>
    %cst_179 = arith.constant dense<0.000000e+00> : vector<17xf32>
    %628 = vector.multi_reduction <add>, %627, %cst_179 [1] : vector<17x17xf32> to vector<17xf32>
    %629 = vector.shape_cast %628 : vector<17xf32> to vector<17x1xf32>
    %630 = tpu.reciprocal %629 {approx = true} : vector<17x1xf32> -> vector<17x1xf32>
    %631 = vector.broadcast %630 : vector<17x1xf32> to vector<17x17xf32>
    %632 = arith.mulf %627, %631 : vector<17x17xf32>
    %633 = arith.truncf %632 : vector<17x17xf32> to vector<17x17xbf16>
    %cst_180 = arith.constant dense<0.000000e+00> : vector<17x32xf32>
    %634 = tpu.matmul %633, %621, %cst_180 {dimension_numbers = #tpu.dot_dimension_numbers<[1], [0], [0], [1], [0, 0, 1, 1], [], []>} : vector<17x17xbf16>, vector<17x32xbf16>, vector<17x32xf32> -> vector<17x32xf32>
    %635 = arith.addf %617, %634 : vector<17x32xf32>
    %c720 = arith.constant 720 : index
    %c0_181 = arith.constant 0 : index
    %636 = vector.load %arg4[%c720, %c0_181] : memref<1008x128xbf16, #tpu.memory_space<vmem>>, vector<32x32xbf16>
    %637 = arith.truncf %635 : vector<17x32xf32> to vector<17x32xbf16>
    %cst_182 = arith.constant dense<0.000000e+00> : vector<17x32xf32>
    %638 = tpu.matmul %637, %636, %cst_182 {dimension_numbers = #tpu.dot_dimension_numbers<[1], [0], [0], [1], [0, 0, 1, 1], [], []>} : vector<17x32xbf16>, vector<32x32xbf16>, vector<17x32xf32> -> vector<17x32xf32>
    %639 = arith.addf %509, %638 : vector<17x32xf32>
    %c111 = arith.constant 111 : index
    %c0_183 = arith.constant 0 : index
    %640 = vector.load %arg3[%c111, %c0_183] : memref<136x128xf32, #tpu.memory_space<vmem>>, vector<1x32xf32>
    %641 = vector.shape_cast %640 : vector<1x32xf32> to vector<32xf32>
    %642 = vector.shape_cast %641 : vector<32xf32> to vector<1x32xf32>
    %643 = vector.broadcast %642 : vector<1x32xf32> to vector<17x32xf32>
    %644 = arith.addf %639, %643 : vector<17x32xf32>
    %c106 = arith.constant 106 : index
    %c0_184 = arith.constant 0 : index
    %645 = vector.load %arg3[%c106, %c0_184] : memref<136x128xf32, #tpu.memory_space<vmem>>, vector<1x32xf32>
    %646 = vector.shape_cast %645 : vector<1x32xf32> to vector<32xf32>
    %c107 = arith.constant 107 : index
    %c0_185 = arith.constant 0 : index
    %647 = vector.load %arg3[%c107, %c0_185] : memref<136x128xf32, #tpu.memory_space<vmem>>, vector<1x32xf32>
    %648 = vector.shape_cast %647 : vector<1x32xf32> to vector<32xf32>
    %cst_186 = arith.constant dense<0.000000e+00> : vector<17xf32>
    %649 = vector.multi_reduction <add>, %644, %cst_186 [1] : vector<17x32xf32> to vector<17xf32>
    %650 = vector.shape_cast %649 : vector<17xf32> to vector<17x1xf32>
    %cst_187 = arith.constant 3.200000e+01 : f32
    %651 = vector.broadcast %cst_187 : f32 to vector<17x1xf32>
    %652 = arith.divf %650, %651 : vector<17x1xf32>
    %653 = vector.broadcast %652 : vector<17x1xf32> to vector<17x32xf32>
    %654 = arith.subf %644, %653 : vector<17x32xf32>
    %655 = arith.mulf %654, %654 : vector<17x32xf32>
    %cst_188 = arith.constant dense<0.000000e+00> : vector<17xf32>
    %656 = vector.multi_reduction <add>, %655, %cst_188 [1] : vector<17x32xf32> to vector<17xf32>
    %657 = vector.shape_cast %656 : vector<17xf32> to vector<17x1xf32>
    %cst_189 = arith.constant 3.200000e+01 : f32
    %658 = vector.broadcast %cst_189 : f32 to vector<17x1xf32>
    %659 = arith.divf %657, %658 : vector<17x1xf32>
    %660 = vector.broadcast %652 : vector<17x1xf32> to vector<17x32xf32>
    %661 = arith.subf %644, %660 : vector<17x32xf32>
    %cst_190 = arith.constant 9.99999997E-7 : f32
    %662 = vector.broadcast %cst_190 : f32 to vector<17x1xf32>
    %663 = arith.addf %659, %662 : vector<17x1xf32>
    %664 = math.rsqrt %663 : vector<17x1xf32>
    %665 = vector.broadcast %664 : vector<17x1xf32> to vector<17x32xf32>
    %666 = arith.mulf %661, %665 : vector<17x32xf32>
    %667 = vector.shape_cast %646 : vector<32xf32> to vector<1x32xf32>
    %668 = vector.broadcast %667 : vector<1x32xf32> to vector<17x32xf32>
    %669 = arith.mulf %666, %668 : vector<17x32xf32>
    %670 = vector.shape_cast %648 : vector<32xf32> to vector<1x32xf32>
    %671 = vector.broadcast %670 : vector<1x32xf32> to vector<17x32xf32>
    %672 = arith.addf %669, %671 : vector<17x32xf32>
    %c752 = arith.constant 752 : index
    %c0_191 = arith.constant 0 : index
    %673 = vector.load %arg4[%c752, %c0_191] : memref<1008x128xbf16, #tpu.memory_space<vmem>>, vector<32x128xbf16>
    %674 = arith.truncf %672 : vector<17x32xf32> to vector<17x32xbf16>
    %cst_192 = arith.constant dense<0.000000e+00> : vector<17x128xf32>
    %675 = tpu.matmul %674, %673, %cst_192 {dimension_numbers = #tpu.dot_dimension_numbers<[1], [0], [0], [1], [0, 0, 1, 1], [], []>} : vector<17x32xbf16>, vector<32x128xbf16>, vector<17x128xf32> -> vector<17x128xf32>
    %c112_193 = arith.constant 112 : index
    %c0_194 = arith.constant 0 : index
    %676 = vector.load %arg3[%c112_193, %c0_194] : memref<136x128xf32, #tpu.memory_space<vmem>>, vector<1x128xf32>
    %677 = vector.shape_cast %676 : vector<1x128xf32> to vector<128xf32>
    %678 = vector.shape_cast %677 : vector<128xf32> to vector<1x128xf32>
    %679 = vector.broadcast %678 : vector<1x128xf32> to vector<17x128xf32>
    %680 = arith.addf %675, %679 : vector<17x128xf32>
    %cst_195 = arith.constant 5.000000e-01 : f32
    %681 = vector.broadcast %cst_195 : f32 to vector<17x128xf32>
    %682 = arith.mulf %681, %680 : vector<17x128xf32>
    %683 = arith.mulf %680, %680 : vector<17x128xf32>
    %684 = arith.mulf %683, %680 : vector<17x128xf32>
    %cst_196 = arith.constant 4.471500e-02 : f32
    %685 = vector.broadcast %cst_196 : f32 to vector<17x128xf32>
    %686 = arith.mulf %685, %684 : vector<17x128xf32>
    %687 = arith.addf %680, %686 : vector<17x128xf32>
    %cst_197 = arith.constant 0.797884583 : f32
    %688 = vector.broadcast %cst_197 : f32 to vector<17x128xf32>
    %689 = arith.mulf %688, %687 : vector<17x128xf32>
    %690 = math.tanh %689 : vector<17x128xf32>
    %cst_198 = arith.constant 1.000000e+00 : f32
    %691 = vector.broadcast %cst_198 : f32 to vector<17x128xf32>
    %692 = arith.addf %691, %690 : vector<17x128xf32>
    %693 = arith.mulf %682, %692 : vector<17x128xf32>
    %c784 = arith.constant 784 : index
    %c0_199 = arith.constant 0 : index
    %694 = vector.load %arg4[%c784, %c0_199] : memref<1008x128xbf16, #tpu.memory_space<vmem>>, vector<128x32xbf16>
    %695 = arith.truncf %693 : vector<17x128xf32> to vector<17x128xbf16>
    %cst_200 = arith.constant dense<0.000000e+00> : vector<17x32xf32>
    %696 = tpu.matmul %695, %694, %cst_200 {dimension_numbers = #tpu.dot_dimension_numbers<[1], [0], [0], [1], [0, 0, 1, 1], [], []>} : vector<17x128xbf16>, vector<128x32xbf16>, vector<17x32xf32> -> vector<17x32xf32>
    %697 = arith.addf %644, %696 : vector<17x32xf32>
    %c113 = arith.constant 113 : index
    %c0_201 = arith.constant 0 : index
    %698 = vector.load %arg3[%c113, %c0_201] : memref<136x128xf32, #tpu.memory_space<vmem>>, vector<1x32xf32>
    %699 = vector.shape_cast %698 : vector<1x32xf32> to vector<32xf32>
    %700 = vector.shape_cast %699 : vector<32xf32> to vector<1x32xf32>
    %701 = vector.broadcast %700 : vector<1x32xf32> to vector<17x32xf32>
    %702 = arith.addf %697, %701 : vector<17x32xf32>
    %cst_202 = arith.constant 0.000000e+00 : f32
    %703 = vector.broadcast %cst_202 : f32 to vector<17x32xf32>
    %704 = tpu.concatenate %702, %79, %508, %703 in 1 : vector<17x32xf32>, vector<17x32xf32>, vector<17x32xf32>, vector<17x32xf32> -> vector<17x128xf32>
    %c0_203 = arith.constant 0 : index
    %c0_204 = arith.constant 0 : index
    %c0_205 = arith.constant 0 : index
    %705 = vector.load %arg5[%c0_203, %c0_204, %c0_205] : memref<2x17x128xf32, #tpu.memory_space<vmem>>, vector<1x17x128xf32>
    %706 = vector.shape_cast %705 : vector<1x17x128xf32> to vector<17x128xf32>
    %707 = vector.shape_cast %704 : vector<17x128xf32> to vector<1x17x128xf32>
    tpu.vector_store %arg5[%c0_203, %c0_204, %c0_205], %707 {strides = array<i32>} : memref<2x17x128xf32, #tpu.memory_space<vmem>>, vector<1x17x128xf32>,
    %c1_206 = arith.constant 1 : index
    %c0_207 = arith.constant 0 : index
    %c0_208 = arith.constant 0 : index
    %708 = vector.load %arg1[%c1_206, %c0_207, %c0_208] : memref<2x17x48xf32, #tpu.memory_space<vmem>>, vector<1x17x48xf32>
    %709 = vector.shape_cast %708 : vector<1x17x48xf32> to vector<17x48xf32>
    %c0_209 = arith.constant 0 : index
    %c0_210 = arith.constant 0 : index
    %710 = vector.load %arg4[%c0_209, %c0_210] : memref<1008x128xbf16, #tpu.memory_space<vmem>>, vector<48x32xbf16>
    %711 = arith.truncf %709 : vector<17x48xf32> to vector<17x48xbf16>
    %cst_211 = arith.constant dense<0.000000e+00> : vector<17x32xf32>
    %712 = tpu.matmul %711, %710, %cst_211 {dimension_numbers = #tpu.dot_dimension_numbers<[1], [0], [0], [1], [0, 0, 1, 1], [], []>} : vector<17x48xbf16>, vector<48x32xbf16>, vector<17x32xf32> -> vector<17x32xf32>
    %713 = arith.addf %712, %29 : vector<17x32xf32>
    %c0_212 = arith.constant 0 : index
    %c1_213 = arith.constant 1 : index
    %c0_214 = arith.constant 0 : index
    %c0_215 = arith.constant 0 : index
    %714 = vector.load %arg2[%c0_212, %c1_213, %c0_214, %c0_215] : memref<2x2x64x48xf32, #tpu.memory_space<vmem>>, vector<1x1x64x48xf32>
    %715 = vector.shape_cast %714 : vector<1x1x64x48xf32> to vector<64x48xf32>
    %c120_216 = arith.constant 120 : index
    %c0_217 = arith.constant 0 : index
    %716 = vector.load %arg3[%c120_216, %c0_217] : memref<136x128xf32, #tpu.memory_space<vmem>>, vector<1x48xf32>
    %717 = vector.shape_cast %716 : vector<1x48xf32> to vector<48xf32>
    %c121_218 = arith.constant 121 : index
    %c0_219 = arith.constant 0 : index
    %718 = vector.load %arg3[%c121_218, %c0_219] : memref<136x128xf32, #tpu.memory_space<vmem>>, vector<1x48xf32>
    %719 = vector.shape_cast %718 : vector<1x48xf32> to vector<48xf32>
    %cst_220 = arith.constant dense<0.000000e+00> : vector<64xf32>
    %720 = vector.multi_reduction <add>, %715, %cst_220 [1] : vector<64x48xf32> to vector<64xf32>
    %721 = vector.shape_cast %720 : vector<64xf32> to vector<64x1xf32>
    %cst_221 = arith.constant 4.800000e+01 : f32
    %722 = vector.broadcast %cst_221 : f32 to vector<64x1xf32>
    %723 = arith.divf %721, %722 : vector<64x1xf32>
    %724 = vector.broadcast %723 : vector<64x1xf32> to vector<64x48xf32>
    %725 = arith.subf %715, %724 : vector<64x48xf32>
    %726 = arith.mulf %725, %725 : vector<64x48xf32>
    %cst_222 = arith.constant dense<0.000000e+00> : vector<64xf32>
    %727 = vector.multi_reduction <add>, %726, %cst_222 [1] : vector<64x48xf32> to vector<64xf32>
    %728 = vector.shape_cast %727 : vector<64xf32> to vector<64x1xf32>
    %cst_223 = arith.constant 4.800000e+01 : f32
    %729 = vector.broadcast %cst_223 : f32 to vector<64x1xf32>
    %730 = arith.divf %728, %729 : vector<64x1xf32>
    %731 = vector.broadcast %723 : vector<64x1xf32> to vector<64x48xf32>
    %732 = arith.subf %715, %731 : vector<64x48xf32>
    %cst_224 = arith.constant 9.99999997E-7 : f32
    %733 = vector.broadcast %cst_224 : f32 to vector<64x1xf32>
    %734 = arith.addf %730, %733 : vector<64x1xf32>
    %735 = math.rsqrt %734 : vector<64x1xf32>
    %736 = vector.broadcast %735 : vector<64x1xf32> to vector<64x48xf32>
    %737 = arith.mulf %732, %736 : vector<64x48xf32>
    %738 = vector.shape_cast %717 : vector<48xf32> to vector<1x48xf32>
    %739 = vector.broadcast %738 : vector<1x48xf32> to vector<64x48xf32>
    %740 = arith.mulf %737, %739 : vector<64x48xf32>
    %741 = vector.shape_cast %719 : vector<48xf32> to vector<1x48xf32>
    %742 = vector.broadcast %741 : vector<1x48xf32> to vector<64x48xf32>
    %743 = arith.addf %740, %742 : vector<64x48xf32>
    %c912_225 = arith.constant 912 : index
    %c0_226 = arith.constant 0 : index
    %744 = vector.load %arg4[%c912_225, %c0_226] : memref<1008x128xbf16, #tpu.memory_space<vmem>>, vector<48x32xbf16>
    %745 = arith.truncf %743 : vector<64x48xf32> to vector<64x48xbf16>
    %cst_227 = arith.constant dense<0.000000e+00> : vector<64x32xf32>
    %746 = tpu.matmul %745, %744, %cst_227 {dimension_numbers = #tpu.dot_dimension_numbers<[1], [0], [0], [1], [0, 0, 1, 1], [], []>} : vector<64x48xbf16>, vector<48x32xbf16>, vector<64x32xf32> -> vector<64x32xf32>
    %c122_228 = arith.constant 122 : index
    %c0_229 = arith.constant 0 : index
    %747 = vector.load %arg3[%c122_228, %c0_229] : memref<136x128xf32, #tpu.memory_space<vmem>>, vector<1x32xf32>
    %748 = vector.shape_cast %747 : vector<1x32xf32> to vector<32xf32>
    %749 = vector.shape_cast %748 : vector<32xf32> to vector<1x32xf32>
    %750 = vector.broadcast %749 : vector<1x32xf32> to vector<64x32xf32>
    %751 = arith.addf %746, %750 : vector<64x32xf32>
    %752 = arith.truncf %31 : vector<17x64xf32> to vector<17x64xbf16>
    %753 = arith.truncf %751 : vector<64x32xf32> to vector<64x32xbf16>
    %cst_230 = arith.constant dense<0.000000e+00> : vector<17x32xf32>
    %754 = tpu.matmul %752, %753, %cst_230 {dimension_numbers = #tpu.dot_dimension_numbers<[1], [0], [0], [1], [0, 0, 1, 1], [], []>} : vector<17x64xbf16>, vector<64x32xbf16>, vector<17x32xf32> -> vector<17x32xf32>
    %755 = arith.addf %713, %754 : vector<17x32xf32>
    %c72_231 = arith.constant 72 : index
    %c0_232 = arith.constant 0 : index
    %756 = vector.load %arg3[%c72_231, %c0_232] : memref<136x128xf32, #tpu.memory_space<vmem>>, vector<1x32xf32>
    %757 = vector.shape_cast %756 : vector<1x32xf32> to vector<32xf32>
    %c73_233 = arith.constant 73 : index
    %c0_234 = arith.constant 0 : index
    %758 = vector.load %arg3[%c73_233, %c0_234] : memref<136x128xf32, #tpu.memory_space<vmem>>, vector<1x32xf32>
    %759 = vector.shape_cast %758 : vector<1x32xf32> to vector<32xf32>
    %cst_235 = arith.constant dense<0.000000e+00> : vector<17xf32>
    %760 = vector.multi_reduction <add>, %755, %cst_235 [1] : vector<17x32xf32> to vector<17xf32>
    %761 = vector.shape_cast %760 : vector<17xf32> to vector<17x1xf32>
    %cst_236 = arith.constant 3.200000e+01 : f32
    %762 = vector.broadcast %cst_236 : f32 to vector<17x1xf32>
    %763 = arith.divf %761, %762 : vector<17x1xf32>
    %764 = vector.broadcast %763 : vector<17x1xf32> to vector<17x32xf32>
    %765 = arith.subf %755, %764 : vector<17x32xf32>
    %766 = arith.mulf %765, %765 : vector<17x32xf32>
    %cst_237 = arith.constant dense<0.000000e+00> : vector<17xf32>
    %767 = vector.multi_reduction <add>, %766, %cst_237 [1] : vector<17x32xf32> to vector<17xf32>
    %768 = vector.shape_cast %767 : vector<17xf32> to vector<17x1xf32>
    %cst_238 = arith.constant 3.200000e+01 : f32
    %769 = vector.broadcast %cst_238 : f32 to vector<17x1xf32>
    %770 = arith.divf %768, %769 : vector<17x1xf32>
    %771 = vector.broadcast %763 : vector<17x1xf32> to vector<17x32xf32>
    %772 = arith.subf %755, %771 : vector<17x32xf32>
    %cst_239 = arith.constant 9.99999997E-7 : f32
    %773 = vector.broadcast %cst_239 : f32 to vector<17x1xf32>
    %774 = arith.addf %770, %773 : vector<17x1xf32>
    %775 = math.rsqrt %774 : vector<17x1xf32>
    %776 = vector.broadcast %775 : vector<17x1xf32> to vector<17x32xf32>
    %777 = arith.mulf %772, %776 : vector<17x32xf32>
    %778 = vector.shape_cast %757 : vector<32xf32> to vector<1x32xf32>
    %779 = vector.broadcast %778 : vector<1x32xf32> to vector<17x32xf32>
    %780 = arith.mulf %777, %779 : vector<17x32xf32>
    %781 = vector.shape_cast %759 : vector<32xf32> to vector<1x32xf32>
    %782 = vector.broadcast %781 : vector<1x32xf32> to vector<17x32xf32>
    %783 = arith.addf %780, %782 : vector<17x32xf32>
    %c48_240 = arith.constant 48 : index
    %c0_241 = arith.constant 0 : index
    %784 = vector.load %arg4[%c48_240, %c0_241] : memref<1008x128xbf16, #tpu.memory_space<vmem>>, vector<32x32xbf16>
    %785 = arith.truncf %783 : vector<17x32xf32> to vector<17x32xbf16>
    %cst_242 = arith.constant dense<0.000000e+00> : vector<17x32xf32>
    %786 = tpu.matmul %785, %784, %cst_242 {dimension_numbers = #tpu.dot_dimension_numbers<[1], [0], [0], [1], [0, 0, 1, 1], [], []>} : vector<17x32xbf16>, vector<32x32xbf16>, vector<17x32xf32> -> vector<17x32xf32>
    %c76_243 = arith.constant 76 : index
    %c0_244 = arith.constant 0 : index
    %787 = vector.load %arg3[%c76_243, %c0_244] : memref<136x128xf32, #tpu.memory_space<vmem>>, vector<1x32xf32>
    %788 = vector.shape_cast %787 : vector<1x32xf32> to vector<32xf32>
    %789 = vector.shape_cast %788 : vector<32xf32> to vector<1x32xf32>
    %790 = vector.broadcast %789 : vector<1x32xf32> to vector<17x32xf32>
    %791 = arith.addf %786, %790 : vector<17x32xf32>
    %c80_245 = arith.constant 80 : index
    %c0_246 = arith.constant 0 : index
    %792 = vector.load %arg4[%c80_245, %c0_246] : memref<1008x128xbf16, #tpu.memory_space<vmem>>, vector<32x32xbf16>
    %793 = arith.truncf %783 : vector<17x32xf32> to vector<17x32xbf16>
    %cst_247 = arith.constant dense<0.000000e+00> : vector<17x32xf32>
    %794 = tpu.matmul %793, %792, %cst_247 {dimension_numbers = #tpu.dot_dimension_numbers<[1], [0], [0], [1], [0, 0, 1, 1], [], []>} : vector<17x32xbf16>, vector<32x32xbf16>, vector<17x32xf32> -> vector<17x32xf32>
    %c77_248 = arith.constant 77 : index
    %c0_249 = arith.constant 0 : index
    %795 = vector.load %arg3[%c77_248, %c0_249] : memref<136x128xf32, #tpu.memory_space<vmem>>, vector<1x32xf32>
    %796 = vector.shape_cast %795 : vector<1x32xf32> to vector<32xf32>
    %797 = vector.shape_cast %796 : vector<32xf32> to vector<1x32xf32>
    %798 = vector.broadcast %797 : vector<1x32xf32> to vector<17x32xf32>
    %799 = arith.addf %794, %798 : vector<17x32xf32>
    %c112_250 = arith.constant 112 : index
    %c0_251 = arith.constant 0 : index
    %800 = vector.load %arg4[%c112_250, %c0_251] : memref<1008x128xbf16, #tpu.memory_space<vmem>>, vector<32x32xbf16>
    %801 = arith.truncf %783 : vector<17x32xf32> to vector<17x32xbf16>
    %cst_252 = arith.constant dense<0.000000e+00> : vector<17x32xf32>
    %802 = tpu.matmul %801, %800, %cst_252 {dimension_numbers = #tpu.dot_dimension_numbers<[1], [0], [0], [1], [0, 0, 1, 1], [], []>} : vector<17x32xbf16>, vector<32x32xbf16>, vector<17x32xf32> -> vector<17x32xf32>
    %c78_253 = arith.constant 78 : index
    %c0_254 = arith.constant 0 : index
    %803 = vector.load %arg3[%c78_253, %c0_254] : memref<136x128xf32, #tpu.memory_space<vmem>>, vector<1x32xf32>
    %804 = vector.shape_cast %803 : vector<1x32xf32> to vector<32xf32>
    %805 = vector.shape_cast %804 : vector<32xf32> to vector<1x32xf32>
    %806 = vector.broadcast %805 : vector<1x32xf32> to vector<17x32xf32>
    %807 = arith.addf %802, %806 : vector<17x32xf32>
    %808 = arith.truncf %799 : vector<17x32xf32> to vector<17x32xbf16>
    %cst_255 = arith.constant 0.000000e+00 : f32
    %809 = vector.broadcast %cst_255 : f32 to vector<17x32xf32>
    %810 = arith.mulf %791, %7 : vector<17x32xf32>
    %811 = arith.truncf %810 : vector<17x32xf32> to vector<17x32xbf16>
    %812 = arith.mulf %807, %7 : vector<17x32xf32>
    %813 = arith.truncf %812 : vector<17x32xf32> to vector<17x32xbf16>
    %cst_256 = arith.constant dense<0.000000e+00> : vector<17x17xf32>
    %814 = tpu.matmul %811, %808, %cst_256 {dimension_numbers = #tpu.dot_dimension_numbers<[1], [1], [0], [0], [0, 0, 1, 0], [], []>} : vector<17x32xbf16>, vector<17x32xbf16>, vector<17x17xf32> -> vector<17x17xf32>
    %cst_257 = arith.constant dense<0xFF800000> : vector<17xf32>
    %815 = vector.multi_reduction <maximumf>, %814, %cst_257 [1] : vector<17x17xf32> to vector<17xf32>
    %816 = vector.shape_cast %815 : vector<17xf32> to vector<17x1xf32>
    %817 = vector.broadcast %816 : vector<17x1xf32> to vector<17x17xf32>
    %818 = arith.subf %814, %817 : vector<17x17xf32>
    %819 = math.exp %818 : vector<17x17xf32>
    %cst_258 = arith.constant dense<0.000000e+00> : vector<17xf32>
    %820 = vector.multi_reduction <add>, %819, %cst_258 [1] : vector<17x17xf32> to vector<17xf32>
    %821 = vector.shape_cast %820 : vector<17xf32> to vector<17x1xf32>
    %822 = tpu.reciprocal %821 {approx = true} : vector<17x1xf32> -> vector<17x1xf32>
    %823 = vector.broadcast %822 : vector<17x1xf32> to vector<17x17xf32>
    %824 = arith.mulf %819, %823 : vector<17x17xf32>
    %825 = arith.truncf %824 : vector<17x17xf32> to vector<17x17xbf16>
    %cst_259 = arith.constant dense<0.000000e+00> : vector<17x32xf32>
    %826 = tpu.matmul %825, %813, %cst_259 {dimension_numbers = #tpu.dot_dimension_numbers<[1], [0], [0], [1], [0, 0, 1, 1], [], []>} : vector<17x17xbf16>, vector<17x32xbf16>, vector<17x32xf32> -> vector<17x32xf32>
    %827 = arith.addf %809, %826 : vector<17x32xf32>
    %828 = arith.mulf %791, %14 : vector<17x32xf32>
    %829 = arith.truncf %828 : vector<17x32xf32> to vector<17x32xbf16>
    %830 = arith.mulf %807, %14 : vector<17x32xf32>
    %831 = arith.truncf %830 : vector<17x32xf32> to vector<17x32xbf16>
    %cst_260 = arith.constant dense<0.000000e+00> : vector<17x17xf32>
    %832 = tpu.matmul %829, %808, %cst_260 {dimension_numbers = #tpu.dot_dimension_numbers<[1], [1], [0], [0], [0, 0, 1, 0], [], []>} : vector<17x32xbf16>, vector<17x32xbf16>, vector<17x17xf32> -> vector<17x17xf32>
    %cst_261 = arith.constant dense<0xFF800000> : vector<17xf32>
    %833 = vector.multi_reduction <maximumf>, %832, %cst_261 [1] : vector<17x17xf32> to vector<17xf32>
    %834 = vector.shape_cast %833 : vector<17xf32> to vector<17x1xf32>
    %835 = vector.broadcast %834 : vector<17x1xf32> to vector<17x17xf32>
    %836 = arith.subf %832, %835 : vector<17x17xf32>
    %837 = math.exp %836 : vector<17x17xf32>
    %cst_262 = arith.constant dense<0.000000e+00> : vector<17xf32>
    %838 = vector.multi_reduction <add>, %837, %cst_262 [1] : vector<17x17xf32> to vector<17xf32>
    %839 = vector.shape_cast %838 : vector<17xf32> to vector<17x1xf32>
    %840 = tpu.reciprocal %839 {approx = true} : vector<17x1xf32> -> vector<17x1xf32>
    %841 = vector.broadcast %840 : vector<17x1xf32> to vector<17x17xf32>
    %842 = arith.mulf %837, %841 : vector<17x17xf32>
    %843 = arith.truncf %842 : vector<17x17xf32> to vector<17x17xbf16>
    %cst_263 = arith.constant dense<0.000000e+00> : vector<17x32xf32>
    %844 = tpu.matmul %843, %831, %cst_263 {dimension_numbers = #tpu.dot_dimension_numbers<[1], [0], [0], [1], [0, 0, 1, 1], [], []>} : vector<17x17xbf16>, vector<17x32xbf16>, vector<17x32xf32> -> vector<17x32xf32>
    %845 = arith.addf %827, %844 : vector<17x32xf32>
    %846 = arith.mulf %791, %21 : vector<17x32xf32>
    %847 = arith.truncf %846 : vector<17x32xf32> to vector<17x32xbf16>
    %848 = arith.mulf %807, %21 : vector<17x32xf32>
    %849 = arith.truncf %848 : vector<17x32xf32> to vector<17x32xbf16>
    %cst_264 = arith.constant dense<0.000000e+00> : vector<17x17xf32>
    %850 = tpu.matmul %847, %808, %cst_264 {dimension_numbers = #tpu.dot_dimension_numbers<[1], [1], [0], [0], [0, 0, 1, 0], [], []>} : vector<17x32xbf16>, vector<17x32xbf16>, vector<17x17xf32> -> vector<17x17xf32>
    %cst_265 = arith.constant dense<0xFF800000> : vector<17xf32>
    %851 = vector.multi_reduction <maximumf>, %850, %cst_265 [1] : vector<17x17xf32> to vector<17xf32>
    %852 = vector.shape_cast %851 : vector<17xf32> to vector<17x1xf32>
    %853 = vector.broadcast %852 : vector<17x1xf32> to vector<17x17xf32>
    %854 = arith.subf %850, %853 : vector<17x17xf32>
    %855 = math.exp %854 : vector<17x17xf32>
    %cst_266 = arith.constant dense<0.000000e+00> : vector<17xf32>
    %856 = vector.multi_reduction <add>, %855, %cst_266 [1] : vector<17x17xf32> to vector<17xf32>
    %857 = vector.shape_cast %856 : vector<17xf32> to vector<17x1xf32>
    %858 = tpu.reciprocal %857 {approx = true} : vector<17x1xf32> -> vector<17x1xf32>
    %859 = vector.broadcast %858 : vector<17x1xf32> to vector<17x17xf32>
    %860 = arith.mulf %855, %859 : vector<17x17xf32>
    %861 = arith.truncf %860 : vector<17x17xf32> to vector<17x17xbf16>
    %cst_267 = arith.constant dense<0.000000e+00> : vector<17x32xf32>
    %862 = tpu.matmul %861, %849, %cst_267 {dimension_numbers = #tpu.dot_dimension_numbers<[1], [0], [0], [1], [0, 0, 1, 1], [], []>} : vector<17x17xbf16>, vector<17x32xbf16>, vector<17x32xf32> -> vector<17x32xf32>
    %863 = arith.addf %845, %862 : vector<17x32xf32>
    %864 = arith.mulf %791, %28 : vector<17x32xf32>
    %865 = arith.truncf %864 : vector<17x32xf32> to vector<17x32xbf16>
    %866 = arith.mulf %807, %28 : vector<17x32xf32>
    %867 = arith.truncf %866 : vector<17x32xf32> to vector<17x32xbf16>
    %cst_268 = arith.constant dense<0.000000e+00> : vector<17x17xf32>
    %868 = tpu.matmul %865, %808, %cst_268 {dimension_numbers = #tpu.dot_dimension_numbers<[1], [1], [0], [0], [0, 0, 1, 0], [], []>} : vector<17x32xbf16>, vector<17x32xbf16>, vector<17x17xf32> -> vector<17x17xf32>
    %cst_269 = arith.constant dense<0xFF800000> : vector<17xf32>
    %869 = vector.multi_reduction <maximumf>, %868, %cst_269 [1] : vector<17x17xf32> to vector<17xf32>
    %870 = vector.shape_cast %869 : vector<17xf32> to vector<17x1xf32>
    %871 = vector.broadcast %870 : vector<17x1xf32> to vector<17x17xf32>
    %872 = arith.subf %868, %871 : vector<17x17xf32>
    %873 = math.exp %872 : vector<17x17xf32>
    %cst_270 = arith.constant dense<0.000000e+00> : vector<17xf32>
    %874 = vector.multi_reduction <add>, %873, %cst_270 [1] : vector<17x17xf32> to vector<17xf32>
    %875 = vector.shape_cast %874 : vector<17xf32> to vector<17x1xf32>
    %876 = tpu.reciprocal %875 {approx = true} : vector<17x1xf32> -> vector<17x1xf32>
    %877 = vector.broadcast %876 : vector<17x1xf32> to vector<17x17xf32>
    %878 = arith.mulf %873, %877 : vector<17x17xf32>
    %879 = arith.truncf %878 : vector<17x17xf32> to vector<17x17xbf16>
    %cst_271 = arith.constant dense<0.000000e+00> : vector<17x32xf32>
    %880 = tpu.matmul %879, %867, %cst_271 {dimension_numbers = #tpu.dot_dimension_numbers<[1], [0], [0], [1], [0, 0, 1, 1], [], []>} : vector<17x17xbf16>, vector<17x32xbf16>, vector<17x32xf32> -> vector<17x32xf32>
    %881 = arith.addf %863, %880 : vector<17x32xf32>
    %c144_272 = arith.constant 144 : index
    %c0_273 = arith.constant 0 : index
    %882 = vector.load %arg4[%c144_272, %c0_273] : memref<1008x128xbf16, #tpu.memory_space<vmem>>, vector<32x32xbf16>
    %883 = arith.truncf %881 : vector<17x32xf32> to vector<17x32xbf16>
    %cst_274 = arith.constant dense<0.000000e+00> : vector<17x32xf32>
    %884 = tpu.matmul %883, %882, %cst_274 {dimension_numbers = #tpu.dot_dimension_numbers<[1], [0], [0], [1], [0, 0, 1, 1], [], []>} : vector<17x32xbf16>, vector<32x32xbf16>, vector<17x32xf32> -> vector<17x32xf32>
    %885 = arith.addf %755, %884 : vector<17x32xf32>
    %c79_275 = arith.constant 79 : index
    %c0_276 = arith.constant 0 : index
    %886 = vector.load %arg3[%c79_275, %c0_276] : memref<136x128xf32, #tpu.memory_space<vmem>>, vector<1x32xf32>
    %887 = vector.shape_cast %886 : vector<1x32xf32> to vector<32xf32>
    %888 = vector.shape_cast %887 : vector<32xf32> to vector<1x32xf32>
    %889 = vector.broadcast %888 : vector<1x32xf32> to vector<17x32xf32>
    %890 = arith.addf %885, %889 : vector<17x32xf32>
    %c74_277 = arith.constant 74 : index
    %c0_278 = arith.constant 0 : index
    %891 = vector.load %arg3[%c74_277, %c0_278] : memref<136x128xf32, #tpu.memory_space<vmem>>, vector<1x32xf32>
    %892 = vector.shape_cast %891 : vector<1x32xf32> to vector<32xf32>
    %c75_279 = arith.constant 75 : index
    %c0_280 = arith.constant 0 : index
    %893 = vector.load %arg3[%c75_279, %c0_280] : memref<136x128xf32, #tpu.memory_space<vmem>>, vector<1x32xf32>
    %894 = vector.shape_cast %893 : vector<1x32xf32> to vector<32xf32>
    %cst_281 = arith.constant dense<0.000000e+00> : vector<17xf32>
    %895 = vector.multi_reduction <add>, %890, %cst_281 [1] : vector<17x32xf32> to vector<17xf32>
    %896 = vector.shape_cast %895 : vector<17xf32> to vector<17x1xf32>
    %cst_282 = arith.constant 3.200000e+01 : f32
    %897 = vector.broadcast %cst_282 : f32 to vector<17x1xf32>
    %898 = arith.divf %896, %897 : vector<17x1xf32>
    %899 = vector.broadcast %898 : vector<17x1xf32> to vector<17x32xf32>
    %900 = arith.subf %890, %899 : vector<17x32xf32>
    %901 = arith.mulf %900, %900 : vector<17x32xf32>
    %cst_283 = arith.constant dense<0.000000e+00> : vector<17xf32>
    %902 = vector.multi_reduction <add>, %901, %cst_283 [1] : vector<17x32xf32> to vector<17xf32>
    %903 = vector.shape_cast %902 : vector<17xf32> to vector<17x1xf32>
    %cst_284 = arith.constant 3.200000e+01 : f32
    %904 = vector.broadcast %cst_284 : f32 to vector<17x1xf32>
    %905 = arith.divf %903, %904 : vector<17x1xf32>
    %906 = vector.broadcast %898 : vector<17x1xf32> to vector<17x32xf32>
    %907 = arith.subf %890, %906 : vector<17x32xf32>
    %cst_285 = arith.constant 9.99999997E-7 : f32
    %908 = vector.broadcast %cst_285 : f32 to vector<17x1xf32>
    %909 = arith.addf %905, %908 : vector<17x1xf32>
    %910 = math.rsqrt %909 : vector<17x1xf32>
    %911 = vector.broadcast %910 : vector<17x1xf32> to vector<17x32xf32>
    %912 = arith.mulf %907, %911 : vector<17x32xf32>
    %913 = vector.shape_cast %892 : vector<32xf32> to vector<1x32xf32>
    %914 = vector.broadcast %913 : vector<1x32xf32> to vector<17x32xf32>
    %915 = arith.mulf %912, %914 : vector<17x32xf32>
    %916 = vector.shape_cast %894 : vector<32xf32> to vector<1x32xf32>
    %917 = vector.broadcast %916 : vector<1x32xf32> to vector<17x32xf32>
    %918 = arith.addf %915, %917 : vector<17x32xf32>
    %c176_286 = arith.constant 176 : index
    %c0_287 = arith.constant 0 : index
    %919 = vector.load %arg4[%c176_286, %c0_287] : memref<1008x128xbf16, #tpu.memory_space<vmem>>, vector<32x128xbf16>
    %920 = arith.truncf %918 : vector<17x32xf32> to vector<17x32xbf16>
    %cst_288 = arith.constant dense<0.000000e+00> : vector<17x128xf32>
    %921 = tpu.matmul %920, %919, %cst_288 {dimension_numbers = #tpu.dot_dimension_numbers<[1], [0], [0], [1], [0, 0, 1, 1], [], []>} : vector<17x32xbf16>, vector<32x128xbf16>, vector<17x128xf32> -> vector<17x128xf32>
    %c80_289 = arith.constant 80 : index
    %c0_290 = arith.constant 0 : index
    %922 = vector.load %arg3[%c80_289, %c0_290] : memref<136x128xf32, #tpu.memory_space<vmem>>, vector<1x128xf32>
    %923 = vector.shape_cast %922 : vector<1x128xf32> to vector<128xf32>
    %924 = vector.shape_cast %923 : vector<128xf32> to vector<1x128xf32>
    %925 = vector.broadcast %924 : vector<1x128xf32> to vector<17x128xf32>
    %926 = arith.addf %921, %925 : vector<17x128xf32>
    %cst_291 = arith.constant 5.000000e-01 : f32
    %927 = vector.broadcast %cst_291 : f32 to vector<17x128xf32>
    %928 = arith.mulf %927, %926 : vector<17x128xf32>
    %929 = arith.mulf %926, %926 : vector<17x128xf32>
    %930 = arith.mulf %929, %926 : vector<17x128xf32>
    %cst_292 = arith.constant 4.471500e-02 : f32
    %931 = vector.broadcast %cst_292 : f32 to vector<17x128xf32>
    %932 = arith.mulf %931, %930 : vector<17x128xf32>
    %933 = arith.addf %926, %932 : vector<17x128xf32>
    %cst_293 = arith.constant 0.797884583 : f32
    %934 = vector.broadcast %cst_293 : f32 to vector<17x128xf32>
    %935 = arith.mulf %934, %933 : vector<17x128xf32>
    %936 = math.tanh %935 : vector<17x128xf32>
    %cst_294 = arith.constant 1.000000e+00 : f32
    %937 = vector.broadcast %cst_294 : f32 to vector<17x128xf32>
    %938 = arith.addf %937, %936 : vector<17x128xf32>
    %939 = arith.mulf %928, %938 : vector<17x128xf32>
    %c208_295 = arith.constant 208 : index
    %c0_296 = arith.constant 0 : index
    %940 = vector.load %arg4[%c208_295, %c0_296] : memref<1008x128xbf16, #tpu.memory_space<vmem>>, vector<128x32xbf16>
    %941 = arith.truncf %939 : vector<17x128xf32> to vector<17x128xbf16>
    %cst_297 = arith.constant dense<0.000000e+00> : vector<17x32xf32>
    %942 = tpu.matmul %941, %940, %cst_297 {dimension_numbers = #tpu.dot_dimension_numbers<[1], [0], [0], [1], [0, 0, 1, 1], [], []>} : vector<17x128xbf16>, vector<128x32xbf16>, vector<17x32xf32> -> vector<17x32xf32>
    %943 = arith.addf %890, %942 : vector<17x32xf32>
    %c81_298 = arith.constant 81 : index
    %c0_299 = arith.constant 0 : index
    %944 = vector.load %arg3[%c81_298, %c0_299] : memref<136x128xf32, #tpu.memory_space<vmem>>, vector<1x32xf32>
    %945 = vector.shape_cast %944 : vector<1x32xf32> to vector<32xf32>
    %946 = vector.shape_cast %945 : vector<32xf32> to vector<1x32xf32>
    %947 = vector.broadcast %946 : vector<1x32xf32> to vector<17x32xf32>
    %948 = arith.addf %943, %947 : vector<17x32xf32>
    %949 = arith.addf %948, %30 : vector<17x32xf32>
    %c88_300 = arith.constant 88 : index
    %c0_301 = arith.constant 0 : index
    %950 = vector.load %arg3[%c88_300, %c0_301] : memref<136x128xf32, #tpu.memory_space<vmem>>, vector<1x32xf32>
    %951 = vector.shape_cast %950 : vector<1x32xf32> to vector<32xf32>
    %c89_302 = arith.constant 89 : index
    %c0_303 = arith.constant 0 : index
    %952 = vector.load %arg3[%c89_302, %c0_303] : memref<136x128xf32, #tpu.memory_space<vmem>>, vector<1x32xf32>
    %953 = vector.shape_cast %952 : vector<1x32xf32> to vector<32xf32>
    %cst_304 = arith.constant dense<0.000000e+00> : vector<17xf32>
    %954 = vector.multi_reduction <add>, %949, %cst_304 [1] : vector<17x32xf32> to vector<17xf32>
    %955 = vector.shape_cast %954 : vector<17xf32> to vector<17x1xf32>
    %cst_305 = arith.constant 3.200000e+01 : f32
    %956 = vector.broadcast %cst_305 : f32 to vector<17x1xf32>
    %957 = arith.divf %955, %956 : vector<17x1xf32>
    %958 = vector.broadcast %957 : vector<17x1xf32> to vector<17x32xf32>
    %959 = arith.subf %949, %958 : vector<17x32xf32>
    %960 = arith.mulf %959, %959 : vector<17x32xf32>
    %cst_306 = arith.constant dense<0.000000e+00> : vector<17xf32>
    %961 = vector.multi_reduction <add>, %960, %cst_306 [1] : vector<17x32xf32> to vector<17xf32>
    %962 = vector.shape_cast %961 : vector<17xf32> to vector<17x1xf32>
    %cst_307 = arith.constant 3.200000e+01 : f32
    %963 = vector.broadcast %cst_307 : f32 to vector<17x1xf32>
    %964 = arith.divf %962, %963 : vector<17x1xf32>
    %965 = vector.broadcast %957 : vector<17x1xf32> to vector<17x32xf32>
    %966 = arith.subf %949, %965 : vector<17x32xf32>
    %cst_308 = arith.constant 9.99999997E-7 : f32
    %967 = vector.broadcast %cst_308 : f32 to vector<17x1xf32>
    %968 = arith.addf %964, %967 : vector<17x1xf32>
    %969 = math.rsqrt %968 : vector<17x1xf32>
    %970 = vector.broadcast %969 : vector<17x1xf32> to vector<17x32xf32>
    %971 = arith.mulf %966, %970 : vector<17x32xf32>
    %972 = vector.shape_cast %951 : vector<32xf32> to vector<1x32xf32>
    %973 = vector.broadcast %972 : vector<1x32xf32> to vector<17x32xf32>
    %974 = arith.mulf %971, %973 : vector<17x32xf32>
    %975 = vector.shape_cast %953 : vector<32xf32> to vector<1x32xf32>
    %976 = vector.broadcast %975 : vector<1x32xf32> to vector<17x32xf32>
    %977 = arith.addf %974, %976 : vector<17x32xf32>
    %c336_309 = arith.constant 336 : index
    %c0_310 = arith.constant 0 : index
    %978 = vector.load %arg4[%c336_309, %c0_310] : memref<1008x128xbf16, #tpu.memory_space<vmem>>, vector<32x32xbf16>
    %979 = arith.truncf %977 : vector<17x32xf32> to vector<17x32xbf16>
    %cst_311 = arith.constant dense<0.000000e+00> : vector<17x32xf32>
    %980 = tpu.matmul %979, %978, %cst_311 {dimension_numbers = #tpu.dot_dimension_numbers<[1], [0], [0], [1], [0, 0, 1, 1], [], []>} : vector<17x32xbf16>, vector<32x32xbf16>, vector<17x32xf32> -> vector<17x32xf32>
    %c92_312 = arith.constant 92 : index
    %c0_313 = arith.constant 0 : index
    %981 = vector.load %arg3[%c92_312, %c0_313] : memref<136x128xf32, #tpu.memory_space<vmem>>, vector<1x32xf32>
    %982 = vector.shape_cast %981 : vector<1x32xf32> to vector<32xf32>
    %983 = vector.shape_cast %982 : vector<32xf32> to vector<1x32xf32>
    %984 = vector.broadcast %983 : vector<1x32xf32> to vector<17x32xf32>
    %985 = arith.addf %980, %984 : vector<17x32xf32>
    %c368_314 = arith.constant 368 : index
    %c0_315 = arith.constant 0 : index
    %986 = vector.load %arg4[%c368_314, %c0_315] : memref<1008x128xbf16, #tpu.memory_space<vmem>>, vector<32x32xbf16>
    %987 = arith.truncf %977 : vector<17x32xf32> to vector<17x32xbf16>
    %cst_316 = arith.constant dense<0.000000e+00> : vector<17x32xf32>
    %988 = tpu.matmul %987, %986, %cst_316 {dimension_numbers = #tpu.dot_dimension_numbers<[1], [0], [0], [1], [0, 0, 1, 1], [], []>} : vector<17x32xbf16>, vector<32x32xbf16>, vector<17x32xf32> -> vector<17x32xf32>
    %c93_317 = arith.constant 93 : index
    %c0_318 = arith.constant 0 : index
    %989 = vector.load %arg3[%c93_317, %c0_318] : memref<136x128xf32, #tpu.memory_space<vmem>>, vector<1x32xf32>
    %990 = vector.shape_cast %989 : vector<1x32xf32> to vector<32xf32>
    %991 = vector.shape_cast %990 : vector<32xf32> to vector<1x32xf32>
    %992 = vector.broadcast %991 : vector<1x32xf32> to vector<17x32xf32>
    %993 = arith.addf %988, %992 : vector<17x32xf32>
    %c400_319 = arith.constant 400 : index
    %c0_320 = arith.constant 0 : index
    %994 = vector.load %arg4[%c400_319, %c0_320] : memref<1008x128xbf16, #tpu.memory_space<vmem>>, vector<32x32xbf16>
    %995 = arith.truncf %977 : vector<17x32xf32> to vector<17x32xbf16>
    %cst_321 = arith.constant dense<0.000000e+00> : vector<17x32xf32>
    %996 = tpu.matmul %995, %994, %cst_321 {dimension_numbers = #tpu.dot_dimension_numbers<[1], [0], [0], [1], [0, 0, 1, 1], [], []>} : vector<17x32xbf16>, vector<32x32xbf16>, vector<17x32xf32> -> vector<17x32xf32>
    %c94_322 = arith.constant 94 : index
    %c0_323 = arith.constant 0 : index
    %997 = vector.load %arg3[%c94_322, %c0_323] : memref<136x128xf32, #tpu.memory_space<vmem>>, vector<1x32xf32>
    %998 = vector.shape_cast %997 : vector<1x32xf32> to vector<32xf32>
    %999 = vector.shape_cast %998 : vector<32xf32> to vector<1x32xf32>
    %1000 = vector.broadcast %999 : vector<1x32xf32> to vector<17x32xf32>
    %1001 = arith.addf %996, %1000 : vector<17x32xf32>
    %1002 = arith.truncf %993 : vector<17x32xf32> to vector<17x32xbf16>
    %cst_324 = arith.constant 0.000000e+00 : f32
    %1003 = vector.broadcast %cst_324 : f32 to vector<17x32xf32>
    %1004 = arith.mulf %985, %7 : vector<17x32xf32>
    %1005 = arith.truncf %1004 : vector<17x32xf32> to vector<17x32xbf16>
    %1006 = arith.mulf %1001, %7 : vector<17x32xf32>
    %1007 = arith.truncf %1006 : vector<17x32xf32> to vector<17x32xbf16>
    %cst_325 = arith.constant dense<0.000000e+00> : vector<17x17xf32>
    %1008 = tpu.matmul %1005, %1002, %cst_325 {dimension_numbers = #tpu.dot_dimension_numbers<[1], [1], [0], [0], [0, 0, 1, 0], [], []>} : vector<17x32xbf16>, vector<17x32xbf16>, vector<17x17xf32> -> vector<17x17xf32>
    %cst_326 = arith.constant dense<0xFF800000> : vector<17xf32>
    %1009 = vector.multi_reduction <maximumf>, %1008, %cst_326 [1] : vector<17x17xf32> to vector<17xf32>
    %1010 = vector.shape_cast %1009 : vector<17xf32> to vector<17x1xf32>
    %1011 = vector.broadcast %1010 : vector<17x1xf32> to vector<17x17xf32>
    %1012 = arith.subf %1008, %1011 : vector<17x17xf32>
    %1013 = math.exp %1012 : vector<17x17xf32>
    %cst_327 = arith.constant dense<0.000000e+00> : vector<17xf32>
    %1014 = vector.multi_reduction <add>, %1013, %cst_327 [1] : vector<17x17xf32> to vector<17xf32>
    %1015 = vector.shape_cast %1014 : vector<17xf32> to vector<17x1xf32>
    %1016 = tpu.reciprocal %1015 {approx = true} : vector<17x1xf32> -> vector<17x1xf32>
    %1017 = vector.broadcast %1016 : vector<17x1xf32> to vector<17x17xf32>
    %1018 = arith.mulf %1013, %1017 : vector<17x17xf32>
    %1019 = arith.truncf %1018 : vector<17x17xf32> to vector<17x17xbf16>
    %cst_328 = arith.constant dense<0.000000e+00> : vector<17x32xf32>
    %1020 = tpu.matmul %1019, %1007, %cst_328 {dimension_numbers = #tpu.dot_dimension_numbers<[1], [0], [0], [1], [0, 0, 1, 1], [], []>} : vector<17x17xbf16>, vector<17x32xbf16>, vector<17x32xf32> -> vector<17x32xf32>
    %1021 = arith.addf %1003, %1020 : vector<17x32xf32>
    %1022 = arith.mulf %985, %14 : vector<17x32xf32>
    %1023 = arith.truncf %1022 : vector<17x32xf32> to vector<17x32xbf16>
    %1024 = arith.mulf %1001, %14 : vector<17x32xf32>
    %1025 = arith.truncf %1024 : vector<17x32xf32> to vector<17x32xbf16>
    %cst_329 = arith.constant dense<0.000000e+00> : vector<17x17xf32>
    %1026 = tpu.matmul %1023, %1002, %cst_329 {dimension_numbers = #tpu.dot_dimension_numbers<[1], [1], [0], [0], [0, 0, 1, 0], [], []>} : vector<17x32xbf16>, vector<17x32xbf16>, vector<17x17xf32> -> vector<17x17xf32>
    %cst_330 = arith.constant dense<0xFF800000> : vector<17xf32>
    %1027 = vector.multi_reduction <maximumf>, %1026, %cst_330 [1] : vector<17x17xf32> to vector<17xf32>
    %1028 = vector.shape_cast %1027 : vector<17xf32> to vector<17x1xf32>
    %1029 = vector.broadcast %1028 : vector<17x1xf32> to vector<17x17xf32>
    %1030 = arith.subf %1026, %1029 : vector<17x17xf32>
    %1031 = math.exp %1030 : vector<17x17xf32>
    %cst_331 = arith.constant dense<0.000000e+00> : vector<17xf32>
    %1032 = vector.multi_reduction <add>, %1031, %cst_331 [1] : vector<17x17xf32> to vector<17xf32>
    %1033 = vector.shape_cast %1032 : vector<17xf32> to vector<17x1xf32>
    %1034 = tpu.reciprocal %1033 {approx = true} : vector<17x1xf32> -> vector<17x1xf32>
    %1035 = vector.broadcast %1034 : vector<17x1xf32> to vector<17x17xf32>
    %1036 = arith.mulf %1031, %1035 : vector<17x17xf32>
    %1037 = arith.truncf %1036 : vector<17x17xf32> to vector<17x17xbf16>
    %cst_332 = arith.constant dense<0.000000e+00> : vector<17x32xf32>
    %1038 = tpu.matmul %1037, %1025, %cst_332 {dimension_numbers = #tpu.dot_dimension_numbers<[1], [0], [0], [1], [0, 0, 1, 1], [], []>} : vector<17x17xbf16>, vector<17x32xbf16>, vector<17x32xf32> -> vector<17x32xf32>
    %1039 = arith.addf %1021, %1038 : vector<17x32xf32>
    %1040 = arith.mulf %985, %21 : vector<17x32xf32>
    %1041 = arith.truncf %1040 : vector<17x32xf32> to vector<17x32xbf16>
    %1042 = arith.mulf %1001, %21 : vector<17x32xf32>
    %1043 = arith.truncf %1042 : vector<17x32xf32> to vector<17x32xbf16>
    %cst_333 = arith.constant dense<0.000000e+00> : vector<17x17xf32>
    %1044 = tpu.matmul %1041, %1002, %cst_333 {dimension_numbers = #tpu.dot_dimension_numbers<[1], [1], [0], [0], [0, 0, 1, 0], [], []>} : vector<17x32xbf16>, vector<17x32xbf16>, vector<17x17xf32> -> vector<17x17xf32>
    %cst_334 = arith.constant dense<0xFF800000> : vector<17xf32>
    %1045 = vector.multi_reduction <maximumf>, %1044, %cst_334 [1] : vector<17x17xf32> to vector<17xf32>
    %1046 = vector.shape_cast %1045 : vector<17xf32> to vector<17x1xf32>
    %1047 = vector.broadcast %1046 : vector<17x1xf32> to vector<17x17xf32>
    %1048 = arith.subf %1044, %1047 : vector<17x17xf32>
    %1049 = math.exp %1048 : vector<17x17xf32>
    %cst_335 = arith.constant dense<0.000000e+00> : vector<17xf32>
    %1050 = vector.multi_reduction <add>, %1049, %cst_335 [1] : vector<17x17xf32> to vector<17xf32>
    %1051 = vector.shape_cast %1050 : vector<17xf32> to vector<17x1xf32>
    %1052 = tpu.reciprocal %1051 {approx = true} : vector<17x1xf32> -> vector<17x1xf32>
    %1053 = vector.broadcast %1052 : vector<17x1xf32> to vector<17x17xf32>
    %1054 = arith.mulf %1049, %1053 : vector<17x17xf32>
    %1055 = arith.truncf %1054 : vector<17x17xf32> to vector<17x17xbf16>
    %cst_336 = arith.constant dense<0.000000e+00> : vector<17x32xf32>
    %1056 = tpu.matmul %1055, %1043, %cst_336 {dimension_numbers = #tpu.dot_dimension_numbers<[1], [0], [0], [1], [0, 0, 1, 1], [], []>} : vector<17x17xbf16>, vector<17x32xbf16>, vector<17x32xf32> -> vector<17x32xf32>
    %1057 = arith.addf %1039, %1056 : vector<17x32xf32>
    %1058 = arith.mulf %985, %28 : vector<17x32xf32>
    %1059 = arith.truncf %1058 : vector<17x32xf32> to vector<17x32xbf16>
    %1060 = arith.mulf %1001, %28 : vector<17x32xf32>
    %1061 = arith.truncf %1060 : vector<17x32xf32> to vector<17x32xbf16>
    %cst_337 = arith.constant dense<0.000000e+00> : vector<17x17xf32>
    %1062 = tpu.matmul %1059, %1002, %cst_337 {dimension_numbers = #tpu.dot_dimension_numbers<[1], [1], [0], [0], [0, 0, 1, 0], [], []>} : vector<17x32xbf16>, vector<17x32xbf16>, vector<17x17xf32> -> vector<17x17xf32>
    %cst_338 = arith.constant dense<0xFF800000> : vector<17xf32>
    %1063 = vector.multi_reduction <maximumf>, %1062, %cst_338 [1] : vector<17x17xf32> to vector<17xf32>
    %1064 = vector.shape_cast %1063 : vector<17xf32> to vector<17x1xf32>
    %1065 = vector.broadcast %1064 : vector<17x1xf32> to vector<17x17xf32>
    %1066 = arith.subf %1062, %1065 : vector<17x17xf32>
    %1067 = math.exp %1066 : vector<17x17xf32>
    %cst_339 = arith.constant dense<0.000000e+00> : vector<17xf32>
    %1068 = vector.multi_reduction <add>, %1067, %cst_339 [1] : vector<17x17xf32> to vector<17xf32>
    %1069 = vector.shape_cast %1068 : vector<17xf32> to vector<17x1xf32>
    %1070 = tpu.reciprocal %1069 {approx = true} : vector<17x1xf32> -> vector<17x1xf32>
    %1071 = vector.broadcast %1070 : vector<17x1xf32> to vector<17x17xf32>
    %1072 = arith.mulf %1067, %1071 : vector<17x17xf32>
    %1073 = arith.truncf %1072 : vector<17x17xf32> to vector<17x17xbf16>
    %cst_340 = arith.constant dense<0.000000e+00> : vector<17x32xf32>
    %1074 = tpu.matmul %1073, %1061, %cst_340 {dimension_numbers = #tpu.dot_dimension_numbers<[1], [0], [0], [1], [0, 0, 1, 1], [], []>} : vector<17x17xbf16>, vector<17x32xbf16>, vector<17x32xf32> -> vector<17x32xf32>
    %1075 = arith.addf %1057, %1074 : vector<17x32xf32>
    %c432_341 = arith.constant 432 : index
    %c0_342 = arith.constant 0 : index
    %1076 = vector.load %arg4[%c432_341, %c0_342] : memref<1008x128xbf16, #tpu.memory_space<vmem>>, vector<32x32xbf16>
    %1077 = arith.truncf %1075 : vector<17x32xf32> to vector<17x32xbf16>
    %cst_343 = arith.constant dense<0.000000e+00> : vector<17x32xf32>
    %1078 = tpu.matmul %1077, %1076, %cst_343 {dimension_numbers = #tpu.dot_dimension_numbers<[1], [0], [0], [1], [0, 0, 1, 1], [], []>} : vector<17x32xbf16>, vector<32x32xbf16>, vector<17x32xf32> -> vector<17x32xf32>
    %1079 = arith.addf %949, %1078 : vector<17x32xf32>
    %c95_344 = arith.constant 95 : index
    %c0_345 = arith.constant 0 : index
    %1080 = vector.load %arg3[%c95_344, %c0_345] : memref<136x128xf32, #tpu.memory_space<vmem>>, vector<1x32xf32>
    %1081 = vector.shape_cast %1080 : vector<1x32xf32> to vector<32xf32>
    %1082 = vector.shape_cast %1081 : vector<32xf32> to vector<1x32xf32>
    %1083 = vector.broadcast %1082 : vector<1x32xf32> to vector<17x32xf32>
    %1084 = arith.addf %1079, %1083 : vector<17x32xf32>
    %c90_346 = arith.constant 90 : index
    %c0_347 = arith.constant 0 : index
    %1085 = vector.load %arg3[%c90_346, %c0_347] : memref<136x128xf32, #tpu.memory_space<vmem>>, vector<1x32xf32>
    %1086 = vector.shape_cast %1085 : vector<1x32xf32> to vector<32xf32>
    %c91_348 = arith.constant 91 : index
    %c0_349 = arith.constant 0 : index
    %1087 = vector.load %arg3[%c91_348, %c0_349] : memref<136x128xf32, #tpu.memory_space<vmem>>, vector<1x32xf32>
    %1088 = vector.shape_cast %1087 : vector<1x32xf32> to vector<32xf32>
    %cst_350 = arith.constant dense<0.000000e+00> : vector<17xf32>
    %1089 = vector.multi_reduction <add>, %1084, %cst_350 [1] : vector<17x32xf32> to vector<17xf32>
    %1090 = vector.shape_cast %1089 : vector<17xf32> to vector<17x1xf32>
    %cst_351 = arith.constant 3.200000e+01 : f32
    %1091 = vector.broadcast %cst_351 : f32 to vector<17x1xf32>
    %1092 = arith.divf %1090, %1091 : vector<17x1xf32>
    %1093 = vector.broadcast %1092 : vector<17x1xf32> to vector<17x32xf32>
    %1094 = arith.subf %1084, %1093 : vector<17x32xf32>
    %1095 = arith.mulf %1094, %1094 : vector<17x32xf32>
    %cst_352 = arith.constant dense<0.000000e+00> : vector<17xf32>
    %1096 = vector.multi_reduction <add>, %1095, %cst_352 [1] : vector<17x32xf32> to vector<17xf32>
    %1097 = vector.shape_cast %1096 : vector<17xf32> to vector<17x1xf32>
    %cst_353 = arith.constant 3.200000e+01 : f32
    %1098 = vector.broadcast %cst_353 : f32 to vector<17x1xf32>
    %1099 = arith.divf %1097, %1098 : vector<17x1xf32>
    %1100 = vector.broadcast %1092 : vector<17x1xf32> to vector<17x32xf32>
    %1101 = arith.subf %1084, %1100 : vector<17x32xf32>
    %cst_354 = arith.constant 9.99999997E-7 : f32
    %1102 = vector.broadcast %cst_354 : f32 to vector<17x1xf32>
    %1103 = arith.addf %1099, %1102 : vector<17x1xf32>
    %1104 = math.rsqrt %1103 : vector<17x1xf32>
    %1105 = vector.broadcast %1104 : vector<17x1xf32> to vector<17x32xf32>
    %1106 = arith.mulf %1101, %1105 : vector<17x32xf32>
    %1107 = vector.shape_cast %1086 : vector<32xf32> to vector<1x32xf32>
    %1108 = vector.broadcast %1107 : vector<1x32xf32> to vector<17x32xf32>
    %1109 = arith.mulf %1106, %1108 : vector<17x32xf32>
    %1110 = vector.shape_cast %1088 : vector<32xf32> to vector<1x32xf32>
    %1111 = vector.broadcast %1110 : vector<1x32xf32> to vector<17x32xf32>
    %1112 = arith.addf %1109, %1111 : vector<17x32xf32>
    %c464_355 = arith.constant 464 : index
    %c0_356 = arith.constant 0 : index
    %1113 = vector.load %arg4[%c464_355, %c0_356] : memref<1008x128xbf16, #tpu.memory_space<vmem>>, vector<32x128xbf16>
    %1114 = arith.truncf %1112 : vector<17x32xf32> to vector<17x32xbf16>
    %cst_357 = arith.constant dense<0.000000e+00> : vector<17x128xf32>
    %1115 = tpu.matmul %1114, %1113, %cst_357 {dimension_numbers = #tpu.dot_dimension_numbers<[1], [0], [0], [1], [0, 0, 1, 1], [], []>} : vector<17x32xbf16>, vector<32x128xbf16>, vector<17x128xf32> -> vector<17x128xf32>
    %c96_358 = arith.constant 96 : index
    %c0_359 = arith.constant 0 : index
    %1116 = vector.load %arg3[%c96_358, %c0_359] : memref<136x128xf32, #tpu.memory_space<vmem>>, vector<1x128xf32>
    %1117 = vector.shape_cast %1116 : vector<1x128xf32> to vector<128xf32>
    %1118 = vector.shape_cast %1117 : vector<128xf32> to vector<1x128xf32>
    %1119 = vector.broadcast %1118 : vector<1x128xf32> to vector<17x128xf32>
    %1120 = arith.addf %1115, %1119 : vector<17x128xf32>
    %cst_360 = arith.constant 5.000000e-01 : f32
    %1121 = vector.broadcast %cst_360 : f32 to vector<17x128xf32>
    %1122 = arith.mulf %1121, %1120 : vector<17x128xf32>
    %1123 = arith.mulf %1120, %1120 : vector<17x128xf32>
    %1124 = arith.mulf %1123, %1120 : vector<17x128xf32>
    %cst_361 = arith.constant 4.471500e-02 : f32
    %1125 = vector.broadcast %cst_361 : f32 to vector<17x128xf32>
    %1126 = arith.mulf %1125, %1124 : vector<17x128xf32>
    %1127 = arith.addf %1120, %1126 : vector<17x128xf32>
    %cst_362 = arith.constant 0.797884583 : f32
    %1128 = vector.broadcast %cst_362 : f32 to vector<17x128xf32>
    %1129 = arith.mulf %1128, %1127 : vector<17x128xf32>
    %1130 = math.tanh %1129 : vector<17x128xf32>
    %cst_363 = arith.constant 1.000000e+00 : f32
    %1131 = vector.broadcast %cst_363 : f32 to vector<17x128xf32>
    %1132 = arith.addf %1131, %1130 : vector<17x128xf32>
    %1133 = arith.mulf %1122, %1132 : vector<17x128xf32>
    %c496_364 = arith.constant 496 : index
    %c0_365 = arith.constant 0 : index
    %1134 = vector.load %arg4[%c496_364, %c0_365] : memref<1008x128xbf16, #tpu.memory_space<vmem>>, vector<128x32xbf16>
    %1135 = arith.truncf %1133 : vector<17x128xf32> to vector<17x128xbf16>
    %cst_366 = arith.constant dense<0.000000e+00> : vector<17x32xf32>
    %1136 = tpu.matmul %1135, %1134, %cst_366 {dimension_numbers = #tpu.dot_dimension_numbers<[1], [0], [0], [1], [0, 0, 1, 1], [], []>} : vector<17x128xbf16>, vector<128x32xbf16>, vector<17x32xf32> -> vector<17x32xf32>
    %1137 = arith.addf %1084, %1136 : vector<17x32xf32>
    %c97_367 = arith.constant 97 : index
    %c0_368 = arith.constant 0 : index
    %1138 = vector.load %arg3[%c97_367, %c0_368] : memref<136x128xf32, #tpu.memory_space<vmem>>, vector<1x32xf32>
    %1139 = vector.shape_cast %1138 : vector<1x32xf32> to vector<32xf32>
    %1140 = vector.shape_cast %1139 : vector<32xf32> to vector<1x32xf32>
    %1141 = vector.broadcast %1140 : vector<1x32xf32> to vector<17x32xf32>
    %1142 = arith.addf %1137, %1141 : vector<17x32xf32>
    %c1_369 = arith.constant 1 : index
    %c1_370 = arith.constant 1 : index
    %c0_371 = arith.constant 0 : index
    %c0_372 = arith.constant 0 : index
    %1143 = vector.load %arg2[%c1_369, %c1_370, %c0_371, %c0_372] : memref<2x2x64x48xf32, #tpu.memory_space<vmem>>, vector<1x1x64x48xf32>
    %1144 = vector.shape_cast %1143 : vector<1x1x64x48xf32> to vector<64x48xf32>
    %c128_373 = arith.constant 128 : index
    %c0_374 = arith.constant 0 : index
    %1145 = vector.load %arg3[%c128_373, %c0_374] : memref<136x128xf32, #tpu.memory_space<vmem>>, vector<1x48xf32>
    %1146 = vector.shape_cast %1145 : vector<1x48xf32> to vector<48xf32>
    %c129_375 = arith.constant 129 : index
    %c0_376 = arith.constant 0 : index
    %1147 = vector.load %arg3[%c129_375, %c0_376] : memref<136x128xf32, #tpu.memory_space<vmem>>, vector<1x48xf32>
    %1148 = vector.shape_cast %1147 : vector<1x48xf32> to vector<48xf32>
    %cst_377 = arith.constant dense<0.000000e+00> : vector<64xf32>
    %1149 = vector.multi_reduction <add>, %1144, %cst_377 [1] : vector<64x48xf32> to vector<64xf32>
    %1150 = vector.shape_cast %1149 : vector<64xf32> to vector<64x1xf32>
    %cst_378 = arith.constant 4.800000e+01 : f32
    %1151 = vector.broadcast %cst_378 : f32 to vector<64x1xf32>
    %1152 = arith.divf %1150, %1151 : vector<64x1xf32>
    %1153 = vector.broadcast %1152 : vector<64x1xf32> to vector<64x48xf32>
    %1154 = arith.subf %1144, %1153 : vector<64x48xf32>
    %1155 = arith.mulf %1154, %1154 : vector<64x48xf32>
    %cst_379 = arith.constant dense<0.000000e+00> : vector<64xf32>
    %1156 = vector.multi_reduction <add>, %1155, %cst_379 [1] : vector<64x48xf32> to vector<64xf32>
    %1157 = vector.shape_cast %1156 : vector<64xf32> to vector<64x1xf32>
    %cst_380 = arith.constant 4.800000e+01 : f32
    %1158 = vector.broadcast %cst_380 : f32 to vector<64x1xf32>
    %1159 = arith.divf %1157, %1158 : vector<64x1xf32>
    %1160 = vector.broadcast %1152 : vector<64x1xf32> to vector<64x48xf32>
    %1161 = arith.subf %1144, %1160 : vector<64x48xf32>
    %cst_381 = arith.constant 9.99999997E-7 : f32
    %1162 = vector.broadcast %cst_381 : f32 to vector<64x1xf32>
    %1163 = arith.addf %1159, %1162 : vector<64x1xf32>
    %1164 = math.rsqrt %1163 : vector<64x1xf32>
    %1165 = vector.broadcast %1164 : vector<64x1xf32> to vector<64x48xf32>
    %1166 = arith.mulf %1161, %1165 : vector<64x48xf32>
    %1167 = vector.shape_cast %1146 : vector<48xf32> to vector<1x48xf32>
    %1168 = vector.broadcast %1167 : vector<1x48xf32> to vector<64x48xf32>
    %1169 = arith.mulf %1166, %1168 : vector<64x48xf32>
    %1170 = vector.shape_cast %1148 : vector<48xf32> to vector<1x48xf32>
    %1171 = vector.broadcast %1170 : vector<1x48xf32> to vector<64x48xf32>
    %1172 = arith.addf %1169, %1171 : vector<64x48xf32>
    %c960_382 = arith.constant 960 : index
    %c0_383 = arith.constant 0 : index
    %1173 = vector.load %arg4[%c960_382, %c0_383] : memref<1008x128xbf16, #tpu.memory_space<vmem>>, vector<48x32xbf16>
    %1174 = arith.truncf %1172 : vector<64x48xf32> to vector<64x48xbf16>
    %cst_384 = arith.constant dense<0.000000e+00> : vector<64x32xf32>
    %1175 = tpu.matmul %1174, %1173, %cst_384 {dimension_numbers = #tpu.dot_dimension_numbers<[1], [0], [0], [1], [0, 0, 1, 1], [], []>} : vector<64x48xbf16>, vector<48x32xbf16>, vector<64x32xf32> -> vector<64x32xf32>
    %c130_385 = arith.constant 130 : index
    %c0_386 = arith.constant 0 : index
    %1176 = vector.load %arg3[%c130_385, %c0_386] : memref<136x128xf32, #tpu.memory_space<vmem>>, vector<1x32xf32>
    %1177 = vector.shape_cast %1176 : vector<1x32xf32> to vector<32xf32>
    %1178 = vector.shape_cast %1177 : vector<32xf32> to vector<1x32xf32>
    %1179 = vector.broadcast %1178 : vector<1x32xf32> to vector<64x32xf32>
    %1180 = arith.addf %1175, %1179 : vector<64x32xf32>
    %1181 = arith.truncf %31 : vector<17x64xf32> to vector<17x64xbf16>
    %1182 = arith.truncf %1180 : vector<64x32xf32> to vector<64x32xbf16>
    %cst_387 = arith.constant dense<0.000000e+00> : vector<17x32xf32>
    %1183 = tpu.matmul %1181, %1182, %cst_387 {dimension_numbers = #tpu.dot_dimension_numbers<[1], [0], [0], [1], [0, 0, 1, 1], [], []>} : vector<17x64xbf16>, vector<64x32xbf16>, vector<17x32xf32> -> vector<17x32xf32>
    %1184 = arith.addf %1142, %1183 : vector<17x32xf32>
    %1185 = arith.addf %1184, %30 : vector<17x32xf32>
    %c104_388 = arith.constant 104 : index
    %c0_389 = arith.constant 0 : index
    %1186 = vector.load %arg3[%c104_388, %c0_389] : memref<136x128xf32, #tpu.memory_space<vmem>>, vector<1x32xf32>
    %1187 = vector.shape_cast %1186 : vector<1x32xf32> to vector<32xf32>
    %c105_390 = arith.constant 105 : index
    %c0_391 = arith.constant 0 : index
    %1188 = vector.load %arg3[%c105_390, %c0_391] : memref<136x128xf32, #tpu.memory_space<vmem>>, vector<1x32xf32>
    %1189 = vector.shape_cast %1188 : vector<1x32xf32> to vector<32xf32>
    %cst_392 = arith.constant dense<0.000000e+00> : vector<17xf32>
    %1190 = vector.multi_reduction <add>, %1185, %cst_392 [1] : vector<17x32xf32> to vector<17xf32>
    %1191 = vector.shape_cast %1190 : vector<17xf32> to vector<17x1xf32>
    %cst_393 = arith.constant 3.200000e+01 : f32
    %1192 = vector.broadcast %cst_393 : f32 to vector<17x1xf32>
    %1193 = arith.divf %1191, %1192 : vector<17x1xf32>
    %1194 = vector.broadcast %1193 : vector<17x1xf32> to vector<17x32xf32>
    %1195 = arith.subf %1185, %1194 : vector<17x32xf32>
    %1196 = arith.mulf %1195, %1195 : vector<17x32xf32>
    %cst_394 = arith.constant dense<0.000000e+00> : vector<17xf32>
    %1197 = vector.multi_reduction <add>, %1196, %cst_394 [1] : vector<17x32xf32> to vector<17xf32>
    %1198 = vector.shape_cast %1197 : vector<17xf32> to vector<17x1xf32>
    %cst_395 = arith.constant 3.200000e+01 : f32
    %1199 = vector.broadcast %cst_395 : f32 to vector<17x1xf32>
    %1200 = arith.divf %1198, %1199 : vector<17x1xf32>
    %1201 = vector.broadcast %1193 : vector<17x1xf32> to vector<17x32xf32>
    %1202 = arith.subf %1185, %1201 : vector<17x32xf32>
    %cst_396 = arith.constant 9.99999997E-7 : f32
    %1203 = vector.broadcast %cst_396 : f32 to vector<17x1xf32>
    %1204 = arith.addf %1200, %1203 : vector<17x1xf32>
    %1205 = math.rsqrt %1204 : vector<17x1xf32>
    %1206 = vector.broadcast %1205 : vector<17x1xf32> to vector<17x32xf32>
    %1207 = arith.mulf %1202, %1206 : vector<17x32xf32>
    %1208 = vector.shape_cast %1187 : vector<32xf32> to vector<1x32xf32>
    %1209 = vector.broadcast %1208 : vector<1x32xf32> to vector<17x32xf32>
    %1210 = arith.mulf %1207, %1209 : vector<17x32xf32>
    %1211 = vector.shape_cast %1189 : vector<32xf32> to vector<1x32xf32>
    %1212 = vector.broadcast %1211 : vector<1x32xf32> to vector<17x32xf32>
    %1213 = arith.addf %1210, %1212 : vector<17x32xf32>
    %c624_397 = arith.constant 624 : index
    %c0_398 = arith.constant 0 : index
    %1214 = vector.load %arg4[%c624_397, %c0_398] : memref<1008x128xbf16, #tpu.memory_space<vmem>>, vector<32x32xbf16>
    %1215 = arith.truncf %1213 : vector<17x32xf32> to vector<17x32xbf16>
    %cst_399 = arith.constant dense<0.000000e+00> : vector<17x32xf32>
    %1216 = tpu.matmul %1215, %1214, %cst_399 {dimension_numbers = #tpu.dot_dimension_numbers<[1], [0], [0], [1], [0, 0, 1, 1], [], []>} : vector<17x32xbf16>, vector<32x32xbf16>, vector<17x32xf32> -> vector<17x32xf32>
    %c108_400 = arith.constant 108 : index
    %c0_401 = arith.constant 0 : index
    %1217 = vector.load %arg3[%c108_400, %c0_401] : memref<136x128xf32, #tpu.memory_space<vmem>>, vector<1x32xf32>
    %1218 = vector.shape_cast %1217 : vector<1x32xf32> to vector<32xf32>
    %1219 = vector.shape_cast %1218 : vector<32xf32> to vector<1x32xf32>
    %1220 = vector.broadcast %1219 : vector<1x32xf32> to vector<17x32xf32>
    %1221 = arith.addf %1216, %1220 : vector<17x32xf32>
    %c656_402 = arith.constant 656 : index
    %c0_403 = arith.constant 0 : index
    %1222 = vector.load %arg4[%c656_402, %c0_403] : memref<1008x128xbf16, #tpu.memory_space<vmem>>, vector<32x32xbf16>
    %1223 = arith.truncf %1213 : vector<17x32xf32> to vector<17x32xbf16>
    %cst_404 = arith.constant dense<0.000000e+00> : vector<17x32xf32>
    %1224 = tpu.matmul %1223, %1222, %cst_404 {dimension_numbers = #tpu.dot_dimension_numbers<[1], [0], [0], [1], [0, 0, 1, 1], [], []>} : vector<17x32xbf16>, vector<32x32xbf16>, vector<17x32xf32> -> vector<17x32xf32>
    %c109_405 = arith.constant 109 : index
    %c0_406 = arith.constant 0 : index
    %1225 = vector.load %arg3[%c109_405, %c0_406] : memref<136x128xf32, #tpu.memory_space<vmem>>, vector<1x32xf32>
    %1226 = vector.shape_cast %1225 : vector<1x32xf32> to vector<32xf32>
    %1227 = vector.shape_cast %1226 : vector<32xf32> to vector<1x32xf32>
    %1228 = vector.broadcast %1227 : vector<1x32xf32> to vector<17x32xf32>
    %1229 = arith.addf %1224, %1228 : vector<17x32xf32>
    %c688_407 = arith.constant 688 : index
    %c0_408 = arith.constant 0 : index
    %1230 = vector.load %arg4[%c688_407, %c0_408] : memref<1008x128xbf16, #tpu.memory_space<vmem>>, vector<32x32xbf16>
    %1231 = arith.truncf %1213 : vector<17x32xf32> to vector<17x32xbf16>
    %cst_409 = arith.constant dense<0.000000e+00> : vector<17x32xf32>
    %1232 = tpu.matmul %1231, %1230, %cst_409 {dimension_numbers = #tpu.dot_dimension_numbers<[1], [0], [0], [1], [0, 0, 1, 1], [], []>} : vector<17x32xbf16>, vector<32x32xbf16>, vector<17x32xf32> -> vector<17x32xf32>
    %c110_410 = arith.constant 110 : index
    %c0_411 = arith.constant 0 : index
    %1233 = vector.load %arg3[%c110_410, %c0_411] : memref<136x128xf32, #tpu.memory_space<vmem>>, vector<1x32xf32>
    %1234 = vector.shape_cast %1233 : vector<1x32xf32> to vector<32xf32>
    %1235 = vector.shape_cast %1234 : vector<32xf32> to vector<1x32xf32>
    %1236 = vector.broadcast %1235 : vector<1x32xf32> to vector<17x32xf32>
    %1237 = arith.addf %1232, %1236 : vector<17x32xf32>
    %1238 = arith.truncf %1229 : vector<17x32xf32> to vector<17x32xbf16>
    %cst_412 = arith.constant 0.000000e+00 : f32
    %1239 = vector.broadcast %cst_412 : f32 to vector<17x32xf32>
    %1240 = arith.mulf %1221, %7 : vector<17x32xf32>
    %1241 = arith.truncf %1240 : vector<17x32xf32> to vector<17x32xbf16>
    %1242 = arith.mulf %1237, %7 : vector<17x32xf32>
    %1243 = arith.truncf %1242 : vector<17x32xf32> to vector<17x32xbf16>
    %cst_413 = arith.constant dense<0.000000e+00> : vector<17x17xf32>
    %1244 = tpu.matmul %1241, %1238, %cst_413 {dimension_numbers = #tpu.dot_dimension_numbers<[1], [1], [0], [0], [0, 0, 1, 0], [], []>} : vector<17x32xbf16>, vector<17x32xbf16>, vector<17x17xf32> -> vector<17x17xf32>
    %cst_414 = arith.constant dense<0xFF800000> : vector<17xf32>
    %1245 = vector.multi_reduction <maximumf>, %1244, %cst_414 [1] : vector<17x17xf32> to vector<17xf32>
    %1246 = vector.shape_cast %1245 : vector<17xf32> to vector<17x1xf32>
    %1247 = vector.broadcast %1246 : vector<17x1xf32> to vector<17x17xf32>
    %1248 = arith.subf %1244, %1247 : vector<17x17xf32>
    %1249 = math.exp %1248 : vector<17x17xf32>
    %cst_415 = arith.constant dense<0.000000e+00> : vector<17xf32>
    %1250 = vector.multi_reduction <add>, %1249, %cst_415 [1] : vector<17x17xf32> to vector<17xf32>
    %1251 = vector.shape_cast %1250 : vector<17xf32> to vector<17x1xf32>
    %1252 = tpu.reciprocal %1251 {approx = true} : vector<17x1xf32> -> vector<17x1xf32>
    %1253 = vector.broadcast %1252 : vector<17x1xf32> to vector<17x17xf32>
    %1254 = arith.mulf %1249, %1253 : vector<17x17xf32>
    %1255 = arith.truncf %1254 : vector<17x17xf32> to vector<17x17xbf16>
    %cst_416 = arith.constant dense<0.000000e+00> : vector<17x32xf32>
    %1256 = tpu.matmul %1255, %1243, %cst_416 {dimension_numbers = #tpu.dot_dimension_numbers<[1], [0], [0], [1], [0, 0, 1, 1], [], []>} : vector<17x17xbf16>, vector<17x32xbf16>, vector<17x32xf32> -> vector<17x32xf32>
    %1257 = arith.addf %1239, %1256 : vector<17x32xf32>
    %1258 = arith.mulf %1221, %14 : vector<17x32xf32>
    %1259 = arith.truncf %1258 : vector<17x32xf32> to vector<17x32xbf16>
    %1260 = arith.mulf %1237, %14 : vector<17x32xf32>
    %1261 = arith.truncf %1260 : vector<17x32xf32> to vector<17x32xbf16>
    %cst_417 = arith.constant dense<0.000000e+00> : vector<17x17xf32>
    %1262 = tpu.matmul %1259, %1238, %cst_417 {dimension_numbers = #tpu.dot_dimension_numbers<[1], [1], [0], [0], [0, 0, 1, 0], [], []>} : vector<17x32xbf16>, vector<17x32xbf16>, vector<17x17xf32> -> vector<17x17xf32>
    %cst_418 = arith.constant dense<0xFF800000> : vector<17xf32>
    %1263 = vector.multi_reduction <maximumf>, %1262, %cst_418 [1] : vector<17x17xf32> to vector<17xf32>
    %1264 = vector.shape_cast %1263 : vector<17xf32> to vector<17x1xf32>
    %1265 = vector.broadcast %1264 : vector<17x1xf32> to vector<17x17xf32>
    %1266 = arith.subf %1262, %1265 : vector<17x17xf32>
    %1267 = math.exp %1266 : vector<17x17xf32>
    %cst_419 = arith.constant dense<0.000000e+00> : vector<17xf32>
    %1268 = vector.multi_reduction <add>, %1267, %cst_419 [1] : vector<17x17xf32> to vector<17xf32>
    %1269 = vector.shape_cast %1268 : vector<17xf32> to vector<17x1xf32>
    %1270 = tpu.reciprocal %1269 {approx = true} : vector<17x1xf32> -> vector<17x1xf32>
    %1271 = vector.broadcast %1270 : vector<17x1xf32> to vector<17x17xf32>
    %1272 = arith.mulf %1267, %1271 : vector<17x17xf32>
    %1273 = arith.truncf %1272 : vector<17x17xf32> to vector<17x17xbf16>
    %cst_420 = arith.constant dense<0.000000e+00> : vector<17x32xf32>
    %1274 = tpu.matmul %1273, %1261, %cst_420 {dimension_numbers = #tpu.dot_dimension_numbers<[1], [0], [0], [1], [0, 0, 1, 1], [], []>} : vector<17x17xbf16>, vector<17x32xbf16>, vector<17x32xf32> -> vector<17x32xf32>
    %1275 = arith.addf %1257, %1274 : vector<17x32xf32>
    %1276 = arith.mulf %1221, %21 : vector<17x32xf32>
    %1277 = arith.truncf %1276 : vector<17x32xf32> to vector<17x32xbf16>
    %1278 = arith.mulf %1237, %21 : vector<17x32xf32>
    %1279 = arith.truncf %1278 : vector<17x32xf32> to vector<17x32xbf16>
    %cst_421 = arith.constant dense<0.000000e+00> : vector<17x17xf32>
    %1280 = tpu.matmul %1277, %1238, %cst_421 {dimension_numbers = #tpu.dot_dimension_numbers<[1], [1], [0], [0], [0, 0, 1, 0], [], []>} : vector<17x32xbf16>, vector<17x32xbf16>, vector<17x17xf32> -> vector<17x17xf32>
    %cst_422 = arith.constant dense<0xFF800000> : vector<17xf32>
    %1281 = vector.multi_reduction <maximumf>, %1280, %cst_422 [1] : vector<17x17xf32> to vector<17xf32>
    %1282 = vector.shape_cast %1281 : vector<17xf32> to vector<17x1xf32>
    %1283 = vector.broadcast %1282 : vector<17x1xf32> to vector<17x17xf32>
    %1284 = arith.subf %1280, %1283 : vector<17x17xf32>
    %1285 = math.exp %1284 : vector<17x17xf32>
    %cst_423 = arith.constant dense<0.000000e+00> : vector<17xf32>
    %1286 = vector.multi_reduction <add>, %1285, %cst_423 [1] : vector<17x17xf32> to vector<17xf32>
    %1287 = vector.shape_cast %1286 : vector<17xf32> to vector<17x1xf32>
    %1288 = tpu.reciprocal %1287 {approx = true} : vector<17x1xf32> -> vector<17x1xf32>
    %1289 = vector.broadcast %1288 : vector<17x1xf32> to vector<17x17xf32>
    %1290 = arith.mulf %1285, %1289 : vector<17x17xf32>
    %1291 = arith.truncf %1290 : vector<17x17xf32> to vector<17x17xbf16>
    %cst_424 = arith.constant dense<0.000000e+00> : vector<17x32xf32>
    %1292 = tpu.matmul %1291, %1279, %cst_424 {dimension_numbers = #tpu.dot_dimension_numbers<[1], [0], [0], [1], [0, 0, 1, 1], [], []>} : vector<17x17xbf16>, vector<17x32xbf16>, vector<17x32xf32> -> vector<17x32xf32>
    %1293 = arith.addf %1275, %1292 : vector<17x32xf32>
    %1294 = arith.mulf %1221, %28 : vector<17x32xf32>
    %1295 = arith.truncf %1294 : vector<17x32xf32> to vector<17x32xbf16>
    %1296 = arith.mulf %1237, %28 : vector<17x32xf32>
    %1297 = arith.truncf %1296 : vector<17x32xf32> to vector<17x32xbf16>
    %cst_425 = arith.constant dense<0.000000e+00> : vector<17x17xf32>
    %1298 = tpu.matmul %1295, %1238, %cst_425 {dimension_numbers = #tpu.dot_dimension_numbers<[1], [1], [0], [0], [0, 0, 1, 0], [], []>} : vector<17x32xbf16>, vector<17x32xbf16>, vector<17x17xf32> -> vector<17x17xf32>
    %cst_426 = arith.constant dense<0xFF800000> : vector<17xf32>
    %1299 = vector.multi_reduction <maximumf>, %1298, %cst_426 [1] : vector<17x17xf32> to vector<17xf32>
    %1300 = vector.shape_cast %1299 : vector<17xf32> to vector<17x1xf32>
    %1301 = vector.broadcast %1300 : vector<17x1xf32> to vector<17x17xf32>
    %1302 = arith.subf %1298, %1301 : vector<17x17xf32>
    %1303 = math.exp %1302 : vector<17x17xf32>
    %cst_427 = arith.constant dense<0.000000e+00> : vector<17xf32>
    %1304 = vector.multi_reduction <add>, %1303, %cst_427 [1] : vector<17x17xf32> to vector<17xf32>
    %1305 = vector.shape_cast %1304 : vector<17xf32> to vector<17x1xf32>
    %1306 = tpu.reciprocal %1305 {approx = true} : vector<17x1xf32> -> vector<17x1xf32>
    %1307 = vector.broadcast %1306 : vector<17x1xf32> to vector<17x17xf32>
    %1308 = arith.mulf %1303, %1307 : vector<17x17xf32>
    %1309 = arith.truncf %1308 : vector<17x17xf32> to vector<17x17xbf16>
    %cst_428 = arith.constant dense<0.000000e+00> : vector<17x32xf32>
    %1310 = tpu.matmul %1309, %1297, %cst_428 {dimension_numbers = #tpu.dot_dimension_numbers<[1], [0], [0], [1], [0, 0, 1, 1], [], []>} : vector<17x17xbf16>, vector<17x32xbf16>, vector<17x32xf32> -> vector<17x32xf32>
    %1311 = arith.addf %1293, %1310 : vector<17x32xf32>
    %c720_429 = arith.constant 720 : index
    %c0_430 = arith.constant 0 : index
    %1312 = vector.load %arg4[%c720_429, %c0_430] : memref<1008x128xbf16, #tpu.memory_space<vmem>>, vector<32x32xbf16>
    %1313 = arith.truncf %1311 : vector<17x32xf32> to vector<17x32xbf16>
    %cst_431 = arith.constant dense<0.000000e+00> : vector<17x32xf32>
    %1314 = tpu.matmul %1313, %1312, %cst_431 {dimension_numbers = #tpu.dot_dimension_numbers<[1], [0], [0], [1], [0, 0, 1, 1], [], []>} : vector<17x32xbf16>, vector<32x32xbf16>, vector<17x32xf32> -> vector<17x32xf32>
    %1315 = arith.addf %1185, %1314 : vector<17x32xf32>
    %c111_432 = arith.constant 111 : index
    %c0_433 = arith.constant 0 : index
    %1316 = vector.load %arg3[%c111_432, %c0_433] : memref<136x128xf32, #tpu.memory_space<vmem>>, vector<1x32xf32>
    %1317 = vector.shape_cast %1316 : vector<1x32xf32> to vector<32xf32>
    %1318 = vector.shape_cast %1317 : vector<32xf32> to vector<1x32xf32>
    %1319 = vector.broadcast %1318 : vector<1x32xf32> to vector<17x32xf32>
    %1320 = arith.addf %1315, %1319 : vector<17x32xf32>
    %c106_434 = arith.constant 106 : index
    %c0_435 = arith.constant 0 : index
    %1321 = vector.load %arg3[%c106_434, %c0_435] : memref<136x128xf32, #tpu.memory_space<vmem>>, vector<1x32xf32>
    %1322 = vector.shape_cast %1321 : vector<1x32xf32> to vector<32xf32>
    %c107_436 = arith.constant 107 : index
    %c0_437 = arith.constant 0 : index
    %1323 = vector.load %arg3[%c107_436, %c0_437] : memref<136x128xf32, #tpu.memory_space<vmem>>, vector<1x32xf32>
    %1324 = vector.shape_cast %1323 : vector<1x32xf32> to vector<32xf32>
    %cst_438 = arith.constant dense<0.000000e+00> : vector<17xf32>
    %1325 = vector.multi_reduction <add>, %1320, %cst_438 [1] : vector<17x32xf32> to vector<17xf32>
    %1326 = vector.shape_cast %1325 : vector<17xf32> to vector<17x1xf32>
    %cst_439 = arith.constant 3.200000e+01 : f32
    %1327 = vector.broadcast %cst_439 : f32 to vector<17x1xf32>
    %1328 = arith.divf %1326, %1327 : vector<17x1xf32>
    %1329 = vector.broadcast %1328 : vector<17x1xf32> to vector<17x32xf32>
    %1330 = arith.subf %1320, %1329 : vector<17x32xf32>
    %1331 = arith.mulf %1330, %1330 : vector<17x32xf32>
    %cst_440 = arith.constant dense<0.000000e+00> : vector<17xf32>
    %1332 = vector.multi_reduction <add>, %1331, %cst_440 [1] : vector<17x32xf32> to vector<17xf32>
    %1333 = vector.shape_cast %1332 : vector<17xf32> to vector<17x1xf32>
    %cst_441 = arith.constant 3.200000e+01 : f32
    %1334 = vector.broadcast %cst_441 : f32 to vector<17x1xf32>
    %1335 = arith.divf %1333, %1334 : vector<17x1xf32>
    %1336 = vector.broadcast %1328 : vector<17x1xf32> to vector<17x32xf32>
    %1337 = arith.subf %1320, %1336 : vector<17x32xf32>
    %cst_442 = arith.constant 9.99999997E-7 : f32
    %1338 = vector.broadcast %cst_442 : f32 to vector<17x1xf32>
    %1339 = arith.addf %1335, %1338 : vector<17x1xf32>
    %1340 = math.rsqrt %1339 : vector<17x1xf32>
    %1341 = vector.broadcast %1340 : vector<17x1xf32> to vector<17x32xf32>
    %1342 = arith.mulf %1337, %1341 : vector<17x32xf32>
    %1343 = vector.shape_cast %1322 : vector<32xf32> to vector<1x32xf32>
    %1344 = vector.broadcast %1343 : vector<1x32xf32> to vector<17x32xf32>
    %1345 = arith.mulf %1342, %1344 : vector<17x32xf32>
    %1346 = vector.shape_cast %1324 : vector<32xf32> to vector<1x32xf32>
    %1347 = vector.broadcast %1346 : vector<1x32xf32> to vector<17x32xf32>
    %1348 = arith.addf %1345, %1347 : vector<17x32xf32>
    %c752_443 = arith.constant 752 : index
    %c0_444 = arith.constant 0 : index
    %1349 = vector.load %arg4[%c752_443, %c0_444] : memref<1008x128xbf16, #tpu.memory_space<vmem>>, vector<32x128xbf16>
    %1350 = arith.truncf %1348 : vector<17x32xf32> to vector<17x32xbf16>
    %cst_445 = arith.constant dense<0.000000e+00> : vector<17x128xf32>
    %1351 = tpu.matmul %1350, %1349, %cst_445 {dimension_numbers = #tpu.dot_dimension_numbers<[1], [0], [0], [1], [0, 0, 1, 1], [], []>} : vector<17x32xbf16>, vector<32x128xbf16>, vector<17x128xf32> -> vector<17x128xf32>
    %c112_446 = arith.constant 112 : index
    %c0_447 = arith.constant 0 : index
    %1352 = vector.load %arg3[%c112_446, %c0_447] : memref<136x128xf32, #tpu.memory_space<vmem>>, vector<1x128xf32>
    %1353 = vector.shape_cast %1352 : vector<1x128xf32> to vector<128xf32>
    %1354 = vector.shape_cast %1353 : vector<128xf32> to vector<1x128xf32>
    %1355 = vector.broadcast %1354 : vector<1x128xf32> to vector<17x128xf32>
    %1356 = arith.addf %1351, %1355 : vector<17x128xf32>
    %cst_448 = arith.constant 5.000000e-01 : f32
    %1357 = vector.broadcast %cst_448 : f32 to vector<17x128xf32>
    %1358 = arith.mulf %1357, %1356 : vector<17x128xf32>
    %1359 = arith.mulf %1356, %1356 : vector<17x128xf32>
    %1360 = arith.mulf %1359, %1356 : vector<17x128xf32>
    %cst_449 = arith.constant 4.471500e-02 : f32
    %1361 = vector.broadcast %cst_449 : f32 to vector<17x128xf32>
    %1362 = arith.mulf %1361, %1360 : vector<17x128xf32>
    %1363 = arith.addf %1356, %1362 : vector<17x128xf32>
    %cst_450 = arith.constant 0.797884583 : f32
    %1364 = vector.broadcast %cst_450 : f32 to vector<17x128xf32>
    %1365 = arith.mulf %1364, %1363 : vector<17x128xf32>
    %1366 = math.tanh %1365 : vector<17x128xf32>
    %cst_451 = arith.constant 1.000000e+00 : f32
    %1367 = vector.broadcast %cst_451 : f32 to vector<17x128xf32>
    %1368 = arith.addf %1367, %1366 : vector<17x128xf32>
    %1369 = arith.mulf %1358, %1368 : vector<17x128xf32>
    %c784_452 = arith.constant 784 : index
    %c0_453 = arith.constant 0 : index
    %1370 = vector.load %arg4[%c784_452, %c0_453] : memref<1008x128xbf16, #tpu.memory_space<vmem>>, vector<128x32xbf16>
    %1371 = arith.truncf %1369 : vector<17x128xf32> to vector<17x128xbf16>
    %cst_454 = arith.constant dense<0.000000e+00> : vector<17x32xf32>
    %1372 = tpu.matmul %1371, %1370, %cst_454 {dimension_numbers = #tpu.dot_dimension_numbers<[1], [0], [0], [1], [0, 0, 1, 1], [], []>} : vector<17x128xbf16>, vector<128x32xbf16>, vector<17x32xf32> -> vector<17x32xf32>
    %1373 = arith.addf %1320, %1372 : vector<17x32xf32>
    %c113_455 = arith.constant 113 : index
    %c0_456 = arith.constant 0 : index
    %1374 = vector.load %arg3[%c113_455, %c0_456] : memref<136x128xf32, #tpu.memory_space<vmem>>, vector<1x32xf32>
    %1375 = vector.shape_cast %1374 : vector<1x32xf32> to vector<32xf32>
    %1376 = vector.shape_cast %1375 : vector<32xf32> to vector<1x32xf32>
    %1377 = vector.broadcast %1376 : vector<1x32xf32> to vector<17x32xf32>
    %1378 = arith.addf %1373, %1377 : vector<17x32xf32>
    %cst_457 = arith.constant 0.000000e+00 : f32
    %1379 = vector.broadcast %cst_457 : f32 to vector<17x32xf32>
    %1380 = tpu.concatenate %1378, %755, %1184, %1379 in 1 : vector<17x32xf32>, vector<17x32xf32>, vector<17x32xf32>, vector<17x32xf32> -> vector<17x128xf32>
    %c1_458 = arith.constant 1 : index
    %c0_459 = arith.constant 0 : index
    %c0_460 = arith.constant 0 : index
    %1381 = vector.load %arg5[%c1_458, %c0_459, %c0_460] : memref<2x17x128xf32, #tpu.memory_space<vmem>>, vector<1x17x128xf32>
    %1382 = vector.shape_cast %1381 : vector<1x17x128xf32> to vector<17x128xf32>
    %1383 = vector.shape_cast %1380 : vector<17x128xf32> to vector<1x17x128xf32>
    tpu.vector_store %arg5[%c1_458, %c0_459, %c0_460], %1383 {strides = array<i32>} : memref<2x17x128xf32, #tpu.memory_space<vmem>>, vector<1x17x128xf32>,
    return
  }
  func.func @transform_0(%arg0: i32) -> (i32, i32, i32) {
    %c0_i32 = arith.constant 0 : i32
    %c0_i32_0 = arith.constant 0 : i32
    %c0_i32_1 = arith.constant 0 : i32
    return %arg0, %c0_i32, %c0_i32_0 : i32, i32, i32
  }
  func.func @transform_1(%arg0: i32) -> (i32, i32, i32, i32) {
    %c0_i32 = arith.constant 0 : i32
    %c0_i32_0 = arith.constant 0 : i32
    %c0_i32_1 = arith.constant 0 : i32
    %c0_i32_2 = arith.constant 0 : i32
    return %c0_i32, %arg0, %c0_i32_0, %c0_i32_1 : i32, i32, i32, i32
  }
  func.func @transform_2(%arg0: i32) -> (i32, i32) {
    %c0_i32 = arith.constant 0 : i32
    %c0_i32_0 = arith.constant 0 : i32
    %c0_i32_1 = arith.constant 0 : i32
    return %c0_i32, %c0_i32_0 : i32, i32
  }
  func.func @transform_3(%arg0: i32) -> (i32, i32) {
    %c0_i32 = arith.constant 0 : i32
    %c0_i32_0 = arith.constant 0 : i32
    %c0_i32_1 = arith.constant 0 : i32
    return %c0_i32, %c0_i32_0 : i32, i32
  }
  func.func @transform_4(%arg0: i32) -> (i32, i32, i32) {
    %c0_i32 = arith.constant 0 : i32
    %c0_i32_0 = arith.constant 0 : i32
    %c0_i32_1 = arith.constant 0 : i32
    return %arg0, %c0_i32, %c0_i32_0 : i32, i32, i32
  }
}

</mosaic_0001>

<bundles_post_ra>
// kernel: side_adapter_forward.1
= control target key start
LH: loop header
LB: loop body
LE: loop exit
PB: predicated region body
PF: predicated region fallthrough
CT: control target
= control target key end

     0   :  { %vm78_vm0 = vcmask 392192   ;;  %vm388_vm1 = vcmask 523264   ;;  %vm448_vm2 = vcmask 261120   ;;  %vm455_vm3 = vcmask 253952   ;;  %s11560_s20 = smov 32   ;;  %s11561_s23 = smov 64   ;;  %s14149_s1 = inlined_call_operand.vmem [shape: f32[2,2,64,48], index: 1, kind: input, shape index: {}]   ;;  %s14150_s3 = inlined_call_operand.vmem [shape: bf16[1008,128], index: 3, kind: input, shape index: {}]   ;;  %s14151_s0 = inlined_call_operand.vmem [shape: f32[2,17,48], index: 0, kind: input, shape index: {}]   ;;  %s14152_s2 = inlined_call_operand.vmem [shape: f32[136,128], index: 2, kind: input, shape index: {}]   ;;  %s14153_s4 = inlined_call_operand.vmem [shape: f32[2,17,128], index: 4, kind: output, shape index: {}]  }
   0x1   :  { %v133_v0 = vld [vmem:[%s14149_s1] sm:$0xff]  ;;  %v135_v1 = vld [vmem:[%s14149_s1 + $0x10] sm:$0xff]  ;;  %v134_v2 = vld [vmem:[%s14149_s1 + $0x8] sm:$0xff]  ;;  %vm933_vm14 = vcmask 1040384   ;;  %vm791_vm15 = vcmask 138240  }
   0x2   :  { %v143_v3 = vsel %vm78_vm0, %v133_v0, 0.0  ;;  %v149_v4 = vsel %vm78_vm0, %v135_v1, 0.0  ;;  %v136_v5 = vld [vmem:[%s14149_s1 + $0x18] sm:$0xff]  ;;  %v146_v6 = vsel %vm78_vm0, %v134_v2, 0.0  ;;  %v137_v8 = vld [vmem:[%s14149_s1 + $0x20] sm:$0xff]  ;;  %v138_v9 = vld [vmem:[%s14149_s1 + $0x28] sm:$0xff] }
   0x3   :  { %144 = vadd.xlane.f32.xlu0 %v143_v3  ;;  %150 = vadd.xlane.f32.xlu1 %v149_v4  ;;  %v152_v7 = vsel %vm78_vm0, %v136_v5, 0.0  ;;  %v155_v10 = vsel %vm78_vm0, %v137_v8, 0.0  ;;  %v158_v11 = vsel %vm78_vm0, %v138_v9, 0.0  ;;  %v139_v12 = vld [vmem:[%s14149_s1 + $0x30] sm:$0xff]  ;;  %v140_v13 = vld [vmem:[%s14149_s1 + $0x38] sm:$0xff]  ;;  %v10961_v57 = vld [vmem:[%s14150_s3 + $0x8] sm:$0xff]  }
   0x4   :  { %v161_v14 = vsel %vm78_vm0, %v139_v12, 0.0  ;;  %v164_v15 = vsel %vm78_vm0, %v140_v13, 0.0  ;;  %v10960_v56 = vld [vmem:[%s14150_s3 + $0x10] sm:$0xff]   ;;  %v10962_v58 = vld [vmem:[%s14150_s3] sm:$0xff]   ;;  %v50_v60 = vld [vmem:[%s14151_s0 + $0x8] sm:$0xff] }
   0x5   :  { %10040 = vmatprep.subr.bf16.mxu0 %v10960_v56  ;;  %v49_v59 = vld [vmem:[%s14151_s0] sm:$0xff]  ;;  %v51_v62 = vld [vmem:[%s14151_s0 + $0x10] sm:$0x1] }
   0x6   :  { %10041 = vmatpush3.bf16.msra.mxu0 %v10960_v56  ;;  %v58_v61 = vpack.c.bf16 %v50_v60, %v49_v59  ;;  %v59_v63 = vpack.c.bf16 %v51_v62, %v51_v62 }
   0x7   :  { %147 = vadd.xlane.f32.xlu0 %v146_v6  ;;  %153 = vadd.xlane.f32.xlu1 %v152_v7 }
   0x8   :  { %10042 = vmatprep.subr.bf16.mxu0 %v10961_v57  ;;  %10046 = vmatprep.mubr.msk.bf16.mxu0 %vm78_vm0, %v58_v61 }
   0xa   :  { %10043 = vmatpush3.bf16.msra.mxu0 %v10961_v57 }
   0xb   :  { %156 = vadd.xlane.f32.xlu0 %v155_v10  ;;  %159 = vadd.xlane.f32.xlu1 %v158_v11 }
   0xc   :  { %10044 = vmatprep.subr.bf16.mxu0 %v10962_v58 }
   0xe   :  { %10045 = vmatpush3.bf16.msra.mxu0 %v10962_v58 }
   0xf   :  { %162 = vadd.xlane.f32.xlu0 %v161_v14  ;;  %165 = vadd.xlane.f32.xlu1 %v164_v15 }
  0x11   :  { %10047 = vmatmul.mubr.msk.bf16.vlgmr.msra.gmra.mxu0 %vm78_vm0, %v59_v63 }
  0x8c   :  { %v145_v16 = vpop.xlane.xlu0 %144  ;;  %v151_v17 = vpop.xlane.xlu1 %150 }
  0x8d   :  { %v168_v18 = vmul.f32 0.020833334, %v145_v16  ;;  %v170_v19 = vmul.f32 0.020833334, %v151_v17 }
  0x8f   :  { %v11619_v20 = vsub.f32 %v133_v0, %v168_v18  ;;  %v11621_v21 = vsub.f32 %v135_v1, %v170_v19  ;;  %v10963_v0 = vld [vmem:[%s14150_s3 + $0x1d8] sm:$0xff]   ;;  %v10964_v1 = vld [vmem:[%s14150_s3 + $0x1d0] sm:$0xff]  }
  0x90   :  { %v148_v22 = vpop.xlane.xlu0 %147  ;;  %v154_v23 = vpop.xlane.xlu1 %153  ;;  %10050 = vmatprep.subr.bf16.mxu0 %v10963_v0 }
  0x91   :  { %v169_v24 = vmul.f32 0.020833334, %v148_v22  ;;  %v171_v25 = vmul.f32 0.020833334, %v154_v23  ;;  %v184_v26 = vmul.f32 %v11619_v20, %v11619_v20  ;;  %v186_v27 = vmul.f32 %v11621_v21, %v11621_v21  ;;  %10051 = vmatpush3.bf16.msra.mxu0 %v10963_v0 }
  0x92   :  { %10052 = vmatprep.subr.bf16.mxu0 %v10964_v1 }
  0x93   :  { %v11627_v28 = vsub.f32 %v134_v2, %v169_v24  ;;  %v11629_v29 = vsub.f32 %v136_v5, %v171_v25  ;;  %v192_v30 = vsel %vm78_vm0, %v184_v26, 0.0  ;;  %v198_v33 = vsel %vm78_vm0, %v186_v27, 0.0  ;;  %v10965_v2 = vld [vmem:[%s14150_s3 + $0x1c8] sm:$0xff]  }
  0x94   :  { %193 = vadd.xlane.f32.xlu0 %v192_v30  ;;  %v157_v31 = vpop.xlane.xlu0 %156  ;;  %v160_v32 = vpop.xlane.xlu1 %159 }
  0x95   :  { %v172_v34 = vmul.f32 0.020833334, %v157_v31  ;;  %v173_v35 = vmul.f32 0.020833334, %v160_v32  ;;  %v185_v36 = vmul.f32 %v11627_v28, %v11627_v28  ;;  %v187_v37 = vmul.f32 %v11629_v29, %v11629_v29  ;;  %10053 = vmatpush3.bf16.msra.mxu0 %v10964_v1 }
  0x96   :  { %10054 = vmatprep.subr.bf16.mxu0 %v10965_v2 }
  0x97   :  { %v11637_v38 = vsub.f32 %v137_v8, %v172_v34  ;;  %v11639_v39 = vsub.f32 %v138_v9, %v173_v35  ;;  %v195_v40 = vsel %vm78_vm0, %v185_v36, 0.0  ;;  %v201_v43 = vsel %vm78_vm0, %v187_v37, 0.0 }
  0x98   :  { %199 = vadd.xlane.f32.xlu0 %v198_v33  ;;  %196 = vadd.xlane.f32.xlu1 %v195_v40  ;;  %v163_v41 = vpop.xlane.xlu0 %162  ;;  %v166_v42 = vpop.xlane.xlu1 %165  ;;  %v9199_v33 = vld [vmem:[%s14152_s2 + $0x78] ss:$0 sm:$0xff] }
  0x99   :  { %v174_v44 = vmul.f32 0.020833334, %v163_v41  ;;  %v175_v45 = vmul.f32 0.020833334, %v166_v42  ;;  %v188_v46 = vmul.f32 %v11637_v38, %v11637_v38  ;;  %v189_v47 = vmul.f32 %v11639_v39, %v11639_v39  ;;  %10055 = vmatpush3.bf16.msra.mxu0 %v10965_v2  ;;  %v9200_v41 = vld [vmem:[%s14152_s2 + $0x79] ss:$0 sm:$0xff] }
  0x9b   :  { %v11647_v48 = vsub.f32 %v139_v12, %v174_v44  ;;  %v11649_v49 = vsub.f32 %v140_v13, %v175_v45  ;;  %v204_v50 = vsel %vm78_vm0, %v188_v46, 0.0  ;;  %v207_v51 = vsel %vm78_vm0, %v189_v47, 0.0 }
  0x9c   :  { %202 = vadd.xlane.f32.xlu1 %v201_v43  ;;  %205 = vadd.xlane.f32.xlu0 %v204_v50 }
  0x9d   :  { %v190_v52 = vmul.f32 %v11647_v48, %v11647_v48  ;;  %v191_v53 = vmul.f32 %v11649_v49, %v11649_v49 }
  0x9f   :  { %v210_v54 = vsel %vm78_vm0, %v190_v52, 0.0  ;;  %v213_v55 = vsel %vm78_vm0, %v191_v53, 0.0 }
  0xa0   :  { %208 = vadd.xlane.f32.xlu1 %v207_v51  ;;  %211 = vadd.xlane.f32.xlu0 %v210_v54 }
  0xa4   :  { %214 = vadd.xlane.f32.xlu1 %v213_v55 }
 0x11d   :  { %v194_v3 = vpop.xlane.xlu0 %193 }
 0x11e   :  { %v216_v4 = vmul.f32 0.020833334, %v194_v3 }
 0x120   :  { %v224_v5 = vadd.f32 1e-06, %v216_v4 }
 0x121   :  { %v197_v6 = vpop.xlane.xlu1 %196  ;;  %v200_v7 = vpop.xlane.xlu0 %199 }
 0x122   :  { %11086 = vrsqrt.f32 %v224_v5  ;;  %v217_v8 = vmul.f32 0.020833334, %v197_v6  ;;  %v218_v9 = vmul.f32 0.020833334, %v200_v7  ;;  %v46_v5 = vld [vmem:[%s14152_s2 + $0x30] sm:$0xff] }
 0x124   :  { %v225_v10 = vadd.f32 1e-06, %v217_v8  ;;  %v226_v11 = vadd.f32 1e-06, %v218_v9 }
 0x125   :  { %v203_v12 = vpop.xlane.xlu1 %202  ;;  %v206_v13 = vpop.xlane.xlu0 %205 }
 0x126   :  { %11088 = vrsqrt.f32 %v225_v10  ;;  %v219_v14 = vmul.f32 0.020833334, %v203_v12  ;;  %v220_v15 = vmul.f32 0.020833334, %v206_v13 }
 0x127   :  { %11090 = vrsqrt.f32 %v226_v11 }
 0x128   :  { %v227_v16 = vadd.f32 1e-06, %v219_v14  ;;  %v228_v17 = vadd.f32 1e-06, %v220_v15  ;;  %v9201_v14 = vld [vmem:[%s14152_s2 + $0x7a] ss:$0 sm:$0xff] }
 0x129   :  { %v209_v18 = vpop.xlane.xlu1 %208  ;;  %v212_v19 = vpop.xlane.xlu0 %211 }
 0x12a   :  { %11092 = vrsqrt.f32 %v227_v16  ;;  %v221_v22 = vmul.f32 0.020833334, %v209_v18  ;;  %v222_v23 = vmul.f32 0.020833334, %v212_v19 }
 0x12b   :  { %11094 = vrsqrt.f32 %v228_v17 }
 0x12c   :  { %v229_v24 = vadd.f32 1e-06, %v221_v22  ;;  %v230_v25 = vadd.f32 1e-06, %v222_v23 }
 0x12d   :  { %v215_v26 = vpop.xlane.xlu1 %214 }
 0x12e   :  { %11096 = vrsqrt.f32 %v229_v24  ;;  %v223_v27 = vmul.f32 0.020833334, %v215_v26 }
 0x12f   :  { %v11087_v30 = vpop.eup %11086  ;;  %11098 = vrsqrt.f32 %v230_v25 }
 0x130   :  { %v231_v31 = vadd.f32 1e-06, %v223_v27  ;;  %v240_v32 = vmul.f32 %v11087_v30, %v11619_v20 }
 0x132   :  { %11100 = vrsqrt.f32 %v231_v31  ;;  %v252_v37 = vmul.f32 %v9199_v33, %v240_v32 }
 0x133   :  { %v11089_v34 = vpop.eup %11088 }
 0x134   :  { %v11091_v35 = vpop.eup %11090  ;;  %v241_v36 = vmul.f32 %v11089_v34, %v11627_v28  ;;  %v264_v45 = vadd.f32 %v9200_v41, %v252_v37 }
 0x135   :  { %v242_v40 = vmul.f32 %v11091_v35, %v11621_v21  ;;  %v40_v35 = vld [vmem:[%s14152_s2] sm:$0xff] }
 0x136   :  { %v253_v42 = vmul.f32 %v9199_v33, %v241_v36  ;;  %v42_v36 = vld [vmem:[%s14152_s2 + $0x10] sm:$0x1] }
 0x137   :  { %v11093_v43 = vpop.eup %11092  ;;  %v254_v47 = vmul.f32 %v9199_v33, %v242_v40 }
 0x138   :  { %v11095_v44 = vpop.eup %11094  ;;  %v243_v20 = vmul.f32 %v11093_v43, %v11629_v29  ;;  %v265_v46 = vadd.f32 %v9200_v41, %v253_v42 }
 0x139   :  { %v244_v50 = vmul.f32 %v11095_v44, %v11637_v38  ;;  %v266_v21 = vadd.f32 %v9200_v41, %v254_v47 }
 0x13a   :  { %v278_v51 = vpack.c.bf16 %v265_v46, %v264_v45  ;;  %v255_v52 = vmul.f32 %v9199_v33, %v243_v20 }
 0x13b   :  { %v11097_v28 = vpop.eup %11096  ;;  %v256_v56 = vmul.f32 %v9199_v33, %v244_v50 }
 0x13c   :  { %v11099_v53 = vpop.eup %11098  ;;  %10056 = vmatprep.mubr.msk.bf16.mxu0 %vm78_vm0, %v278_v51  ;;  %v267_v54 = vadd.f32 %v9200_v41, %v255_v52  ;;  %v245_v55 = vmul.f32 %v11097_v28, %v11639_v39 }
 0x13d   :  { %v246_v57 = vmul.f32 %v11099_v53, %v11647_v48  ;;  %v268_v60 = vadd.f32 %v9200_v41, %v256_v56  ;;  %v10048_v48 = vpop.f32.mrf.mxu0 }
 0x13e   :  { %v279_v58 = vpack.c.bf16 %v267_v54, %v266_v21  ;;  %v257_v29 = vmul.f32 %v9199_v33, %v245_v55  ;;  %v128_v43 = vadd.f32 %v10048_v48, %v42_v36  ;;  %v10969_v48 = vld [vmem:[%s14150_s3 + $0x28] sm:$0xff]  }
 0x13f   :  { %v11101_v59 = vpop.eup %11100  ;;  %v258_v62 = vmul.f32 %v9199_v33, %v246_v57  ;;  %v119_v3 = vpop.f32.mrf.mxu0 }
 0x140   :  { %10057 = vmatmul.mubr.msk.bf16.vlgmr.msra.gmra.mxu0 %vm78_vm0, %v279_v58  ;;  %v269_v38 = vadd.f32 %v9200_v41, %v257_v29  ;;  %v247_v61 = vmul.f32 %v11101_v59, %v11649_v49  ;;  %v47_v49 = vld [vmem:[%s14152_s2 + $0x38] sm:$0xff]  ;;  %v120_v40 = vadd.f32 %v119_v3, %v40_v35  ;;  %v10970_v3 = vld [vmem:[%s14150_s3 + $0x40] sm:$0xff]  }
 0x141   :  { %v270_v1 = vadd.f32 %v9200_v41, %v258_v62  ;;  %v10049_v4 = vpop.f32.mrf.mxu0  ;;  %v11712_v6 = vpack.c.bf16 %v47_v49, %v46_v5  ;;  %v11558_v49 = vmov 0.0  }
 0x142   :  { %v280_v63 = vpack.c.bf16 %v269_v38, %v268_v60  ;;  %v259_v0 = vmul.f32 %v9199_v33, %v247_v61  ;;  %v48_v33 = vld [vmem:[%s14152_s2 + $0x40] sm:$0x1]  ;;  %v18_v4 = vlaneseq }
 0x143   :  { %v122_v7 = vpop.f32.mrf.mxu0  ;;  %v11722_v34 = vpack.c.bf16 %v48_v33, %v48_v33 }
 0x144   :  { %10060 = vmatprep.mubr.msk.bf16.mxu0 %vm78_vm0, %v280_v63  ;;  %v271_v2 = vadd.f32 %v9200_v41, %v259_v0  ;;  %v41_v41 = vld [vmem:[%s14152_s2 + $0x8] sm:$0xff]  ;;  %v11768_v5 = vand.u32 127, %v18_v4 }
 0x145   :  { %v123_v45 = vadd.f32 %v122_v7, %v41_v41  ;;  %v9218_v41 = vld [vmem:[%s14152_s2 + $0x4d] ss:$0 sm:$0xff] }
 0x146   :  { %v281_v39 = vpack.c.bf16 %v271_v2, %v270_v1  ;;  %v10966_v1 = vld [vmem:[%s14150_s3 + $0x20] sm:$0xff]   ;;  %v10967_v2 = vld [vmem:[%s14150_s3 + $0x30] sm:$0xff]   ;;  %vm35_vm4 = vcmp.ge.s32.totalorder %v11768_v5, 24  ;;  %vm36_vm5 = vcmp.lt.s32.totalorder %v11768_v5, 32  ;;  %vm25_vm7 = vcmp.ge.s32.totalorder %v11768_v5, 8 }
 0x147   :  { %10076 = vmatprep.subr.bf16.mxu1 %v10966_v1  ;;  %vm37_vm6 = vmand %vm35_vm4, %vm36_vm5  ;;  %vm26_vm8 = vcmp.lt.s32.totalorder %v11768_v5, 16  ;;  %vm30_vm9 = vcmp.ge.s32.totalorder %v11768_v5, 16  ;;  %vm31_vm10 = vcmp.lt.s32.totalorder %v11768_v5, 24  ;;  %vm21_vm11 = vcmp.lt.s32.totalorder %v11768_v5, 8 }
 0x148   :  { %10061 = vmatmul.mubr.msk.bf16.gmra.mxu0 %vm78_vm0, %v281_v39  ;;  %v10968_v39 = vld [vmem:[%s14150_s3 + $0x18] sm:$0xff]   ;;  %10077 = vmatpush3.bf16.msra.mxu1 %v10966_v1  ;;  %v11773_v7 = vsel %vm37_vm6, 1.0, %v11558_v49  ;;  %vm27_vm12 = vmand %vm25_vm7, %vm26_vm8  ;;  %vm798_vm4 = vcmask 131072  }
 0x149   :  { %10072 = vmatprep.mubr.msk.bf16.mxu0 %vm388_vm1, %v11712_v6  ;;  %10078 = vmatprep.subr.bf16.mxu1 %v10968_v39  ;;  %vm32_vm13 = vmand %vm30_vm9, %vm31_vm10 }
 0x14c   :  { %10079 = vmatpush3.bf16.msra.mxu1 %v10968_v39 }
 0x14d   :  { %10092 = vmatprep.subr.bf16.mxu1 %v10970_v3 }
 0x200   :  { %v10058_v8 = vpop.f32.mrf.mxu0 }
 0x201   :  { %v360_v26 = vadd.f32 %v10058_v8, %v9201_v14 }
 0x202   :  { %v351_v9 = vpop.f32.mrf.mxu0 }
 0x203   :  { %v352_v31 = vadd.f32 %v9201_v14, %v351_v9 }
 0x204   :  { %v10059_v10 = vpop.f32.mrf.mxu0 }
 0x205   :  { %v363_v24 = vadd.f32 %v10059_v10, %v9201_v14 }
 0x206   :  { %v354_v11 = vpop.f32.mrf.mxu0 }
 0x207   :  { %v385_v27 = vpack.c.bf16 %v363_v24, %v360_v26  ;;  %v355_v30 = vadd.f32 %v9201_v14, %v354_v11 }
 0x208   :  { %v10062_v12 = vpop.f32.mrf.mxu0 }
 0x209   :  { %v376_v16 = vadd.f32 %v10062_v12, %v9201_v14  ;;  %v384_v32 = vpack.c.bf16 %v355_v30, %v352_v31 }
 0x20a   :  { %v367_v13 = vpop.f32.mrf.mxu0 }
 0x20b   :  { %v368_v19 = vadd.f32 %v9201_v14, %v367_v13 }
 0x20c   :  { %v10063_v15 = vpop.f32.mrf.mxu0 }
 0x20d   :  { %v379_v17 = vadd.f32 %v10063_v15, %v9201_v14 }
 0x20e   :  { %v370_v18 = vpop.f32.mrf.mxu0 }
 0x20f   :  { %v387_v22 = vpack.c.bf16 %v379_v17, %v376_v16  ;;  %v371_v23 = vadd.f32 %v9201_v14, %v370_v18 }
 0x211   :  { %v386_v25 = vpack.c.bf16 %v371_v23, %v368_v19  ;;  %10064 = vmatprep.subr.bf16.mxu0 %v387_v22  ;;  %v9211_v19 = vld [vmem:[%s14152_s2 + $0x48] ss:$0 sm:$0xff] }
 0x212   :  { %10065 = vmatpush3.bf16.msra.mxu0 %v387_v22 }
 0x213   :  { %10066 = vmatprep.subr.bf16.mxu0 %v386_v25 }
 0x216   :  { %10067 = vmatpush3.bf16.msra.mxu0 %v386_v25 }
 0x217   :  { %10068 = vmatprep.subr.bf16.mxu0 %v385_v27 }
 0x21a   :  { %10069 = vmatpush3.bf16.msra.mxu0 %v385_v27  ;;  %v9212_v27 = vld [vmem:[%s14152_s2 + $0x49] ss:$0 sm:$0xff] }
 0x21b   :  { %10070 = vmatprep.subr.bf16.mxu0 %v384_v32 }
 0x21e   :  { %10071 = vmatpush3.bf16.msra.mxu0 %v384_v32 }
 0x21f   :  { %10084 = vmatprep.subr.bf16.mxu0 %v10967_v2 }
 0x221   :  { %10073 = vmatmul.mubr.msk.bf16.vlgmr.msra.gmra.mxu0 %vm388_vm1, %v11722_v34 }
 0x222   :  { %10085 = vmatpush3.bf16.msra.mxu0 %v10967_v2 }
 0x223   :  { %10086 = vmatprep.subr.bf16.mxu0 %v10969_v48 }
 0x226   :  { %10087 = vmatpush3.bf16.msra.mxu0 %v10969_v48 }
 0x2e1   :  { %v10074_v37 = vpop.f32.mrf.mxu0 }
 0x2e2   :  { %v11737_v46 = vadd.f32 %v10074_v37, %v128_v43 }
 0x2e3   :  { %v429_v42 = vpop.f32.mrf.mxu0 }
 0x2e4   :  { %v11735_v44 = vadd.f32 %v429_v42, %v120_v40  ;;  %v456_v28 = vsel %vm455_vm3, %v11737_v46, 0.0  ;;  %v10971_v40 = vld [vmem:[%s14150_s3 + $0x38] sm:$0xff]  }
 0x2e5   :  { %v10075_v20 = vpop.f32.mrf.mxu0 }
 0x2e6   :  { %v449_v47 = vsel %vm448_vm2, %v11735_v44, 0.0 }
 0x2e7   :  { %v432_v50 = vpop.f32.mrf.mxu0  ;;  %450 = vadd.xlane.f32.xlu0 %v449_v47 }
 0x2e8   :  { %v11741_v51 = vadd.f32 %v432_v50, %v123_v45  ;;  %v9213_v50 = vld [vmem:[%s14152_s2 + $0x4c] ss:$0 sm:$0xff] }
 0x2ea   :  { %v452_v52 = vsel %vm448_vm2, %v11741_v51, 0.0 }
 0x2eb   :  { %453 = vadd.xlane.f32.xlu1 %v452_v52  ;;  %457 = vadd.xlane.f32.xlu0 %v456_v28 }
 0x370   :  { %v451_v53 = vpop.xlane.xlu0 %450 }
 0x371   :  { %v460_v21 = vmul.f32 0.03125, %v451_v53 }
 0x373   :  { %v463_v54 = vsub.f32 %v11735_v44, %v460_v21 }
 0x374   :  { %v454_v55 = vpop.xlane.xlu1 %453  ;;  %v458_v56 = vpop.xlane.xlu0 %457 }
 0x375   :  { %v461_v57 = vmul.f32 0.03125, %v454_v55  ;;  %v462_v58 = vmul.f32 0.03125, %v458_v56  ;;  %v466_v29 = vmul.f32 %v463_v54, %v463_v54  ;;  %v11807_v55 = vsel %vm27_vm12, 1.0, %v11558_v49 }
 0x377   :  { %v464_v59 = vsub.f32 %v11741_v51, %v461_v57  ;;  %v465_v60 = vsub.f32 %v11737_v46, %v462_v58  ;;  %v469_v38 = vsel %vm448_vm2, %v466_v29, 0.0  ;;  %v9223_v58 = vld [vmem:[%s14152_s2 + $0x4e] ss:$0 sm:$0xff] }
 0x378   :  { %470 = vadd.xlane.f32.xlu1 %v469_v38 }
 0x379   :  { %v467_v61 = vmul.f32 %v464_v59, %v464_v59  ;;  %v468_v62 = vmul.f32 %v465_v60, %v465_v60 }
 0x37b   :  { %v472_v63 = vsel %vm448_vm2, %v467_v61, 0.0  ;;  %v475_v0 = vsel %vm455_vm3, %v468_v62, 0.0  ;;  %v11821_v61 = vsel %vm32_vm13, 1.0, %v11558_v49 }
 0x37c   :  { %473 = vadd.xlane.f32.xlu0 %v472_v63  ;;  %476 = vadd.xlane.f32.xlu1 %v475_v0 }
 0x401   :  { %v471_v8 = vpop.xlane.xlu1 %470 }
 0x402   :  { %v478_v9 = vmul.f32 0.03125, %v471_v8 }
 0x404   :  { %v481_v10 = vadd.f32 1e-06, %v478_v9 }
 0x405   :  { %v477_v11 = vpop.xlane.xlu1 %476  ;;  %v474_v12 = vpop.xlane.xlu0 %473 }
 0x406   :  { %11102 = vrsqrt.f32 %v481_v10  ;;  %v480_v13 = vmul.f32 0.03125, %v477_v11  ;;  %v479_v14 = vmul.f32 0.03125, %v474_v12 }
 0x408   :  { %v483_v15 = vadd.f32 1e-06, %v480_v13  ;;  %v482_v16 = vadd.f32 1e-06, %v479_v14 }
 0x40a   :  { %11104 = vrsqrt.f32 %v483_v15 }
 0x40b   :  { %11106 = vrsqrt.f32 %v482_v16 }
 0x413   :  { %v11103_v17 = vpop.eup %11102 }
 0x414   :  { %v487_v18 = vmul.f32 %v11103_v17, %v463_v54  ;;  %v11804_v54 = vsel %vm21_vm11, 1.0, %v11558_v49  ;;  %v11559_v17 = vmov 0  }
 0x416   :  { %v494_v26 = vmul.f32 %v9211_v19, %v487_v18  ;;  %v11860_v18 = vsel %vm933_vm14, 65535, %v11559_v17 }
 0x417   :  { %v11105_v22 = vpop.eup %11104 }
 0x418   :  { %v11107_v23 = vpop.eup %11106  ;;  %v489_v24 = vmul.f32 %v11105_v22, %v465_v60  ;;  %v501_v33 = vadd.f32 %v9212_v27, %v494_v26 }
 0x419   :  { %v488_v25 = vmul.f32 %v11107_v23, %v464_v59 }
 0x41a   :  { %v496_v30 = vmul.f32 %v9211_v19, %v489_v24 }
 0x41b   :  { %v495_v31 = vmul.f32 %v9211_v19, %v488_v25 }
 0x41c   :  { %v503_v32 = vadd.f32 %v9212_v27, %v496_v30 }
 0x41d   :  { %v502_v35 = vadd.f32 %v9212_v27, %v495_v31 }
 0x41e   :  { %v509_v36 = vpack.c.bf16 %v503_v32, %v503_v32 }
 0x41f   :  { %v508_v37 = vpack.c.bf16 %v502_v35, %v501_v33 }
 0x421   :  { %10080 = vmatprep.mubr.msk.bf16.mxu1 %vm448_vm2, %v508_v37  ;;  %10088 = vmatprep.mubr.msk.bf16.mxu0 %vm448_vm2, %v508_v37 }
 0x422   :  { %10081 = vmatmul.mubr.msk.bf16.vlgmr.msra.gmra.mxu1 %vm448_vm2, %v509_v36  ;;  %10089 = vmatmul.mubr.msk.bf16.vlgmr.msra.gmra.mxu0 %vm448_vm2, %v509_v36 }
 0x423   :  { %10093 = vmatpush3.bf16.msra.mxu1 %v10970_v3  ;;  %10096 = vmatprep.mubr.msk.bf16.mxu1 %vm448_vm2, %v508_v37 }
 0x424   :  { %10094 = vmatprep.subr.bf16.mxu1 %v10971_v40 }
 0x427   :  { %10095 = vmatpush3.bf16.msra.mxu1 %v10971_v40 }
 0x42a   :  { %10097 = vmatmul.mubr.msk.bf16.vlgmr.msra.gmra.mxu1 %vm448_vm2, %v509_v36 }
 0x4e2   :  { %v10082_v42 = vpop.f32.mrf.mxu1  ;;  %v10090_v43 = vpop.f32.mrf.mxu0 }
 0x4e3   :  { %v645_v20 = vadd.f32 %v10090_v43, %v9218_v41  ;;  %v11852_v14 = vadd.f32 %v10082_v42, %v9213_v50 }
 0x4e4   :  { %v567_v45 = vpop.f32.mrf.mxu1  ;;  %v636_v47 = vpop.f32.mrf.mxu0 }
 0x4e5   :  { %v11801_v52 = vpack.c.bf16 %v645_v20, %v645_v20  ;;  %v568_v28 = vadd.f32 %v9213_v50, %v567_v45  ;;  %v637_v29 = vadd.f32 %v9218_v41, %v636_v47  ;;  %v723_v31 = vmul.f32 %v11804_v54, %v11852_v14 }
 0x4e6   :  { %v10083_v53 = vpop.f32.mrf.mxu1  ;;  %v10091_v21 = vpop.f32.mrf.mxu0  ;;  %v830_v32 = vmul.f32 %v11807_v55, %v11852_v14 }
 0x4e7   :  { %10908 = vmatprep.subr.msk.bf16.mxu0 %vm448_vm2, %v11801_v52  ;;  %10910 = vmatprep.subr.msk.bf16.mxu1 %vm448_vm2, %v11801_v52  ;;  %v11818_v38 = vsel %vm448_vm2, %v11801_v52, 0  ;;  %v721_v62 = vmul.f32 %v11804_v54, %v568_v28  ;;  %v828_v63 = vmul.f32 %v11807_v55, %v568_v28  ;;  %v11834_v3 = vmul.f32 %v11821_v61, %v568_v28 }
 0x4e8   :  { %v570_v56 = vpop.f32.mrf.mxu1  ;;  %v639_v57 = vpop.f32.mrf.mxu0  ;;  %10101 = vmatpush3.bf16.xpose.msra.mxu0 %v11818_v38  ;;  %10109 = vmatpush3.bf16.xpose.msra.mxu1 %v11818_v38  ;;  %v11855_v15 = vmul.f32 %v11773_v7, %v568_v28  ;;  %v725_v45 = vpack.c.bf16 %v723_v31, %v723_v31  ;;  %v832_v47 = vpack.c.bf16 %v830_v32, %v830_v32 }
 0x4e9   :  { %v571_v59 = vadd.f32 %v9213_v50, %v570_v56  ;;  %v640_v60 = vadd.f32 %v9218_v41, %v639_v57 }
 0x4ea   :  { %v10098_v0 = vpop.f32.mrf.mxu1 }
 0x4eb   :  { %v11827_v1 = vpack.c.bf16 %v640_v60, %v637_v29  ;;  %v11829_v2 = vadd.f32 %v10098_v0, %v9223_v58  ;;  %v722_v39 = vmul.f32 %v11804_v54, %v571_v59  ;;  %v829_v48 = vmul.f32 %v11807_v55, %v571_v59 }
 0x4ec   :  { %v705_v4 = vpop.f32.mrf.mxu1  ;;  %v11837_v5 = vmul.f32 %v11821_v61, %v571_v59  ;;  %v11844_v9 = vmul.f32 %v11773_v7, %v571_v59 }
 0x4ed   :  { %10909 = vmatprep.subr.msk.bf16.mxu0 %vm448_vm2, %v11827_v1  ;;  %10911 = vmatprep.subr.msk.bf16.mxu1 %vm448_vm2, %v11827_v1  ;;  %v724_v49 = vpack.c.bf16 %v722_v39, %v721_v62  ;;  %v831_v8 = vpack.c.bf16 %v829_v48, %v828_v63  ;;  %v835_v11 = vmul.f32 %v11807_v55, %v11829_v2  ;;  %v11864_v25 = vsel %vm448_vm2, %v11827_v1, 0 }
 0x4ee   :  { %v10099_v10 = vpop.f32.mrf.mxu1  ;;  %v728_v12 = vmul.f32 %v11804_v54, %v11829_v2  ;;  %v1047_v13 = vpack.c.bf16 %v11837_v5, %v11834_v3  ;;  %v706_v16 = vadd.f32 %v9223_v58, %v705_v4  ;;  %v1206_v26 = vpack.c.bf16 %v11844_v9, %v11855_v15 }
 0x4ef   :  { %10104 = vmatprep.mubr.msk.bf16.mxu0 %vm448_vm2, %v724_v49  ;;  %10112 = vmatprep.mubr.msk.bf16.mxu1 %vm448_vm2, %v831_v8  ;;  %v837_v22 = vpack.c.bf16 %v835_v11, %v835_v11  ;;  %v1051_v42 = vmul.f32 %v11821_v61, %v11829_v2 }
 0x4f0   :  { %v708_v19 = vpop.f32.mrf.mxu1  ;;  %v730_v23 = vpack.c.bf16 %v728_v12, %v728_v12  ;;  %10103 = vmatpush3.bf16.xpose.msra.mxu0 %v11864_v25  ;;  %10111 = vmatpush3.bf16.xpose.msra.mxu1 %v11864_v25  ;;  %v1208_v33 = vmul.f32 %v11773_v7, %v706_v16  ;;  %v1049_v36 = vmul.f32 %v11821_v61, %v706_v16 }
 0x4f1   :  { %v709_v24 = vadd.f32 %v9223_v58, %v708_v19  ;;  %v937_v27 = vand.u32 %v11860_v18, %v837_v22  ;;  %v833_v50 = vmul.f32 %v11807_v55, %v706_v16  ;;  %v726_v28 = vmul.f32 %v11804_v54, %v706_v16 }
 0x4f2   :  { %v994_v30 = vand.u32 %v11860_v18, %v730_v23  ;;  %v1053_v56 = vpack.c.bf16 %v1051_v42, %v1051_v42 }
 0x4f3   :  { %v1209_v35 = vmul.f32 %v11773_v7, %v709_v24  ;;  %10116 = vmatprep.subr.bf16.mxu0 %v937_v27  ;;  %v1050_v37 = vmul.f32 %v11821_v61, %v709_v24  ;;  %v834_v40 = vmul.f32 %v11807_v55, %v709_v24  ;;  %v727_v41 = vmul.f32 %v11804_v54, %v709_v24 }
 0x4f4   :  { %10124 = vmatprep.subr.bf16.mxu1 %v994_v30  ;;  %v11893_v57 = vand.u32 %v1053_v56, %v11860_v18 }
 0x4f5   :  { %v11884_v43 = vpack.c.bf16 %v1209_v35, %v1208_v33  ;;  %v11886_v20 = vpack.c.bf16 %v1050_v37, %v1049_v36  ;;  %v836_v53 = vpack.c.bf16 %v834_v40, %v833_v50  ;;  %v729_v21 = vpack.c.bf16 %v727_v41, %v726_v28 }
 0x4f7   :  { %10105 = vmatmul.mubr.msk.bf16.vlgmr.msra.gmra.mxu0 %vm448_vm2, %v725_v45  ;;  %10113 = vmatmul.mubr.msk.bf16.vlgmr.msra.gmra.mxu1 %vm448_vm2, %v832_v47 }
 0x4f8   :  { %10117 = vmatpush3.bf16.msra.mxu0 %v937_v27  ;;  %10125 = vmatpush3.bf16.msra.mxu1 %v994_v30 }
 0x4f9   :  { %10118 = vmatprep.subr.bf16.mxu0 %v836_v53  ;;  %10126 = vmatprep.subr.bf16.mxu1 %v729_v21 }
 0x4fc   :  { %10119 = vmatpush3.bf16.msra.mxu0 %v836_v53  ;;  %10127 = vmatpush3.bf16.msra.mxu1 %v729_v21 }
 0x4fd   :  { %10912 = vmatprep.subr.msk.bf16.mxu0 %vm448_vm2, %v11801_v52  ;;  %10140 = vmatprep.subr.bf16.mxu1 %v11893_v57 }
 0x5b7   :  { %v11898_v58 = vpop.f32.mrf.mxu0  ;;  %v10114_v29 = vpop.f32.mrf.mxu1 }
 0x5b8   :  { %v898_v48 = vsel %vm798_vm4, %v10114_v29, -inf  ;;  %v799_v37 = vsel %vm798_vm4, %v11898_v58, -inf }
 0x5b9   :  { %v11900_v59 = vpop.f32.mrf.mxu0  ;;  %v878_v60 = vpop.f32.mrf.mxu1 }
 0x5ba   :  { %v892_v62 = vsel %vm791_vm15, %v878_v60, -inf  ;;  %v792_v36 = vsel %vm791_vm15, %v11900_v59, -inf }
 0x5bb   :  { %893 = vmax.xlane.f32.xlu0 %v892_v62  ;;  %v10107_v63 = vpop.f32.mrf.mxu0  ;;  %v10115_v0 = vpop.f32.mrf.mxu1 }
 0x5bc   :  { %v1046_v0 = vmul.f32 %v11821_v61, %v11852_v14 }
 0x5bd   :  { %v881_v39 = vpop.f32.mrf.mxu1  ;;  %v780_v32 = vpop.f32.mrf.mxu0 }
 0x5be   :  { %v895_v4 = vsel %vm791_vm15, %v881_v39, -inf  ;;  %v795_v35 = vsel %vm791_vm15, %v780_v32, -inf }
 0x5bf   :  { %899 = vmax.xlane.f32.xlu0 %v898_v48  ;;  %896 = vmax.xlane.f32.xlu1 %v895_v4 }
 0x644   :  { %v894_v49 = vpop.xlane.xlu0 %893 }
 0x645   :  { %v901_v8 = vsub.f32 %v878_v60, %v894_v49  ;;  %v1210_v60 = vmul.f32 %v11773_v7, %v11829_v2  ;;  %v1048_v2 = vpack.c.bf16 %v1046_v0, %v1046_v0 }
 0x647   :  { %v904_v10 = vmul.f32 1.442695, %v901_v8  ;;  %v1212_v62 = vpack.c.bf16 %v1210_v60, %v1210_v60 }
 0x648   :  { %v900_v11 = vpop.xlane.xlu0 %899  ;;  %v897_v12 = vpop.xlane.xlu1 %896 }
 0x649   :  { %11108 = vpow2.f32 %v904_v10  ;;  %v903_v16 = vsub.f32 %v10114_v29, %v900_v11  ;;  %v902_v17 = vsub.f32 %v881_v39, %v897_v12  ;;  %v1309_v63 = vand.u32 %v1212_v62, %v11860_v18 }
 0x64b   :  { %v908_v19 = vmul.f32 1.442695, %v903_v16  ;;  %v906_v22 = vmul.f32 1.442695, %v902_v17 }
 0x64d   :  { %11110 = vpow2.f32 %v908_v19 }
 0x64e   :  { %11112 = vpow2.f32 %v906_v22 }
 0x656   :  { %v11109_v23 = vpop.eup %11108 }
 0x657   :  { %v910_v24 = vsel %vm791_vm15, %v11109_v23, 0.0 }
 0x658   :  { %911 = vadd.xlane.f32.xlu1 %v910_v24 }
 0x65a   :  { %v11111_v27 = vpop.eup %11110 }
 0x65b   :  { %v11113_v30 = vpop.eup %11112  ;;  %v916_v31 = vsel %vm798_vm4, %v11111_v27, 0.0 }
 0x65c   :  { %917 = vadd.xlane.f32.xlu1 %v916_v31  ;;  %v913_v33 = vsel %vm791_vm15, %v11113_v30, 0.0 }
 0x65d   :  { %914 = vadd.xlane.f32.xlu0 %v913_v33 }
 0x660   :  { %796 = vmax.xlane.f32.xlu1 %v795_v35 }
 0x661   :  { %793 = vmax.xlane.f32.xlu0 %v792_v36 }
 0x665   :  { %800 = vmax.xlane.f32.xlu0 %v799_v37 }
 0x6e1   :  { %v912_v40 = vpop.xlane.xlu1 %911 }
 0x6e2   :  { %11114 = vrcp.f32 %v912_v40 }
 0x6e5   :  { %v918_v41 = vpop.xlane.xlu1 %917 }
 0x6e6   :  { %v915_v42 = vpop.xlane.xlu0 %914  ;;  %11116 = vrcp.f32 %v918_v41 }
 0x6e7   :  { %11118 = vrcp.f32 %v915_v42 }
 0x6e9   :  { %v797_v5 = vpop.xlane.xlu1 %796 }
 0x6ea   :  { %v794_v3 = vpop.xlane.xlu0 %793  ;;  %v803_v39 = vsub.f32 %v780_v32, %v797_v5 }
 0x6eb   :  { %v802_v4 = vsub.f32 %v11900_v59, %v794_v3 }
 0x6ec   :  { %v807_v10 = vmul.f32 1.442695, %v803_v39 }
 0x6ed   :  { %v805_v11 = vmul.f32 1.442695, %v802_v4 }
 0x6ee   :  { %v801_v49 = vpop.xlane.xlu0 %800  ;;  %11120 = vpow2.f32 %v807_v10 }
 0x6ef   :  { %v11115_v45 = vpop.eup %11114  ;;  %v804_v12 = vsub.f32 %v11898_v58, %v801_v49  ;;  %11122 = vpow2.f32 %v805_v11 }
 0x6f0   :  { %v922_v53 = vmul.f32 %v11115_v45, %v11109_v23 }
 0x6f1   :  { %v809_v16 = vmul.f32 1.442695, %v804_v12 }
 0x6f3   :  { %v11117_v47 = vpop.eup %11116  ;;  %11124 = vpow2.f32 %v809_v16 }
 0x6f4   :  { %v11119_v50 = vpop.eup %11118  ;;  %v924_v28 = vmul.f32 %v11117_v47, %v11111_v27 }
 0x6f5   :  { %v923_v21 = vmul.f32 %v11119_v50, %v11113_v30 }
 0x6f6   :  { %v926_v56 = vpack.c.bf16 %v924_v28, %v924_v28 }
 0x6f7   :  { %v925_v29 = vpack.c.bf16 %v923_v21, %v922_v53 }
 0x6f9   :  { %10120 = vmatprep.mubr.msk.bf16.mxu0 %vm791_vm15, %v925_v29 }
 0x6fa   :  { %10121 = vmatmul.mubr.msk.bf16.vlgmr.msra.gmra.mxu0 %vm791_vm15, %v926_v56 }
 0x6fb   :  { %10133 = vmatpush3.bf16.xpose.msra.mxu0 %v11818_v38  ;;  %10136 = vmatprep.mubr.msk.bf16.mxu0 %vm448_vm2, %v1047_v13  ;;  %v11121_v59 = vpop.eup %11120 }
 0x6fc   :  { %10913 = vmatprep.subr.msk.bf16.mxu0 %vm448_vm2, %v11827_v1  ;;  %v11123_v31 = vpop.eup %11122  ;;  %v814_v32 = vsel %vm791_vm15, %v11121_v59, 0.0 }
 0x6fd   :  { %v811_v58 = vsel %vm791_vm15, %v11123_v31, 0.0 }
 0x700   :  { %v11125_v33 = vpop.eup %11124 }
 0x701   :  { %v817_v35 = vsel %vm798_vm4, %v11125_v33, 0.0 }
 0x703   :  { %10135 = vmatpush3.bf16.xpose.msra.mxu0 %v11864_v25 }
 0x704   :  { %10156 = vmatprep.subr.bf16.mxu0 %v1309_v63 }
 0x70a   :  { %10137 = vmatmul.mubr.msk.bf16.vlgmr.msra.gmra.mxu0 %vm448_vm2, %v1048_v2 }
 0x70b   :  { %10157 = vmatpush3.bf16.msra.mxu0 %v1309_v63 }
 0x70c   :  { %10158 = vmatprep.subr.bf16.mxu0 %v11884_v43 }
 0x70f   :  { %10159 = vmatpush3.bf16.msra.mxu0 %v11884_v43 }
 0x7ba   :  { %v11931_v13 = vpop.f32.mrf.mxu0 }
 0x7bc   :  { %v11933_v48 = vpop.f32.mrf.mxu0 }
 0x7be   :  { %v10123_v8 = vpop.f32.mrf.mxu0 }
 0x7c0   :  { %v11937_v17 = vpop.f32.mrf.mxu0 }
 0x7ca   :  { %v10138_v43 = vpop.f32.mrf.mxu0 }
 0x7cb   :  { %v1114_v30 = vsel %vm798_vm4, %v10138_v43, -inf }
 0x7cc   :  { %v1094_v19 = vpop.f32.mrf.mxu0 }
 0x7cd   :  { %v1108_v22 = vsel %vm791_vm15, %v1094_v19, -inf }
 0x7ce   :  { %v10139_v23 = vpop.f32.mrf.mxu0  ;;  %1109 = vmax.xlane.f32.xlu1 %v1108_v22 }
 0x7d0   :  { %v1097_v24 = vpop.f32.mrf.mxu0 }
 0x7d1   :  { %v1111_v27 = vsel %vm791_vm15, %v1097_v24, -inf }
 0x7d2   :  { %1112 = vmax.xlane.f32.xlu0 %v1111_v27  ;;  %1115 = vmax.xlane.f32.xlu1 %v1114_v30 }
 0x7d6   :  { %812 = vadd.xlane.f32.xlu0 %v811_v58  ;;  %815 = vadd.xlane.f32.xlu1 %v814_v32 }
 0x7da   :  { %818 = vadd.xlane.f32.xlu0 %v817_v35 }
 0x857   :  { %v1110_v36 = vpop.xlane.xlu1 %1109 }
 0x858   :  { %v1117_v37 = vsub.f32 %v1094_v19, %v1110_v36 }
 0x85a   :  { %v1120_v40 = vmul.f32 1.442695, %v1117_v37 }
 0x85b   :  { %v1113_v41 = vpop.xlane.xlu0 %1112  ;;  %v1116_v42 = vpop.xlane.xlu1 %1115 }
 0x85c   :  { %11126 = vpow2.f32 %v1120_v40  ;;  %v1118_v45 = vsub.f32 %v1097_v24, %v1113_v41  ;;  %v1119_v47 = vsub.f32 %v10138_v43, %v1116_v42 }
 0x85e   :  { %v1122_v50 = vmul.f32 1.442695, %v1118_v45  ;;  %v1124_v28 = vmul.f32 1.442695, %v1119_v47 }
 0x85f   :  { %v813_v53 = vpop.xlane.xlu0 %812  ;;  %v816_v21 = vpop.xlane.xlu1 %815 }
 0x860   :  { %11128 = vpow2.f32 %v1122_v50 }
 0x861   :  { %11130 = vpow2.f32 %v1124_v28 }
 0x862   :  { %11132 = vrcp.f32 %v813_v53 }
 0x863   :  { %11134 = vrcp.f32 %v816_v21  ;;  %v819_v56 = vpop.xlane.xlu0 %818 }
 0x864   :  { %11136 = vrcp.f32 %v819_v56 }
 0x869   :  { %v11127_v29 = vpop.eup %11126 }
 0x86a   :  { %v1126_v60 = vsel %vm791_vm15, %v11127_v29, 0.0 }
 0x86b   :  { %1127 = vadd.xlane.f32.xlu1 %v1126_v60 }
 0x86d   :  { %v11129_v62 = vpop.eup %11128 }
 0x86e   :  { %v11131_v63 = vpop.eup %11130  ;;  %v1129_v0 = vsel %vm791_vm15, %v11129_v62, 0.0 }
 0x86f   :  { %v11133_v2 = vpop.eup %11132  ;;  %1130 = vadd.xlane.f32.xlu0 %v1129_v0  ;;  %v1132_v3 = vsel %vm798_vm4, %v11131_v63, 0.0 }
 0x870   :  { %v11135_v5 = vpop.eup %11134  ;;  %1133 = vadd.xlane.f32.xlu1 %v1132_v3  ;;  %v823_v39 = vmul.f32 %v11133_v2, %v11123_v31 }
 0x871   :  { %v11137_v4 = vpop.eup %11136  ;;  %v824_v49 = vmul.f32 %v11135_v5, %v11121_v59 }
 0x872   :  { %v825_v8 = vmul.f32 %v11137_v4, %v11125_v33 }
 0x873   :  { %v826_v10 = vpack.c.bf16 %v824_v49, %v823_v39 }
 0x874   :  { %v827_v11 = vpack.c.bf16 %v825_v8, %v825_v8 }
 0x875   :  { %10128 = vmatprep.mubr.msk.bf16.mxu1 %vm791_vm15, %v826_v10 }
 0x876   :  { %10129 = vmatmul.mubr.msk.bf16.vlgmr.msra.gmra.mxu1 %vm791_vm15, %v827_v11 }
 0x877   :  { %10141 = vmatpush3.bf16.msra.mxu1 %v11893_v57 }
 0x878   :  { %10142 = vmatprep.subr.bf16.mxu1 %v11886_v20 }
 0x87b   :  { %10143 = vmatpush3.bf16.msra.mxu1 %v11886_v20 }
 0x87c   :  { %10914 = vmatprep.subr.msk.bf16.mxu1 %vm448_vm2, %v11801_v52  ;;  %v1205_v52 = vmul.f32 %v11773_v7, %v11852_v14 }
 0x87e   :  { %v1207_v20 = vpack.c.bf16 %v1205_v52, %v1205_v52 }
 0x8f4   :  { %v1128_v12 = vpop.xlane.xlu1 %1127 }
 0x8f5   :  { %11138 = vrcp.f32 %v1128_v12 }
 0x8f8   :  { %v1131_v16 = vpop.xlane.xlu0 %1130 }
 0x8f9   :  { %11140 = vrcp.f32 %v1131_v16  ;;  %v1134_v43 = vpop.xlane.xlu1 %1133 }
 0x8fa   :  { %11142 = vrcp.f32 %v1134_v43 }
 0x902   :  { %v11139_v19 = vpop.eup %11138 }
 0x903   :  { %v1138_v24 = vmul.f32 %v11139_v19, %v11127_v29 }
 0x906   :  { %v11141_v22 = vpop.eup %11140 }
 0x907   :  { %v11143_v23 = vpop.eup %11142  ;;  %v1139_v59 = vmul.f32 %v11141_v22, %v11129_v62 }
 0x908   :  { %v1140_v27 = vmul.f32 %v11143_v23, %v11131_v63  ;;  %v10972_v23 = vld [vmem:[%s14150_s3 + $0x50] sm:$0xff]  }
 0x909   :  { %v1141_v57 = vpack.c.bf16 %v1139_v59, %v1138_v24  ;;  %10164 = vmatprep.subr.bf16.mxu0 %v10972_v23  ;;  %v10973_v24 = vld [vmem:[%s14150_s3 + $0x48] sm:$0xff]  }
 0x90a   :  { %v1142_v30 = vpack.c.bf16 %v1140_v27, %v1140_v27 }
 0x90b   :  { %10144 = vmatprep.mubr.msk.bf16.mxu1 %vm791_vm15, %v1141_v57 }
 0x90c   :  { %10145 = vmatmul.mubr.msk.bf16.vlgmr.msra.gmra.mxu1 %vm791_vm15, %v1142_v30 }
 0x90d   :  { %10149 = vmatpush3.bf16.xpose.msra.mxu1 %v11818_v38  ;;  %10152 = vmatprep.mubr.msk.bf16.mxu1 %vm448_vm2, %v1206_v26 }
 0x90e   :  { %10915 = vmatprep.subr.msk.bf16.mxu1 %vm448_vm2, %v11827_v1 }
 0x915   :  { %10151 = vmatpush3.bf16.xpose.msra.mxu1 %v11864_v25 }
 0x91c   :  { %10153 = vmatmul.mubr.msk.bf16.vlgmr.msra.gmra.mxu1 %vm448_vm2, %v1207_v20 }
 0x936   :  { %v10130_v31 = vpop.f32.mrf.mxu1 }
 0x937   :  { %v1039_v9 = vadd.f32 %v10130_v31, %v11931_v13 }
 0x938   :  { %v1030_v58 = vpop.f32.mrf.mxu1 }
 0x939   :  { %v1031_v26 = vadd.f32 %v1030_v58, %v11933_v48 }
 0x93a   :  { %v10131_v32 = vpop.f32.mrf.mxu1 }
 0x93c   :  { %v11968_v38 = vpop.f32.mrf.mxu1 }
 0x93d   :  { %v1034_v57 = vadd.f32 %v11968_v38, %v11937_v17  ;;  %v9248_v38 = vld [vmem:[%s14152_s2 + $0x4f] ss:$0 sm:$0xff] }
 0x9cc   :  { %v10146_v15 = vpop.f32.mrf.mxu1 }
 0x9cd   :  { %v11972_v33 = vadd.f32 %v10146_v15, %v1039_v9 }
 0x9ce   :  { %v1186_v1 = vpop.f32.mrf.mxu1 }
 0x9cf   :  { %v11974_v25 = vadd.f32 %v1186_v1, %v1031_v26 }
 0x9d0   :  { %v10147_v35 = vpop.f32.mrf.mxu1 }
 0x9d2   :  { %v1189_v14 = vpop.f32.mrf.mxu1 }
 0x9d3   :  { %v1201_v52 = vadd.f32 %v1189_v14, %v1034_v57 }
 0x9dc   :  { %v10154_v36 = vpop.f32.mrf.mxu1 }
 0x9dd   :  { %v1273_v45 = vsel %vm798_vm4, %v10154_v36, -inf }
 0x9de   :  { %v1253_v37 = vpop.f32.mrf.mxu1 }
 0x9df   :  { %v1267_v40 = vsel %vm791_vm15, %v1253_v37, -inf }
 0x9e0   :  { %1268 = vmax.xlane.f32.xlu0 %v1267_v40  ;;  %v10155_v41 = vpop.f32.mrf.mxu1 }
 0x9e2   :  { %v1256_v42 = vpop.f32.mrf.mxu1 }
 0x9e3   :  { %v1270_v13 = vsel %vm791_vm15, %v1256_v42, -inf }
 0x9e4   :  { %1274 = vmax.xlane.f32.xlu0 %v1273_v45  ;;  %1271 = vmax.xlane.f32.xlu1 %v1270_v13 }
 0xa69   :  { %v1269_v48 = vpop.xlane.xlu0 %1268 }
 0xa6a   :  { %v1276_v47 = vsub.f32 %v1253_v37, %v1269_v48 }
 0xa6c   :  { %v1279_v50 = vmul.f32 1.442695, %v1276_v47 }
 0xa6d   :  { %v1275_v28 = vpop.xlane.xlu0 %1274  ;;  %v1272_v53 = vpop.xlane.xlu1 %1271 }
 0xa6e   :  { %11144 = vpow2.f32 %v1279_v50  ;;  %v1278_v21 = vsub.f32 %v10154_v36, %v1275_v28  ;;  %v1277_v56 = vsub.f32 %v1256_v42, %v1272_v53 }
 0xa70   :  { %v1283_v29 = vmul.f32 1.442695, %v1278_v21  ;;  %v1281_v60 = vmul.f32 1.442695, %v1277_v56 }
 0xa72   :  { %11146 = vpow2.f32 %v1283_v29 }
 0xa73   :  { %11148 = vpow2.f32 %v1281_v60 }
 0xa7b   :  { %v11145_v62 = vpop.eup %11144 }
 0xa7c   :  { %v1285_v63 = vsel %vm791_vm15, %v11145_v62, 0.0 }
 0xa7d   :  { %1286 = vadd.xlane.f32.xlu1 %v1285_v63 }
 0xa7f   :  { %v11147_v0 = vpop.eup %11146 }
 0xa80   :  { %v11149_v2 = vpop.eup %11148  ;;  %v1291_v3 = vsel %vm798_vm4, %v11147_v0, 0.0 }
 0xa81   :  { %1292 = vadd.xlane.f32.xlu1 %v1291_v3  ;;  %v1288_v5 = vsel %vm791_vm15, %v11149_v2, 0.0 }
 0xa82   :  { %1289 = vadd.xlane.f32.xlu0 %v1288_v5  ;;  %v10974_v5 = vld [vmem:[%s14150_s3 + $0x60] sm:$0xff]  }
 0xa83   :  { %10172 = vmatprep.subr.bf16.mxu1 %v10974_v5 }
 0xa84   :  { %10173 = vmatpush3.bf16.msra.mxu1 %v10974_v5 }
 0xb06   :  { %v1287_v39 = vpop.xlane.xlu1 %1286 }
 0xb07   :  { %11150 = vrcp.f32 %v1287_v39  ;;  %v10975_v39 = vld [vmem:[%s14150_s3 + $0x58] sm:$0xff]  }
 0xb08   :  { %10174 = vmatprep.subr.bf16.mxu1 %v10975_v39 }
 0xb09   :  { %10175 = vmatpush3.bf16.msra.mxu1 %v10975_v39 }
 0xb0a   :  { %v1293_v4 = vpop.xlane.xlu1 %1292 }
 0xb0b   :  { %v1290_v49 = vpop.xlane.xlu0 %1289  ;;  %11152 = vrcp.f32 %v1293_v4 }
 0xb0c   :  { %11154 = vrcp.f32 %v1290_v49 }
 0xb14   :  { %v11151_v8 = vpop.eup %11150 }
 0xb15   :  { %v1297_v16 = vmul.f32 %v11151_v8, %v11145_v62 }
 0xb18   :  { %v11153_v10 = vpop.eup %11152 }
 0xb19   :  { %v11155_v11 = vpop.eup %11154  ;;  %v1299_v12 = vmul.f32 %v11153_v10, %v11147_v0 }
 0xb1a   :  { %v1298_v43 = vmul.f32 %v11155_v11, %v11149_v2 }
 0xb1b   :  { %v1301_v19 = vpack.c.bf16 %v1299_v12, %v1299_v12 }
 0xb1c   :  { %v1300_v22 = vpack.c.bf16 %v1298_v43, %v1297_v16 }
 0xb1e   :  { %10160 = vmatprep.mubr.msk.bf16.mxu0 %vm791_vm15, %v1300_v22 }
 0xb1f   :  { %10161 = vmatmul.mubr.msk.bf16.vlgmr.msra.gmra.mxu0 %vm791_vm15, %v1301_v19 }
 0xb20   :  { %10165 = vmatpush3.bf16.msra.mxu0 %v10972_v23 }
 0xb21   :  { %10166 = vmatprep.subr.bf16.mxu0 %v10973_v24 }
 0xb24   :  { %10167 = vmatpush3.bf16.msra.mxu0 %v10973_v24  ;;  %v9249_v24 = vld [vmem:[%s14152_s2 + $0x4a] ss:$0 sm:$0xff] }
 0xbdf   :  { %v10162_v59 = vpop.f32.mrf.mxu0 }
 0xbe0   :  { %v1361_v20 = vadd.f32 %v10162_v59, %v11972_v33 }
 0xbe1   :  { %v1345_v27 = vpop.f32.mrf.mxu0 }
 0xbe2   :  { %v1359_v58 = vadd.f32 %v1345_v27, %v11974_v25  ;;  %v1367_v15 = vpack.c.bf16 %v1361_v20, %v1361_v20 }
 0xbe3   :  { %v10163_v30 = vpop.f32.mrf.mxu0 }
 0xbe5   :  { %v1348_v31 = vpop.f32.mrf.mxu0 }
 0xbe6   :  { %v1360_v32 = vadd.f32 %v1348_v31, %v1201_v52  ;;  %v9250_v52 = vld [vmem:[%s14152_s2 + $0x4b] ss:$0 sm:$0xff] }
 0xbe8   :  { %v1366_v9 = vpack.c.bf16 %v1360_v32, %v1359_v58 }
 0xbea   :  { %10168 = vmatprep.mubr.msk.bf16.mxu0 %vm448_vm2, %v1366_v9 }
 0xbeb   :  { %10169 = vmatmul.mubr.msk.bf16.vlgmr.msra.gmra.mxu0 %vm448_vm2, %v1367_v15 }
 0xcab   :  { %v10170_v26 = vpop.f32.mrf.mxu0 }
 0xcac   :  { %v1436_v35 = vadd.f32 %v10170_v26, %v11737_v46 }
 0xcad   :  { %v1420_v1 = vpop.f32.mrf.mxu0 }
 0xcae   :  { %v1434_v17 = vadd.f32 %v1420_v1, %v11735_v44  ;;  %v12003_v36 = vadd.f32 %v9248_v38, %v1436_v35  ;;  %v10976_v35 = vld [vmem:[%s14150_s3 + $0xa0] sm:$0xff]  }
 0xcaf   :  { %v10171_v33 = vpop.f32.mrf.mxu0  ;;  %10180 = vmatprep.subr.bf16.mxu0 %v10976_v35 }
 0xcb0   :  { %v12001_v14 = vadd.f32 %v9248_v38, %v1434_v17  ;;  %v1453_v42 = vsel %vm455_vm3, %v12003_v36, 0.0  ;;  %10181 = vmatpush3.bf16.msra.mxu0 %v10976_v35  ;;  %v10977_v17 = vld [vmem:[%s14150_s3 + $0x98] sm:$0xff]   ;;  %v10979_v33 = vld [vmem:[%s14150_s3 + $0x88] sm:$0xff]  }
 0xcb1   :  { %v1423_v25 = vpop.f32.mrf.mxu0  ;;  %10182 = vmatprep.subr.bf16.mxu0 %v10977_v17 }
 0xcb2   :  { %v1435_v37 = vadd.f32 %v1423_v25, %v11741_v51  ;;  %v1447_v40 = vsel %vm448_vm2, %v12001_v14, 0.0  ;;  %v10980_v25 = vld [vmem:[%s14150_s3 + $0x80] sm:$0xff]  }
 0xcb3   :  { %1448 = vadd.xlane.f32.xlu0 %v1447_v40  ;;  %v10982_v40 = vld [vmem:[%s14150_s3 + $0x70] sm:$0xff]  }
 0xcb4   :  { %v12008_v41 = vadd.f32 %v9248_v38, %v1435_v37  ;;  %10183 = vmatpush3.bf16.msra.mxu0 %v10977_v17  ;;  %v10978_v38 = vld [vmem:[%s14150_s3 + $0x90] sm:$0xff]   ;;  %v10981_v37 = vld [vmem:[%s14150_s3 + $0x78] sm:$0xff]  }
 0xcb5   :  { %10184 = vmatprep.subr.bf16.mxu0 %v10978_v38 }
 0xcb6   :  { %v1450_v45 = vsel %vm448_vm2, %v12008_v41, 0.0 }
 0xcb7   :  { %1454 = vadd.xlane.f32.xlu0 %v1453_v42  ;;  %1451 = vadd.xlane.f32.xlu1 %v1450_v45  ;;  %v10983_v42 = vld [vmem:[%s14150_s3 + $0x68] sm:$0xff]   ;;  %v9251_v45 = vld [vmem:[%s14152_s2 + $0x50] ss:$0 sm:$0xff] }
 0xcb8   :  { %10185 = vmatpush3.bf16.msra.mxu0 %v10978_v38 }
 0xcb9   :  { %10186 = vmatprep.subr.bf16.mxu0 %v10979_v33 }
 0xcbc   :  { %10187 = vmatpush3.bf16.msra.mxu0 %v10979_v33  ;;  %v45_v33 = vld [vmem:[%s14152_s2 + $0x28] sm:$0x1] }
 0xcbd   :  { %10188 = vmatprep.subr.bf16.mxu0 %v10980_v25 }
 0xcc0   :  { %10189 = vmatpush3.bf16.msra.mxu0 %v10980_v25 }
 0xcc1   :  { %10190 = vmatprep.subr.bf16.mxu0 %v10981_v37 }
 0xcc4   :  { %10191 = vmatpush3.bf16.msra.mxu0 %v10981_v37 }
 0xcc5   :  { %10192 = vmatprep.subr.bf16.mxu0 %v10982_v40 }
 0xcc8   :  { %10193 = vmatpush3.bf16.msra.mxu0 %v10982_v40 }
 0xcc9   :  { %10194 = vmatprep.subr.bf16.mxu0 %v10983_v42 }
 0xccc   :  { %10195 = vmatpush3.bf16.msra.mxu0 %v10983_v42 }
 0xd3c   :  { %v1449_v13 = vpop.xlane.xlu0 %1448 }
 0xd3d   :  { %v1456_v48 = vmul.f32 0.03125, %v1449_v13 }
 0xd3f   :  { %v1459_v47 = vsub.f32 %v12001_v14, %v1456_v48 }
 0xd40   :  { %v1455_v50 = vpop.xlane.xlu0 %1454  ;;  %v1452_v28 = vpop.xlane.xlu1 %1451 }
 0xd41   :  { %v1458_v53 = vmul.f32 0.03125, %v1455_v50  ;;  %v1457_v21 = vmul.f32 0.03125, %v1452_v28  ;;  %v1462_v56 = vmul.f32 %v1459_v47, %v1459_v47 }
 0xd43   :  { %v1461_v29 = vsub.f32 %v12003_v36, %v1458_v53  ;;  %v1460_v60 = vsub.f32 %v12008_v41, %v1457_v21  ;;  %v1465_v62 = vsel %vm448_vm2, %v1462_v56, 0.0 }
 0xd44   :  { %1466 = vadd.xlane.f32.xlu1 %v1465_v62 }
 0xd45   :  { %v1464_v63 = vmul.f32 %v1461_v29, %v1461_v29  ;;  %v1463_v0 = vmul.f32 %v1460_v60, %v1460_v60 }
 0xd47   :  { %v1471_v2 = vsel %vm455_vm3, %v1464_v63, 0.0  ;;  %v1468_v3 = vsel %vm448_vm2, %v1463_v0, 0.0 }
 0xd48   :  { %1472 = vadd.xlane.f32.xlu1 %v1471_v2  ;;  %1469 = vadd.xlane.f32.xlu0 %v1468_v3 }
 0xdcd   :  { %v1467_v4 = vpop.xlane.xlu1 %1466 }
 0xdce   :  { %v1474_v49 = vmul.f32 0.03125, %v1467_v4 }
 0xdd0   :  { %v1477_v8 = vadd.f32 1e-06, %v1474_v49 }
 0xdd1   :  { %v1470_v10 = vpop.xlane.xlu0 %1469  ;;  %v1473_v11 = vpop.xlane.xlu1 %1472 }
 0xdd2   :  { %11156 = vrsqrt.f32 %v1477_v8  ;;  %v1475_v12 = vmul.f32 0.03125, %v1470_v10  ;;  %v1476_v16 = vmul.f32 0.03125, %v1473_v11 }
 0xdd4   :  { %v1478_v43 = vadd.f32 1e-06, %v1475_v12  ;;  %v1479_v19 = vadd.f32 1e-06, %v1476_v16 }
 0xdd6   :  { %11158 = vrsqrt.f32 %v1478_v43 }
 0xdd7   :  { %11160 = vrsqrt.f32 %v1479_v19 }
 0xddf   :  { %v11157_v22 = vpop.eup %11156 }
 0xde0   :  { %v1483_v23 = vmul.f32 %v11157_v22, %v1459_v47 }
 0xde2   :  { %v1490_v30 = vmul.f32 %v9249_v24, %v1483_v23 }
 0xde3   :  { %v11159_v59 = vpop.eup %11158 }
 0xde4   :  { %v11161_v27 = vpop.eup %11160  ;;  %v1484_v57 = vmul.f32 %v11159_v59, %v1460_v60  ;;  %v1497_v32 = vadd.f32 %v9250_v52, %v1490_v30 }
 0xde5   :  { %v1485_v20 = vmul.f32 %v11161_v27, %v1461_v29 }
 0xde6   :  { %v1491_v31 = vmul.f32 %v9249_v24, %v1484_v57 }
 0xde7   :  { %v1492_v58 = vmul.f32 %v9249_v24, %v1485_v20 }
 0xde8   :  { %v1498_v9 = vadd.f32 %v9250_v52, %v1491_v31 }
 0xde9   :  { %v1499_v15 = vadd.f32 %v9250_v52, %v1492_v58 }
 0xdea   :  { %v1504_v26 = vpack.c.bf16 %v1498_v9, %v1497_v32  ;;  %v9264_v9 = vld [vmem:[%s14152_s2 + $0x51] ss:$0 sm:$0xff] }
 0xdeb   :  { %v1505_v1 = vpack.c.bf16 %v1499_v15, %v1499_v15 }
 0xdec   :  { %10176 = vmatprep.mubr.msk.bf16.mxu1 %vm448_vm2, %v1504_v26 }
 0xded   :  { %10177 = vmatmul.mubr.msk.bf16.vlgmr.msra.gmra.mxu1 %vm448_vm2, %v1505_v1  ;;  %v43_v1 = vld [vmem:[%s14152_s2 + $0x18] sm:$0xff] }
 0xead   :  { %v10178_v13 = vpop.f32.mrf.mxu1 }
 0xeae   :  { %v1572_v48 = vadd.f32 %v10178_v13, %v9251_v45 }
 0xeaf   :  { %v1563_v47 = vpop.f32.mrf.mxu1 }
 0xeb0   :  { %v1582_v50 = vmul.f32 %v1572_v48, %v1572_v48  ;;  %v1564_v28 = vadd.f32 %v9251_v45, %v1563_v47  ;;  %v1579_v23 = vmul.f32 0.5, %v1572_v48 }
 0xeb1   :  { %v10179_v53 = vpop.f32.mrf.mxu1 }
 0xeb2   :  { %v1585_v21 = vmul.f32 %v1582_v50, %v1572_v48  ;;  %v1580_v56 = vmul.f32 %v1564_v28, %v1564_v28  ;;  %v1577_v24 = vmul.f32 0.5, %v1564_v28 }
 0xeb3   :  { %v1566_v29 = vpop.f32.mrf.mxu1 }
 0xeb4   :  { %v1588_v60 = vmul.f32 0.044715, %v1585_v21  ;;  %v1583_v62 = vmul.f32 %v1580_v56, %v1564_v28  ;;  %v1567_v63 = vadd.f32 %v9251_v45, %v1566_v29 }
 0xeb6   :  { %v1591_v0 = vadd.f32 %v1588_v60, %v1572_v48  ;;  %v1586_v2 = vmul.f32 0.044715, %v1583_v62  ;;  %v1581_v3 = vmul.f32 %v1567_v63, %v1567_v63  ;;  %v1578_v59 = vmul.f32 0.5, %v1567_v63 }
 0xeb8   :  { %v1594_v5 = vmul.f32 0.7978846, %v1591_v0  ;;  %v1589_v39 = vadd.f32 %v1586_v2, %v1564_v28  ;;  %v1584_v4 = vmul.f32 %v1581_v3, %v1567_v63 }
 0xeba   :  { %v1592_v49 = vmul.f32 0.7978846, %v1589_v39  ;;  %v1587_v8 = vmul.f32 0.044715, %v1584_v4  ;;  %11162 = vtanh.f32 %v1594_v5  ;;  %v10984_v4 = vld [vmem:[%s14150_s3 + $0xb0] sm:$0xff]  }
 0xebb   :  { %10200 = vmatprep.subr.bf16.mxu1 %v10984_v4 }
 0xebc   :  { %11164 = vtanh.f32 %v1592_v49  ;;  %v1590_v10 = vadd.f32 %v1587_v8, %v1567_v63  ;;  %v10985_v49 = vld [vmem:[%s14150_s3 + $0xa8] sm:$0xff]   ;;  %10201 = vmatpush3.bf16.msra.mxu1 %v10984_v4  ;;  %v10986_v8 = vld [vmem:[%s14150_s3 + $0xc0] sm:$0xff]  }
 0xebd   :  { %10202 = vmatprep.subr.bf16.mxu1 %v10985_v49 }
 0xebe   :  { %v1593_v11 = vmul.f32 0.7978846, %v1590_v10 }
 0xec0   :  { %11166 = vtanh.f32 %v1593_v11  ;;  %10203 = vmatpush3.bf16.msra.mxu1 %v10985_v49 }
 0xec1   :  { %10208 = vmatprep.subr.bf16.mxu1 %v10986_v8 }
 0xec7   :  { %v11163_v12 = vpop.eup %11162 }
 0xec8   :  { %v1600_v43 = vadd.f32 1.0, %v11163_v12 }
 0xec9   :  { %v11165_v16 = vpop.eup %11164 }
 0xeca   :  { %v1598_v19 = vadd.f32 1.0, %v11165_v16  ;;  %v1603_v57 = vmul.f32 %v1600_v43, %v1579_v23 }
 0xecc   :  { %v1601_v30 = vmul.f32 %v1598_v19, %v1577_v24  ;;  %v1621_v31 = vpack.c.bf16 %v1603_v57, %v1603_v57  ;;  %v9265_v57 = vld [vmem:[%s14152_s2 + $0x58] ss:$0 sm:$0xff] }
 0xecd   :  { %v11167_v22 = vpop.eup %11166 }
 0xece   :  { %v1599_v27 = vadd.f32 1.0, %v11167_v22 }
 0xed0   :  { %v1602_v52 = vmul.f32 %v1599_v27, %v1578_v59 }
 0xed2   :  { %v1620_v20 = vpack.c.bf16 %v1602_v52, %v1601_v30 }
 0xed4   :  { %10196 = vmatprep.mubr.bf16.mxu0 %v1620_v20 }
 0xed5   :  { %10197 = vmatmul.mubr.bf16.vlgmr.msra.gmra.mxu0 %v1621_v31 }
 0xf95   :  { %v10198_v58 = vpop.f32.mrf.mxu0 }
 0xf96   :  { %v1720_v32 = vadd.f32 %v10198_v58, %v12003_v36  ;;  %v9266_v58 = vld [vmem:[%s14152_s2 + $0x59] ss:$0 sm:$0xff] }
 0xf97   :  { %v1704_v15 = vpop.f32.mrf.mxu0 }
 0xf98   :  { %v1718_v26 = vadd.f32 %v1704_v15, %v12001_v14  ;;  %v1728_v17 = vadd.f32 %v9264_v9, %v1720_v32  ;;  %v44_v14 = vld [vmem:[%s14152_s2 + $0x20] sm:$0xff] }
 0xf99   :  { %v10199_v35 = vpop.f32.mrf.mxu0 }
 0xf9a   :  { %v1726_v38 = vadd.f32 %v9264_v9, %v1718_v26  ;;  %v12078_v40 = vadd.f32 %v1728_v17, %v45_v33  ;;  %v10987_v33 = vld [vmem:[%s14150_s3 + $0xb8] sm:$0xff]  }
 0xf9b   :  { %v1707_v25 = vpop.f32.mrf.mxu0 }
 0xf9c   :  { %v12072_v36 = vadd.f32 %v1726_v38, %v43_v1  ;;  %v1719_v37 = vadd.f32 %v1707_v25, %v12008_v41  ;;  %v1740_v48 = vsel %vm455_vm3, %v12078_v40, 0.0  ;;  %v10988_v25 = vld [vmem:[%s14150_s3 + $0xd0] sm:$0xff]  }
 0xf9e   :  { %v1727_v42 = vadd.f32 %v9264_v9, %v1719_v37  ;;  %v1734_v45 = vsel %vm448_vm2, %v12072_v36, 0.0  ;;  %v10989_v37 = vld [vmem:[%s14150_s3 + $0xc8] sm:$0xff]  }
 0xf9f   :  { %1735 = vadd.xlane.f32.xlu0 %v1734_v45  ;;  %v9267_v45 = vld [vmem:[%s14152_s2 + $0x5c] ss:$0 sm:$0xff] }
 0xfa0   :  { %v12082_v13 = vadd.f32 %v1727_v42, %v44_v14 }
 0xfa2   :  { %v1737_v47 = vsel %vm448_vm2, %v12082_v13, 0.0 }
 0xfa3   :  { %1741 = vadd.xlane.f32.xlu0 %v1740_v48  ;;  %1738 = vadd.xlane.f32.xlu1 %v1737_v47 }
0x1028   :  { %v1736_v41 = vpop.xlane.xlu0 %1735 }
0x1029   :  { %v1743_v50 = vmul.f32 0.03125, %v1736_v41 }
0x102b   :  { %v1746_v28 = vsub.f32 %v12072_v36, %v1743_v50  ;;  %v9272_v50 = vld [vmem:[%s14152_s2 + $0x5d] ss:$0 sm:$0xff] }
0x102c   :  { %v1742_v53 = vpop.xlane.xlu0 %1741  ;;  %v1739_v21 = vpop.xlane.xlu1 %1738 }
0x102d   :  { %v1745_v56 = vmul.f32 0.03125, %v1742_v53  ;;  %v1744_v29 = vmul.f32 0.03125, %v1739_v21  ;;  %v1749_v60 = vmul.f32 %v1746_v28, %v1746_v28 }
0x102f   :  { %v1748_v62 = vsub.f32 %v12078_v40, %v1745_v56  ;;  %v1747_v63 = vsub.f32 %v12082_v13, %v1744_v29  ;;  %v1752_v0 = vsel %vm448_vm2, %v1749_v60, 0.0 }
0x1030   :  { %1753 = vadd.xlane.f32.xlu1 %v1752_v0 }
0x1031   :  { %v1751_v2 = vmul.f32 %v1748_v62, %v1748_v62  ;;  %v1750_v3 = vmul.f32 %v1747_v63, %v1747_v63 }
0x1033   :  { %v1758_v5 = vsel %vm455_vm3, %v1751_v2, 0.0  ;;  %v1755_v39 = vsel %vm448_vm2, %v1750_v3, 0.0 }
0x1034   :  { %1759 = vadd.xlane.f32.xlu1 %v1758_v5  ;;  %1756 = vadd.xlane.f32.xlu0 %v1755_v39 }
0x10b9   :  { %v1754_v10 = vpop.xlane.xlu1 %1753 }
0x10ba   :  { %v1761_v11 = vmul.f32 0.03125, %v1754_v10 }
0x10bc   :  { %v1764_v12 = vadd.f32 1e-06, %v1761_v11 }
0x10bd   :  { %v1757_v16 = vpop.xlane.xlu0 %1756  ;;  %v1760_v43 = vpop.xlane.xlu1 %1759 }
0x10be   :  { %11168 = vrsqrt.f32 %v1764_v12  ;;  %v1762_v19 = vmul.f32 0.03125, %v1757_v16  ;;  %v1763_v22 = vmul.f32 0.03125, %v1760_v43  ;;  %v9277_v43 = vld [vmem:[%s14152_s2 + $0x5e] ss:$0 sm:$0xff] }
0x10c0   :  { %v1765_v23 = vadd.f32 1e-06, %v1762_v19  ;;  %v1766_v24 = vadd.f32 1e-06, %v1763_v22 }
0x10c2   :  { %11170 = vrsqrt.f32 %v1765_v23 }
0x10c3   :  { %11172 = vrsqrt.f32 %v1766_v24 }
0x10cb   :  { %v11169_v59 = vpop.eup %11168 }
0x10cc   :  { %v1770_v27 = vmul.f32 %v11169_v59, %v1746_v28 }
0x10ce   :  { %v1777_v31 = vmul.f32 %v9265_v57, %v1770_v27 }
0x10cf   :  { %v11171_v30 = vpop.eup %11170 }
0x10d0   :  { %v11173_v52 = vpop.eup %11172  ;;  %v1771_v20 = vmul.f32 %v11171_v30, %v1747_v63  ;;  %v1784_v26 = vadd.f32 %v9266_v58, %v1777_v31 }
0x10d1   :  { %v1772_v32 = vmul.f32 %v11173_v52, %v1748_v62 }
0x10d2   :  { %v1778_v9 = vmul.f32 %v9265_v57, %v1771_v20 }
0x10d3   :  { %v1779_v15 = vmul.f32 %v9265_v57, %v1772_v32 }
0x10d4   :  { %v1785_v1 = vadd.f32 %v9266_v58, %v1778_v9 }
0x10d5   :  { %v1786_v35 = vadd.f32 %v9266_v58, %v1779_v15 }
0x10d6   :  { %v1791_v17 = vpack.c.bf16 %v1785_v1, %v1784_v26 }
0x10d7   :  { %v1792_v38 = vpack.c.bf16 %v1786_v35, %v1786_v35 }
0x10d8   :  { %10204 = vmatprep.mubr.msk.bf16.mxu1 %vm448_vm2, %v1791_v17 }
0x10d9   :  { %10205 = vmatmul.mubr.msk.bf16.vlgmr.msra.gmra.mxu1 %vm448_vm2, %v1792_v38 }
0x10da   :  { %10209 = vmatpush3.bf16.msra.mxu1 %v10986_v8  ;;  %10212 = vmatprep.mubr.msk.bf16.mxu1 %vm448_vm2, %v1791_v17 }
0x10db   :  { %10210 = vmatprep.subr.bf16.mxu1 %v10987_v33 }
0x10de   :  { %10211 = vmatpush3.bf16.msra.mxu1 %v10987_v33 }
0x10df   :  { %10216 = vmatprep.subr.bf16.mxu1 %v10988_v25 }
0x10e1   :  { %10213 = vmatmul.mubr.msk.bf16.vlgmr.msra.gmra.mxu1 %vm448_vm2, %v1792_v38 }
0x10e2   :  { %10217 = vmatpush3.bf16.msra.mxu1 %v10988_v25  ;;  %10220 = vmatprep.mubr.msk.bf16.mxu1 %vm448_vm2, %v1791_v17 }
0x10e3   :  { %10218 = vmatprep.subr.bf16.mxu1 %v10989_v37 }
0x10e6   :  { %10219 = vmatpush3.bf16.msra.mxu1 %v10989_v37 }
0x10e9   :  { %10221 = vmatmul.mubr.msk.bf16.vlgmr.msra.gmra.mxu1 %vm448_vm2, %v1792_v38 }
0x1199   :  { %v10206_v14 = vpop.f32.mrf.mxu1 }
0x119a   :  { %v12171_v27 = vadd.f32 %v10206_v14, %v9267_v45 }
0x119b   :  { %v1850_v42 = vpop.f32.mrf.mxu1 }
0x119c   :  { %v1851_v48 = vadd.f32 %v9267_v45, %v1850_v42  ;;  %v2006_v9 = vmul.f32 %v11804_v54, %v12171_v27  ;;  %v2111_v38 = vmul.f32 %v11807_v55, %v12171_v27 }
0x119d   :  { %v10207_v47 = vpop.f32.mrf.mxu1 }
0x119e   :  { %v2004_v53 = vmul.f32 %v11804_v54, %v1851_v48  ;;  %v2109_v21 = vmul.f32 %v11807_v55, %v1851_v48  ;;  %v12138_v0 = vmul.f32 %v11821_v61, %v1851_v48  ;;  %v12141_v2 = vmul.f32 %v11773_v7, %v1851_v48 }
0x119f   :  { %v1853_v41 = vpop.f32.mrf.mxu1  ;;  %v2008_v47 = vpack.c.bf16 %v2006_v9, %v2006_v9 }
0x11a0   :  { %v1854_v28 = vadd.f32 %v9267_v45, %v1853_v41 }
0x11a1   :  { %v10214_v56 = vpop.f32.mrf.mxu1 }
0x11a2   :  { %v1928_v29 = vadd.f32 %v10214_v56, %v9272_v50  ;;  %v2005_v60 = vmul.f32 %v11804_v54, %v1854_v28  ;;  %v2110_v62 = vmul.f32 %v11807_v55, %v1854_v28  ;;  %v12135_v63 = vmul.f32 %v11821_v61, %v1854_v28 }
0x11a3   :  { %v1919_v3 = vpop.f32.mrf.mxu1  ;;  %v12144_v5 = vmul.f32 %v11773_v7, %v1854_v28 }
0x11a4   :  { %v12146_v39 = vpack.c.bf16 %v1928_v29, %v1928_v29  ;;  %v2007_v4 = vpack.c.bf16 %v2005_v60, %v2004_v53  ;;  %v2112_v49 = vpack.c.bf16 %v2110_v62, %v2109_v21  ;;  %v2325_v10 = vpack.c.bf16 %v12135_v63, %v12138_v0 }
0x11a5   :  { %v10215_v8 = vpop.f32.mrf.mxu1  ;;  %v2484_v11 = vpack.c.bf16 %v12144_v5, %v12141_v2  ;;  %v1920_v19 = vadd.f32 %v9272_v50, %v1919_v3 }
0x11a6   :  { %10916 = vmatprep.subr.msk.bf16.mxu1 %vm448_vm2, %v12146_v39  ;;  %10228 = vmatprep.mubr.msk.bf16.mxu1 %vm448_vm2, %v2007_v4  ;;  %v12157_v12 = vsel %vm448_vm2, %v12146_v39, 0 }
0x11a7   :  { %10918 = vmatprep.subr.msk.bf16.mxu0 %vm448_vm2, %v12146_v39  ;;  %10236 = vmatprep.mubr.msk.bf16.mxu0 %vm448_vm2, %v2112_v49  ;;  %v1922_v16 = vpop.f32.mrf.mxu1 }
0x11a8   :  { %v1923_v22 = vadd.f32 %v9272_v50, %v1922_v16  ;;  %10225 = vmatpush3.bf16.xpose.msra.mxu1 %v12157_v12  ;;  %10233 = vmatpush3.bf16.xpose.msra.mxu0 %v12157_v12  ;;  %v2113_v50 = vpack.c.bf16 %v2111_v38, %v2111_v38 }
0x11a9   :  { %v10222_v23 = vpop.f32.mrf.mxu1 }
0x11aa   :  { %v12167_v24 = vpack.c.bf16 %v1923_v22, %v1920_v19  ;;  %v12169_v59 = vadd.f32 %v10222_v23, %v9277_v43 }
0x11ab   :  { %v1988_v57 = vpop.f32.mrf.mxu1 }
0x11ac   :  { %10917 = vmatprep.subr.msk.bf16.mxu1 %vm448_vm2, %v12167_v24  ;;  %10919 = vmatprep.subr.msk.bf16.mxu0 %vm448_vm2, %v12167_v24  ;;  %v2116_v30 = vmul.f32 %v11807_v55, %v12169_v59  ;;  %v2011_v52 = vmul.f32 %v11804_v54, %v12169_v59  ;;  %v1989_v31 = vadd.f32 %v9277_v43, %v1988_v57  ;;  %v12185_v26 = vsel %vm448_vm2, %v12167_v24, 0 }
0x11ad   :  { %v10223_v20 = vpop.f32.mrf.mxu1  ;;  %v2329_v33 = vmul.f32 %v11821_v61, %v12169_v59 }
0x11ae   :  { %v2118_v58 = vpack.c.bf16 %v2116_v30, %v2116_v30  ;;  %v2013_v32 = vpack.c.bf16 %v2011_v52, %v2011_v52  ;;  %v2486_v25 = vmul.f32 %v11773_v7, %v1989_v31  ;;  %v2327_v45 = vmul.f32 %v11821_v61, %v1989_v31 }
0x11af   :  { %v1991_v15 = vpop.f32.mrf.mxu1  ;;  %v2114_v28 = vmul.f32 %v11807_v55, %v1989_v31  ;;  %v2009_v53 = vmul.f32 %v11804_v54, %v1989_v31  ;;  %v2331_v60 = vpack.c.bf16 %v2329_v33, %v2329_v33 }
0x11b0   :  { %v1992_v1 = vadd.f32 %v9277_v43, %v1991_v15  ;;  %10227 = vmatpush3.bf16.xpose.msra.mxu1 %v12185_v26  ;;  %10235 = vmatpush3.bf16.xpose.msra.mxu0 %v12185_v26  ;;  %v2215_v35 = vand.u32 %v2118_v58, %v11860_v18  ;;  %v2272_v17 = vand.u32 %v2013_v32, %v11860_v18 }
0x11b1   :  { %v12210_v62 = vand.u32 %v2331_v60, %v11860_v18 }
0x11b2   :  { %10240 = vmatprep.subr.bf16.mxu1 %v2215_v35  ;;  %10248 = vmatprep.subr.bf16.mxu0 %v2272_v17  ;;  %v2487_v37 = vmul.f32 %v11773_v7, %v1992_v1  ;;  %v2115_v14 = vmul.f32 %v11807_v55, %v1992_v1  ;;  %v2010_v42 = vmul.f32 %v11804_v54, %v1992_v1 }
0x11b3   :  { %v2328_v48 = vmul.f32 %v11821_v61, %v1992_v1 }
0x11b4   :  { %v12201_v41 = vpack.c.bf16 %v2487_v37, %v2486_v25  ;;  %v2117_v56 = vpack.c.bf16 %v2115_v14, %v2114_v28  ;;  %v2012_v29 = vpack.c.bf16 %v2010_v42, %v2009_v53 }
0x11b5   :  { %v12205_v21 = vpack.c.bf16 %v2328_v48, %v2327_v45 }
0x11b7   :  { %10229 = vmatmul.mubr.msk.bf16.vlgmr.msra.gmra.mxu1 %vm448_vm2, %v2008_v47  ;;  %10237 = vmatmul.mubr.msk.bf16.vlgmr.msra.gmra.mxu0 %vm448_vm2, %v2113_v50 }
0x11b8   :  { %10241 = vmatpush3.bf16.msra.mxu1 %v2215_v35  ;;  %10249 = vmatpush3.bf16.msra.mxu0 %v2272_v17 }
0x11b9   :  { %10242 = vmatprep.subr.bf16.mxu1 %v2117_v56  ;;  %10250 = vmatprep.subr.bf16.mxu0 %v2012_v29 }
0x11bc   :  { %10243 = vmatpush3.bf16.msra.mxu1 %v2117_v56  ;;  %10251 = vmatpush3.bf16.msra.mxu0 %v2012_v29 }
0x11bd   :  { %10920 = vmatprep.subr.msk.bf16.mxu1 %vm448_vm2, %v12146_v39  ;;  %10264 = vmatprep.subr.bf16.mxu0 %v12210_v62 }
0x1277   :  { %v12215_v3 = vpop.f32.mrf.mxu1  ;;  %v10238_v4 = vpop.f32.mrf.mxu0 }
0x1278   :  { %v2179_v23 = vsel %vm798_vm4, %v10238_v4, -inf  ;;  %v2080_v48 = vsel %vm798_vm4, %v12215_v3, -inf }
0x1279   :  { %v12217_v49 = vpop.f32.mrf.mxu1  ;;  %v2159_v8 = vpop.f32.mrf.mxu0 }
0x127a   :  { %v2173_v16 = vsel %vm791_vm15, %v2159_v8, -inf  ;;  %v2074_v45 = vsel %vm791_vm15, %v12217_v49, -inf }
0x127b   :  { %2174 = vmax.xlane.f32.xlu0 %v2173_v16  ;;  %v10231_v43 = vpop.f32.mrf.mxu1  ;;  %v10239_v19 = vpop.f32.mrf.mxu0 }
0x127c   :  { %v2488_v19 = vmul.f32 %v11773_v7, %v12169_v59 }
0x127d   :  { %v2162_v22 = vpop.f32.mrf.mxu0  ;;  %v2063_v37 = vpop.f32.mrf.mxu1 }
0x127e   :  { %v2176_v57 = vsel %vm791_vm15, %v2162_v22, -inf  ;;  %v2077_v42 = vsel %vm791_vm15, %v2063_v37, -inf }
0x127f   :  { %2180 = vmax.xlane.f32.xlu0 %v2179_v23  ;;  %2177 = vmax.xlane.f32.xlu1 %v2176_v57  ;;  %v2324_v57 = vmul.f32 %v11821_v61, %v12171_v27 }
0x1281   :  { %v2326_v59 = vpack.c.bf16 %v2324_v57, %v2324_v57 }
0x1304   :  { %v2175_v30 = vpop.xlane.xlu0 %2174 }
0x1305   :  { %v2182_v52 = vsub.f32 %v2159_v8, %v2175_v30 }
0x1307   :  { %v2185_v20 = vmul.f32 1.442695, %v2182_v52 }
0x1308   :  { %v2181_v31 = vpop.xlane.xlu0 %2180  ;;  %v2178_v58 = vpop.xlane.xlu1 %2177 }
0x1309   :  { %11174 = vpow2.f32 %v2185_v20  ;;  %v2184_v32 = vsub.f32 %v10238_v4, %v2181_v31  ;;  %v2183_v9 = vsub.f32 %v2162_v22, %v2178_v58  ;;  %v2490_v22 = vpack.c.bf16 %v2488_v19, %v2488_v19 }
0x130b   :  { %v2189_v15 = vmul.f32 1.442695, %v2184_v32  ;;  %v2187_v1 = vmul.f32 1.442695, %v2183_v9  ;;  %v2587_v23 = vand.u32 %v2490_v22, %v11860_v18 }
0x130d   :  { %11176 = vpow2.f32 %v2189_v15 }
0x130e   :  { %11178 = vpow2.f32 %v2187_v1 }
0x1316   :  { %v11175_v35 = vpop.eup %11174 }
0x1317   :  { %v2191_v17 = vsel %vm791_vm15, %v11175_v35, 0.0 }
0x1318   :  { %2192 = vadd.xlane.f32.xlu1 %v2191_v17 }
0x131a   :  { %v11177_v38 = vpop.eup %11176 }
0x131b   :  { %v11179_v33 = vpop.eup %11178  ;;  %v2197_v25 = vsel %vm798_vm4, %v11177_v38, 0.0 }
0x131c   :  { %2198 = vadd.xlane.f32.xlu1 %v2197_v25  ;;  %v2194_v14 = vsel %vm791_vm15, %v11179_v33, 0.0 }
0x131d   :  { %2195 = vadd.xlane.f32.xlu0 %v2194_v14 }
0x1320   :  { %2078 = vmax.xlane.f32.xlu1 %v2077_v42 }
0x1321   :  { %2075 = vmax.xlane.f32.xlu0 %v2074_v45 }
0x1325   :  { %2081 = vmax.xlane.f32.xlu0 %v2080_v48 }
0x13a1   :  { %v2193_v47 = vpop.xlane.xlu1 %2192 }
0x13a2   :  { %11180 = vrcp.f32 %v2193_v47 }
0x13a5   :  { %v2199_v50 = vpop.xlane.xlu1 %2198 }
0x13a6   :  { %v2196_v28 = vpop.xlane.xlu0 %2195  ;;  %11182 = vrcp.f32 %v2199_v50 }
0x13a7   :  { %11184 = vrcp.f32 %v2196_v28 }
0x13a9   :  { %v2079_v0 = vpop.xlane.xlu1 %2078 }
0x13aa   :  { %v2076_v63 = vpop.xlane.xlu0 %2075  ;;  %v2084_v30 = vsub.f32 %v2063_v37, %v2079_v0 }
0x13ab   :  { %v2083_v20 = vsub.f32 %v12217_v49, %v2076_v63 }
0x13ac   :  { %v2088_v32 = vmul.f32 1.442695, %v2084_v30 }
0x13ad   :  { %v2086_v9 = vmul.f32 1.442695, %v2083_v20 }
0x13ae   :  { %v2082_v31 = vpop.xlane.xlu0 %2081  ;;  %11186 = vpow2.f32 %v2088_v32 }
0x13af   :  { %v11181_v53 = vpop.eup %11180  ;;  %v2085_v15 = vsub.f32 %v12215_v3, %v2082_v31  ;;  %11188 = vpow2.f32 %v2086_v9 }
0x13b0   :  { %v2203_v4 = vmul.f32 %v11181_v53, %v11175_v35 }
0x13b1   :  { %v2090_v1 = vmul.f32 1.442695, %v2085_v15 }
0x13b3   :  { %v11183_v56 = vpop.eup %11182  ;;  %11190 = vpow2.f32 %v2090_v1 }
0x13b4   :  { %v11185_v29 = vpop.eup %11184  ;;  %v2205_v60 = vmul.f32 %v11183_v56, %v11177_v38 }
0x13b5   :  { %v2204_v8 = vmul.f32 %v11185_v29, %v11179_v33 }
0x13b6   :  { %v2207_v16 = vpack.c.bf16 %v2205_v60, %v2205_v60 }
0x13b7   :  { %v2206_v43 = vpack.c.bf16 %v2204_v8, %v2203_v4 }
0x13b9   :  { %10244 = vmatprep.mubr.msk.bf16.mxu1 %vm791_vm15, %v2206_v43 }
0x13ba   :  { %10245 = vmatmul.mubr.msk.bf16.vlgmr.msra.gmra.mxu1 %vm791_vm15, %v2207_v16 }
0x13bb   :  { %10257 = vmatpush3.bf16.xpose.msra.mxu1 %v12157_v12  ;;  %10260 = vmatprep.mubr.msk.bf16.mxu1 %vm448_vm2, %v2325_v10  ;;  %v11187_v49 = vpop.eup %11186 }
0x13bc   :  { %10921 = vmatprep.subr.msk.bf16.mxu1 %vm448_vm2, %v12167_v24  ;;  %v11189_v42 = vpop.eup %11188  ;;  %v2095_v45 = vsel %vm791_vm15, %v11187_v49, 0.0 }
0x13bd   :  { %v2092_v3 = vsel %vm791_vm15, %v11189_v42, 0.0 }
0x13c0   :  { %v11191_v48 = vpop.eup %11190 }
0x13c1   :  { %v2098_v47 = vsel %vm798_vm4, %v11191_v48, 0.0 }
0x13c3   :  { %10259 = vmatpush3.bf16.xpose.msra.mxu1 %v12185_v26 }
0x13c4   :  { %10280 = vmatprep.subr.bf16.mxu1 %v2587_v23 }
0x13ca   :  { %10261 = vmatmul.mubr.msk.bf16.vlgmr.msra.gmra.mxu1 %vm448_vm2, %v2326_v59 }
0x13cb   :  { %10281 = vmatpush3.bf16.msra.mxu1 %v2587_v23 }
0x13cc   :  { %10282 = vmatprep.subr.bf16.mxu1 %v12201_v41 }
0x13cf   :  { %10283 = vmatpush3.bf16.msra.mxu1 %v12201_v41 }
0x147a   :  { %v12248_v10 = vpop.f32.mrf.mxu1 }
0x147c   :  { %v12250_v52 = vpop.f32.mrf.mxu1 }
0x147e   :  { %v10247_v58 = vpop.f32.mrf.mxu1 }
0x1480   :  { %v12254_v35 = vpop.f32.mrf.mxu1 }
0x148a   :  { %v10262_v41 = vpop.f32.mrf.mxu1 }
0x148b   :  { %v2392_v14 = vsel %vm798_vm4, %v10262_v41, -inf }
0x148c   :  { %v2372_v17 = vpop.f32.mrf.mxu1 }
0x148d   :  { %v2386_v38 = vsel %vm791_vm15, %v2372_v17, -inf }
0x148e   :  { %v10263_v33 = vpop.f32.mrf.mxu1  ;;  %2387 = vmax.xlane.f32.xlu1 %v2386_v38 }
0x1490   :  { %v2375_v25 = vpop.f32.mrf.mxu1 }
0x1491   :  { %v2389_v37 = vsel %vm791_vm15, %v2375_v25, -inf }
0x1492   :  { %2390 = vmax.xlane.f32.xlu0 %v2389_v37  ;;  %2393 = vmax.xlane.f32.xlu1 %v2392_v14 }
0x1496   :  { %2093 = vadd.xlane.f32.xlu0 %v2092_v3  ;;  %2096 = vadd.xlane.f32.xlu1 %v2095_v45 }
0x149a   :  { %2099 = vadd.xlane.f32.xlu0 %v2098_v47 }
0x1517   :  { %v2388_v50 = vpop.xlane.xlu1 %2387 }
0x1518   :  { %v2395_v28 = vsub.f32 %v2372_v17, %v2388_v50 }
0x151a   :  { %v2398_v53 = vmul.f32 1.442695, %v2395_v28 }
0x151b   :  { %v2391_v56 = vpop.xlane.xlu0 %2390  ;;  %v2394_v29 = vpop.xlane.xlu1 %2393 }
0x151c   :  { %11192 = vpow2.f32 %v2398_v53  ;;  %v2396_v60 = vsub.f32 %v2375_v25, %v2391_v56  ;;  %v2397_v4 = vsub.f32 %v10262_v41, %v2394_v29 }
0x151e   :  { %v2400_v8 = vmul.f32 1.442695, %v2396_v60  ;;  %v2402_v16 = vmul.f32 1.442695, %v2397_v4 }
0x151f   :  { %v2094_v43 = vpop.xlane.xlu0 %2093  ;;  %v2097_v19 = vpop.xlane.xlu1 %2096 }
0x1520   :  { %11194 = vpow2.f32 %v2400_v8 }
0x1521   :  { %11196 = vpow2.f32 %v2402_v16 }
0x1522   :  { %11198 = vrcp.f32 %v2094_v43 }
0x1523   :  { %11200 = vrcp.f32 %v2097_v19  ;;  %v2100_v22 = vpop.xlane.xlu0 %2099 }
0x1524   :  { %11202 = vrcp.f32 %v2100_v22 }
0x1529   :  { %v11193_v23 = vpop.eup %11192 }
0x152a   :  { %v2404_v57 = vsel %vm791_vm15, %v11193_v23, 0.0 }
0x152b   :  { %2405 = vadd.xlane.f32.xlu1 %v2404_v57 }
0x152d   :  { %v11195_v59 = vpop.eup %11194 }
0x152e   :  { %v11197_v63 = vpop.eup %11196  ;;  %v2407_v0 = vsel %vm791_vm15, %v11195_v59, 0.0 }
0x152f   :  { %v11199_v30 = vpop.eup %11198  ;;  %2408 = vadd.xlane.f32.xlu0 %v2407_v0  ;;  %v2410_v20 = vsel %vm798_vm4, %v11197_v63, 0.0 }
0x1530   :  { %v11201_v31 = vpop.eup %11200  ;;  %2411 = vadd.xlane.f32.xlu1 %v2410_v20  ;;  %v2104_v58 = vmul.f32 %v11199_v30, %v11189_v42 }
0x1531   :  { %v11203_v32 = vpop.eup %11202  ;;  %v2105_v9 = vmul.f32 %v11201_v31, %v11187_v49 }
0x1532   :  { %v2106_v15 = vmul.f32 %v11203_v32, %v11191_v48 }
0x1533   :  { %v2107_v1 = vpack.c.bf16 %v2105_v9, %v2104_v58 }
0x1534   :  { %v2108_v41 = vpack.c.bf16 %v2106_v15, %v2106_v15 }
0x1535   :  { %10252 = vmatprep.mubr.msk.bf16.mxu0 %vm791_vm15, %v2107_v1 }
0x1536   :  { %10253 = vmatmul.mubr.msk.bf16.vlgmr.msra.gmra.mxu0 %vm791_vm15, %v2108_v41 }
0x1537   :  { %10265 = vmatpush3.bf16.msra.mxu0 %v12210_v62 }
0x1538   :  { %10266 = vmatprep.subr.bf16.mxu0 %v12205_v21 }
0x153b   :  { %10267 = vmatpush3.bf16.msra.mxu0 %v12205_v21 }
0x153c   :  { %10922 = vmatprep.subr.msk.bf16.mxu0 %vm448_vm2, %v12146_v39  ;;  %v2483_v39 = vmul.f32 %v11773_v7, %v12171_v27 }
0x153e   :  { %v2485_v21 = vpack.c.bf16 %v2483_v39, %v2483_v39 }
0x15b4   :  { %v2406_v17 = vpop.xlane.xlu1 %2405 }
0x15b5   :  { %11204 = vrcp.f32 %v2406_v17 }
0x15b8   :  { %v2409_v38 = vpop.xlane.xlu0 %2408 }
0x15b9   :  { %11206 = vrcp.f32 %v2409_v38  ;;  %v2412_v33 = vpop.xlane.xlu1 %2411 }
0x15ba   :  { %11208 = vrcp.f32 %v2412_v33 }
0x15c2   :  { %v11205_v25 = vpop.eup %11204 }
0x15c3   :  { %v2416_v14 = vmul.f32 %v11205_v25, %v11193_v23 }
0x15c6   :  { %v11207_v49 = vpop.eup %11206 }
0x15c7   :  { %v11209_v37 = vpop.eup %11208  ;;  %v2417_v42 = vmul.f32 %v11207_v49, %v11195_v59 }
0x15c8   :  { %v2418_v3 = vmul.f32 %v11209_v37, %v11197_v63 }
0x15c9   :  { %v2419_v62 = vpack.c.bf16 %v2417_v42, %v2416_v14 }
0x15ca   :  { %v2420_v45 = vpack.c.bf16 %v2418_v3, %v2418_v3  ;;  %v10990_v3 = vld [vmem:[%s14150_s3 + $0xe0] sm:$0xff]  }
0x15cb   :  { %10268 = vmatprep.mubr.msk.bf16.mxu0 %vm791_vm15, %v2419_v62  ;;  %10288 = vmatprep.subr.bf16.mxu1 %v10990_v3  ;;  %v10991_v62 = vld [vmem:[%s14150_s3 + $0xd8] sm:$0xff]  }
0x15cc   :  { %10269 = vmatmul.mubr.msk.bf16.vlgmr.msra.gmra.mxu0 %vm791_vm15, %v2420_v45 }
0x15cd   :  { %10273 = vmatpush3.bf16.xpose.msra.mxu0 %v12157_v12  ;;  %10276 = vmatprep.mubr.msk.bf16.mxu0 %vm448_vm2, %v2484_v11 }
0x15ce   :  { %10923 = vmatprep.subr.msk.bf16.mxu0 %vm448_vm2, %v12167_v24 }
0x15d5   :  { %10275 = vmatpush3.bf16.xpose.msra.mxu0 %v12185_v26 }
0x15dc   :  { %10277 = vmatmul.mubr.msk.bf16.vlgmr.msra.gmra.mxu0 %vm448_vm2, %v2485_v21 }
0x15f6   :  { %v10254_v48 = vpop.f32.mrf.mxu0 }
0x15f7   :  { %v2317_v2 = vadd.f32 %v10254_v48, %v12248_v10 }
0x15f8   :  { %v2308_v47 = vpop.f32.mrf.mxu0 }
0x15f9   :  { %v2309_v11 = vadd.f32 %v2308_v47, %v12250_v52 }
0x15fa   :  { %v10255_v50 = vpop.f32.mrf.mxu0 }
0x15fc   :  { %v12285_v12 = vpop.f32.mrf.mxu0 }
0x15fd   :  { %v2312_v21 = vadd.f32 %v12285_v12, %v12254_v35  ;;  %v9302_v12 = vld [vmem:[%s14152_s2 + $0x5f] ss:$0 sm:$0xff] }
0x168c   :  { %v10270_v5 = vpop.f32.mrf.mxu0 }
0x168d   :  { %v12289_v28 = vadd.f32 %v10270_v5, %v2317_v2 }
0x168e   :  { %v2464_v24 = vpop.f32.mrf.mxu0 }
0x168f   :  { %v12291_v26 = vadd.f32 %v2464_v24, %v2309_v11 }
0x1690   :  { %v10271_v53 = vpop.f32.mrf.mxu0 }
0x1692   :  { %v2467_v27 = vpop.f32.mrf.mxu0 }
0x1693   :  { %v2479_v47 = vadd.f32 %v2467_v27, %v2312_v21 }
0x169c   :  { %v10278_v56 = vpop.f32.mrf.mxu0 }
0x169d   :  { %v2551_v16 = vsel %vm798_vm4, %v10278_v56, -inf }
0x169e   :  { %v2531_v29 = vpop.f32.mrf.mxu0 }
0x169f   :  { %v2545_v60 = vsel %vm791_vm15, %v2531_v29, -inf }
0x16a0   :  { %2546 = vmax.xlane.f32.xlu0 %v2545_v60  ;;  %v10279_v4 = vpop.f32.mrf.mxu0 }
0x16a2   :  { %v2534_v8 = vpop.f32.mrf.mxu0 }
0x16a3   :  { %v2548_v10 = vsel %vm791_vm15, %v2534_v8, -inf }
0x16a4   :  { %2552 = vmax.xlane.f32.xlu0 %v2551_v16  ;;  %2549 = vmax.xlane.f32.xlu1 %v2548_v10 }
0x1729   :  { %v2547_v52 = vpop.xlane.xlu0 %2546 }
0x172a   :  { %v2554_v43 = vsub.f32 %v2531_v29, %v2547_v52 }
0x172c   :  { %v2557_v19 = vmul.f32 1.442695, %v2554_v43 }
0x172d   :  { %v2553_v22 = vpop.xlane.xlu0 %2552  ;;  %v2550_v23 = vpop.xlane.xlu1 %2549 }
0x172e   :  { %11210 = vpow2.f32 %v2557_v19  ;;  %v2556_v57 = vsub.f32 %v10278_v56, %v2553_v22  ;;  %v2555_v59 = vsub.f32 %v2534_v8, %v2550_v23  ;;  %v9322_v22 = vld [vmem:[%s14149_s1 + $0x98] sm:$0xff]  ;;  %v9321_v23 = vld [vmem:[%s14149_s1 + $0x90] sm:$0xff] }
0x1730   :  { %v2561_v63 = vmul.f32 1.442695, %v2556_v57  ;;  %v2559_v0 = vmul.f32 1.442695, %v2555_v59  ;;  %v3027_v57 = vsel %vm78_vm0, %v9322_v22, 0.0  ;;  %v3024_v59 = vsel %vm78_vm0, %v9321_v23, 0.0 }
0x1732   :  { %11212 = vpow2.f32 %v2561_v63  ;;  %v9324_v63 = vld [vmem:[%s14149_s1 + $0xa8] sm:$0xff] }
0x1733   :  { %11214 = vpow2.f32 %v2559_v0  ;;  %v9323_v0 = vld [vmem:[%s14149_s1 + $0xa0] sm:$0xff] }
0x173b   :  { %v11211_v30 = vpop.eup %11210 }
0x173c   :  { %v2563_v20 = vsel %vm791_vm15, %v11211_v30, 0.0 }
0x173d   :  { %2564 = vadd.xlane.f32.xlu1 %v2563_v20  ;;  %v3030_v20 = vsel %vm78_vm0, %v9323_v0, 0.0 }
0x173f   :  { %v11213_v31 = vpop.eup %11212 }
0x1740   :  { %v11215_v58 = vpop.eup %11214  ;;  %v2569_v32 = vsel %vm798_vm4, %v11213_v31, 0.0 }
0x1741   :  { %2570 = vadd.xlane.f32.xlu1 %v2569_v32  ;;  %v2566_v9 = vsel %vm791_vm15, %v11215_v58, 0.0 }
0x1742   :  { %2567 = vadd.xlane.f32.xlu0 %v2566_v9 }
0x17c6   :  { %v2565_v15 = vpop.xlane.xlu1 %2564 }
0x17c7   :  { %11216 = vrcp.f32 %v2565_v15 }
0x17ca   :  { %v2571_v1 = vpop.xlane.xlu1 %2570 }
0x17cb   :  { %v2568_v41 = vpop.xlane.xlu0 %2567  ;;  %11218 = vrcp.f32 %v2571_v1 }
0x17cc   :  { %11220 = vrcp.f32 %v2568_v41 }
0x17d4   :  { %v11217_v17 = vpop.eup %11216 }
0x17d5   :  { %v2575_v49 = vmul.f32 %v11217_v17, %v11211_v30  ;;  %v3033_v30 = vsel %vm78_vm0, %v9324_v63, 0.0 }
0x17d8   :  { %v11219_v38 = vpop.eup %11218 }
0x17d9   :  { %v11221_v33 = vpop.eup %11220  ;;  %v2577_v25 = vmul.f32 %v11219_v38, %v11213_v31  ;;  %v9326_v31 = vld [vmem:[%s14149_s1 + $0xb8] sm:$0xff] }
0x17da   :  { %v2576_v37 = vmul.f32 %v11221_v33, %v11215_v58  ;;  %v9325_v58 = vld [vmem:[%s14149_s1 + $0xb0] sm:$0xff]  ;;  %v3039_v32 = vsel %vm78_vm0, %v9326_v31, 0.0 }
0x17db   :  { %v2579_v14 = vpack.c.bf16 %v2577_v25, %v2577_v25  ;;  %v3036_v9 = vsel %vm78_vm0, %v9325_v58, 0.0 }
0x17dc   :  { %v2578_v42 = vpack.c.bf16 %v2576_v37, %v2575_v49 }
0x17de   :  { %10284 = vmatprep.mubr.msk.bf16.mxu1 %vm791_vm15, %v2578_v42 }
0x17df   :  { %10285 = vmatmul.mubr.msk.bf16.vlgmr.msra.gmra.mxu1 %vm791_vm15, %v2579_v14 }
0x17e0   :  { %10289 = vmatpush3.bf16.msra.mxu1 %v10990_v3 }
0x17e1   :  { %10290 = vmatprep.subr.bf16.mxu1 %v10991_v62 }
0x17e4   :  { %10291 = vmatpush3.bf16.msra.mxu1 %v10991_v62 }
0x189f   :  { %v10286_v45 = vpop.f32.mrf.mxu1 }
0x18a0   :  { %v2639_v50 = vadd.f32 %v10286_v45, %v12289_v28 }
0x18a1   :  { %v2623_v39 = vpop.f32.mrf.mxu1 }
0x18a2   :  { %v2637_v5 = vadd.f32 %v2623_v39, %v12291_v26  ;;  %v2645_v53 = vpack.c.bf16 %v2639_v50, %v2639_v50 }
0x18a3   :  { %v10287_v48 = vpop.f32.mrf.mxu1 }
0x18a5   :  { %v2626_v2 = vpop.f32.mrf.mxu1 }
0x18a6   :  { %v2638_v11 = vadd.f32 %v2626_v2, %v2479_v47 }
0x18a8   :  { %v2644_v24 = vpack.c.bf16 %v2638_v11, %v2637_v5 }
0x18aa   :  { %10292 = vmatprep.mubr.msk.bf16.mxu1 %vm448_vm2, %v2644_v24 }
0x18ab   :  { %10293 = vmatmul.mubr.msk.bf16.vlgmr.msra.gmra.mxu1 %vm448_vm2, %v2645_v53 }
0x196b   :  { %v10294_v56 = vpop.f32.mrf.mxu1 }
0x196c   :  { %v2714_v60 = vadd.f32 %v10294_v56, %v12078_v40  ;;  %v9319_v40 = vld [vmem:[%s14149_s1 + $0x80] sm:$0xff] }
0x196d   :  { %v2698_v29 = vpop.f32.mrf.mxu1  ;;  %v3018_v19 = vsel %vm78_vm0, %v9319_v40, 0.0 }
0x196e   :  { %v2712_v35 = vadd.f32 %v2698_v29, %v12072_v36  ;;  %v12320_v4 = vadd.f32 %v9302_v12, %v2714_v60  ;;  %v9320_v36 = vld [vmem:[%s14149_s1 + $0x88] sm:$0xff] }
0x196f   :  { %v10295_v28 = vpop.f32.mrf.mxu1  ;;  %v3021_v43 = vsel %vm78_vm0, %v9320_v36, 0.0 }
0x1970   :  { %v12318_v27 = vadd.f32 %v9302_v12, %v2712_v35  ;;  %v2731_v52 = vsel %vm455_vm3, %v12320_v4, 0.0 }
0x1971   :  { %v2701_v26 = vpop.f32.mrf.mxu1 }
0x1972   :  { %v2713_v8 = vadd.f32 %v2701_v26, %v12082_v13  ;;  %v2725_v16 = vsel %vm448_vm2, %v12318_v27, 0.0 }
0x1973   :  { %2726 = vadd.xlane.f32.xlu0 %v2725_v16 }
0x1974   :  { %v12325_v10 = vadd.f32 %v9302_v12, %v2713_v8 }
0x1976   :  { %v2728_v13 = vsel %vm448_vm2, %v12325_v10, 0.0 }
0x1977   :  { %2732 = vadd.xlane.f32.xlu0 %v2731_v52  ;;  %2729 = vadd.xlane.f32.xlu1 %v2728_v13 }
0x197b   :  { %3022 = vadd.xlane.f32.xlu0 %v3021_v43  ;;  %3019 = vadd.xlane.f32.xlu1 %v3018_v19 }
0x197f   :  { %3028 = vadd.xlane.f32.xlu0 %v3027_v57  ;;  %3025 = vadd.xlane.f32.xlu1 %v3024_v59 }
0x1983   :  { %3034 = vadd.xlane.f32.xlu0 %v3033_v30  ;;  %3031 = vadd.xlane.f32.xlu1 %v3030_v20 }
0x1987   :  { %3040 = vadd.xlane.f32.xlu0 %v3039_v32  ;;  %3037 = vadd.xlane.f32.xlu1 %v3036_v9 }
0x19fc   :  { %v2727_v15 = vpop.xlane.xlu0 %2726 }
0x19fd   :  { %v2734_v1 = vmul.f32 0.03125, %v2727_v15 }
0x19ff   :  { %v12364_v41 = vsub.f32 %v12318_v27, %v2734_v1 }
0x1a00   :  { %v2733_v17 = vpop.xlane.xlu0 %2732  ;;  %v2730_v38 = vpop.xlane.xlu1 %2729 }
0x1a01   :  { %v2736_v33 = vmul.f32 0.03125, %v2733_v17  ;;  %v2735_v25 = vmul.f32 0.03125, %v2730_v38  ;;  %v2740_v49 = vmul.f32 %v12364_v41, %v12364_v41 }
0x1a03   :  { %v12369_v37 = vsub.f32 %v12320_v4, %v2736_v33  ;;  %v12372_v14 = vsub.f32 %v12325_v10, %v2735_v25  ;;  %v2743_v42 = vsel %vm448_vm2, %v2740_v49, 0.0  ;;  %v12430_v49 = vld [vmem:[%s14150_s3 + $0x1f0] sm:$0xff]  }
0x1a04   :  { %v3023_v3 = vpop.xlane.xlu0 %3022  ;;  %2744 = vadd.xlane.f32.xlu1 %v2743_v42  ;;  %v3020_v62 = vpop.xlane.xlu1 %3019 }
0x1a05   :  { %v3043_v45 = vmul.f32 0.020833334, %v3023_v3  ;;  %v3042_v39 = vmul.f32 0.020833334, %v3020_v62  ;;  %v2742_v21 = vmul.f32 %v12369_v37, %v12369_v37  ;;  %v2741_v48 = vmul.f32 %v12372_v14, %v12372_v14 }
0x1a07   :  { %v12379_v47 = vsub.f32 %v9320_v36, %v3043_v45  ;;  %v12381_v50 = vsub.f32 %v9319_v40, %v3042_v39  ;;  %v2749_v2 = vsel %vm455_vm3, %v2742_v21, 0.0  ;;  %v2746_v5 = vsel %vm448_vm2, %v2741_v48, 0.0 }
0x1a08   :  { %v3029_v11 = vpop.xlane.xlu0 %3028  ;;  %2750 = vadd.xlane.f32.xlu1 %v2749_v2  ;;  %2747 = vadd.xlane.f32.xlu0 %v2746_v5  ;;  %v3026_v24 = vpop.xlane.xlu1 %3025 }
0x1a09   :  { %v3045_v53 = vmul.f32 0.020833334, %v3029_v11  ;;  %v3044_v56 = vmul.f32 0.020833334, %v3026_v24  ;;  %v3059_v29 = vmul.f32 %v12379_v47, %v12379_v47  ;;  %v3058_v60 = vmul.f32 %v12381_v50, %v12381_v50 }
0x1a0b   :  { %v12389_v35 = vsub.f32 %v9322_v22, %v3045_v53  ;;  %v12391_v12 = vsub.f32 %v9321_v23, %v3044_v56  ;;  %v3069_v28 = vsel %vm78_vm0, %v3059_v29, 0.0  ;;  %v3066_v26 = vsel %vm78_vm0, %v3058_v60, 0.0 }
0x1a0c   :  { %v3035_v8 = vpop.xlane.xlu0 %3034  ;;  %3070 = vadd.xlane.f32.xlu1 %v3069_v28  ;;  %3067 = vadd.xlane.f32.xlu0 %v3066_v26  ;;  %v3032_v16 = vpop.xlane.xlu1 %3031 }
0x1a0d   :  { %v3047_v36 = vmul.f32 0.020833334, %v3035_v8  ;;  %v3046_v40 = vmul.f32 0.020833334, %v3032_v16  ;;  %v3061_v52 = vmul.f32 %v12389_v35, %v12389_v35  ;;  %v3060_v13 = vmul.f32 %v12391_v12, %v12391_v12 }
0x1a0f   :  { %v12399_v43 = vsub.f32 %v9324_v63, %v3047_v36  ;;  %v12401_v19 = vsub.f32 %v9323_v0, %v3046_v40  ;;  %v3075_v22 = vsel %vm78_vm0, %v3061_v52, 0.0  ;;  %v3072_v23 = vsel %vm78_vm0, %v3060_v13, 0.0 }
0x1a10   :  { %v3041_v57 = vpop.xlane.xlu0 %3040  ;;  %3076 = vadd.xlane.f32.xlu1 %v3075_v22  ;;  %3073 = vadd.xlane.f32.xlu0 %v3072_v23  ;;  %v3038_v59 = vpop.xlane.xlu1 %3037 }
0x1a11   :  { %v3049_v30 = vmul.f32 0.020833334, %v3041_v57  ;;  %v3048_v20 = vmul.f32 0.020833334, %v3038_v59  ;;  %v3063_v32 = vmul.f32 %v12399_v43, %v12399_v43  ;;  %v3062_v9 = vmul.f32 %v12401_v19, %v12401_v19 }
0x1a13   :  { %v12409_v63 = vsub.f32 %v9326_v31, %v3049_v30  ;;  %v12411_v0 = vsub.f32 %v9325_v58, %v3048_v20  ;;  %v3081_v15 = vsel %vm78_vm0, %v3063_v32, 0.0  ;;  %v3078_v1 = vsel %vm78_vm0, %v3062_v9, 0.0  ;;  %v10992_v31 = vld [vmem:[%s14150_s3 + $0xf0] sm:$0xff]   ;;  %v10993_v58 = vld [vmem:[%s14150_s3 + $0xe8] sm:$0xff]  }
0x1a14   :  { %3082 = vadd.xlane.f32.xlu1 %v3081_v15  ;;  %3079 = vadd.xlane.f32.xlu0 %v3078_v1  ;;  %v9303_v15 = vld [vmem:[%s14152_s2 + $0x5a] ss:$0 sm:$0xff] }
0x1a15   :  { %v3065_v17 = vmul.f32 %v12409_v63, %v12409_v63  ;;  %v3064_v38 = vmul.f32 %v12411_v0, %v12411_v0  ;;  %10296 = vmatprep.subr.bf16.mxu0 %v10992_v31 }
0x1a16   :  { %10297 = vmatpush3.bf16.msra.mxu0 %v10992_v31 }
0x1a17   :  { %v3087_v33 = vsel %vm78_vm0, %v3065_v17, 0.0  ;;  %v3084_v25 = vsel %vm78_vm0, %v3064_v38, 0.0  ;;  %10298 = vmatprep.subr.bf16.mxu0 %v10993_v58 }
0x1a18   :  { %3088 = vadd.xlane.f32.xlu1 %v3087_v33  ;;  %3085 = vadd.xlane.f32.xlu0 %v3084_v25 }
0x1a1a   :  { %10299 = vmatpush3.bf16.msra.mxu0 %v10993_v58 }
0x1a1b   :  { %10324 = vmatprep.subr.bf16.mxu0 %v12430_v49 }
0x1a8d   :  { %v2745_v42 = vpop.xlane.xlu1 %2744 }
0x1a8e   :  { %v2752_v3 = vmul.f32 0.03125, %v2745_v42 }
0x1a90   :  { %v2755_v62 = vadd.f32 1e-06, %v2752_v3 }
0x1a91   :  { %v2748_v45 = vpop.xlane.xlu0 %2747  ;;  %v2751_v39 = vpop.xlane.xlu1 %2750 }
0x1a92   :  { %11222 = vrsqrt.f32 %v2755_v62  ;;  %v2753_v21 = vmul.f32 0.03125, %v2748_v45  ;;  %v2754_v48 = vmul.f32 0.03125, %v2751_v39 }
0x1a94   :  { %v2756_v2 = vadd.f32 1e-06, %v2753_v21  ;;  %v2757_v5 = vadd.f32 1e-06, %v2754_v48  ;;  %v9327_v21 = vld [vmem:[%s14152_s2 + $0x80] ss:$0 sm:$0xff] }
0x1a95   :  { %v3068_v11 = vpop.xlane.xlu0 %3067  ;;  %v3071_v24 = vpop.xlane.xlu1 %3070 }
0x1a96   :  { %11224 = vrsqrt.f32 %v2756_v2  ;;  %v3090_v53 = vmul.f32 0.020833334, %v3068_v11  ;;  %v3091_v56 = vmul.f32 0.020833334, %v3071_v24  ;;  %v9328_v24 = vld [vmem:[%s14152_s2 + $0x81] ss:$0 sm:$0xff] }
0x1a97   :  { %11226 = vrsqrt.f32 %v2757_v5 }
0x1a98   :  { %v3098_v29 = vadd.f32 1e-06, %v3090_v53  ;;  %v3099_v60 = vadd.f32 1e-06, %v3091_v56 }
0x1a99   :  { %v3074_v28 = vpop.xlane.xlu0 %3073  ;;  %v3077_v26 = vpop.xlane.xlu1 %3076 }
0x1a9a   :  { %11228 = vrsqrt.f32 %v3098_v29  ;;  %v3092_v8 = vmul.f32 0.020833334, %v3074_v28  ;;  %v3093_v16 = vmul.f32 0.020833334, %v3077_v26  ;;  %v10995_v28 = vld [vmem:[%s14150_s3 + $0x1e8] sm:$0xff]  }
0x1a9b   :  { %11230 = vrsqrt.f32 %v3099_v60 }
0x1a9c   :  { %v3100_v36 = vadd.f32 1e-06, %v3092_v8  ;;  %v3101_v40 = vadd.f32 1e-06, %v3093_v16 }
0x1a9d   :  { %v3080_v52 = vpop.xlane.xlu0 %3079  ;;  %v3083_v13 = vpop.xlane.xlu1 %3082 }
0x1a9e   :  { %11232 = vrsqrt.f32 %v3100_v36  ;;  %v3094_v22 = vmul.f32 0.020833334, %v3080_v52  ;;  %v3095_v23 = vmul.f32 0.020833334, %v3083_v13  ;;  %v10996_v13 = vld [vmem:[%s14150_s3 + $0x1e0] sm:$0xff]  }
0x1a9f   :  { %v11223_v57 = vpop.eup %11222  ;;  %11234 = vrsqrt.f32 %v3101_v40 }
0x1aa0   :  { %v3102_v59 = vadd.f32 1e-06, %v3094_v22  ;;  %v3103_v30 = vadd.f32 1e-06, %v3095_v23  ;;  %v2761_v20 = vmul.f32 %v11223_v57, %v12364_v41  ;;  %v9304_v41 = vld [vmem:[%s14152_s2 + $0x5b] ss:$0 sm:$0xff] }
0x1aa1   :  { %v3086_v32 = vpop.xlane.xlu0 %3085  ;;  %v3089_v9 = vpop.xlane.xlu1 %3088 }
0x1aa2   :  { %11236 = vrsqrt.f32 %v3102_v59  ;;  %v3096_v1 = vmul.f32 0.020833334, %v3086_v32  ;;  %v3097_v17 = vmul.f32 0.020833334, %v3089_v9  ;;  %v2768_v42 = vmul.f32 %v9303_v15, %v2761_v20 }
0x1aa3   :  { %v11225_v38 = vpop.eup %11224  ;;  %11238 = vrsqrt.f32 %v3103_v30 }
0x1aa4   :  { %v11227_v33 = vpop.eup %11226  ;;  %v3104_v25 = vadd.f32 1e-06, %v3096_v1  ;;  %v3105_v31 = vadd.f32 1e-06, %v3097_v17  ;;  %v2762_v58 = vmul.f32 %v11225_v38, %v12372_v14  ;;  %v2775_v2 = vadd.f32 %v9304_v41, %v2768_v42 }
0x1aa5   :  { %v2763_v3 = vmul.f32 %v11227_v33, %v12369_v37 }
0x1aa6   :  { %11240 = vrsqrt.f32 %v3104_v25  ;;  %v2769_v62 = vmul.f32 %v9303_v15, %v2762_v58 }
0x1aa7   :  { %v11229_v45 = vpop.eup %11228  ;;  %11242 = vrsqrt.f32 %v3105_v31  ;;  %v2770_v39 = vmul.f32 %v9303_v15, %v2763_v3  ;;  %v11000_v3 = vld [vmem:[%s14150_s3 + $0x118] sm:$0xff]  }
0x1aa8   :  { %v11231_v48 = vpop.eup %11230  ;;  %v2776_v5 = vadd.f32 %v9304_v41, %v2769_v62  ;;  %v3114_v14 = vmul.f32 %v11229_v45, %v12381_v50  ;;  %v11001_v62 = vld [vmem:[%s14150_s3 + $0x110] sm:$0xff]   ;;  %v11002_v45 = vld [vmem:[%s14150_s3 + $0x108] sm:$0xff]  }
0x1aa9   :  { %v2777_v11 = vadd.f32 %v9304_v41, %v2770_v39  ;;  %v3115_v37 = vmul.f32 %v11231_v48, %v12379_v47  ;;  %v10999_v41 = vld [vmem:[%s14150_s3 + $0x120] sm:$0xff]  }
0x1aaa   :  { %v2782_v53 = vpack.c.bf16 %v2776_v5, %v2775_v2  ;;  %v3126_v56 = vmul.f32 %v9327_v21, %v3114_v14  ;;  %v11003_v39 = vld [vmem:[%s14150_s3 + $0x100] sm:$0xff]  }
0x1aab   :  { %v11233_v29 = vpop.eup %11232  ;;  %v2783_v60 = vpack.c.bf16 %v2777_v11, %v2777_v11  ;;  %v3127_v26 = vmul.f32 %v9327_v21, %v3115_v37  ;;  %v9305_v48 = vld [vmem:[%s14152_s2 + $0x60] ss:$0 sm:$0xff] }
0x1aac   :  { %v11235_v8 = vpop.eup %11234  ;;  %v3116_v16 = vmul.f32 %v11233_v29, %v12391_v12  ;;  %10300 = vmatprep.mubr.msk.bf16.mxu0 %vm448_vm2, %v2782_v53  ;;  %v3138_v50 = vadd.f32 %v9328_v24, %v3126_v56 }
0x1aad   :  { %v3117_v36 = vmul.f32 %v11235_v8, %v12389_v35  ;;  %10301 = vmatmul.mubr.msk.bf16.vlgmr.msra.gmra.mxu0 %vm448_vm2, %v2783_v60  ;;  %v3139_v47 = vadd.f32 %v9328_v24, %v3127_v26 }
0x1aae   :  { %10325 = vmatpush3.bf16.msra.mxu0 %v12430_v49  ;;  %v3128_v22 = vmul.f32 %v9327_v21, %v3116_v16 }
0x1aaf   :  { %v11237_v40 = vpop.eup %11236  ;;  %10326 = vmatprep.subr.bf16.mxu0 %v10995_v28  ;;  %v3152_v52 = vpack.c.bf16 %v3139_v47, %v3138_v50  ;;  %v3129_v23 = vmul.f32 %v9327_v21, %v3117_v36 }
0x1ab0   :  { %v11239_v12 = vpop.eup %11238  ;;  %v3118_v57 = vmul.f32 %v11237_v40, %v12401_v19  ;;  %v3140_v49 = vadd.f32 %v9328_v24, %v3128_v22 }
0x1ab1   :  { %10330 = vmatprep.mubr.msk.bf16.mxu0 %vm78_vm0, %v3152_v52  ;;  %v3119_v35 = vmul.f32 %v11239_v12, %v12399_v43  ;;  %v3141_v20 = vadd.f32 %v9328_v24, %v3129_v23 }
0x1ab2   :  { %10327 = vmatpush3.bf16.msra.mxu0 %v10995_v28  ;;  %v3130_v59 = vmul.f32 %v9327_v21, %v3118_v57 }
0x1ab3   :  { %v11241_v30 = vpop.eup %11240  ;;  %10328 = vmatprep.subr.bf16.mxu0 %v10996_v13  ;;  %v3131_v32 = vmul.f32 %v9327_v21, %v3119_v35  ;;  %v3153_v19 = vpack.c.bf16 %v3141_v20, %v3140_v49  ;;  %v9329_v20 = vld [vmem:[%s14152_s2 + $0x82] ss:$0 sm:$0xff] }
0x1ab4   :  { %v11243_v9 = vpop.eup %11242  ;;  %v3142_v15 = vadd.f32 %v9328_v24, %v3130_v59  ;;  %v3120_v1 = vmul.f32 %v11241_v30, %v12411_v0  ;;  %v10998_v0 = vld [vmem:[%s14150_s3 + $0x128] sm:$0xff]  }
0x1ab5   :  { %v3143_v17 = vadd.f32 %v9328_v24, %v3131_v32  ;;  %v3121_v38 = vmul.f32 %v11243_v9, %v12409_v63  ;;  %v10997_v63 = vld [vmem:[%s14150_s3 + $0x130] sm:$0xff]  }
0x1ab6   :  { %10329 = vmatpush3.bf16.msra.mxu0 %v10996_v13  ;;  %v3132_v25 = vmul.f32 %v9327_v21, %v3120_v1  ;;  %10304 = vmatprep.subr.bf16.mxu1 %v10997_v63 }
0x1ab7   :  { %v3154_v33 = vpack.c.bf16 %v3143_v17, %v3142_v15  ;;  %v3133_v31 = vmul.f32 %v9327_v21, %v3121_v38  ;;  %10305 = vmatpush3.bf16.msra.mxu1 %v10997_v63  ;;  %v11004_v21 = vld [vmem:[%s14150_s3 + $0xf8] sm:$0xff]  }
0x1ab8   :  { %v3144_v43 = vadd.f32 %v9328_v24, %v3132_v25  ;;  %10306 = vmatprep.subr.bf16.mxu1 %v10998_v0 }
0x1ab9   :  { %10331 = vmatmul.mubr.msk.bf16.vlgmr.msra.gmra.mxu0 %vm78_vm0, %v3153_v19  ;;  %v3145_v58 = vadd.f32 %v9328_v24, %v3133_v31 }
0x1aba   :  { %10334 = vmatprep.mubr.msk.bf16.mxu0 %vm78_vm0, %v3154_v33 }
0x1abb   :  { %v3155_v42 = vpack.c.bf16 %v3145_v58, %v3144_v43  ;;  %10307 = vmatpush3.bf16.msra.mxu1 %v10998_v0 }
0x1abc   :  { %10308 = vmatprep.subr.bf16.mxu1 %v10999_v41 }
0x1abf   :  { %10309 = vmatpush3.bf16.msra.mxu1 %v10999_v41 }
0x1ac0   :  { %10310 = vmatprep.subr.bf16.mxu1 %v11000_v3 }
0x1ac1   :  { %10335 = vmatmul.mubr.msk.bf16.gmra.mxu0 %vm78_vm0, %v3155_v42 }
0x1ac2   :  { %10346 = vmatprep.mubr.msk.bf16.mxu0 %vm388_vm1, %v11712_v6 }
0x1ac3   :  { %10311 = vmatpush3.bf16.msra.mxu1 %v11000_v3 }
0x1ac4   :  { %10312 = vmatprep.subr.bf16.mxu1 %v11001_v62 }
0x1ac7   :  { %10313 = vmatpush3.bf16.msra.mxu1 %v11001_v62 }
0x1ac8   :  { %10314 = vmatprep.subr.bf16.mxu1 %v11002_v45 }
0x1acb   :  { %10315 = vmatpush3.bf16.msra.mxu1 %v11002_v45 }
0x1acc   :  { %10316 = vmatprep.subr.bf16.mxu1 %v11003_v39 }
0x1acf   :  { %10317 = vmatpush3.bf16.msra.mxu1 %v11003_v39 }
0x1ad0   :  { %10318 = vmatprep.subr.bf16.mxu1 %v11004_v21 }
0x1ad3   :  { %10319 = vmatpush3.bf16.msra.mxu1 %v11004_v21 }
0x1b6d   :  { %v10302_v2 = vpop.f32.mrf.mxu0 }
0x1b6e   :  { %v2850_v5 = vadd.f32 %v10302_v2, %v9305_v48 }
0x1b6f   :  { %v2841_v14 = vpop.f32.mrf.mxu0 }
0x1b70   :  { %v2860_v11 = vmul.f32 %v2850_v5, %v2850_v5  ;;  %v2842_v24 = vadd.f32 %v9305_v48, %v2841_v14  ;;  %v2857_v41 = vmul.f32 0.5, %v2850_v5 }
0x1b71   :  { %v10303_v37 = vpop.f32.mrf.mxu0 }
0x1b72   :  { %v2863_v53 = vmul.f32 %v2860_v11, %v2850_v5  ;;  %v2858_v56 = vmul.f32 %v2842_v24, %v2842_v24  ;;  %v2855_v3 = vmul.f32 0.5, %v2842_v24 }
0x1b73   :  { %v2844_v29 = vpop.f32.mrf.mxu0 }
0x1b74   :  { %v2866_v60 = vmul.f32 0.044715, %v2863_v53  ;;  %v2861_v28 = vmul.f32 %v2858_v56, %v2842_v24  ;;  %v2845_v26 = vadd.f32 %v9305_v48, %v2844_v29  ;;  %v9318_v29 = vld [vmem:[%s14152_s2 + $0x61] ss:$0 sm:$0xff] }
0x1b76   :  { %v2869_v8 = vadd.f32 %v2866_v60, %v2850_v5  ;;  %v2864_v16 = vmul.f32 0.044715, %v2861_v28  ;;  %v2859_v50 = vmul.f32 %v2845_v26, %v2845_v26  ;;  %v2856_v39 = vmul.f32 0.5, %v2845_v26 }
0x1b78   :  { %v2872_v36 = vmul.f32 0.7978846, %v2869_v8  ;;  %v2867_v47 = vadd.f32 %v2864_v16, %v2842_v24  ;;  %v2862_v40 = vmul.f32 %v2859_v50, %v2845_v26 }
0x1b79   :  { %v10332_v52 = vpop.f32.mrf.mxu0 }
0x1b7a   :  { %v2870_v13 = vmul.f32 0.7978846, %v2867_v47  ;;  %v2865_v22 = vmul.f32 0.044715, %v2862_v40  ;;  %11244 = vtanh.f32 %v2872_v36  ;;  %v3234_v42 = vadd.f32 %v10332_v52, %v9329_v20 }
0x1b7b   :  { %v3225_v23 = vpop.f32.mrf.mxu0 }
0x1b7c   :  { %11246 = vtanh.f32 %v2870_v13  ;;  %v2868_v12 = vadd.f32 %v2865_v22, %v2845_v26  ;;  %v3226_v2 = vadd.f32 %v9329_v20, %v3225_v23  ;;  %v11546_v23 = vld [vmem:[%s14152_s2 + $0x18] sm:$0xff] }
0x1b7d   :  { %v10333_v57 = vpop.f32.mrf.mxu0 }
0x1b7e   :  { %v2871_v35 = vmul.f32 0.7978846, %v2868_v12  ;;  %v3237_v31 = vadd.f32 %v10333_v57, %v9329_v20  ;;  %v11547_v57 = vld [vmem:[%s14152_s2 + $0x28] sm:$0x1] }
0x1b7f   :  { %v3228_v59 = vpop.f32.mrf.mxu0 }
0x1b80   :  { %11248 = vtanh.f32 %v2871_v35  ;;  %v3257_v62 = vpack.c.bf16 %v3237_v31, %v3234_v42  ;;  %v3229_v45 = vadd.f32 %v9329_v20, %v3228_v59 }
0x1b81   :  { %v10336_v30 = vpop.f32.mrf.mxu0 }
0x1b82   :  { %v3250_v9 = vadd.f32 %v10336_v30, %v9329_v20  ;;  %v3256_v37 = vpack.c.bf16 %v3229_v45, %v3226_v2  ;;  %v11548_v30 = vld [vmem:[%s14152_s2 + $0x20] sm:$0xff]  ;;  %v11007_v45 = vld [vmem:[%s14150_s3 + $0x138] sm:$0xff]  }
0x1b83   :  { %v3241_v49 = vpop.f32.mrf.mxu0 }
0x1b84   :  { %v3242_v38 = vadd.f32 %v9329_v20, %v3241_v49 }
0x1b85   :  { %v10337_v32 = vpop.f32.mrf.mxu0 }
0x1b86   :  { %v3253_v15 = vadd.f32 %v10337_v32, %v9329_v20 }
0x1b87   :  { %v3244_v1 = vpop.f32.mrf.mxu0  ;;  %v11245_v17 = vpop.eup %11244 }
0x1b88   :  { %v3259_v19 = vpack.c.bf16 %v3253_v15, %v3250_v9  ;;  %v3245_v33 = vadd.f32 %v9329_v20, %v3244_v1  ;;  %v2878_v58 = vadd.f32 1.0, %v11245_v17 }
0x1b89   :  { %v11247_v25 = vpop.eup %11246 }
0x1b8a   :  { %v3258_v43 = vpack.c.bf16 %v3245_v33, %v3242_v38  ;;  %10338 = vmatprep.subr.bf16.mxu0 %v3259_v19  ;;  %v2876_v63 = vadd.f32 1.0, %v11247_v25  ;;  %v2881_v48 = vmul.f32 %v2878_v58, %v2857_v41 }
0x1b8b   :  { %10339 = vmatpush3.bf16.msra.mxu0 %v3259_v19 }
0x1b8c   :  { %10340 = vmatprep.subr.bf16.mxu0 %v3258_v43  ;;  %v2879_v14 = vmul.f32 %v2876_v63, %v2855_v3  ;;  %v2899_v56 = vpack.c.bf16 %v2881_v48, %v2881_v48  ;;  %v11005_v3 = vld [vmem:[%s14150_s3 + $0x140] sm:$0xff]  }
0x1b8d   :  { %v11249_v0 = vpop.eup %11248  ;;  %10350 = vmatprep.subr.bf16.mxu1 %v11005_v3 }
0x1b8e   :  { %v2877_v21 = vadd.f32 1.0, %v11249_v0 }
0x1b8f   :  { %10341 = vmatpush3.bf16.msra.mxu0 %v3258_v43 }
0x1b90   :  { %10342 = vmatprep.subr.bf16.mxu0 %v3257_v62  ;;  %v2880_v11 = vmul.f32 %v2877_v21, %v2856_v39  ;;  %v11008_v39 = vld [vmem:[%s14150_s3 + $0x148] sm:$0xff]   ;;  %v11009_v21 = vld [vmem:[%s14150_s3 + $0x160] sm:$0xff]  }
0x1b92   :  { %v2898_v53 = vpack.c.bf16 %v2880_v11, %v2879_v14 }
0x1b93   :  { %10343 = vmatpush3.bf16.msra.mxu0 %v3257_v62  ;;  %v11006_v62 = vld [vmem:[%s14150_s3 + $0x150] sm:$0xff]  }
0x1b94   :  { %10344 = vmatprep.subr.bf16.mxu0 %v3256_v37  ;;  %10320 = vmatprep.mubr.bf16.mxu1 %v2898_v53 }
0x1b95   :  { %10321 = vmatmul.mubr.bf16.vlgmr.msra.gmra.mxu1 %v2899_v56 }
0x1b96   :  { %10351 = vmatpush3.bf16.msra.mxu1 %v11005_v3 }
0x1b97   :  { %10345 = vmatpush3.bf16.msra.mxu0 %v3256_v37  ;;  %10352 = vmatprep.subr.bf16.mxu1 %v11007_v45 }
0x1b98   :  { %10358 = vmatprep.subr.bf16.mxu0 %v11006_v62 }
0x1b9a   :  { %10347 = vmatmul.mubr.msk.bf16.vlgmr.msra.gmra.mxu0 %vm388_vm1, %v11722_v34  ;;  %10353 = vmatpush3.bf16.msra.mxu1 %v11007_v45 }
0x1b9b   :  { %10359 = vmatpush3.bf16.msra.mxu0 %v11006_v62  ;;  %10366 = vmatprep.subr.bf16.mxu1 %v11009_v21 }
0x1b9c   :  { %10360 = vmatprep.subr.bf16.mxu0 %v11008_v39 }
0x1b9f   :  { %10361 = vmatpush3.bf16.msra.mxu0 %v11008_v39 }
0x1c55   :  { %v10322_v5 = vpop.f32.mrf.mxu1 }
0x1c56   :  { %v2998_v24 = vadd.f32 %v10322_v5, %v12320_v4 }
0x1c57   :  { %v2982_v60 = vpop.f32.mrf.mxu1 }
0x1c58   :  { %v2996_v28 = vadd.f32 %v2982_v60, %v12318_v27  ;;  %v3006_v8 = vadd.f32 %v9318_v29, %v2998_v24 }
0x1c59   :  { %v10323_v26 = vpop.f32.mrf.mxu1 }
0x1c5a   :  { %v10348_v16 = vpop.f32.mrf.mxu0  ;;  %v3004_v50 = vadd.f32 %v9318_v29, %v2996_v28  ;;  %v9339_v28 = vld [vmem:[%s14152_s2 + $0x68] ss:$0 sm:$0xff] }
0x1c5b   :  { %v2985_v36 = vpop.f32.mrf.mxu1  ;;  %v12509_v52 = vadd.f32 %v10348_v16, %v3006_v8 }
0x1c5c   :  { %v2997_v47 = vadd.f32 %v2985_v36, %v12325_v10  ;;  %v3294_v40 = vpop.f32.mrf.mxu0  ;;  %v9340_v36 = vld [vmem:[%s14152_s2 + $0x69] ss:$0 sm:$0xff] }
0x1c5d   :  { %v12511_v13 = vadd.f32 %v3294_v40, %v3004_v50  ;;  %v12523_v10 = vadd.f32 %v11547_v57, %v12509_v52 }
0x1c5e   :  { %v10349_v4 = vpop.f32.mrf.mxu0  ;;  %v3005_v22 = vadd.f32 %v9318_v29, %v2997_v47 }
0x1c5f   :  { %v12517_v27 = vadd.f32 %v11546_v23, %v12511_v13  ;;  %v3322_v20 = vsel %vm455_vm3, %v12523_v10, 0.0 }
0x1c60   :  { %v3297_v12 = vpop.f32.mrf.mxu0 }
0x1c61   :  { %v12525_v35 = vadd.f32 %v3297_v12, %v3005_v22  ;;  %v3316_v59 = vsel %vm448_vm2, %v12517_v27, 0.0 }
0x1c62   :  { %3317 = vadd.xlane.f32.xlu0 %v3316_v59 }
0x1c63   :  { %v12533_v49 = vadd.f32 %v11548_v30, %v12525_v35  ;;  %v11010_v30 = vld [vmem:[%s14150_s3 + $0x158] sm:$0xff]  }
0x1c65   :  { %v3319_v32 = vsel %vm448_vm2, %v12533_v49, 0.0 }
0x1c66   :  { %3323 = vadd.xlane.f32.xlu0 %v3322_v20  ;;  %3320 = vadd.xlane.f32.xlu1 %v3319_v32  ;;  %v9346_v20 = vld [vmem:[%s14152_s2 + $0x6d] ss:$0 sm:$0xff] }
0x1ceb   :  { %v3318_v9 = vpop.xlane.xlu0 %3317 }
0x1cec   :  { %v3325_v15 = vmul.f32 0.03125, %v3318_v9 }
0x1cee   :  { %v3328_v1 = vsub.f32 %v12517_v27, %v3325_v15 }
0x1cef   :  { %v3324_v17 = vpop.xlane.xlu0 %3323  ;;  %v3321_v38 = vpop.xlane.xlu1 %3320 }
0x1cf0   :  { %v3327_v19 = vmul.f32 0.03125, %v3324_v17  ;;  %v3326_v33 = vmul.f32 0.03125, %v3321_v38  ;;  %v3331_v25 = vmul.f32 %v3328_v1, %v3328_v1  ;;  %v9341_v38 = vld [vmem:[%s14152_s2 + $0x6c] ss:$0 sm:$0xff] }
0x1cf2   :  { %v3330_v31 = vsub.f32 %v12523_v10, %v3327_v19  ;;  %v3329_v43 = vsub.f32 %v12533_v49, %v3326_v33  ;;  %v3334_v58 = vsel %vm448_vm2, %v3331_v25, 0.0 }
0x1cf3   :  { %3335 = vadd.xlane.f32.xlu1 %v3334_v58 }
0x1cf4   :  { %v3333_v42 = vmul.f32 %v3330_v31, %v3330_v31  ;;  %v3332_v63 = vmul.f32 %v3329_v43, %v3329_v43 }
0x1cf6   :  { %v3340_v0 = vsel %vm455_vm3, %v3333_v42, 0.0  ;;  %v3337_v41 = vsel %vm448_vm2, %v3332_v63, 0.0  ;;  %v9351_v42 = vld [vmem:[%s14152_s2 + $0x6e] ss:$0 sm:$0xff] }
0x1cf7   :  { %3341 = vadd.xlane.f32.xlu1 %v3340_v0  ;;  %3338 = vadd.xlane.f32.xlu0 %v3337_v41 }
0x1d7c   :  { %v3336_v48 = vpop.xlane.xlu1 %3335 }
0x1d7d   :  { %v3343_v2 = vmul.f32 0.03125, %v3336_v48 }
0x1d7f   :  { %v3346_v14 = vadd.f32 1e-06, %v3343_v2 }
0x1d80   :  { %v3339_v11 = vpop.xlane.xlu0 %3338  ;;  %v3342_v37 = vpop.xlane.xlu1 %3341 }
0x1d81   :  { %11250 = vrsqrt.f32 %v3346_v14  ;;  %v3344_v53 = vmul.f32 0.03125, %v3339_v11  ;;  %v3345_v56 = vmul.f32 0.03125, %v3342_v37 }
0x1d83   :  { %v3347_v5 = vadd.f32 1e-06, %v3344_v53  ;;  %v3348_v24 = vadd.f32 1e-06, %v3345_v56 }
0x1d85   :  { %11252 = vrsqrt.f32 %v3347_v5 }
0x1d86   :  { %11254 = vrsqrt.f32 %v3348_v24 }
0x1d8e   :  { %v11251_v29 = vpop.eup %11250 }
0x1d8f   :  { %v3352_v60 = vmul.f32 %v11251_v29, %v3328_v1 }
0x1d91   :  { %v3359_v50 = vmul.f32 %v9339_v28, %v3352_v60 }
0x1d92   :  { %v11253_v26 = vpop.eup %11252 }
0x1d93   :  { %v11255_v8 = vpop.eup %11254  ;;  %v3353_v16 = vmul.f32 %v11253_v26, %v3329_v43  ;;  %v3366_v22 = vadd.f32 %v9340_v36, %v3359_v50 }
0x1d94   :  { %v3354_v47 = vmul.f32 %v11255_v8, %v3330_v31 }
0x1d95   :  { %v3360_v40 = vmul.f32 %v9339_v28, %v3353_v16 }
0x1d96   :  { %v3361_v4 = vmul.f32 %v9339_v28, %v3354_v47 }
0x1d97   :  { %v3367_v23 = vadd.f32 %v9340_v36, %v3360_v40 }
0x1d98   :  { %v3368_v12 = vadd.f32 %v9340_v36, %v3361_v4 }
0x1d99   :  { %v3373_v57 = vpack.c.bf16 %v3367_v23, %v3366_v22 }
0x1d9a   :  { %v3374_v59 = vpack.c.bf16 %v3368_v12, %v3368_v12 }
0x1d9b   :  { %10354 = vmatprep.mubr.msk.bf16.mxu1 %vm448_vm2, %v3373_v57  ;;  %10362 = vmatprep.mubr.msk.bf16.mxu0 %vm448_vm2, %v3373_v57 }
0x1d9c   :  { %10355 = vmatmul.mubr.msk.bf16.vlgmr.msra.gmra.mxu1 %vm448_vm2, %v3374_v59  ;;  %10363 = vmatmul.mubr.msk.bf16.vlgmr.msra.gmra.mxu0 %vm448_vm2, %v3374_v59 }
0x1d9d   :  { %10367 = vmatpush3.bf16.msra.mxu1 %v11009_v21  ;;  %10370 = vmatprep.mubr.msk.bf16.mxu1 %vm448_vm2, %v3373_v57 }
0x1d9e   :  { %10368 = vmatprep.subr.bf16.mxu1 %v11010_v30 }
0x1da1   :  { %10369 = vmatpush3.bf16.msra.mxu1 %v11010_v30 }
0x1da4   :  { %10371 = vmatmul.mubr.msk.bf16.vlgmr.msra.gmra.mxu1 %vm448_vm2, %v3374_v59 }
0x1e5c   :  { %v10356_v32 = vpop.f32.mrf.mxu1  ;;  %v10364_v9 = vpop.f32.mrf.mxu0 }
0x1e5d   :  { %v3510_v15 = vadd.f32 %v10364_v9, %v9346_v20  ;;  %v12623_v8 = vadd.f32 %v10356_v32, %v9341_v38 }
0x1e5e   :  { %v3432_v1 = vpop.f32.mrf.mxu1  ;;  %v3501_v17 = vpop.f32.mrf.mxu0 }
0x1e5f   :  { %v12581_v19 = vpack.c.bf16 %v3510_v15, %v3510_v15  ;;  %v3433_v33 = vadd.f32 %v9341_v38, %v3432_v1  ;;  %v3502_v63 = vadd.f32 %v9346_v20, %v3501_v17  ;;  %v3588_v59 = vmul.f32 %v11804_v54, %v12623_v8 }
0x1e60   :  { %v10357_v25 = vpop.f32.mrf.mxu1  ;;  %v10365_v31 = vpop.f32.mrf.mxu0  ;;  %v3693_v30 = vmul.f32 %v11807_v55, %v12623_v8 }
0x1e61   :  { %10924 = vmatprep.subr.msk.bf16.mxu0 %vm448_vm2, %v12581_v19  ;;  %10926 = vmatprep.subr.msk.bf16.mxu1 %vm448_vm2, %v12581_v19  ;;  %v12592_v3 = vsel %vm448_vm2, %v12581_v19, 0  ;;  %v3586_v62 = vmul.f32 %v11804_v54, %v3433_v33  ;;  %v3691_v45 = vmul.f32 %v11807_v55, %v3433_v33  ;;  %v12605_v11 = vmul.f32 %v11821_v61, %v3433_v33 }
0x1e62   :  { %v3435_v43 = vpop.f32.mrf.mxu1  ;;  %v3504_v58 = vpop.f32.mrf.mxu0  ;;  %10375 = vmatpush3.bf16.xpose.msra.mxu0 %v12592_v3  ;;  %10383 = vmatpush3.bf16.xpose.msra.mxu1 %v12592_v3  ;;  %v12626_v16 = vmul.f32 %v11773_v7, %v3433_v33  ;;  %v3590_v31 = vpack.c.bf16 %v3588_v59, %v3588_v59 }
0x1e63   :  { %v3436_v0 = vadd.f32 %v9341_v38, %v3435_v43  ;;  %v3505_v41 = vadd.f32 %v9346_v20, %v3504_v58  ;;  %v3695_v43 = vpack.c.bf16 %v3693_v30, %v3693_v30 }
0x1e64   :  { %v10372_v39 = vpop.f32.mrf.mxu1 }
0x1e65   :  { %v12598_v21 = vpack.c.bf16 %v3505_v41, %v3502_v63  ;;  %v12600_v48 = vadd.f32 %v10372_v39, %v9351_v42  ;;  %v3587_v2 = vmul.f32 %v11804_v54, %v3436_v0  ;;  %v3692_v14 = vmul.f32 %v11807_v55, %v3436_v0 }
0x1e66   :  { %v3570_v37 = vpop.f32.mrf.mxu1  ;;  %v12608_v53 = vmul.f32 %v11821_v61, %v3436_v0  ;;  %v12615_v24 = vmul.f32 %v11773_v7, %v3436_v0 }
0x1e67   :  { %10925 = vmatprep.subr.msk.bf16.mxu0 %vm448_vm2, %v12598_v21  ;;  %10927 = vmatprep.subr.msk.bf16.mxu1 %vm448_vm2, %v12598_v21  ;;  %v3589_v56 = vpack.c.bf16 %v3587_v2, %v3586_v62  ;;  %v3694_v5 = vpack.c.bf16 %v3692_v14, %v3691_v45  ;;  %v3698_v60 = vmul.f32 %v11807_v55, %v12600_v48  ;;  %v12632_v22 = vsel %vm448_vm2, %v12598_v21, 0 }
0x1e68   :  { %v10373_v29 = vpop.f32.mrf.mxu1  ;;  %v3593_v28 = vmul.f32 %v11804_v54, %v12600_v48  ;;  %v3907_v26 = vpack.c.bf16 %v12608_v53, %v12605_v11  ;;  %v3571_v50 = vadd.f32 %v9351_v42, %v3570_v37  ;;  %v4066_v23 = vpack.c.bf16 %v12615_v24, %v12626_v16 }
0x1e69   :  { %10378 = vmatprep.mubr.msk.bf16.mxu0 %vm448_vm2, %v3589_v56  ;;  %10386 = vmatprep.mubr.msk.bf16.mxu1 %vm448_vm2, %v3694_v5  ;;  %v3700_v47 = vpack.c.bf16 %v3698_v60, %v3698_v60  ;;  %v3911_v38 = vmul.f32 %v11821_v61, %v12600_v48 }
0x1e6a   :  { %v3573_v36 = vpop.f32.mrf.mxu1  ;;  %v3595_v40 = vpack.c.bf16 %v3593_v28, %v3593_v28  ;;  %10377 = vmatpush3.bf16.xpose.msra.mxu0 %v12632_v22  ;;  %10385 = vmatpush3.bf16.xpose.msra.mxu1 %v12632_v22  ;;  %v4068_v20 = vmul.f32 %v11773_v7, %v3571_v50  ;;  %v3909_v9 = vmul.f32 %v11821_v61, %v3571_v50 }
0x1e6b   :  { %v3574_v4 = vadd.f32 %v9351_v42, %v3573_v36  ;;  %v3797_v12 = vand.u32 %v3700_v47, %v11860_v18  ;;  %v3696_v58 = vmul.f32 %v11807_v55, %v3571_v50  ;;  %v3591_v42 = vmul.f32 %v11804_v54, %v3571_v50 }
0x1e6c   :  { %v3854_v57 = vand.u32 %v3595_v40, %v11860_v18  ;;  %v3913_v41 = vpack.c.bf16 %v3911_v38, %v3911_v38 }
0x1e6d   :  { %v4069_v32 = vmul.f32 %v11773_v7, %v3574_v4  ;;  %10390 = vmatprep.subr.bf16.mxu0 %v3797_v12  ;;  %v3910_v15 = vmul.f32 %v11821_v61, %v3574_v4  ;;  %v3697_v1 = vmul.f32 %v11807_v55, %v3574_v4  ;;  %v3592_v17 = vmul.f32 %v11804_v54, %v3574_v4 }
0x1e6e   :  { %10398 = vmatprep.subr.bf16.mxu1 %v3854_v57  ;;  %v12661_v62 = vand.u32 %v3913_v41, %v11860_v18 }
0x1e6f   :  { %v12652_v33 = vpack.c.bf16 %v4069_v32, %v4068_v20  ;;  %v12654_v25 = vpack.c.bf16 %v3910_v15, %v3909_v9  ;;  %v3699_v63 = vpack.c.bf16 %v3697_v1, %v3696_v58  ;;  %v3594_v0 = vpack.c.bf16 %v3592_v17, %v3591_v42 }
0x1e71   :  { %10379 = vmatmul.mubr.msk.bf16.vlgmr.msra.gmra.mxu0 %vm448_vm2, %v3590_v31  ;;  %10387 = vmatmul.mubr.msk.bf16.vlgmr.msra.gmra.mxu1 %vm448_vm2, %v3695_v43 }
0x1e72   :  { %10391 = vmatpush3.bf16.msra.mxu0 %v3797_v12  ;;  %10399 = vmatpush3.bf16.msra.mxu1 %v3854_v57 }
0x1e73   :  { %10392 = vmatprep.subr.bf16.mxu0 %v3699_v63  ;;  %10400 = vmatprep.subr.bf16.mxu1 %v3594_v0 }
0x1e76   :  { %10393 = vmatpush3.bf16.msra.mxu0 %v3699_v63  ;;  %10401 = vmatpush3.bf16.msra.mxu1 %v3594_v0 }
0x1e77   :  { %10928 = vmatprep.subr.msk.bf16.mxu0 %vm448_vm2, %v12581_v19  ;;  %10414 = vmatprep.subr.bf16.mxu1 %v12661_v62 }
0x1f31   :  { %v12666_v45 = vpop.f32.mrf.mxu0  ;;  %v10388_v39 = vpop.f32.mrf.mxu1 }
0x1f32   :  { %v3761_v60 = vsel %vm798_vm4, %v10388_v39, -inf  ;;  %v3662_v58 = vsel %vm798_vm4, %v12666_v45, -inf }
0x1f33   :  { %v12668_v2 = vpop.f32.mrf.mxu0  ;;  %v3741_v14 = vpop.f32.mrf.mxu1 }
0x1f34   :  { %v3755_v37 = vsel %vm791_vm15, %v3741_v14, -inf  ;;  %v3656_v43 = vsel %vm791_vm15, %v12668_v2, -inf }
0x1f35   :  { %3756 = vmax.xlane.f32.xlu0 %v3755_v37  ;;  %v10381_v56 = vpop.f32.mrf.mxu0  ;;  %v10389_v5 = vpop.f32.mrf.mxu1 }
0x1f37   :  { %v3744_v29 = vpop.f32.mrf.mxu1  ;;  %v3645_v17 = vpop.f32.mrf.mxu0 }
0x1f38   :  { %v3758_v28 = vsel %vm791_vm15, %v3744_v29, -inf  ;;  %v3659_v31 = vsel %vm791_vm15, %v3645_v17, -inf }
0x1f39   :  { %3762 = vmax.xlane.f32.xlu0 %v3761_v60  ;;  %3759 = vmax.xlane.f32.xlu1 %v3758_v28  ;;  %v4070_v28 = vmul.f32 %v11773_v7, %v12600_v48 }
0x1fbe   :  { %v3757_v50 = vpop.xlane.xlu0 %3756 }
0x1fbf   :  { %v3764_v36 = vsub.f32 %v3741_v14, %v3757_v50  ;;  %v4072_v50 = vpack.c.bf16 %v4070_v28, %v4070_v28 }
0x1fc1   :  { %v3767_v47 = vmul.f32 1.442695, %v3764_v36  ;;  %v4169_v36 = vand.u32 %v4072_v50, %v11860_v18 }
0x1fc2   :  { %v3763_v40 = vpop.xlane.xlu0 %3762  ;;  %v3760_v4 = vpop.xlane.xlu1 %3759 }
0x1fc3   :  { %11256 = vpow2.f32 %v3767_v47  ;;  %v3766_v12 = vsub.f32 %v10388_v39, %v3763_v40  ;;  %v3765_v57 = vsub.f32 %v3744_v29, %v3760_v4  ;;  %v3906_v47 = vmul.f32 %v11821_v61, %v12623_v8 }
0x1fc5   :  { %v3771_v59 = vmul.f32 1.442695, %v3766_v12  ;;  %v3769_v30 = vmul.f32 1.442695, %v3765_v57  ;;  %v3908_v48 = vpack.c.bf16 %v3906_v47, %v3906_v47 }
0x1fc7   :  { %11258 = vpow2.f32 %v3771_v59 }
0x1fc8   :  { %11260 = vpow2.f32 %v3769_v30 }
0x1fd0   :  { %v11257_v20 = vpop.eup %11256 }
0x1fd1   :  { %v3773_v32 = vsel %vm791_vm15, %v11257_v20, 0.0 }
0x1fd2   :  { %3774 = vadd.xlane.f32.xlu1 %v3773_v32 }
0x1fd4   :  { %v11259_v9 = vpop.eup %11258 }
0x1fd5   :  { %v11261_v15 = vpop.eup %11260  ;;  %v3779_v1 = vsel %vm798_vm4, %v11259_v9, 0.0 }
0x1fd6   :  { %3780 = vadd.xlane.f32.xlu1 %v3779_v1  ;;  %v3776_v38 = vsel %vm791_vm15, %v11261_v15, 0.0 }
0x1fd7   :  { %3777 = vadd.xlane.f32.xlu0 %v3776_v38 }
0x1fda   :  { %3660 = vmax.xlane.f32.xlu1 %v3659_v31 }
0x1fdb   :  { %3657 = vmax.xlane.f32.xlu0 %v3656_v43 }
0x1fdf   :  { %3663 = vmax.xlane.f32.xlu0 %v3662_v58 }
0x205b   :  { %v3775_v42 = vpop.xlane.xlu1 %3774 }
0x205c   :  { %11262 = vrcp.f32 %v3775_v42 }
0x205f   :  { %v3781_v63 = vpop.xlane.xlu1 %3780 }
0x2060   :  { %v3778_v0 = vpop.xlane.xlu0 %3777  ;;  %11264 = vrcp.f32 %v3781_v63 }
0x2061   :  { %11266 = vrcp.f32 %v3778_v0 }
0x2063   :  { %v3661_v53 = vpop.xlane.xlu1 %3660 }
0x2064   :  { %v3658_v11 = vpop.xlane.xlu0 %3657  ;;  %v3666_v40 = vsub.f32 %v3645_v17, %v3661_v53 }
0x2065   :  { %v3665_v12 = vsub.f32 %v12668_v2, %v3658_v11 }
0x2066   :  { %v3670_v30 = vmul.f32 1.442695, %v3666_v40 }
0x2068   :  { %v3664_v57 = vpop.xlane.xlu0 %3663  ;;  %11268 = vpow2.f32 %v3670_v30 }
0x2069   :  { %v11263_v41 = vpop.eup %11262  ;;  %v3667_v32 = vsub.f32 %v12666_v45, %v3664_v57 }
0x206a   :  { %v3785_v56 = vmul.f32 %v11263_v41, %v11257_v20  ;;  %v3668_v20 = vmul.f32 1.442695, %v3665_v12 }
0x206c   :  { %11270 = vpow2.f32 %v3668_v20 }
0x206d   :  { %v11265_v39 = vpop.eup %11264 }
0x206e   :  { %v11267_v14 = vpop.eup %11266  ;;  %v3787_v37 = vmul.f32 %v11265_v39, %v11259_v9  ;;  %v3672_v9 = vmul.f32 1.442695, %v3667_v32 }
0x206f   :  { %v3786_v5 = vmul.f32 %v11267_v14, %v11261_v15 }
0x2070   :  { %v3789_v29 = vpack.c.bf16 %v3787_v37, %v3787_v37  ;;  %11272 = vpow2.f32 %v3672_v9 }
0x2071   :  { %v3788_v60 = vpack.c.bf16 %v3786_v5, %v3785_v56 }
0x2073   :  { %10394 = vmatprep.mubr.msk.bf16.mxu0 %vm791_vm15, %v3788_v60 }
0x2074   :  { %10395 = vmatmul.mubr.msk.bf16.vlgmr.msra.gmra.mxu0 %vm791_vm15, %v3789_v29 }
0x2075   :  { %10407 = vmatpush3.bf16.xpose.msra.mxu0 %v12592_v3  ;;  %10410 = vmatprep.mubr.msk.bf16.mxu0 %vm448_vm2, %v3907_v26  ;;  %v11269_v2 = vpop.eup %11268 }
0x2076   :  { %10929 = vmatprep.subr.msk.bf16.mxu0 %vm448_vm2, %v12598_v21  ;;  %v3677_v63 = vsel %vm791_vm15, %v11269_v2, 0.0 }
0x2079   :  { %v11271_v42 = vpop.eup %11270 }
0x207a   :  { %v3674_v45 = vsel %vm791_vm15, %v11271_v42, 0.0 }
0x207d   :  { %10409 = vmatpush3.bf16.xpose.msra.mxu0 %v12632_v22  ;;  %v11273_v0 = vpop.eup %11272 }
0x207e   :  { %10430 = vmatprep.subr.bf16.mxu0 %v4169_v36  ;;  %v3680_v41 = vsel %vm798_vm4, %v11273_v0, 0.0 }
0x2084   :  { %10411 = vmatmul.mubr.msk.bf16.vlgmr.msra.gmra.mxu0 %vm448_vm2, %v3908_v48 }
0x2085   :  { %10431 = vmatpush3.bf16.msra.mxu0 %v4169_v36 }
0x2086   :  { %10432 = vmatprep.subr.bf16.mxu0 %v12652_v33 }
0x2089   :  { %10433 = vmatpush3.bf16.msra.mxu0 %v12652_v33 }
0x2134   :  { %v12699_v26 = vpop.f32.mrf.mxu0 }
0x2136   :  { %v12701_v4 = vpop.f32.mrf.mxu0 }
0x2138   :  { %v10397_v59 = vpop.f32.mrf.mxu0 }
0x213a   :  { %v12705_v15 = vpop.f32.mrf.mxu0 }
0x2144   :  { %v10412_v33 = vpop.f32.mrf.mxu0 }
0x2145   :  { %v3974_v58 = vsel %vm798_vm4, %v10412_v33, -inf }
0x2146   :  { %v3954_v1 = vpop.f32.mrf.mxu0 }
0x2147   :  { %v3968_v17 = vsel %vm791_vm15, %v3954_v1, -inf }
0x2148   :  { %v10413_v38 = vpop.f32.mrf.mxu0  ;;  %3969 = vmax.xlane.f32.xlu1 %v3968_v17 }
0x214a   :  { %v3957_v31 = vpop.f32.mrf.mxu0 }
0x214b   :  { %v3971_v43 = vsel %vm791_vm15, %v3957_v31, -inf }
0x214c   :  { %3972 = vmax.xlane.f32.xlu0 %v3971_v43  ;;  %3975 = vmax.xlane.f32.xlu1 %v3974_v58 }
0x2150   :  { %3675 = vadd.xlane.f32.xlu0 %v3674_v45  ;;  %3678 = vadd.xlane.f32.xlu1 %v3677_v63 }
0x2154   :  { %3681 = vadd.xlane.f32.xlu0 %v3680_v41 }
0x21d1   :  { %v3970_v39 = vpop.xlane.xlu1 %3969 }
0x21d2   :  { %v3977_v14 = vsub.f32 %v3954_v1, %v3970_v39 }
0x21d4   :  { %v3980_v37 = vmul.f32 1.442695, %v3977_v14 }
0x21d5   :  { %v3973_v56 = vpop.xlane.xlu0 %3972  ;;  %v3976_v5 = vpop.xlane.xlu1 %3975 }
0x21d6   :  { %11274 = vpow2.f32 %v3980_v37  ;;  %v3978_v29 = vsub.f32 %v3957_v31, %v3973_v56  ;;  %v3979_v60 = vsub.f32 %v10412_v33, %v3976_v5 }
0x21d8   :  { %v3982_v28 = vmul.f32 1.442695, %v3978_v29  ;;  %v3984_v50 = vmul.f32 1.442695, %v3979_v60 }
0x21d9   :  { %v3676_v36 = vpop.xlane.xlu0 %3675  ;;  %v3679_v47 = vpop.xlane.xlu1 %3678 }
0x21da   :  { %11276 = vpow2.f32 %v3982_v28 }
0x21db   :  { %11278 = vpow2.f32 %v3984_v50 }
0x21dc   :  { %11280 = vrcp.f32 %v3676_v36 }
0x21dd   :  { %11282 = vrcp.f32 %v3679_v47  ;;  %v3682_v48 = vpop.xlane.xlu0 %3681 }
0x21de   :  { %11284 = vrcp.f32 %v3682_v48 }
0x21e3   :  { %v11275_v11 = vpop.eup %11274 }
0x21e4   :  { %v3986_v53 = vsel %vm791_vm15, %v11275_v11, 0.0 }
0x21e5   :  { %3987 = vadd.xlane.f32.xlu1 %v3986_v53 }
0x21e7   :  { %v11277_v40 = vpop.eup %11276 }
0x21e8   :  { %v11279_v12 = vpop.eup %11278  ;;  %v3989_v57 = vsel %vm791_vm15, %v11277_v40, 0.0 }
0x21e9   :  { %v11281_v59 = vpop.eup %11280  ;;  %3990 = vadd.xlane.f32.xlu0 %v3989_v57  ;;  %v3992_v30 = vsel %vm798_vm4, %v11279_v12, 0.0 }
0x21ea   :  { %v11283_v20 = vpop.eup %11282  ;;  %3993 = vadd.xlane.f32.xlu1 %v3992_v30  ;;  %v3686_v32 = vmul.f32 %v11281_v59, %v11271_v42 }
0x21eb   :  { %v11285_v9 = vpop.eup %11284  ;;  %v3687_v33 = vmul.f32 %v11283_v20, %v11269_v2 }
0x21ec   :  { %v3688_v1 = vmul.f32 %v11285_v9, %v11273_v0 }
0x21ed   :  { %v3689_v17 = vpack.c.bf16 %v3687_v33, %v3686_v32 }
0x21ee   :  { %v3690_v38 = vpack.c.bf16 %v3688_v1, %v3688_v1 }
0x21ef   :  { %10402 = vmatprep.mubr.msk.bf16.mxu1 %vm791_vm15, %v3689_v17 }
0x21f0   :  { %10403 = vmatmul.mubr.msk.bf16.vlgmr.msra.gmra.mxu1 %vm791_vm15, %v3690_v38 }
0x21f1   :  { %10415 = vmatpush3.bf16.msra.mxu1 %v12661_v62 }
0x21f2   :  { %10416 = vmatprep.subr.bf16.mxu1 %v12654_v25 }
0x21f5   :  { %10417 = vmatpush3.bf16.msra.mxu1 %v12654_v25 }
0x21f6   :  { %10930 = vmatprep.subr.msk.bf16.mxu1 %vm448_vm2, %v12581_v19  ;;  %v4065_v19 = vmul.f32 %v11773_v7, %v12623_v8 }
0x21f8   :  { %v4067_v25 = vpack.c.bf16 %v4065_v19, %v4065_v19  ;;  %v11011_v19 = vld [vmem:[%s14150_s3 + $0x170] sm:$0xff]  }
0x21f9   :  { %10438 = vmatprep.subr.bf16.mxu0 %v11011_v19 }
0x226e   :  { %v3988_v31 = vpop.xlane.xlu1 %3987 }
0x226f   :  { %11286 = vrcp.f32 %v3988_v31 }
0x2272   :  { %v3991_v43 = vpop.xlane.xlu0 %3990 }
0x2273   :  { %11288 = vrcp.f32 %v3991_v43  ;;  %v3994_v2 = vpop.xlane.xlu1 %3993 }
0x2274   :  { %11290 = vrcp.f32 %v3994_v2 }
0x227c   :  { %v11287_v58 = vpop.eup %11286 }
0x227d   :  { %v3998_v63 = vmul.f32 %v11287_v58, %v11275_v11 }
0x2280   :  { %v11289_v42 = vpop.eup %11288 }
0x2281   :  { %v11291_v45 = vpop.eup %11290  ;;  %v3999_v0 = vmul.f32 %v11289_v42, %v11277_v40 }
0x2282   :  { %v4000_v41 = vmul.f32 %v11291_v45, %v11279_v12 }
0x2283   :  { %v4001_v62 = vpack.c.bf16 %v3999_v0, %v3998_v63 }
0x2284   :  { %v4002_v39 = vpack.c.bf16 %v4000_v41, %v4000_v41 }
0x2285   :  { %10418 = vmatprep.mubr.msk.bf16.mxu1 %vm791_vm15, %v4001_v62 }
0x2286   :  { %10419 = vmatmul.mubr.msk.bf16.vlgmr.msra.gmra.mxu1 %vm791_vm15, %v4002_v39 }
0x2287   :  { %10423 = vmatpush3.bf16.xpose.msra.mxu1 %v12592_v3  ;;  %10426 = vmatprep.mubr.msk.bf16.mxu1 %vm448_vm2, %v4066_v23 }
0x2288   :  { %10931 = vmatprep.subr.msk.bf16.mxu1 %vm448_vm2, %v12598_v21 }
0x228f   :  { %10425 = vmatpush3.bf16.xpose.msra.mxu1 %v12632_v22 }
0x2296   :  { %10427 = vmatmul.mubr.msk.bf16.vlgmr.msra.gmra.mxu1 %vm448_vm2, %v4067_v25  ;;  %v11012_v25 = vld [vmem:[%s14150_s3 + $0x168] sm:$0xff]  }
0x22b0   :  { %v10404_v14 = vpop.f32.mrf.mxu1 }
0x22b1   :  { %v3899_v24 = vadd.f32 %v10404_v14, %v12699_v26 }
0x22b2   :  { %v3890_v37 = vpop.f32.mrf.mxu1 }
0x22b3   :  { %v3891_v23 = vadd.f32 %v3890_v37, %v12701_v4 }
0x22b4   :  { %v10405_v56 = vpop.f32.mrf.mxu1 }
0x22b6   :  { %v12736_v3 = vpop.f32.mrf.mxu1 }
0x22b7   :  { %v3894_v56 = vadd.f32 %v12736_v3, %v12705_v15  ;;  %v9376_v3 = vld [vmem:[%s14152_s2 + $0x6f] ss:$0 sm:$0xff] }
0x2346   :  { %v10420_v16 = vpop.f32.mrf.mxu1 }
0x2347   :  { %v12740_v5 = vadd.f32 %v10420_v16, %v3899_v24 }
0x2348   :  { %v4046_v21 = vpop.f32.mrf.mxu1 }
0x2349   :  { %v12742_v22 = vadd.f32 %v4046_v21, %v3891_v23 }
0x234a   :  { %v10421_v29 = vpop.f32.mrf.mxu1 }
0x234c   :  { %v4049_v8 = vpop.f32.mrf.mxu1 }
0x234d   :  { %v4061_v16 = vadd.f32 %v4049_v8, %v3894_v56 }
0x2356   :  { %v10428_v60 = vpop.f32.mrf.mxu1 }
0x2357   :  { %v4133_v48 = vsel %vm798_vm4, %v10428_v60, -inf }
0x2358   :  { %v4113_v28 = vpop.f32.mrf.mxu1 }
0x2359   :  { %v4127_v50 = vsel %vm791_vm15, %v4113_v28, -inf }
0x235a   :  { %4128 = vmax.xlane.f32.xlu0 %v4127_v50  ;;  %v10429_v36 = vpop.f32.mrf.mxu1 }
0x235c   :  { %v4116_v47 = vpop.f32.mrf.mxu1 }
0x235d   :  { %v4130_v26 = vsel %vm791_vm15, %v4116_v47, -inf }
0x235e   :  { %4134 = vmax.xlane.f32.xlu0 %v4133_v48  ;;  %4131 = vmax.xlane.f32.xlu1 %v4130_v26 }
0x23e3   :  { %v4129_v4 = vpop.xlane.xlu0 %4128 }
0x23e4   :  { %v4136_v11 = vsub.f32 %v4113_v28, %v4129_v4 }
0x23e6   :  { %v4139_v53 = vmul.f32 1.442695, %v4136_v11 }
0x23e7   :  { %v4135_v40 = vpop.xlane.xlu0 %4134  ;;  %v4132_v12 = vpop.xlane.xlu1 %4131 }
0x23e8   :  { %11292 = vpow2.f32 %v4139_v53  ;;  %v4138_v57 = vsub.f32 %v10428_v60, %v4135_v40  ;;  %v4137_v59 = vsub.f32 %v4116_v47, %v4132_v12 }
0x23ea   :  { %v4143_v30 = vmul.f32 1.442695, %v4138_v57  ;;  %v4141_v20 = vmul.f32 1.442695, %v4137_v59  ;;  %v9404_v59 = vld [vmem:[%s14149_s1 + $0x58] sm:$0xff] }
0x23ec   :  { %11294 = vpow2.f32 %v4143_v30  ;;  %v9403_v30 = vld [vmem:[%s14149_s1 + $0x50] sm:$0xff] }
0x23ed   :  { %11296 = vpow2.f32 %v4141_v20  ;;  %v4730_v20 = vsel %vm78_vm0, %v9404_v59, 0.0 }
0x23f5   :  { %v11293_v32 = vpop.eup %11292 }
0x23f6   :  { %v4145_v9 = vsel %vm791_vm15, %v11293_v32, 0.0 }
0x23f7   :  { %4146 = vadd.xlane.f32.xlu1 %v4145_v9  ;;  %v9406_v9 = vld [vmem:[%s14149_s1 + $0x68] sm:$0xff] }
0x23f9   :  { %v11295_v33 = vpop.eup %11294 }
0x23fa   :  { %v11297_v1 = vpop.eup %11296  ;;  %v4151_v17 = vsel %vm798_vm4, %v11295_v33, 0.0 }
0x23fb   :  { %4152 = vadd.xlane.f32.xlu1 %v4151_v17  ;;  %v4148_v38 = vsel %vm791_vm15, %v11297_v1, 0.0 }
0x23fc   :  { %4149 = vadd.xlane.f32.xlu0 %v4148_v38  ;;  %v9408_v38 = vld [vmem:[%s14149_s1 + $0x78] sm:$0xff] }
0x2480   :  { %v4147_v31 = vpop.xlane.xlu1 %4146 }
0x2481   :  { %11298 = vrcp.f32 %v4147_v31  ;;  %v9407_v31 = vld [vmem:[%s14149_s1 + $0x70] sm:$0xff] }
0x2484   :  { %v4153_v43 = vpop.xlane.xlu1 %4152 }
0x2485   :  { %v4150_v2 = vpop.xlane.xlu0 %4149  ;;  %11300 = vrcp.f32 %v4153_v43  ;;  %v4742_v43 = vsel %vm78_vm0, %v9408_v38, 0.0 }
0x2486   :  { %11302 = vrcp.f32 %v4150_v2  ;;  %v4739_v2 = vsel %vm78_vm0, %v9407_v31, 0.0 }
0x248e   :  { %v11299_v58 = vpop.eup %11298 }
0x248f   :  { %v4157_v0 = vmul.f32 %v11299_v58, %v11293_v32  ;;  %v4727_v32 = vsel %vm78_vm0, %v9403_v30, 0.0 }
0x2492   :  { %v11301_v42 = vpop.eup %11300 }
0x2493   :  { %v11303_v45 = vpop.eup %11302  ;;  %v4159_v63 = vmul.f32 %v11301_v42, %v11295_v33  ;;  %v9405_v33 = vld [vmem:[%s14149_s1 + $0x60] sm:$0xff] }
0x2494   :  { %v4158_v41 = vmul.f32 %v11303_v45, %v11297_v1  ;;  %v4736_v1 = vsel %vm78_vm0, %v9406_v9, 0.0  ;;  %v4733_v17 = vsel %vm78_vm0, %v9405_v33, 0.0 }
0x2495   :  { %v4161_v62 = vpack.c.bf16 %v4159_v63, %v4159_v63 }
0x2496   :  { %v4160_v39 = vpack.c.bf16 %v4158_v41, %v4157_v0 }
0x2498   :  { %10434 = vmatprep.mubr.msk.bf16.mxu0 %vm791_vm15, %v4160_v39 }
0x2499   :  { %10435 = vmatmul.mubr.msk.bf16.vlgmr.msra.gmra.mxu0 %vm791_vm15, %v4161_v62 }
0x249a   :  { %10439 = vmatpush3.bf16.msra.mxu0 %v11011_v19 }
0x249b   :  { %10440 = vmatprep.subr.bf16.mxu0 %v11012_v25 }
0x249e   :  { %10441 = vmatpush3.bf16.msra.mxu0 %v11012_v25 }
0x2559   :  { %v10436_v14 = vpop.f32.mrf.mxu0 }
0x255a   :  { %v4221_v23 = vadd.f32 %v10436_v14, %v12740_v5 }
0x255b   :  { %v4205_v37 = vpop.f32.mrf.mxu0 }
0x255c   :  { %v4219_v29 = vadd.f32 %v4205_v37, %v12742_v22  ;;  %v4227_v50 = vpack.c.bf16 %v4221_v23, %v4221_v23 }
0x255d   :  { %v10437_v24 = vpop.f32.mrf.mxu0 }
0x255f   :  { %v4208_v21 = vpop.f32.mrf.mxu0 }
0x2560   :  { %v4220_v60 = vadd.f32 %v4208_v21, %v4061_v16 }
0x2562   :  { %v4226_v28 = vpack.c.bf16 %v4220_v60, %v4219_v29 }
0x2564   :  { %10442 = vmatprep.mubr.msk.bf16.mxu0 %vm448_vm2, %v4226_v28 }
0x2565   :  { %10443 = vmatmul.mubr.msk.bf16.vlgmr.msra.gmra.mxu0 %vm448_vm2, %v4227_v50 }
0x2625   :  { %v10444_v36 = vpop.f32.mrf.mxu0 }
0x2626   :  { %v4296_v48 = vadd.f32 %v10444_v36, %v12523_v10  ;;  %v9401_v10 = vld [vmem:[%s14149_s1 + $0x40] sm:$0xff] }
0x2627   :  { %v4280_v47 = vpop.f32.mrf.mxu0  ;;  %v4721_v57 = vsel %vm78_vm0, %v9401_v10, 0.0 }
0x2628   :  { %v4294_v15 = vadd.f32 %v4280_v47, %v12517_v27  ;;  %v12771_v26 = vadd.f32 %v9376_v3, %v4296_v48  ;;  %v9402_v27 = vld [vmem:[%s14149_s1 + $0x48] sm:$0xff] }
0x2629   :  { %v10445_v5 = vpop.f32.mrf.mxu0  ;;  %v4724_v12 = vsel %vm78_vm0, %v9402_v27, 0.0 }
0x262a   :  { %v12769_v8 = vadd.f32 %v9376_v3, %v4294_v15  ;;  %v4313_v40 = vsel %vm455_vm3, %v12771_v26, 0.0 }
0x262b   :  { %v4283_v22 = vpop.f32.mrf.mxu0 }
0x262c   :  { %v4295_v4 = vadd.f32 %v4283_v22, %v12533_v49  ;;  %v4307_v11 = vsel %vm448_vm2, %v12769_v8, 0.0 }
0x262d   :  { %4308 = vadd.xlane.f32.xlu0 %v4307_v11 }
0x262e   :  { %v12776_v53 = vadd.f32 %v9376_v3, %v4295_v4 }
0x2630   :  { %v4310_v49 = vsel %vm448_vm2, %v12776_v53, 0.0 }
0x2631   :  { %4314 = vadd.xlane.f32.xlu0 %v4313_v40  ;;  %4311 = vadd.xlane.f32.xlu1 %v4310_v49 }
0x2635   :  { %4725 = vadd.xlane.f32.xlu0 %v4724_v12  ;;  %4722 = vadd.xlane.f32.xlu1 %v4721_v57 }
0x2639   :  { %4731 = vadd.xlane.f32.xlu0 %v4730_v20  ;;  %4728 = vadd.xlane.f32.xlu1 %v4727_v32 }
0x263d   :  { %4737 = vadd.xlane.f32.xlu0 %v4736_v1  ;;  %4734 = vadd.xlane.f32.xlu1 %v4733_v17 }
0x2641   :  { %4743 = vadd.xlane.f32.xlu0 %v4742_v43  ;;  %4740 = vadd.xlane.f32.xlu1 %v4739_v2 }
0x26b6   :  { %v4309_v58 = vpop.xlane.xlu0 %4308 }
0x26b7   :  { %v4316_v42 = vmul.f32 0.03125, %v4309_v58 }
0x26b9   :  { %v12815_v45 = vsub.f32 %v12769_v8, %v4316_v42 }
0x26ba   :  { %v4315_v63 = vpop.xlane.xlu0 %4314  ;;  %v4312_v0 = vpop.xlane.xlu1 %4311 }
0x26bb   :  { %v4318_v41 = vmul.f32 0.03125, %v4315_v63  ;;  %v4317_v62 = vmul.f32 0.03125, %v4312_v0  ;;  %v4322_v39 = vmul.f32 %v12815_v45, %v12815_v45 }
0x26bd   :  { %v12820_v19 = vsub.f32 %v12771_v26, %v4318_v41  ;;  %v12823_v25 = vsub.f32 %v12776_v53, %v4317_v62  ;;  %v4325_v14 = vsel %vm448_vm2, %v4322_v39, 0.0 }
0x26be   :  { %v4726_v37 = vpop.xlane.xlu0 %4725  ;;  %4326 = vadd.xlane.f32.xlu1 %v4325_v14  ;;  %v4723_v56 = vpop.xlane.xlu1 %4722 }
0x26bf   :  { %v4746_v24 = vmul.f32 0.020833334, %v4726_v37  ;;  %v4745_v16 = vmul.f32 0.020833334, %v4723_v56  ;;  %v4324_v23 = vmul.f32 %v12820_v19, %v12820_v19  ;;  %v4323_v21 = vmul.f32 %v12823_v25, %v12823_v25  ;;  %v12881_v56 = vld [vmem:[%s14150_s3 + $0x10] sm:$0xff]  }
0x26c1   :  { %v12830_v29 = vsub.f32 %v9402_v27, %v4746_v24  ;;  %v12832_v60 = vsub.f32 %v9401_v10, %v4745_v16  ;;  %v4331_v28 = vsel %vm455_vm3, %v4324_v23, 0.0  ;;  %v4328_v50 = vsel %vm448_vm2, %v4323_v21, 0.0 }
0x26c2   :  { %v4732_v36 = vpop.xlane.xlu0 %4731  ;;  %4332 = vadd.xlane.f32.xlu1 %v4331_v28  ;;  %4329 = vadd.xlane.f32.xlu0 %v4328_v50  ;;  %v4729_v47 = vpop.xlane.xlu1 %4728 }
0x26c3   :  { %v4748_v48 = vmul.f32 0.020833334, %v4732_v36  ;;  %v4747_v15 = vmul.f32 0.020833334, %v4729_v47  ;;  %v4762_v3 = vmul.f32 %v12830_v29, %v12830_v29  ;;  %v4761_v5 = vmul.f32 %v12832_v60, %v12832_v60 }
0x26c5   :  { %v12840_v22 = vsub.f32 %v9404_v59, %v4748_v48  ;;  %v12842_v4 = vsub.f32 %v9403_v30, %v4747_v15  ;;  %v4772_v11 = vsel %vm78_vm0, %v4762_v3, 0.0  ;;  %v4769_v27 = vsel %vm78_vm0, %v4761_v5, 0.0 }
0x26c6   :  { %v4738_v10 = vpop.xlane.xlu0 %4737  ;;  %4773 = vadd.xlane.f32.xlu1 %v4772_v11  ;;  %4770 = vadd.xlane.f32.xlu0 %v4769_v27  ;;  %v4735_v40 = vpop.xlane.xlu1 %4734 }
0x26c7   :  { %v4750_v49 = vmul.f32 0.020833334, %v4738_v10  ;;  %v4749_v12 = vmul.f32 0.020833334, %v4735_v40  ;;  %v4764_v57 = vmul.f32 %v12840_v22, %v12840_v22  ;;  %v4763_v20 = vmul.f32 %v12842_v4, %v12842_v4 }
0x26c9   :  { %v12850_v59 = vsub.f32 %v9406_v9, %v4750_v49  ;;  %v12852_v30 = vsub.f32 %v9405_v33, %v4749_v12  ;;  %v4778_v32 = vsel %vm78_vm0, %v4764_v57, 0.0  ;;  %v4775_v1 = vsel %vm78_vm0, %v4763_v20, 0.0 }
0x26ca   :  { %v4744_v17 = vpop.xlane.xlu0 %4743  ;;  %4779 = vadd.xlane.f32.xlu1 %v4778_v32  ;;  %4776 = vadd.xlane.f32.xlu0 %v4775_v1  ;;  %v4741_v43 = vpop.xlane.xlu1 %4740 }
0x26cb   :  { %v4752_v2 = vmul.f32 0.020833334, %v4744_v17  ;;  %v4751_v58 = vmul.f32 0.020833334, %v4741_v43  ;;  %v4766_v42 = vmul.f32 %v12850_v59, %v12850_v59  ;;  %v4765_v63 = vmul.f32 %v12852_v30, %v12852_v30 }
0x26cd   :  { %v12860_v9 = vsub.f32 %v9408_v38, %v4752_v2  ;;  %v12862_v33 = vsub.f32 %v9407_v31, %v4751_v58  ;;  %v4784_v0 = vsel %vm78_vm0, %v4766_v42, 0.0  ;;  %v4781_v41 = vsel %vm78_vm0, %v4765_v63, 0.0  ;;  %v11013_v38 = vld [vmem:[%s14150_s3 + $0x180] sm:$0xff]   ;;  %v11014_v31 = vld [vmem:[%s14150_s3 + $0x178] sm:$0xff]   ;;  %v9377_v42 = vld [vmem:[%s14152_s2 + $0x6a] ss:$0 sm:$0xff] }
0x26ce   :  { %4785 = vadd.xlane.f32.xlu1 %v4784_v0  ;;  %4782 = vadd.xlane.f32.xlu0 %v4781_v41 }
0x26cf   :  { %v4768_v62 = vmul.f32 %v12860_v9, %v12860_v9  ;;  %v4767_v39 = vmul.f32 %v12862_v33, %v12862_v33  ;;  %10446 = vmatprep.subr.bf16.mxu1 %v11013_v38 }
0x26d0   :  { %10447 = vmatpush3.bf16.msra.mxu1 %v11013_v38 }
0x26d1   :  { %v4790_v14 = vsel %vm78_vm0, %v4768_v62, 0.0  ;;  %v4787_v37 = vsel %vm78_vm0, %v4767_v39, 0.0  ;;  %10448 = vmatprep.subr.bf16.mxu1 %v11014_v31 }
0x26d2   :  { %4791 = vadd.xlane.f32.xlu1 %v4790_v14  ;;  %4788 = vadd.xlane.f32.xlu0 %v4787_v37 }
0x26d4   :  { %10449 = vmatpush3.bf16.msra.mxu1 %v11014_v31 }
0x26d5   :  { %10474 = vmatprep.subr.bf16.mxu1 %v12881_v56 }
0x2747   :  { %v4327_v24 = vpop.xlane.xlu1 %4326 }
0x2748   :  { %v4334_v16 = vmul.f32 0.03125, %v4327_v24 }
0x274a   :  { %v4337_v23 = vadd.f32 1e-06, %v4334_v16 }
0x274b   :  { %v4330_v21 = vpop.xlane.xlu0 %4329  ;;  %v4333_v28 = vpop.xlane.xlu1 %4332 }
0x274c   :  { %11304 = vrsqrt.f32 %v4337_v23  ;;  %v4335_v50 = vmul.f32 0.03125, %v4330_v21  ;;  %v4336_v36 = vmul.f32 0.03125, %v4333_v28 }
0x274e   :  { %v4338_v47 = vadd.f32 1e-06, %v4335_v50  ;;  %v4339_v48 = vadd.f32 1e-06, %v4336_v36  ;;  %v9393_v50 = vld [vmem:[%s14151_s0 + $0x18] sm:$0xff] }
0x274f   :  { %v4771_v15 = vpop.xlane.xlu0 %4770  ;;  %v4774_v3 = vpop.xlane.xlu1 %4773 }
0x2750   :  { %11306 = vrsqrt.f32 %v4338_v47  ;;  %v4793_v5 = vmul.f32 0.020833334, %v4771_v15  ;;  %v4794_v11 = vmul.f32 0.020833334, %v4774_v3 }
0x2751   :  { %11308 = vrsqrt.f32 %v4339_v48 }
0x2752   :  { %v4801_v27 = vadd.f32 1e-06, %v4793_v5  ;;  %v4802_v10 = vadd.f32 1e-06, %v4794_v11 }
0x2753   :  { %v4777_v40 = vpop.xlane.xlu0 %4776  ;;  %v4780_v49 = vpop.xlane.xlu1 %4779 }
0x2754   :  { %11310 = vrsqrt.f32 %v4801_v27  ;;  %v4795_v12 = vmul.f32 0.020833334, %v4777_v40  ;;  %v4796_v32 = vmul.f32 0.020833334, %v4780_v49  ;;  %v11016_v40 = vld [vmem:[%s14150_s3 + $0x8] sm:$0xff]  }
0x2755   :  { %11312 = vrsqrt.f32 %v4802_v10 }
0x2756   :  { %v4803_v58 = vadd.f32 1e-06, %v4795_v12  ;;  %v4804_v63 = vadd.f32 1e-06, %v4796_v32 }
0x2757   :  { %v4783_v57 = vpop.xlane.xlu0 %4782  ;;  %v4786_v20 = vpop.xlane.xlu1 %4785 }
0x2758   :  { %v4797_v17 = vmul.f32 0.020833334, %v4783_v57  ;;  %v4798_v43 = vmul.f32 0.020833334, %v4786_v20  ;;  %11314 = vrsqrt.f32 %v4803_v58  ;;  %v9409_v57 = vld [vmem:[%s14152_s2 + $0x78] ss:$0 sm:$0xff] }
0x2759   :  { %v11305_v1 = vpop.eup %11304  ;;  %11316 = vrsqrt.f32 %v4804_v63  ;;  %v11017_v20 = vld [vmem:[%s14150_s3] sm:$0xff]  }
0x275a   :  { %v4343_v2 = vmul.f32 %v11305_v1, %v12815_v45  ;;  %v4805_v41 = vadd.f32 1e-06, %v4797_v17  ;;  %v4806_v14 = vadd.f32 1e-06, %v4798_v43  ;;  %v9378_v45 = vld [vmem:[%s14152_s2 + $0x6b] ss:$0 sm:$0xff] }
0x275b   :  { %v4789_v62 = vpop.xlane.xlu0 %4788  ;;  %v4792_v37 = vpop.xlane.xlu1 %4791  ;;  %v11018_v43 = vld [vmem:[%s14150_s3 + $0x1d8] sm:$0xff]  }
0x275c   :  { %v4350_v31 = vmul.f32 %v9377_v42, %v4343_v2  ;;  %v4799_v16 = vmul.f32 0.020833334, %v4789_v62  ;;  %11318 = vrsqrt.f32 %v4805_v41  ;;  %v4800_v21 = vmul.f32 0.020833334, %v4792_v37 }
0x275d   :  { %v11307_v0 = vpop.eup %11306  ;;  %11320 = vrsqrt.f32 %v4806_v14 }
0x275e   :  { %v11309_v39 = vpop.eup %11308  ;;  %v4344_v38 = vmul.f32 %v11307_v0, %v12823_v25  ;;  %v9394_v25 = vld [vmem:[%s14151_s0 + $0x20] sm:$0xff]  ;;  %v4357_v47 = vadd.f32 %v9378_v45, %v4350_v31  ;;  %v4807_v3 = vadd.f32 1e-06, %v4799_v16  ;;  %v4808_v27 = vadd.f32 1e-06, %v4800_v21 }
0x275f   :  { %v4345_v24 = vmul.f32 %v11309_v39, %v12820_v19  ;;  %v4636_v11 = vpack.c.bf16 %v9394_v25, %v9393_v50  ;;  %v11019_v39 = vld [vmem:[%s14150_s3 + $0x1d0] sm:$0xff]  }
0x2760   :  { %v4351_v23 = vmul.f32 %v9377_v42, %v4344_v38  ;;  %11322 = vrsqrt.f32 %v4807_v3 }
0x2761   :  { %v4352_v28 = vmul.f32 %v9377_v42, %v4345_v24  ;;  %v11311_v36 = vpop.eup %11310  ;;  %11324 = vrsqrt.f32 %v4808_v27  ;;  %v11024_v27 = vld [vmem:[%s14150_s3 + $0x1a8] sm:$0xff]  }
0x2762   :  { %v4358_v48 = vadd.f32 %v9378_v45, %v4351_v23  ;;  %v11313_v15 = vpop.eup %11312  ;;  %v4817_v49 = vmul.f32 %v11311_v36, %v12832_v60 }
0x2763   :  { %v4359_v19 = vadd.f32 %v9378_v45, %v4352_v28  ;;  %v4818_v12 = vmul.f32 %v11313_v15, %v12830_v29  ;;  %v9410_v29 = vld [vmem:[%s14152_s2 + $0x79] ss:$0 sm:$0xff] }
0x2764   :  { %v4364_v5 = vpack.c.bf16 %v4358_v48, %v4357_v47  ;;  %v4829_v60 = vmul.f32 %v9409_v57, %v4817_v49  ;;  %v11027_v49 = vld [vmem:[%s14150_s3 + $0x190] sm:$0xff]  }
0x2765   :  { %v4365_v10 = vpack.c.bf16 %v4359_v19, %v4359_v19  ;;  %v4830_v32 = vmul.f32 %v9409_v57, %v4818_v12  ;;  %v11315_v1 = vpop.eup %11314  ;;  %v11028_v12 = vld [vmem:[%s14150_s3 + $0x188] sm:$0xff]  }
0x2766   :  { %10450 = vmatprep.mubr.msk.bf16.mxu1 %vm448_vm2, %v4364_v5  ;;  %v11317_v17 = vpop.eup %11316  ;;  %v4841_v58 = vadd.f32 %v9410_v29, %v4829_v60  ;;  %v4819_v41 = vmul.f32 %v11315_v1, %v12842_v4 }
0x2767   :  { %10451 = vmatmul.mubr.msk.bf16.vlgmr.msra.gmra.mxu1 %vm448_vm2, %v4365_v10  ;;  %v4842_v42 = vadd.f32 %v9410_v29, %v4830_v32  ;;  %v4820_v62 = vmul.f32 %v11317_v17, %v12840_v22  ;;  %v11020_v22 = vld [vmem:[%s14150_s3 + $0x1c8] sm:$0xff]   ;;  %v11025_v10 = vld [vmem:[%s14150_s3 + $0x1a0] sm:$0xff]  }
0x2768   :  { %10475 = vmatpush3.bf16.msra.mxu1 %v12881_v56  ;;  %10480 = vmatprep.mubr.msk.bf16.mxu1 %vm78_vm0, %v4636_v11  ;;  %v9395_v56 = vld [vmem:[%s14151_s0 + $0x28] sm:$0x1]  ;;  %v4831_v4 = vmul.f32 %v9409_v57, %v4819_v41  ;;  %v11023_v11 = vld [vmem:[%s14150_s3 + $0x1b0] sm:$0xff]  }
0x2769   :  { %10476 = vmatprep.subr.bf16.mxu1 %v11016_v40  ;;  %v11319_v2 = vpop.eup %11318  ;;  %v4637_v0 = vpack.c.bf16 %v9395_v56, %v9395_v56  ;;  %v4855_v14 = vpack.c.bf16 %v4842_v42, %v4841_v58  ;;  %v4832_v45 = vmul.f32 %v9409_v57, %v4820_v62 }
0x276a   :  { %v11321_v63 = vpop.eup %11320  ;;  %v4821_v37 = vmul.f32 %v11319_v2, %v12852_v30  ;;  %v4843_v30 = vadd.f32 %v9410_v29, %v4831_v4 }
0x276b   :  { %v4822_v38 = vmul.f32 %v11321_v63, %v12850_v59  ;;  %v4844_v59 = vadd.f32 %v9410_v29, %v4832_v45 }
0x276c   :  { %10477 = vmatpush3.bf16.msra.mxu1 %v11016_v40  ;;  %v4833_v16 = vmul.f32 %v9409_v57, %v4821_v37  ;;  %v11026_v40 = vld [vmem:[%s14150_s3 + $0x198] sm:$0xff]  }
0x276d   :  { %10478 = vmatprep.subr.bf16.mxu1 %v11017_v20  ;;  %v11323_v31 = vpop.eup %11322  ;;  %v4834_v23 = vmul.f32 %v9409_v57, %v4822_v38  ;;  %v4856_v36 = vpack.c.bf16 %v4844_v59, %v4843_v30 }
0x276e   :  { %v11325_v24 = vpop.eup %11324  ;;  %v4823_v21 = vmul.f32 %v11323_v31, %v12862_v33  ;;  %v4845_v50 = vadd.f32 %v9410_v29, %v4833_v16  ;;  %v11022_v33 = vld [vmem:[%s14150_s3 + $0x1b8] sm:$0xff]  }
0x276f   :  { %v4824_v28 = vmul.f32 %v11325_v24, %v12860_v9  ;;  %v4846_v25 = vadd.f32 %v9410_v29, %v4834_v23  ;;  %v11021_v9 = vld [vmem:[%s14150_s3 + $0x1c0] sm:$0xff]  }
0x2770   :  { %10479 = vmatpush3.bf16.msra.mxu1 %v11017_v20  ;;  %v4835_v47 = vmul.f32 %v9409_v57, %v4823_v21  ;;  %10454 = vmatprep.subr.bf16.mxu0 %v11021_v9 }
0x2771   :  { %10484 = vmatprep.subr.bf16.mxu1 %v11018_v43  ;;  %v4836_v48 = vmul.f32 %v9409_v57, %v4824_v28  ;;  %v4857_v15 = vpack.c.bf16 %v4846_v25, %v4845_v50  ;;  %10455 = vmatpush3.bf16.msra.mxu0 %v11021_v9  ;;  %v9379_v57 = vld [vmem:[%s14152_s2 + $0x70] ss:$0 sm:$0xff] }
0x2772   :  { %v4847_v19 = vadd.f32 %v9410_v29, %v4835_v47  ;;  %10456 = vmatprep.subr.bf16.mxu0 %v11022_v33 }
0x2773   :  { %10481 = vmatmul.mubr.msk.bf16.vlgmr.msra.gmra.mxu1 %vm78_vm0, %v4637_v0  ;;  %v4848_v3 = vadd.f32 %v9410_v29, %v4836_v48 }
0x2774   :  { %10485 = vmatpush3.bf16.msra.mxu1 %v11018_v43  ;;  %10490 = vmatprep.mubr.msk.bf16.mxu1 %vm78_vm0, %v4855_v14 }
0x2775   :  { %10486 = vmatprep.subr.bf16.mxu1 %v11019_v39  ;;  %v4858_v5 = vpack.c.bf16 %v4848_v3, %v4847_v19  ;;  %10457 = vmatpush3.bf16.msra.mxu0 %v11022_v33 }
0x2776   :  { %10458 = vmatprep.subr.bf16.mxu0 %v11023_v11 }
0x2778   :  { %10487 = vmatpush3.bf16.msra.mxu1 %v11019_v39 }
0x2779   :  { %10488 = vmatprep.subr.bf16.mxu1 %v11020_v22  ;;  %10459 = vmatpush3.bf16.msra.mxu0 %v11023_v11 }
0x277a   :  { %10460 = vmatprep.subr.bf16.mxu0 %v11024_v27 }
0x277c   :  { %10489 = vmatpush3.bf16.msra.mxu1 %v11020_v22 }
0x277d   :  { %10461 = vmatpush3.bf16.msra.mxu0 %v11024_v27 }
0x277e   :  { %10462 = vmatprep.subr.bf16.mxu0 %v11025_v10 }
0x277f   :  { %10491 = vmatmul.mubr.msk.bf16.vlgmr.msra.gmra.mxu1 %vm78_vm0, %v4856_v36 }
0x2780   :  { %10494 = vmatprep.mubr.msk.bf16.mxu1 %vm78_vm0, %v4857_v15 }
0x2781   :  { %10463 = vmatpush3.bf16.msra.mxu0 %v11025_v10 }
0x2782   :  { %10464 = vmatprep.subr.bf16.mxu0 %v11026_v40 }
0x2785   :  { %10465 = vmatpush3.bf16.msra.mxu0 %v11026_v40  ;;  %v9411_v40 = vld [vmem:[%s14152_s2 + $0x7a] ss:$0 sm:$0xff] }
0x2786   :  { %10466 = vmatprep.subr.bf16.mxu0 %v11027_v49 }
0x2787   :  { %10495 = vmatmul.mubr.msk.bf16.gmra.mxu1 %vm78_vm0, %v4858_v5 }
0x2788   :  { %10506 = vmatprep.mubr.msk.bf16.mxu1 %vm388_vm1, %v11712_v6 }
0x2789   :  { %10467 = vmatpush3.bf16.msra.mxu0 %v11027_v49 }
0x278a   :  { %10468 = vmatprep.subr.bf16.mxu0 %v11028_v12 }
0x278d   :  { %10469 = vmatpush3.bf16.msra.mxu0 %v11028_v12 }
0x2827   :  { %v10452_v20 = vpop.f32.mrf.mxu1 }
0x2828   :  { %v4432_v60 = vadd.f32 %v10452_v20, %v9379_v57 }
0x2829   :  { %v4423_v32 = vpop.f32.mrf.mxu1 }
0x282a   :  { %v4442_v29 = vmul.f32 %v4432_v60, %v4432_v60  ;;  %v4424_v1 = vadd.f32 %v9379_v57, %v4423_v32  ;;  %v4439_v15 = vmul.f32 0.5, %v4432_v60 }
0x282b   :  { %v10453_v56 = vpop.f32.mrf.mxu1 }
0x282c   :  { %v4445_v17 = vmul.f32 %v4442_v29, %v4432_v60  ;;  %v4440_v43 = vmul.f32 %v4424_v1, %v4424_v1  ;;  %v4437_v3 = vmul.f32 0.5, %v4424_v1 }
0x282d   :  { %v4426_v2 = vpop.f32.mrf.mxu1 }
0x282e   :  { %v4448_v58 = vmul.f32 0.044715, %v4445_v17  ;;  %v4443_v42 = vmul.f32 %v4440_v43, %v4424_v1  ;;  %v4427_v63 = vadd.f32 %v9379_v57, %v4426_v2 }
0x2830   :  { %v4451_v0 = vadd.f32 %v4448_v58, %v4432_v60  ;;  %v4446_v41 = vmul.f32 0.044715, %v4443_v42  ;;  %v4441_v62 = vmul.f32 %v4427_v63, %v4427_v63  ;;  %v4438_v5 = vmul.f32 0.5, %v4427_v63 }
0x2832   :  { %v4454_v39 = vmul.f32 0.7978846, %v4451_v0  ;;  %v4449_v14 = vadd.f32 %v4446_v41, %v4424_v1  ;;  %v4444_v37 = vmul.f32 %v4441_v62, %v4427_v63 }
0x2833   :  { %v12969_v38 = vpop.f32.mrf.mxu1 }
0x2834   :  { %v4452_v31 = vmul.f32 0.7978846, %v4449_v14  ;;  %v4447_v22 = vmul.f32 0.044715, %v4444_v37  ;;  %11326 = vtanh.f32 %v4454_v39  ;;  %v11549_v37 = vld [vmem:[%s14152_s2] sm:$0xff] }
0x2835   :  { %v4696_v4 = vpop.f32.mrf.mxu1 }
0x2836   :  { %11328 = vtanh.f32 %v4452_v31  ;;  %v4450_v45 = vadd.f32 %v4447_v22, %v4427_v63  ;;  %v4697_v31 = vadd.f32 %v11549_v37, %v4696_v4  ;;  %v9421_v37 = vld [vmem:[%s14152_s2 + $0x48] ss:$0 sm:$0xff] }
0x2837   :  { %v10483_v24 = vpop.f32.mrf.mxu1 }
0x2838   :  { %v4453_v16 = vmul.f32 0.7978846, %v4450_v45  ;;  %v11550_v45 = vld [vmem:[%s14152_s2 + $0x10] sm:$0x1] }
0x2839   :  { %v4699_v23 = vpop.f32.mrf.mxu1  ;;  %v4705_v24 = vadd.f32 %v11550_v45, %v12969_v38 }
0x283a   :  { %11330 = vtanh.f32 %v4453_v16 }
0x283f   :  { %v10492_v30 = vpop.f32.mrf.mxu1 }
0x2840   :  { %v4937_v2 = vadd.f32 %v10492_v30, %v9411_v40 }
0x2841   :  { %v4928_v59 = vpop.f32.mrf.mxu1  ;;  %v11327_v21 = vpop.eup %11326 }
0x2842   :  { %v4460_v36 = vadd.f32 1.0, %v11327_v21  ;;  %v4929_v63 = vadd.f32 %v9411_v40, %v4928_v59  ;;  %v11551_v59 = vld [vmem:[%s14152_s2 + $0x8] sm:$0xff] }
0x2843   :  { %v11329_v28 = vpop.eup %11328  ;;  %v10493_v50 = vpop.f32.mrf.mxu1  ;;  %v4700_v21 = vadd.f32 %v11551_v59, %v4699_v23 }
0x2844   :  { %v4458_v47 = vadd.f32 1.0, %v11329_v28  ;;  %v4463_v11 = vmul.f32 %v4460_v36, %v4439_v15  ;;  %v4940_v1 = vadd.f32 %v10493_v50, %v9411_v40 }
0x2845   :  { %v4931_v25 = vpop.f32.mrf.mxu1 }
0x2846   :  { %v4461_v27 = vmul.f32 %v4458_v47, %v4437_v3  ;;  %v4481_v29 = vpack.c.bf16 %v4463_v11, %v4463_v11  ;;  %v4960_v58 = vpack.c.bf16 %v4940_v1, %v4937_v2  ;;  %v4932_v42 = vadd.f32 %v9411_v40, %v4931_v25 }
0x2847   :  { %v11331_v48 = vpop.eup %11330  ;;  %v10496_v19 = vpop.f32.mrf.mxu1 }
0x2848   :  { %v4459_v9 = vadd.f32 1.0, %v11331_v48  ;;  %v4953_v12 = vadd.f32 %v10496_v19, %v9411_v40  ;;  %v4959_v0 = vpack.c.bf16 %v4932_v42, %v4929_v63 }
0x2849   :  { %v4944_v33 = vpop.f32.mrf.mxu1 }
0x284a   :  { %v4462_v10 = vmul.f32 %v4459_v9, %v4438_v5  ;;  %v4945_v56 = vadd.f32 %v9411_v40, %v4944_v33 }
0x284b   :  { %v10497_v49 = vpop.f32.mrf.mxu1 }
0x284c   :  { %v4956_v57 = vadd.f32 %v10497_v49, %v9411_v40  ;;  %v4480_v20 = vpack.c.bf16 %v4462_v10, %v4461_v27 }
0x284d   :  { %v4947_v32 = vpop.f32.mrf.mxu1 }
0x284e   :  { %v4962_v60 = vpack.c.bf16 %v4956_v57, %v4953_v12  ;;  %v4948_v17 = vadd.f32 %v9411_v40, %v4947_v32  ;;  %10470 = vmatprep.mubr.bf16.mxu0 %v4480_v20  ;;  %v11029_v57 = vld [vmem:[%s14150_s3 + $0x20] sm:$0xff]   ;;  %v11031_v32 = vld [vmem:[%s14150_s3 + $0x18] sm:$0xff]  }
0x284f   :  { %10471 = vmatmul.mubr.bf16.vlgmr.msra.gmra.mxu0 %v4481_v29  ;;  %v11030_v20 = vld [vmem:[%s14150_s3 + $0x40] sm:$0xff]   ;;  %v11032_v29 = vld [vmem:[%s14150_s3 + $0x38] sm:$0xff]   ;;  %10510 = vmatprep.subr.bf16.mxu0 %v11029_v57 }
0x2850   :  { %v4961_v43 = vpack.c.bf16 %v4948_v17, %v4945_v56  ;;  %10498 = vmatprep.subr.bf16.mxu1 %v4962_v60  ;;  %10511 = vmatpush3.bf16.msra.mxu0 %v11029_v57  ;;  %v11033_v56 = vld [vmem:[%s14150_s3 + $0x30] sm:$0xff]  }
0x2851   :  { %10499 = vmatpush3.bf16.msra.mxu1 %v4962_v60  ;;  %10512 = vmatprep.subr.bf16.mxu0 %v11031_v32 }
0x2852   :  { %10500 = vmatprep.subr.bf16.mxu1 %v4961_v43 }
0x2854   :  { %10513 = vmatpush3.bf16.msra.mxu0 %v11031_v32 }
0x2855   :  { %10501 = vmatpush3.bf16.msra.mxu1 %v4961_v43  ;;  %10518 = vmatprep.subr.bf16.mxu0 %v11033_v56 }
0x2856   :  { %10502 = vmatprep.subr.bf16.mxu1 %v4960_v58 }
0x2859   :  { %10503 = vmatpush3.bf16.msra.mxu1 %v4960_v58 }
0x285a   :  { %10504 = vmatprep.subr.bf16.mxu1 %v4959_v0 }
0x285d   :  { %10505 = vmatpush3.bf16.msra.mxu1 %v4959_v0 }
0x285e   :  { %10526 = vmatprep.subr.bf16.mxu1 %v11030_v20 }
0x2860   :  { %10507 = vmatmul.mubr.msk.bf16.vlgmr.msra.gmra.mxu1 %vm388_vm1, %v11722_v34 }
0x2861   :  { %10527 = vmatpush3.bf16.msra.mxu1 %v11030_v20  ;;  %v9428_v20 = vld [vmem:[%s14152_s2 + $0x4d] ss:$0 sm:$0xff] }
0x2862   :  { %10528 = vmatprep.subr.bf16.mxu1 %v11032_v29 }
0x2865   :  { %10529 = vmatpush3.bf16.msra.mxu1 %v11032_v29 }
0x290f   :  { %v12976_v41 = vpop.f32.mrf.mxu0 }
0x2911   :  { %v12978_v62 = vpop.f32.mrf.mxu0 }
0x2913   :  { %v10473_v39 = vpop.f32.mrf.mxu0 }
0x2920   :  { %v10508_v14 = vpop.f32.mrf.mxu1 }
0x2921   :  { %v12992_v28 = vadd.f32 %v10508_v14, %v4705_v24 }
0x2922   :  { %v4997_v22 = vpop.f32.mrf.mxu1 }
0x2923   :  { %v12987_v16 = vadd.f32 %v4997_v22, %v4697_v31  ;;  %v5022_v38 = vsel %vm455_vm3, %v12992_v28, 0.0 }
0x2924   :  { %v10509_v30 = vpop.f32.mrf.mxu1 }
0x2925   :  { %v5016_v4 = vsel %vm448_vm2, %v12987_v16, 0.0  ;;  %v9422_v30 = vld [vmem:[%s14152_s2 + $0x49] ss:$0 sm:$0xff] }
0x2926   :  { %5017 = vadd.xlane.f32.xlu0 %v5016_v4  ;;  %v5000_v50 = vpop.f32.mrf.mxu1 }
0x2927   :  { %v12996_v25 = vadd.f32 %v5000_v50, %v4700_v21 }
0x2929   :  { %v5019_v36 = vsel %vm448_vm2, %v12996_v25, 0.0 }
0x292a   :  { %5023 = vadd.xlane.f32.xlu0 %v5022_v38  ;;  %5020 = vadd.xlane.f32.xlu1 %v5019_v36 }
0x29af   :  { %v5018_v47 = vpop.xlane.xlu0 %5017 }
0x29b0   :  { %v5025_v48 = vmul.f32 0.03125, %v5018_v47 }
0x29b2   :  { %v5028_v23 = vsub.f32 %v12987_v16, %v5025_v48 }
0x29b3   :  { %v5024_v15 = vpop.xlane.xlu0 %5023  ;;  %v5021_v19 = vpop.xlane.xlu1 %5020 }
0x29b4   :  { %v5027_v3 = vmul.f32 0.03125, %v5024_v15  ;;  %v5026_v5 = vmul.f32 0.03125, %v5021_v19  ;;  %v5031_v9 = vmul.f32 %v5028_v23, %v5028_v23  ;;  %v13038_v15 = vpop.f32.mrf.mxu0 }
0x29b6   :  { %v5030_v33 = vsub.f32 %v12992_v28, %v5027_v3  ;;  %v5029_v11 = vsub.f32 %v12996_v25, %v5026_v5  ;;  %v5034_v27 = vsel %vm448_vm2, %v5031_v9, 0.0 }
0x29b7   :  { %5035 = vadd.xlane.f32.xlu1 %v5034_v27 }
0x29b8   :  { %v5033_v10 = vmul.f32 %v5030_v33, %v5030_v33  ;;  %v5032_v40 = vmul.f32 %v5029_v11, %v5029_v11 }
0x29ba   :  { %v5040_v49 = vsel %vm455_vm3, %v5033_v10, 0.0  ;;  %v5037_v12 = vsel %vm448_vm2, %v5032_v40, 0.0  ;;  %v9433_v40 = vld [vmem:[%s14152_s2 + $0x4e] ss:$0 sm:$0xff] }
0x29bb   :  { %5041 = vadd.xlane.f32.xlu1 %v5040_v49  ;;  %5038 = vadd.xlane.f32.xlu0 %v5037_v12 }
0x2a40   :  { %v5036_v60 = vpop.xlane.xlu1 %5035 }
0x2a41   :  { %v5043_v17 = vmul.f32 0.03125, %v5036_v60 }
0x2a43   :  { %v5046_v1 = vadd.f32 1e-06, %v5043_v17 }
0x2a44   :  { %v5039_v43 = vpop.xlane.xlu0 %5038  ;;  %v5042_v2 = vpop.xlane.xlu1 %5041 }
0x2a45   :  { %11332 = vrsqrt.f32 %v5046_v1  ;;  %v5044_v58 = vmul.f32 0.03125, %v5039_v43  ;;  %v5045_v42 = vmul.f32 0.03125, %v5042_v2 }
0x2a47   :  { %v5047_v63 = vadd.f32 1e-06, %v5044_v58  ;;  %v5048_v0 = vadd.f32 1e-06, %v5045_v42 }
0x2a49   :  { %11334 = vrsqrt.f32 %v5047_v63 }
0x2a4a   :  { %11336 = vrsqrt.f32 %v5048_v0 }
0x2a52   :  { %v11333_v39 = vpop.eup %11332 }
0x2a53   :  { %v5052_v14 = vmul.f32 %v11333_v39, %v5028_v23  ;;  %v11034_v23 = vld [vmem:[%s14150_s3 + $0x28] sm:$0xff]  }
0x2a55   :  { %v5059_v24 = vmul.f32 %v9421_v37, %v5052_v14 }
0x2a56   :  { %v11335_v31 = vpop.eup %11334 }
0x2a57   :  { %v11337_v22 = vpop.eup %11336  ;;  %v5053_v45 = vmul.f32 %v11335_v31, %v5029_v11  ;;  %v5066_v50 = vadd.f32 %v9422_v30, %v5059_v24 }
0x2a58   :  { %v5054_v59 = vmul.f32 %v11337_v22, %v5030_v33  ;;  %v9423_v33 = vld [vmem:[%s14152_s2 + $0x4c] ss:$0 sm:$0xff] }
0x2a59   :  { %v5060_v21 = vmul.f32 %v9421_v37, %v5053_v45 }
0x2a5a   :  { %v5061_v4 = vmul.f32 %v9421_v37, %v5054_v59 }
0x2a5b   :  { %v5067_v38 = vadd.f32 %v9422_v30, %v5060_v21 }
0x2a5c   :  { %v5068_v36 = vadd.f32 %v9422_v30, %v5061_v4 }
0x2a5d   :  { %v5073_v47 = vpack.c.bf16 %v5067_v38, %v5066_v50 }
0x2a5e   :  { %v5074_v48 = vpack.c.bf16 %v5068_v36, %v5068_v36 }
0x2a5f   :  { %10514 = vmatprep.mubr.msk.bf16.mxu0 %vm448_vm2, %v5073_v47  ;;  %10530 = vmatprep.mubr.msk.bf16.mxu1 %vm448_vm2, %v5073_v47 }
0x2a60   :  { %10515 = vmatmul.mubr.msk.bf16.vlgmr.msra.gmra.mxu0 %vm448_vm2, %v5074_v48  ;;  %10531 = vmatmul.mubr.msk.bf16.vlgmr.msra.gmra.mxu1 %vm448_vm2, %v5074_v48 }
0x2a61   :  { %10519 = vmatpush3.bf16.msra.mxu0 %v11033_v56  ;;  %10522 = vmatprep.mubr.msk.bf16.mxu0 %vm448_vm2, %v5073_v47 }
0x2a62   :  { %10520 = vmatprep.subr.bf16.mxu0 %v11034_v23 }
0x2a65   :  { %10521 = vmatpush3.bf16.msra.mxu0 %v11034_v23 }
0x2a68   :  { %10523 = vmatmul.mubr.msk.bf16.vlgmr.msra.gmra.mxu0 %vm448_vm2, %v5074_v48 }
0x2b20   :  { %v10516_v19 = vpop.f32.mrf.mxu0  ;;  %v10532_v3 = vpop.f32.mrf.mxu1 }
0x2b21   :  { %v13049_v32 = vadd.f32 %v10532_v3, %v9433_v40 }
0x2b22   :  { %v5132_v5 = vpop.f32.mrf.mxu0  ;;  %v5270_v9 = vpop.f32.mrf.mxu1 }
0x2b23   :  { %v5133_v11 = vadd.f32 %v9423_v33, %v5132_v5  ;;  %v5271_v58 = vadd.f32 %v9433_v40, %v5270_v9  ;;  %v5398_v30 = vmul.f32 %v11807_v55, %v13049_v32  ;;  %v5293_v59 = vmul.f32 %v11804_v54, %v13049_v32 }
0x2b24   :  { %v10517_v27 = vpop.f32.mrf.mxu0  ;;  %v10533_v10 = vpop.f32.mrf.mxu1 }
0x2b25   :  { %v5286_v29 = vmul.f32 %v11804_v54, %v5133_v11  ;;  %v5391_v60 = vmul.f32 %v11807_v55, %v5133_v11  ;;  %v13059_v2 = vmul.f32 %v11821_v61, %v5133_v11  ;;  %v13069_v24 = vmul.f32 %v11773_v7, %v5133_v11 }
0x2b26   :  { %v5135_v49 = vpop.f32.mrf.mxu0  ;;  %v5273_v57 = vpop.f32.mrf.mxu1  ;;  %v5768_v38 = vmul.f32 %v11773_v7, %v5271_v58  ;;  %v5609_v48 = vmul.f32 %v11821_v61, %v5271_v58  ;;  %v5400_v27 = vpack.c.bf16 %v5398_v30, %v5398_v30  ;;  %v5295_v10 = vpack.c.bf16 %v5293_v59, %v5293_v59 }
0x2b27   :  { %v5136_v12 = vadd.f32 %v9423_v33, %v5135_v49  ;;  %v5274_v42 = vadd.f32 %v9433_v40, %v5273_v57  ;;  %v13103_v40 = vadd.f32 %v10516_v19, %v9423_v33 }
0x2b28   :  { %v10524_v56 = vpop.f32.mrf.mxu0  ;;  %v5554_v57 = vand.u32 %v5295_v10, %v11860_v18 }
0x2b29   :  { %v5287_v17 = vmul.f32 %v11804_v54, %v5136_v12  ;;  %v5392_v1 = vmul.f32 %v11807_v55, %v5136_v12  ;;  %v13056_v43 = vmul.f32 %v11821_v61, %v5136_v12  ;;  %v5210_v63 = vadd.f32 %v10524_v56, %v9428_v20 }
0x2b2a   :  { %v5201_v0 = vpop.f32.mrf.mxu0  ;;  %v13062_v37 = vmul.f32 %v11773_v7, %v5136_v12  ;;  %v5769_v36 = vmul.f32 %v11773_v7, %v5274_v42  ;;  %v5610_v23 = vmul.f32 %v11821_v61, %v5274_v42  ;;  %v5497_v12 = vand.u32 %v5400_v27, %v11860_v18 }
0x2b2b   :  { %v5289_v39 = vpack.c.bf16 %v5287_v17, %v5286_v29  ;;  %v5394_v14 = vpack.c.bf16 %v5392_v1, %v5391_v60  ;;  %v13064_v31 = vpack.c.bf16 %v5210_v63, %v5210_v63  ;;  %v5607_v45 = vpack.c.bf16 %v13056_v43, %v13059_v2 }
0x2b2c   :  { %v10525_v22 = vpop.f32.mrf.mxu0  ;;  %v5202_v21 = vadd.f32 %v9428_v20, %v5201_v0  ;;  %v13091_v3 = vpack.c.bf16 %v5769_v36, %v5768_v38  ;;  %v5766_v5 = vpack.c.bf16 %v13062_v37, %v13069_v24  ;;  %v13097_v11 = vpack.c.bf16 %v5610_v23, %v5609_v48 }
0x2b2d   :  { %10538 = vmatprep.mubr.msk.bf16.mxu0 %vm448_vm2, %v5289_v39  ;;  %10546 = vmatprep.mubr.msk.bf16.mxu1 %vm448_vm2, %v5394_v14  ;;  %v13083_v50 = vsel %vm448_vm2, %v13064_v31, 0  ;;  %v5393_v29 = vmul.f32 %v11807_v55, %v13103_v40  ;;  %v5397_v19 = vmul.f32 %v11807_v55, %v5274_v42  ;;  %v5292_v33 = vmul.f32 %v11804_v54, %v5274_v42 }
0x2b2e   :  { %10932 = vmatprep.subr.msk.bf16.mxu0 %vm448_vm2, %v13064_v31  ;;  %10934 = vmatprep.subr.msk.bf16.mxu1 %vm448_vm2, %v13064_v31  ;;  %v5204_v4 = vpop.f32.mrf.mxu0  ;;  %v5611_v56 = vmul.f32 %v11821_v61, %v13049_v32  ;;  %v5396_v1 = vmul.f32 %v11807_v55, %v5271_v58  ;;  %v5291_v63 = vmul.f32 %v11804_v54, %v5271_v58 }
0x2b2f   :  { %v5205_v47 = vadd.f32 %v9428_v20, %v5204_v4  ;;  %10535 = vmatpush3.bf16.xpose.msra.mxu0 %v13083_v50  ;;  %10543 = vmatpush3.bf16.xpose.msra.mxu1 %v13083_v50  ;;  %v5288_v20 = vmul.f32 %v11804_v54, %v13103_v40  ;;  %v5395_v17 = vpack.c.bf16 %v5393_v29, %v5393_v29 }
0x2b30   :  { %v5399_v0 = vpack.c.bf16 %v5397_v19, %v5396_v1  ;;  %v5294_v39 = vpack.c.bf16 %v5292_v33, %v5291_v63  ;;  %v5613_v14 = vpack.c.bf16 %v5611_v56, %v5611_v56 }
0x2b31   :  { %v13095_v9 = vpack.c.bf16 %v5205_v47, %v5202_v21  ;;  %v5290_v60 = vpack.c.bf16 %v5288_v20, %v5288_v20 }
0x2b32   :  { %v13126_v42 = vand.u32 %v5613_v14, %v11860_v18 }
0x2b33   :  { %10933 = vmatprep.subr.msk.bf16.mxu0 %vm448_vm2, %v13095_v9  ;;  %10935 = vmatprep.subr.msk.bf16.mxu1 %vm448_vm2, %v13095_v9  ;;  %v13107_v49 = vsel %vm448_vm2, %v13095_v9, 0 }
0x2b37   :  { %10537 = vmatpush3.bf16.xpose.msra.mxu0 %v13107_v49  ;;  %10545 = vmatpush3.bf16.xpose.msra.mxu1 %v13107_v49 }
0x2b38   :  { %10550 = vmatprep.subr.bf16.mxu0 %v5497_v12  ;;  %10558 = vmatprep.subr.bf16.mxu1 %v5554_v57 }
0x2b3e   :  { %10539 = vmatmul.mubr.msk.bf16.vlgmr.msra.gmra.mxu0 %vm448_vm2, %v5290_v60  ;;  %10547 = vmatmul.mubr.msk.bf16.vlgmr.msra.gmra.mxu1 %vm448_vm2, %v5395_v17 }
0x2b3f   :  { %10551 = vmatpush3.bf16.msra.mxu0 %v5497_v12  ;;  %10559 = vmatpush3.bf16.msra.mxu1 %v5554_v57 }
0x2b40   :  { %10552 = vmatprep.subr.bf16.mxu0 %v5399_v0  ;;  %10560 = vmatprep.subr.bf16.mxu1 %v5294_v39 }
0x2b43   :  { %10553 = vmatpush3.bf16.msra.mxu0 %v5399_v0  ;;  %10561 = vmatpush3.bf16.msra.mxu1 %v5294_v39 }
0x2b44   :  { %10936 = vmatprep.subr.msk.bf16.mxu0 %vm448_vm2, %v13064_v31  ;;  %10574 = vmatprep.subr.bf16.mxu1 %v13126_v42 }
0x2bfe   :  { %v13131_v58 = vpop.f32.mrf.mxu0  ;;  %v10548_v22 = vpop.f32.mrf.mxu1 }
0x2bff   :  { %v5461_v47 = vsel %vm798_vm4, %v10548_v22, -inf }
0x2c00   :  { %v13133_v30 = vpop.f32.mrf.mxu0  ;;  %v5441_v59 = vpop.f32.mrf.mxu1 }
0x2c01   :  { %v5455_v21 = vsel %vm791_vm15, %v5441_v59, -inf }
0x2c02   :  { %5456 = vmax.xlane.f32.xlu0 %v5455_v21  ;;  %v10541_v4 = vpop.f32.mrf.mxu0  ;;  %v10549_v38 = vpop.f32.mrf.mxu1 }
0x2c04   :  { %v5444_v36 = vpop.f32.mrf.mxu1  ;;  %v5345_v0 = vpop.f32.mrf.mxu0 }
0x2c05   :  { %v5458_v48 = vsel %vm791_vm15, %v5444_v36, -inf  ;;  %v5359_v14 = vsel %vm791_vm15, %v5345_v0, -inf }
0x2c06   :  { %5462 = vmax.xlane.f32.xlu0 %v5461_v47  ;;  %5459 = vmax.xlane.f32.xlu1 %v5458_v48 }
0x2c8b   :  { %v5457_v23 = vpop.xlane.xlu0 %5456 }
0x2c8c   :  { %v5464_v27 = vsub.f32 %v5441_v59, %v5457_v23  ;;  %v5362_v59 = vsel %vm798_vm4, %v13131_v58, -inf }
0x2c8e   :  { %v5467_v10 = vmul.f32 1.442695, %v5464_v27 }
0x2c8f   :  { %v5463_v12 = vpop.xlane.xlu0 %5462  ;;  %v5460_v57 = vpop.xlane.xlu1 %5459 }
0x2c90   :  { %11338 = vpow2.f32 %v5467_v10  ;;  %v5466_v20 = vsub.f32 %v10548_v22, %v5463_v12  ;;  %v5465_v29 = vsub.f32 %v5444_v36, %v5460_v57  ;;  %v5356_v22 = vsel %vm791_vm15, %v13133_v30, -inf }
0x2c92   :  { %v5471_v19 = vmul.f32 1.442695, %v5466_v20  ;;  %v5469_v33 = vmul.f32 1.442695, %v5465_v29  ;;  %v5770_v20 = vmul.f32 %v11773_v7, %v13049_v32 }
0x2c94   :  { %11340 = vpow2.f32 %v5471_v19  ;;  %v5772_v29 = vpack.c.bf16 %v5770_v20, %v5770_v20 }
0x2c95   :  { %11342 = vpow2.f32 %v5469_v33  ;;  %v5606_v33 = vmul.f32 %v11821_v61, %v13103_v40 }
0x2c96   :  { %v5869_v19 = vand.u32 %v5772_v29, %v11860_v18 }
0x2c97   :  { %v5608_v32 = vpack.c.bf16 %v5606_v33, %v5606_v33 }
0x2c9d   :  { %v11339_v56 = vpop.eup %11338 }
0x2c9e   :  { %v5473_v60 = vsel %vm791_vm15, %v11339_v56, 0.0 }
0x2c9f   :  { %5474 = vadd.xlane.f32.xlu1 %v5473_v60 }
0x2ca1   :  { %v11341_v17 = vpop.eup %11340 }
0x2ca2   :  { %v11343_v1 = vpop.eup %11342  ;;  %v5479_v63 = vsel %vm798_vm4, %v11341_v17, 0.0 }
0x2ca3   :  { %5480 = vadd.xlane.f32.xlu1 %v5479_v63  ;;  %v5476_v39 = vsel %vm791_vm15, %v11343_v1, 0.0 }
0x2ca4   :  { %5477 = vadd.xlane.f32.xlu0 %v5476_v39 }
0x2ca7   :  { %5360 = vmax.xlane.f32.xlu1 %v5359_v14 }
0x2ca8   :  { %5357 = vmax.xlane.f32.xlu0 %v5356_v22 }
0x2cac   :  { %5363 = vmax.xlane.f32.xlu0 %v5362_v59 }
0x2d28   :  { %v5475_v21 = vpop.xlane.xlu1 %5474 }
0x2d29   :  { %11344 = vrcp.f32 %v5475_v21 }
0x2d2c   :  { %v5481_v4 = vpop.xlane.xlu1 %5480 }
0x2d2d   :  { %v5478_v38 = vpop.xlane.xlu0 %5477  ;;  %11346 = vrcp.f32 %v5481_v4 }
0x2d2e   :  { %11348 = vrcp.f32 %v5478_v38 }
0x2d30   :  { %v5361_v2 = vpop.xlane.xlu1 %5360 }
0x2d31   :  { %v5358_v43 = vpop.xlane.xlu0 %5357 }
0x2d36   :  { %v11345_v36 = vpop.eup %11344 }
0x2d37   :  { %v5485_v27 = vmul.f32 %v11345_v36, %v11339_v56  ;;  %v5366_v56 = vsub.f32 %v5345_v0, %v5361_v2 }
0x2d39   :  { %v5370_v39 = vmul.f32 1.442695, %v5366_v56 }
0x2d3a   :  { %v11347_v47 = vpop.eup %11346 }
0x2d3b   :  { %v11349_v48 = vpop.eup %11348  ;;  %v5487_v23 = vmul.f32 %v11347_v47, %v11341_v17  ;;  %v5365_v17 = vsub.f32 %v13133_v30, %v5358_v43  ;;  %11350 = vpow2.f32 %v5370_v39 }
0x2d3c   :  { %v5486_v10 = vmul.f32 %v11349_v48, %v11343_v1  ;;  %v5364_v1 = vpop.xlane.xlu0 %5363 }
0x2d3d   :  { %v5489_v12 = vpack.c.bf16 %v5487_v23, %v5487_v23  ;;  %v5368_v14 = vmul.f32 1.442695, %v5365_v17  ;;  %v5367_v22 = vsub.f32 %v13131_v58, %v5364_v1 }
0x2d3e   :  { %v5488_v57 = vpack.c.bf16 %v5486_v10, %v5485_v27 }
0x2d3f   :  { %11352 = vpow2.f32 %v5368_v14  ;;  %v5372_v59 = vmul.f32 1.442695, %v5367_v22 }
0x2d40   :  { %10554 = vmatprep.mubr.msk.bf16.mxu0 %vm791_vm15, %v5488_v57 }
0x2d41   :  { %10555 = vmatmul.mubr.msk.bf16.vlgmr.msra.gmra.mxu0 %vm791_vm15, %v5489_v12  ;;  %11354 = vpow2.f32 %v5372_v59 }
0x2d42   :  { %10567 = vmatpush3.bf16.xpose.msra.mxu0 %v13083_v50  ;;  %10570 = vmatprep.mubr.msk.bf16.mxu0 %vm448_vm2, %v5607_v45 }
0x2d43   :  { %10937 = vmatprep.subr.msk.bf16.mxu0 %vm448_vm2, %v13095_v9 }
0x2d48   :  { %v11351_v30 = vpop.eup %11350 }
0x2d49   :  { %v5377_v27 = vsel %vm791_vm15, %v11351_v30, 0.0 }
0x2d4a   :  { %10569 = vmatpush3.bf16.xpose.msra.mxu0 %v13107_v49 }
0x2d4b   :  { %10590 = vmatprep.subr.bf16.mxu0 %v5869_v19 }
0x2d4c   :  { %v11353_v23 = vpop.eup %11352 }
0x2d4d   :  { %v5374_v58 = vsel %vm791_vm15, %v11353_v23, 0.0 }
0x2d4e   :  { %v11355_v10 = vpop.eup %11354 }
0x2d4f   :  { %v5380_v12 = vsel %vm798_vm4, %v11355_v10, 0.0 }
0x2d51   :  { %10571 = vmatmul.mubr.msk.bf16.vlgmr.msra.gmra.mxu0 %vm448_vm2, %v5608_v32 }
0x2d52   :  { %10591 = vmatpush3.bf16.msra.mxu0 %v5869_v19 }
0x2d53   :  { %10592 = vmatprep.subr.bf16.mxu0 %v13091_v3 }
0x2d56   :  { %10593 = vmatpush3.bf16.msra.mxu0 %v13091_v3 }
0x2e01   :  { %v13164_v45 = vpop.f32.mrf.mxu0 }
0x2e03   :  { %v13166_v60 = vpop.f32.mrf.mxu0 }
0x2e05   :  { %v10557_v63 = vpop.f32.mrf.mxu0 }
0x2e07   :  { %v13170_v21 = vpop.f32.mrf.mxu0 }
0x2e11   :  { %v10572_v3 = vpop.f32.mrf.mxu0 }
0x2e12   :  { %v5674_v48 = vsel %vm798_vm4, %v10572_v3, -inf }
0x2e13   :  { %v5654_v4 = vpop.f32.mrf.mxu0 }
0x2e14   :  { %v5668_v0 = vsel %vm791_vm15, %v5654_v4, -inf }
0x2e15   :  { %v10573_v38 = vpop.f32.mrf.mxu0  ;;  %5669 = vmax.xlane.f32.xlu1 %v5668_v0 }
0x2e17   :  { %v5657_v36 = vpop.f32.mrf.mxu0 }
0x2e18   :  { %v5671_v47 = vsel %vm791_vm15, %v5657_v36, -inf }
0x2e19   :  { %5672 = vmax.xlane.f32.xlu0 %v5671_v47  ;;  %5675 = vmax.xlane.f32.xlu1 %v5674_v48 }
0x2e1d   :  { %5375 = vadd.xlane.f32.xlu0 %v5374_v58  ;;  %5378 = vadd.xlane.f32.xlu1 %v5377_v27 }
0x2e21   :  { %5381 = vadd.xlane.f32.xlu0 %v5380_v12 }
0x2e9e   :  { %v5670_v57 = vpop.xlane.xlu1 %5669 }
0x2e9f   :  { %v5677_v20 = vsub.f32 %v5654_v4, %v5670_v57 }
0x2ea1   :  { %v5680_v29 = vmul.f32 1.442695, %v5677_v20 }
0x2ea2   :  { %v5673_v19 = vpop.xlane.xlu0 %5672  ;;  %v5676_v33 = vpop.xlane.xlu1 %5675 }
0x2ea3   :  { %11356 = vpow2.f32 %v5680_v29  ;;  %v5678_v32 = vsub.f32 %v5657_v36, %v5673_v19  ;;  %v5679_v43 = vsub.f32 %v10572_v3, %v5676_v33 }
0x2ea5   :  { %v5682_v2 = vmul.f32 1.442695, %v5678_v32  ;;  %v5684_v56 = vmul.f32 1.442695, %v5679_v43 }
0x2ea6   :  { %v5376_v17 = vpop.xlane.xlu0 %5375  ;;  %v5379_v1 = vpop.xlane.xlu1 %5378 }
0x2ea7   :  { %11358 = vpow2.f32 %v5682_v2 }
0x2ea8   :  { %11360 = vpow2.f32 %v5684_v56 }
0x2ea9   :  { %11362 = vrcp.f32 %v5376_v17 }
0x2eaa   :  { %11364 = vrcp.f32 %v5379_v1  ;;  %v5382_v63 = vpop.xlane.xlu0 %5381 }
0x2eab   :  { %11366 = vrcp.f32 %v5382_v63 }
0x2eb0   :  { %v11357_v39 = vpop.eup %11356 }
0x2eb1   :  { %v5686_v14 = vsel %vm791_vm15, %v11357_v39, 0.0 }
0x2eb2   :  { %5687 = vadd.xlane.f32.xlu1 %v5686_v14 }
0x2eb4   :  { %v11359_v22 = vpop.eup %11358 }
0x2eb5   :  { %v11361_v59 = vpop.eup %11360  ;;  %v5689_v4 = vsel %vm791_vm15, %v11359_v22, 0.0 }
0x2eb6   :  { %v11363_v0 = vpop.eup %11362  ;;  %5690 = vadd.xlane.f32.xlu0 %v5689_v4  ;;  %v5692_v3 = vsel %vm798_vm4, %v11361_v59, 0.0 }
0x2eb7   :  { %v11365_v38 = vpop.eup %11364  ;;  %5693 = vadd.xlane.f32.xlu1 %v5692_v3  ;;  %v5386_v36 = vmul.f32 %v11363_v0, %v11353_v23 }
0x2eb8   :  { %v11367_v47 = vpop.eup %11366  ;;  %v5387_v48 = vmul.f32 %v11365_v38, %v11351_v30 }
0x2eb9   :  { %v5388_v58 = vmul.f32 %v11367_v47, %v11355_v10 }
0x2eba   :  { %v5389_v27 = vpack.c.bf16 %v5387_v48, %v5386_v36 }
0x2ebb   :  { %v5390_v12 = vpack.c.bf16 %v5388_v58, %v5388_v58 }
0x2ebc   :  { %10562 = vmatprep.mubr.msk.bf16.mxu1 %vm791_vm15, %v5389_v27 }
0x2ebd   :  { %10563 = vmatmul.mubr.msk.bf16.vlgmr.msra.gmra.mxu1 %vm791_vm15, %v5390_v12 }
0x2ebe   :  { %10575 = vmatpush3.bf16.msra.mxu1 %v13126_v42 }
0x2ebf   :  { %10576 = vmatprep.subr.bf16.mxu1 %v13097_v11 }
0x2ec2   :  { %10577 = vmatpush3.bf16.msra.mxu1 %v13097_v11 }
0x2ec3   :  { %10938 = vmatprep.subr.msk.bf16.mxu1 %vm448_vm2, %v13064_v31  ;;  %v5765_v31 = vmul.f32 %v11773_v7, %v13103_v40 }
0x2ec5   :  { %v5767_v11 = vpack.c.bf16 %v5765_v31, %v5765_v31 }
0x2f3b   :  { %v5688_v57 = vpop.xlane.xlu1 %5687 }
0x2f3c   :  { %11368 = vrcp.f32 %v5688_v57 }
0x2f3f   :  { %v5691_v23 = vpop.xlane.xlu0 %5690 }
0x2f40   :  { %11370 = vrcp.f32 %v5691_v23  ;;  %v5694_v30 = vpop.xlane.xlu1 %5693 }
0x2f41   :  { %11372 = vrcp.f32 %v5694_v30 }
0x2f49   :  { %v11369_v10 = vpop.eup %11368 }
0x2f4a   :  { %v5698_v19 = vmul.f32 %v11369_v10, %v11357_v39 }
0x2f4d   :  { %v11371_v20 = vpop.eup %11370 }
0x2f4e   :  { %v11373_v29 = vpop.eup %11372  ;;  %v5699_v33 = vmul.f32 %v11371_v20, %v11359_v22 }
0x2f4f   :  { %v5700_v32 = vmul.f32 %v11373_v29, %v11361_v59 }
0x2f50   :  { %v5701_v42 = vpack.c.bf16 %v5699_v33, %v5698_v19 }
0x2f51   :  { %v5702_v43 = vpack.c.bf16 %v5700_v32, %v5700_v32 }
0x2f52   :  { %10578 = vmatprep.mubr.msk.bf16.mxu1 %vm791_vm15, %v5701_v42 }
0x2f53   :  { %10579 = vmatmul.mubr.msk.bf16.vlgmr.msra.gmra.mxu1 %vm791_vm15, %v5702_v43 }
0x2f54   :  { %10583 = vmatpush3.bf16.xpose.msra.mxu1 %v13083_v50  ;;  %10586 = vmatprep.mubr.msk.bf16.mxu1 %vm448_vm2, %v5766_v5 }
0x2f55   :  { %10939 = vmatprep.subr.msk.bf16.mxu1 %vm448_vm2, %v13095_v9 }
0x2f5c   :  { %10585 = vmatpush3.bf16.xpose.msra.mxu1 %v13107_v49 }
0x2f63   :  { %10587 = vmatmul.mubr.msk.bf16.vlgmr.msra.gmra.mxu1 %vm448_vm2, %v5767_v11 }
0x2f7d   :  { %v10564_v2 = vpop.f32.mrf.mxu1 }
0x2f7e   :  { %v5599_v37 = vadd.f32 %v10564_v2, %v13164_v45 }
0x2f7f   :  { %v5590_v56 = vpop.f32.mrf.mxu1 }
0x2f80   :  { %v5591_v5 = vadd.f32 %v5590_v56, %v13166_v60 }
0x2f81   :  { %v10565_v17 = vpop.f32.mrf.mxu1 }
0x2f83   :  { %v13201_v50 = vpop.f32.mrf.mxu1 }
0x3013   :  { %v10580_v24 = vpop.f32.mrf.mxu1 }
0x3014   :  { %v13205_v1 = vadd.f32 %v10580_v24, %v5599_v37  ;;  %v11035_v24 = vld [vmem:[%s14150_s3 + $0x50] sm:$0xff]  }
0x3015   :  { %v5746_v9 = vpop.f32.mrf.mxu1  ;;  %10598 = vmatprep.subr.bf16.mxu0 %v11035_v24 }
0x3016   :  { %v13207_v49 = vadd.f32 %v5746_v9, %v5591_v5  ;;  %v11036_v5 = vld [vmem:[%s14150_s3 + $0x48] sm:$0xff]  }
0x3017   :  { %v10581_v63 = vpop.f32.mrf.mxu1 }
0x3019   :  { %v5749_v40 = vpop.f32.mrf.mxu1 }
0x3023   :  { %v10588_v39 = vpop.f32.mrf.mxu1 }
0x3024   :  { %v5833_v0 = vsel %vm798_vm4, %v10588_v39, -inf }
0x3025   :  { %v5813_v14 = vpop.f32.mrf.mxu1 }
0x3026   :  { %v5827_v22 = vsel %vm791_vm15, %v5813_v14, -inf }
0x3027   :  { %5828 = vmax.xlane.f32.xlu0 %v5827_v22  ;;  %v10589_v59 = vpop.f32.mrf.mxu1 }
0x3029   :  { %v5816_v4 = vpop.f32.mrf.mxu1 }
0x302a   :  { %v5830_v45 = vsel %vm791_vm15, %v5816_v4, -inf }
0x302b   :  { %5834 = vmax.xlane.f32.xlu0 %v5833_v0  ;;  %5831 = vmax.xlane.f32.xlu1 %v5830_v45 }
0x30b0   :  { %v5829_v60 = vpop.xlane.xlu0 %5828 }
0x30b1   :  { %v5836_v3 = vsub.f32 %v5813_v14, %v5829_v60 }
0x30b3   :  { %v5839_v38 = vmul.f32 1.442695, %v5836_v3 }
0x30b4   :  { %v5835_v36 = vpop.xlane.xlu0 %5834  ;;  %v5832_v47 = vpop.xlane.xlu1 %5831 }
0x30b5   :  { %11374 = vpow2.f32 %v5839_v38  ;;  %v5838_v48 = vsub.f32 %v10588_v39, %v5835_v36  ;;  %v5837_v58 = vsub.f32 %v5816_v4, %v5832_v47  ;;  %v5594_v39 = vadd.f32 %v13201_v50, %v13170_v21  ;;  %v9458_v50 = vld [vmem:[%s14152_s2 + $0x4f] ss:$0 sm:$0xff] }
0x30b7   :  { %v5843_v27 = vmul.f32 1.442695, %v5838_v48  ;;  %v5841_v12 = vmul.f32 1.442695, %v5837_v58  ;;  %v5761_v22 = vadd.f32 %v5749_v40, %v5594_v39 }
0x30b9   :  { %11376 = vpow2.f32 %v5843_v27 }
0x30ba   :  { %11378 = vpow2.f32 %v5841_v12 }
0x30c2   :  { %v11375_v57 = vpop.eup %11374 }
0x30c3   :  { %v5845_v23 = vsel %vm791_vm15, %v11375_v57, 0.0 }
0x30c4   :  { %5846 = vadd.xlane.f32.xlu1 %v5845_v23 }
0x30c6   :  { %v11377_v30 = vpop.eup %11376 }
0x30c7   :  { %v11379_v10 = vpop.eup %11378  ;;  %v5851_v20 = vsel %vm798_vm4, %v11377_v30, 0.0 }
0x30c8   :  { %5852 = vadd.xlane.f32.xlu1 %v5851_v20  ;;  %v5848_v29 = vsel %vm791_vm15, %v11379_v10, 0.0 }
0x30c9   :  { %5849 = vadd.xlane.f32.xlu0 %v5848_v29 }
0x314d   :  { %v5847_v19 = vpop.xlane.xlu1 %5846 }
0x314e   :  { %11380 = vrcp.f32 %v5847_v19 }
0x3151   :  { %v5853_v33 = vpop.xlane.xlu1 %5852 }
0x3152   :  { %v5850_v32 = vpop.xlane.xlu0 %5849  ;;  %11382 = vrcp.f32 %v5853_v33 }
0x3153   :  { %11384 = vrcp.f32 %v5850_v32 }
0x315b   :  { %v11381_v42 = vpop.eup %11380 }
0x315c   :  { %v5857_v2 = vmul.f32 %v11381_v42, %v11375_v57 }
0x315f   :  { %v11383_v43 = vpop.eup %11382 }
0x3160   :  { %v11385_v31 = vpop.eup %11384  ;;  %v5859_v11 = vmul.f32 %v11383_v43, %v11377_v30 }
0x3161   :  { %v5858_v56 = vmul.f32 %v11385_v31, %v11379_v10 }
0x3162   :  { %v5861_v17 = vpack.c.bf16 %v5859_v11, %v5859_v11 }
0x3163   :  { %v5860_v37 = vpack.c.bf16 %v5858_v56, %v5857_v2 }
0x3165   :  { %10594 = vmatprep.mubr.msk.bf16.mxu0 %vm791_vm15, %v5860_v37 }
0x3166   :  { %10595 = vmatmul.mubr.msk.bf16.vlgmr.msra.gmra.mxu0 %vm791_vm15, %v5861_v17 }
0x3167   :  { %10599 = vmatpush3.bf16.msra.mxu0 %v11035_v24  ;;  %v11037_v24 = vld [vmem:[%s14150_s3 + $0x60] sm:$0xff]  }
0x3168   :  { %10600 = vmatprep.subr.bf16.mxu0 %v11036_v5  ;;  %10606 = vmatprep.subr.bf16.mxu1 %v11037_v24 }
0x3169   :  { %10607 = vmatpush3.bf16.msra.mxu1 %v11037_v24 }
0x316b   :  { %10601 = vmatpush3.bf16.msra.mxu0 %v11036_v5  ;;  %v11038_v5 = vld [vmem:[%s14150_s3 + $0x58] sm:$0xff]  }
0x316c   :  { %10608 = vmatprep.subr.bf16.mxu1 %v11038_v5 }
0x316d   :  { %10609 = vmatpush3.bf16.msra.mxu1 %v11038_v5 }
0x3226   :  { %v10596_v9 = vpop.f32.mrf.mxu0 }
0x3227   :  { %v5921_v59 = vadd.f32 %v10596_v9, %v13205_v1 }
0x3228   :  { %v5905_v63 = vpop.f32.mrf.mxu0 }
0x3229   :  { %v5919_v0 = vadd.f32 %v5905_v63, %v13207_v49  ;;  %v5927_v3 = vpack.c.bf16 %v5921_v59, %v5921_v59 }
0x322a   :  { %v10597_v14 = vpop.f32.mrf.mxu0 }
0x322c   :  { %v5908_v4 = vpop.f32.mrf.mxu0 }
0x322d   :  { %v5920_v45 = vadd.f32 %v5908_v4, %v5761_v22 }
0x322f   :  { %v5926_v60 = vpack.c.bf16 %v5920_v45, %v5919_v0 }
0x3231   :  { %10602 = vmatprep.mubr.msk.bf16.mxu0 %vm448_vm2, %v5926_v60 }
0x3232   :  { %10603 = vmatmul.mubr.msk.bf16.vlgmr.msra.gmra.mxu0 %vm448_vm2, %v5927_v3 }
0x32f2   :  { %v10604_v38 = vpop.f32.mrf.mxu0 }
0x32f3   :  { %v5996_v47 = vadd.f32 %v10604_v38, %v12992_v28  ;;  %v9459_v38 = vld [vmem:[%s14152_s2 + $0x4a] ss:$0 sm:$0xff] }
0x32f4   :  { %v5980_v36 = vpop.f32.mrf.mxu0 }
0x32f5   :  { %v5994_v21 = vadd.f32 %v5980_v36, %v12987_v16  ;;  %v13236_v48 = vadd.f32 %v9458_v50, %v5996_v47 }
0x32f6   :  { %v10605_v1 = vpop.f32.mrf.mxu0 }
0x32f7   :  { %v13234_v40 = vadd.f32 %v9458_v50, %v5994_v21  ;;  %v6013_v57 = vsel %vm455_vm3, %v13236_v48, 0.0 }
0x32f8   :  { %v5983_v49 = vpop.f32.mrf.mxu0 }
0x32f9   :  { %v5995_v58 = vadd.f32 %v5983_v49, %v12996_v25  ;;  %v6007_v27 = vsel %vm448_vm2, %v13234_v40, 0.0  ;;  %v9460_v49 = vld [vmem:[%s14152_s2 + $0x4b] ss:$0 sm:$0xff] }
0x32fa   :  { %6008 = vadd.xlane.f32.xlu0 %v6007_v27 }
0x32fb   :  { %v13241_v12 = vadd.f32 %v9458_v50, %v5995_v58 }
0x32fd   :  { %v6010_v23 = vsel %vm448_vm2, %v13241_v12, 0.0 }
0x32fe   :  { %6014 = vadd.xlane.f32.xlu0 %v6013_v57  ;;  %6011 = vadd.xlane.f32.xlu1 %v6010_v23 }
0x3383   :  { %v6009_v30 = vpop.xlane.xlu0 %6008 }
0x3384   :  { %v6016_v10 = vmul.f32 0.03125, %v6009_v30 }
0x3386   :  { %v6019_v20 = vsub.f32 %v13234_v40, %v6016_v10 }
0x3387   :  { %v6015_v29 = vpop.xlane.xlu0 %6014  ;;  %v6012_v19 = vpop.xlane.xlu1 %6011 }
0x3388   :  { %v6018_v33 = vmul.f32 0.03125, %v6015_v29  ;;  %v6017_v32 = vmul.f32 0.03125, %v6012_v19  ;;  %v6022_v42 = vmul.f32 %v6019_v20, %v6019_v20  ;;  %v11039_v29 = vld [vmem:[%s14150_s3 + $0xa0] sm:$0xff]   ;;  %v11040_v19 = vld [vmem:[%s14150_s3 + $0x98] sm:$0xff]  }
0x3389   :  { %10614 = vmatprep.subr.bf16.mxu0 %v11039_v29 }
0x338a   :  { %v6021_v43 = vsub.f32 %v13236_v48, %v6018_v33  ;;  %v6020_v31 = vsub.f32 %v13241_v12, %v6017_v32  ;;  %v6025_v11 = vsel %vm448_vm2, %v6022_v42, 0.0  ;;  %10615 = vmatpush3.bf16.msra.mxu0 %v11039_v29  ;;  %v11041_v33 = vld [vmem:[%s14150_s3 + $0x90] sm:$0xff]   ;;  %v11042_v32 = vld [vmem:[%s14150_s3 + $0x88] sm:$0xff]   ;;  %v11043_v42 = vld [vmem:[%s14150_s3 + $0x80] sm:$0xff]  }
0x338b   :  { %6026 = vadd.xlane.f32.xlu1 %v6025_v11  ;;  %10616 = vmatprep.subr.bf16.mxu0 %v11040_v19  ;;  %v11046_v11 = vld [vmem:[%s14150_s3 + $0x68] sm:$0xff]  }
0x338c   :  { %v6024_v2 = vmul.f32 %v6021_v43, %v6021_v43  ;;  %v6023_v56 = vmul.f32 %v6020_v31, %v6020_v31 }
0x338e   :  { %v6031_v17 = vsel %vm455_vm3, %v6024_v2, 0.0  ;;  %v6028_v37 = vsel %vm448_vm2, %v6023_v56, 0.0  ;;  %10617 = vmatpush3.bf16.msra.mxu0 %v11040_v19  ;;  %v9461_v2 = vld [vmem:[%s14152_s2 + $0x50] ss:$0 sm:$0xff] }
0x338f   :  { %6032 = vadd.xlane.f32.xlu1 %v6031_v17  ;;  %6029 = vadd.xlane.f32.xlu0 %v6028_v37 }
0x3390   :  { %10618 = vmatprep.subr.bf16.mxu0 %v11041_v33 }
0x3392   :  { %10619 = vmatpush3.bf16.msra.mxu0 %v11041_v33 }
0x3393   :  { %10620 = vmatprep.subr.bf16.mxu0 %v11042_v32 }
0x3396   :  { %10621 = vmatpush3.bf16.msra.mxu0 %v11042_v32 }
0x3397   :  { %10622 = vmatprep.subr.bf16.mxu0 %v11043_v42 }
0x339a   :  { %10623 = vmatpush3.bf16.msra.mxu0 %v11043_v42 }
0x3414   :  { %v6027_v9 = vpop.xlane.xlu1 %6026 }
0x3415   :  { %v6034_v63 = vmul.f32 0.03125, %v6027_v9 }
0x3417   :  { %v6037_v39 = vadd.f32 1e-06, %v6034_v63 }
0x3418   :  { %v6030_v14 = vpop.xlane.xlu0 %6029  ;;  %v6033_v22 = vpop.xlane.xlu1 %6032 }
0x3419   :  { %11386 = vrsqrt.f32 %v6037_v39  ;;  %v6035_v59 = vmul.f32 0.03125, %v6030_v14  ;;  %v6036_v4 = vmul.f32 0.03125, %v6033_v22 }
0x341b   :  { %v6038_v0 = vadd.f32 1e-06, %v6035_v59  ;;  %v6039_v45 = vadd.f32 1e-06, %v6036_v4 }
0x341d   :  { %11388 = vrsqrt.f32 %v6038_v0 }
0x341e   :  { %11390 = vrsqrt.f32 %v6039_v45 }
0x3426   :  { %v11387_v60 = vpop.eup %11386 }
0x3427   :  { %v6043_v3 = vmul.f32 %v11387_v60, %v6019_v20 }
0x3429   :  { %v6050_v50 = vmul.f32 %v9459_v38, %v6043_v3 }
0x342a   :  { %v11389_v36 = vpop.eup %11388 }
0x342b   :  { %v11391_v47 = vpop.eup %11390  ;;  %v6044_v21 = vmul.f32 %v11389_v36, %v6020_v31  ;;  %v6057_v57 = vadd.f32 %v9460_v49, %v6050_v50  ;;  %v11045_v31 = vld [vmem:[%s14150_s3 + $0x70] sm:$0xff]  }
0x342c   :  { %v6045_v1 = vmul.f32 %v11391_v47, %v6021_v43  ;;  %v11044_v43 = vld [vmem:[%s14150_s3 + $0x78] sm:$0xff]  }
0x342d   :  { %v6051_v58 = vmul.f32 %v9459_v38, %v6044_v21  ;;  %10624 = vmatprep.subr.bf16.mxu0 %v11044_v43 }
0x342e   :  { %v6052_v27 = vmul.f32 %v9459_v38, %v6045_v1  ;;  %10625 = vmatpush3.bf16.msra.mxu0 %v11044_v43 }
0x342f   :  { %v6058_v23 = vadd.f32 %v9460_v49, %v6051_v58  ;;  %10626 = vmatprep.subr.bf16.mxu0 %v11045_v31 }
0x3430   :  { %v6059_v30 = vadd.f32 %v9460_v49, %v6052_v27 }
0x3431   :  { %v6064_v10 = vpack.c.bf16 %v6058_v23, %v6057_v57 }
0x3432   :  { %v6065_v20 = vpack.c.bf16 %v6059_v30, %v6059_v30  ;;  %10627 = vmatpush3.bf16.msra.mxu0 %v11045_v31 }
0x3433   :  { %10610 = vmatprep.mubr.msk.bf16.mxu1 %vm448_vm2, %v6064_v10  ;;  %10628 = vmatprep.subr.bf16.mxu0 %v11046_v11 }
0x3434   :  { %10611 = vmatmul.mubr.msk.bf16.vlgmr.msra.gmra.mxu1 %vm448_vm2, %v6065_v20 }
0x3436   :  { %10629 = vmatpush3.bf16.msra.mxu0 %v11046_v11 }
0x34f4   :  { %v10612_v56 = vpop.f32.mrf.mxu1 }
0x34f5   :  { %v6132_v17 = vadd.f32 %v10612_v56, %v9461_v2 }
0x34f6   :  { %v6123_v37 = vpop.f32.mrf.mxu1 }
0x34f7   :  { %v6142_v24 = vmul.f32 %v6132_v17, %v6132_v17  ;;  %v6124_v5 = vadd.f32 %v9461_v2, %v6123_v37  ;;  %v6139_v30 = vmul.f32 0.5, %v6132_v17 }
0x34f8   :  { %v10613_v9 = vpop.f32.mrf.mxu1 }
0x34f9   :  { %v6145_v63 = vmul.f32 %v6142_v24, %v6132_v17  ;;  %v6140_v39 = vmul.f32 %v6124_v5, %v6124_v5  ;;  %v6137_v10 = vmul.f32 0.5, %v6124_v5 }
0x34fa   :  { %v6126_v14 = vpop.f32.mrf.mxu1 }
0x34fb   :  { %v6148_v22 = vmul.f32 0.044715, %v6145_v63  ;;  %v6143_v59 = vmul.f32 %v6140_v39, %v6124_v5  ;;  %v6127_v4 = vadd.f32 %v9461_v2, %v6126_v14  ;;  %v9474_v2 = vld [vmem:[%s14152_s2 + $0x51] ss:$0 sm:$0xff]  ;;  %v11552_v63 = vld [vmem:[%s14152_s2 + $0x18] sm:$0xff] }
0x34fd   :  { %v6151_v0 = vadd.f32 %v6148_v22, %v6132_v17  ;;  %v6146_v45 = vmul.f32 0.044715, %v6143_v59  ;;  %v6141_v60 = vmul.f32 %v6127_v4, %v6127_v4  ;;  %v6138_v20 = vmul.f32 0.5, %v6127_v4 }
0x34ff   :  { %v6154_v3 = vmul.f32 0.7978846, %v6151_v0  ;;  %v6149_v38 = vadd.f32 %v6146_v45, %v6124_v5  ;;  %v6144_v36 = vmul.f32 %v6141_v60, %v6127_v4 }
0x3501   :  { %v6152_v47 = vmul.f32 0.7978846, %v6149_v38  ;;  %v6147_v21 = vmul.f32 0.044715, %v6144_v36  ;;  %11392 = vtanh.f32 %v6154_v3 }
0x3503   :  { %11394 = vtanh.f32 %v6152_v47  ;;  %v6150_v50 = vadd.f32 %v6147_v21, %v6127_v4  ;;  %v11554_v4 = vld [vmem:[%s14152_s2 + $0x20] sm:$0xff] }
0x3505   :  { %v6153_v1 = vmul.f32 0.7978846, %v6150_v50 }
0x3507   :  { %11396 = vtanh.f32 %v6153_v1 }
0x350e   :  { %v11393_v49 = vpop.eup %11392 }
0x350f   :  { %v6160_v27 = vadd.f32 1.0, %v11393_v49 }
0x3510   :  { %v11395_v58 = vpop.eup %11394 }
0x3511   :  { %v6158_v57 = vadd.f32 1.0, %v11395_v58  ;;  %v6163_v19 = vmul.f32 %v6160_v27, %v6139_v30 }
0x3513   :  { %v6161_v33 = vmul.f32 %v6158_v57, %v6137_v10  ;;  %v6181_v43 = vpack.c.bf16 %v6163_v19, %v6163_v19  ;;  %v11049_v19 = vld [vmem:[%s14150_s3 + $0xc0] sm:$0xff]  }
0x3514   :  { %v11397_v23 = vpop.eup %11396 }
0x3515   :  { %v6159_v29 = vadd.f32 1.0, %v11397_v23 }
0x3517   :  { %v6162_v32 = vmul.f32 %v6159_v29, %v6138_v20  ;;  %v11047_v20 = vld [vmem:[%s14150_s3 + $0xb0] sm:$0xff]   ;;  %v11048_v29 = vld [vmem:[%s14150_s3 + $0xa8] sm:$0xff]  }
0x3518   :  { %10634 = vmatprep.subr.bf16.mxu1 %v11047_v20 }
0x3519   :  { %v6180_v42 = vpack.c.bf16 %v6162_v32, %v6161_v33  ;;  %10635 = vmatpush3.bf16.msra.mxu1 %v11047_v20 }
0x351a   :  { %10636 = vmatprep.subr.bf16.mxu1 %v11048_v29 }
0x351b   :  { %10630 = vmatprep.mubr.bf16.mxu0 %v6180_v42 }
0x351c   :  { %10631 = vmatmul.mubr.bf16.vlgmr.msra.gmra.mxu0 %v6181_v43 }
0x351d   :  { %10637 = vmatpush3.bf16.msra.mxu1 %v11048_v29 }
0x351e   :  { %10642 = vmatprep.subr.bf16.mxu1 %v11049_v19 }
0x35dc   :  { %v10632_v31 = vpop.f32.mrf.mxu0 }
0x35dd   :  { %v6280_v11 = vadd.f32 %v10632_v31, %v13236_v48  ;;  %v11553_v48 = vld [vmem:[%s14152_s2 + $0x28] sm:$0x1] }
0x35de   :  { %v6264_v56 = vpop.f32.mrf.mxu0 }
0x35df   :  { %v6278_v17 = vadd.f32 %v6264_v56, %v13234_v40  ;;  %v6288_v24 = vadd.f32 %v9474_v2, %v6280_v11 }
0x35e0   :  { %v10633_v37 = vpop.f32.mrf.mxu0 }
0x35e1   :  { %v6286_v5 = vadd.f32 %v9474_v2, %v6278_v17  ;;  %v13308_v22 = vadd.f32 %v11553_v48, %v6288_v24 }
0x35e2   :  { %v6267_v9 = vpop.f32.mrf.mxu0 }
0x35e3   :  { %v13302_v39 = vadd.f32 %v11552_v63, %v6286_v5  ;;  %v6279_v14 = vadd.f32 %v6267_v9, %v13241_v12  ;;  %v6300_v12 = vsel %vm455_vm3, %v13308_v22, 0.0  ;;  %v9475_v5 = vld [vmem:[%s14152_s2 + $0x58] ss:$0 sm:$0xff] }
0x35e5   :  { %v6287_v59 = vadd.f32 %v9474_v2, %v6279_v14  ;;  %v6294_v40 = vsel %vm448_vm2, %v13302_v39, 0.0 }
0x35e6   :  { %6295 = vadd.xlane.f32.xlu0 %v6294_v40  ;;  %v9476_v40 = vld [vmem:[%s14152_s2 + $0x59] ss:$0 sm:$0xff] }
0x35e7   :  { %v13315_v0 = vadd.f32 %v11554_v4, %v6287_v59 }
0x35e9   :  { %v6297_v45 = vsel %vm448_vm2, %v13315_v0, 0.0 }
0x35ea   :  { %6301 = vadd.xlane.f32.xlu0 %v6300_v12  ;;  %6298 = vadd.xlane.f32.xlu1 %v6297_v45 }
0x366f   :  { %v6296_v60 = vpop.xlane.xlu0 %6295 }
0x3670   :  { %v6303_v3 = vmul.f32 0.03125, %v6296_v60 }
0x3672   :  { %v6306_v38 = vsub.f32 %v13302_v39, %v6303_v3 }
0x3673   :  { %v6302_v36 = vpop.xlane.xlu0 %6301  ;;  %v6299_v47 = vpop.xlane.xlu1 %6298 }
0x3674   :  { %v6305_v21 = vmul.f32 0.03125, %v6302_v36  ;;  %v6304_v50 = vmul.f32 0.03125, %v6299_v47  ;;  %v6309_v1 = vmul.f32 %v6306_v38, %v6306_v38  ;;  %v11050_v47 = vld [vmem:[%s14150_s3 + $0xb8] sm:$0xff]  }
0x3676   :  { %v6308_v49 = vsub.f32 %v13308_v22, %v6305_v21  ;;  %v6307_v58 = vsub.f32 %v13315_v0, %v6304_v50  ;;  %v6312_v27 = vsel %vm448_vm2, %v6309_v1, 0.0  ;;  %v11051_v21 = vld [vmem:[%s14150_s3 + $0xd0] sm:$0xff]   ;;  %v11052_v50 = vld [vmem:[%s14150_s3 + $0xc8] sm:$0xff]  }
0x3677   :  { %6313 = vadd.xlane.f32.xlu1 %v6312_v27 }
0x3678   :  { %v6311_v57 = vmul.f32 %v6308_v49, %v6308_v49  ;;  %v6310_v23 = vmul.f32 %v6307_v58, %v6307_v58 }
0x367a   :  { %v6318_v30 = vsel %vm455_vm3, %v6311_v57, 0.0  ;;  %v6315_v10 = vsel %vm448_vm2, %v6310_v23, 0.0 }
0x367b   :  { %6319 = vadd.xlane.f32.xlu1 %v6318_v30  ;;  %6316 = vadd.xlane.f32.xlu0 %v6315_v10  ;;  %v9482_v10 = vld [vmem:[%s14152_s2 + $0x5d] ss:$0 sm:$0xff] }
0x3700   :  { %v6314_v33 = vpop.xlane.xlu1 %6313 }
0x3701   :  { %v6321_v32 = vmul.f32 0.03125, %v6314_v33 }
0x3703   :  { %v6324_v42 = vadd.f32 1e-06, %v6321_v32 }
0x3704   :  { %v6317_v43 = vpop.xlane.xlu0 %6316  ;;  %v6320_v31 = vpop.xlane.xlu1 %6319 }
0x3705   :  { %11398 = vrsqrt.f32 %v6324_v42  ;;  %v6322_v11 = vmul.f32 0.03125, %v6317_v43  ;;  %v6323_v2 = vmul.f32 0.03125, %v6320_v31 }
0x3707   :  { %v6325_v56 = vadd.f32 1e-06, %v6322_v11  ;;  %v6326_v17 = vadd.f32 1e-06, %v6323_v2 }
0x3709   :  { %11400 = vrsqrt.f32 %v6325_v56 }
0x370a   :  { %11402 = vrsqrt.f32 %v6326_v17 }
0x3712   :  { %v11399_v37 = vpop.eup %11398 }
0x3713   :  { %v6330_v24 = vmul.f32 %v11399_v37, %v6306_v38 }
0x3715   :  { %v6337_v48 = vmul.f32 %v9475_v5, %v6330_v24 }
0x3716   :  { %v11401_v9 = vpop.eup %11400 }
0x3717   :  { %v11403_v63 = vpop.eup %11402  ;;  %v6331_v14 = vmul.f32 %v11401_v9, %v6307_v58  ;;  %v6344_v45 = vadd.f32 %v9476_v40, %v6337_v48  ;;  %v9477_v58 = vld [vmem:[%s14152_s2 + $0x5c] ss:$0 sm:$0xff] }
0x3718   :  { %v6332_v59 = vmul.f32 %v11403_v63, %v6308_v49 }
0x3719   :  { %v6338_v4 = vmul.f32 %v9475_v5, %v6331_v14 }
0x371a   :  { %v6339_v12 = vmul.f32 %v9475_v5, %v6332_v59  ;;  %v9487_v59 = vld [vmem:[%s14152_s2 + $0x5e] ss:$0 sm:$0xff] }
0x371b   :  { %v6345_v60 = vadd.f32 %v9476_v40, %v6338_v4 }
0x371c   :  { %v6346_v3 = vadd.f32 %v9476_v40, %v6339_v12 }
0x371d   :  { %v6351_v36 = vpack.c.bf16 %v6345_v60, %v6344_v45 }
0x371e   :  { %v6352_v38 = vpack.c.bf16 %v6346_v3, %v6346_v3 }
0x371f   :  { %10638 = vmatprep.mubr.msk.bf16.mxu1 %vm448_vm2, %v6351_v36 }
0x3720   :  { %10639 = vmatmul.mubr.msk.bf16.vlgmr.msra.gmra.mxu1 %vm448_vm2, %v6352_v38 }
0x3721   :  { %10643 = vmatpush3.bf16.msra.mxu1 %v11049_v19  ;;  %10646 = vmatprep.mubr.msk.bf16.mxu1 %vm448_vm2, %v6351_v36 }
0x3722   :  { %10644 = vmatprep.subr.bf16.mxu1 %v11050_v47 }
0x3725   :  { %10645 = vmatpush3.bf16.msra.mxu1 %v11050_v47 }
0x3726   :  { %10650 = vmatprep.subr.bf16.mxu1 %v11051_v21 }
0x3728   :  { %10647 = vmatmul.mubr.msk.bf16.vlgmr.msra.gmra.mxu1 %vm448_vm2, %v6352_v38 }
0x3729   :  { %10651 = vmatpush3.bf16.msra.mxu1 %v11051_v21  ;;  %10654 = vmatprep.mubr.msk.bf16.mxu1 %vm448_vm2, %v6351_v36 }
0x372a   :  { %10652 = vmatprep.subr.bf16.mxu1 %v11052_v50 }
0x372d   :  { %10653 = vmatpush3.bf16.msra.mxu1 %v11052_v50 }
0x3730   :  { %10655 = vmatmul.mubr.msk.bf16.vlgmr.msra.gmra.mxu1 %vm448_vm2, %v6352_v38 }
0x37e0   :  { %v10640_v1 = vpop.f32.mrf.mxu1 }
0x37e1   :  { %v13404_v3 = vadd.f32 %v10640_v1, %v9477_v58 }
0x37e2   :  { %v6410_v49 = vpop.f32.mrf.mxu1 }
0x37e3   :  { %v6411_v27 = vadd.f32 %v9477_v58, %v6410_v49  ;;  %v6566_v1 = vmul.f32 %v11804_v54, %v13404_v3 }
0x37e4   :  { %v10641_v57 = vpop.f32.mrf.mxu1 }
0x37e5   :  { %v6564_v20 = vmul.f32 %v11804_v54, %v6411_v27  ;;  %v6669_v29 = vmul.f32 %v11807_v55, %v6411_v27  ;;  %v13366_v19 = vmul.f32 %v11821_v61, %v6411_v27  ;;  %v13377_v11 = vmul.f32 %v11773_v7, %v6411_v27 }
0x37e6   :  { %v6413_v23 = vpop.f32.mrf.mxu1 }
0x37e7   :  { %v6414_v30 = vadd.f32 %v9477_v58, %v6413_v23 }
0x37e8   :  { %v10648_v33 = vpop.f32.mrf.mxu1 }
0x37e9   :  { %v6565_v32 = vmul.f32 %v11804_v54, %v6414_v30  ;;  %v6670_v42 = vmul.f32 %v11807_v55, %v6414_v30  ;;  %v13371_v43 = vmul.f32 %v11821_v61, %v6414_v30  ;;  %v13374_v31 = vmul.f32 %v11773_v7, %v6414_v30 }
0x37ea   :  { %v6488_v2 = vadd.f32 %v10648_v33, %v9482_v10  ;;  %v6479_v56 = vpop.f32.mrf.mxu1 }
0x37eb   :  { %v6567_v17 = vpack.c.bf16 %v6565_v32, %v6564_v20  ;;  %v6672_v37 = vpack.c.bf16 %v6670_v42, %v6669_v29  ;;  %v6885_v24 = vpack.c.bf16 %v13371_v43, %v13366_v19  ;;  %v7044_v63 = vpack.c.bf16 %v13374_v31, %v13377_v11 }
0x37ec   :  { %v13381_v5 = vpack.c.bf16 %v6488_v2, %v6488_v2  ;;  %v10649_v9 = vpop.f32.mrf.mxu1  ;;  %v6480_v40 = vadd.f32 %v9482_v10, %v6479_v56  ;;  %v6671_v20 = vmul.f32 %v11807_v55, %v13404_v3 }
0x37ed   :  { %10662 = vmatprep.mubr.msk.bf16.mxu1 %vm448_vm2, %v6567_v17  ;;  %10670 = vmatprep.mubr.msk.bf16.mxu0 %vm448_vm2, %v6672_v37  ;;  %v6568_v37 = vpack.c.bf16 %v6566_v1, %v6566_v1 }
0x37ee   :  { %10940 = vmatprep.subr.msk.bf16.mxu1 %vm448_vm2, %v13381_v5  ;;  %10942 = vmatprep.subr.msk.bf16.mxu0 %vm448_vm2, %v13381_v5  ;;  %v6482_v14 = vpop.f32.mrf.mxu1  ;;  %v13393_v48 = vsel %vm448_vm2, %v13381_v5, 0 }
0x37ef   :  { %v6483_v4 = vadd.f32 %v9482_v10, %v6482_v14  ;;  %10659 = vmatpush3.bf16.xpose.msra.mxu1 %v13393_v48  ;;  %10667 = vmatpush3.bf16.xpose.msra.mxu0 %v13393_v48  ;;  %v6673_v14 = vpack.c.bf16 %v6671_v20, %v6671_v20 }
0x37f0   :  { %v10656_v12 = vpop.f32.mrf.mxu1 }
0x37f1   :  { %v13400_v45 = vpack.c.bf16 %v6483_v4, %v6480_v40  ;;  %v13402_v60 = vadd.f32 %v10656_v12, %v9487_v59 }
0x37f2   :  { %v6548_v36 = vpop.f32.mrf.mxu1 }
0x37f3   :  { %10941 = vmatprep.subr.msk.bf16.mxu1 %vm448_vm2, %v13400_v45  ;;  %10943 = vmatprep.subr.msk.bf16.mxu0 %vm448_vm2, %v13400_v45  ;;  %v6676_v38 = vmul.f32 %v11807_v55, %v13402_v60  ;;  %v6571_v47 = vmul.f32 %v11804_v54, %v13402_v60  ;;  %v6549_v50 = vadd.f32 %v9487_v59, %v6548_v36  ;;  %v13418_v57 = vsel %vm448_vm2, %v13400_v45, 0 }
0x37f4   :  { %v10657_v21 = vpop.f32.mrf.mxu1  ;;  %v6889_v29 = vmul.f32 %v11821_v61, %v13402_v60 }
0x37f5   :  { %v6678_v49 = vpack.c.bf16 %v6676_v38, %v6676_v38  ;;  %v6573_v27 = vpack.c.bf16 %v6571_v47, %v6571_v47  ;;  %v7046_v33 = vmul.f32 %v11773_v7, %v6549_v50  ;;  %v6887_v56 = vmul.f32 %v11821_v61, %v6549_v50 }
0x37f6   :  { %v6551_v58 = vpop.f32.mrf.mxu1  ;;  %v6569_v40 = vmul.f32 %v11804_v54, %v6549_v50  ;;  %v6891_v38 = vpack.c.bf16 %v6889_v29, %v6889_v29 }
0x37f7   :  { %v6552_v23 = vadd.f32 %v9487_v59, %v6551_v58  ;;  %10661 = vmatpush3.bf16.xpose.msra.mxu1 %v13418_v57  ;;  %10669 = vmatpush3.bf16.xpose.msra.mxu0 %v13418_v57  ;;  %v6775_v30 = vand.u32 %v6678_v49, %v11860_v18  ;;  %v6832_v10 = vand.u32 %v6573_v27, %v11860_v18 }
0x37f8   :  { %v6674_v59 = vmul.f32 %v11807_v55, %v6549_v50  ;;  %v13443_v47 = vand.u32 %v6891_v38, %v11860_v18 }
0x37f9   :  { %10674 = vmatprep.subr.bf16.mxu1 %v6775_v30  ;;  %10682 = vmatprep.subr.bf16.mxu0 %v6832_v10  ;;  %v7047_v32 = vmul.f32 %v11773_v7, %v6552_v23  ;;  %v6675_v42 = vmul.f32 %v11807_v55, %v6552_v23  ;;  %v6570_v2 = vmul.f32 %v11804_v54, %v6552_v23 }
0x37fa   :  { %v6888_v17 = vmul.f32 %v11821_v61, %v6552_v23 }
0x37fb   :  { %v13434_v9 = vpack.c.bf16 %v7047_v32, %v7046_v33  ;;  %v6677_v12 = vpack.c.bf16 %v6675_v42, %v6674_v59  ;;  %v6572_v36 = vpack.c.bf16 %v6570_v2, %v6569_v40 }
0x37fc   :  { %v13438_v4 = vpack.c.bf16 %v6888_v17, %v6887_v56 }
0x37fe   :  { %10663 = vmatmul.mubr.msk.bf16.vlgmr.msra.gmra.mxu1 %vm448_vm2, %v6568_v37  ;;  %10671 = vmatmul.mubr.msk.bf16.vlgmr.msra.gmra.mxu0 %vm448_vm2, %v6673_v14 }
0x37ff   :  { %10675 = vmatpush3.bf16.msra.mxu1 %v6775_v30  ;;  %10683 = vmatpush3.bf16.msra.mxu0 %v6832_v10 }
0x3800   :  { %10676 = vmatprep.subr.bf16.mxu1 %v6677_v12  ;;  %10684 = vmatprep.subr.bf16.mxu0 %v6572_v36 }
0x3803   :  { %10677 = vmatpush3.bf16.msra.mxu1 %v6677_v12  ;;  %10685 = vmatpush3.bf16.msra.mxu0 %v6572_v36 }
0x3804   :  { %10944 = vmatprep.subr.msk.bf16.mxu1 %vm448_vm2, %v13381_v5  ;;  %10698 = vmatprep.subr.bf16.mxu0 %v13443_v47 }
0x38be   :  { %v13448_v21 = vpop.f32.mrf.mxu1  ;;  %v10672_v50 = vpop.f32.mrf.mxu0 }
0x38bf   :  { %v6739_v10 = vsel %vm798_vm4, %v10672_v50, -inf }
0x38c0   :  { %v13450_v49 = vpop.f32.mrf.mxu1  ;;  %v6719_v27 = vpop.f32.mrf.mxu0 }
0x38c1   :  { %v6733_v1 = vsel %vm791_vm15, %v6719_v27, -inf }
0x38c2   :  { %6734 = vmax.xlane.f32.xlu0 %v6733_v1  ;;  %v10665_v58 = vpop.f32.mrf.mxu1  ;;  %v10673_v23 = vpop.f32.mrf.mxu0 }
0x38c3   :  { %v6634_v58 = vsel %vm791_vm15, %v13450_v49, -inf  ;;  %v6640_v23 = vsel %vm798_vm4, %v13448_v21, -inf }
0x38c4   :  { %v6722_v30 = vpop.f32.mrf.mxu0  ;;  %v6623_v1 = vpop.f32.mrf.mxu1 }
0x38c5   :  { %v6736_v20 = vsel %vm791_vm15, %v6722_v30, -inf }
0x38c6   :  { %6740 = vmax.xlane.f32.xlu0 %v6739_v10  ;;  %6737 = vmax.xlane.f32.xlu1 %v6736_v20 }
0x394b   :  { %v6735_v29 = vpop.xlane.xlu0 %6734 }
0x394c   :  { %v6742_v33 = vsub.f32 %v6719_v27, %v6735_v29 }
0x394e   :  { %v6745_v32 = vmul.f32 1.442695, %v6742_v33 }
0x394f   :  { %v6741_v42 = vpop.xlane.xlu0 %6740  ;;  %v6738_v2 = vpop.xlane.xlu1 %6737 }
0x3950   :  { %11404 = vpow2.f32 %v6745_v32  ;;  %v6744_v56 = vsub.f32 %v10672_v50, %v6741_v42  ;;  %v6743_v17 = vsub.f32 %v6722_v30, %v6738_v2  ;;  %v6637_v50 = vsel %vm791_vm15, %v6623_v1, -inf }
0x3952   :  { %v6749_v37 = vmul.f32 1.442695, %v6744_v56  ;;  %v6747_v14 = vmul.f32 1.442695, %v6743_v17 }
0x3954   :  { %11406 = vpow2.f32 %v6749_v37 }
0x3955   :  { %11408 = vpow2.f32 %v6747_v14  ;;  %v7048_v14 = vmul.f32 %v11773_v7, %v13402_v60 }
0x395d   :  { %v11405_v59 = vpop.eup %11404 }
0x395e   :  { %v6751_v40 = vsel %vm791_vm15, %v11405_v59, 0.0 }
0x395f   :  { %6752 = vadd.xlane.f32.xlu1 %v6751_v40 }
0x3961   :  { %v11407_v12 = vpop.eup %11406 }
0x3962   :  { %v11409_v36 = vpop.eup %11408  ;;  %v6757_v38 = vsel %vm798_vm4, %v11407_v12, 0.0 }
0x3963   :  { %6758 = vadd.xlane.f32.xlu1 %v6757_v38  ;;  %v6754_v27 = vsel %vm791_vm15, %v11409_v36, 0.0 }
0x3964   :  { %6755 = vadd.xlane.f32.xlu0 %v6754_v27 }
0x3967   :  { %6638 = vmax.xlane.f32.xlu1 %v6637_v50 }
0x3968   :  { %6635 = vmax.xlane.f32.xlu0 %v6634_v58 }
0x396c   :  { %6641 = vmax.xlane.f32.xlu0 %v6640_v23 }
0x39e8   :  { %v6753_v30 = vpop.xlane.xlu1 %6752 }
0x39e9   :  { %11410 = vrcp.f32 %v6753_v30 }
0x39ec   :  { %v6759_v10 = vpop.xlane.xlu1 %6758 }
0x39ed   :  { %v6756_v20 = vpop.xlane.xlu0 %6755  ;;  %11412 = vrcp.f32 %v6759_v10 }
0x39ee   :  { %11414 = vrcp.f32 %v6756_v20 }
0x39f0   :  { %v6639_v43 = vpop.xlane.xlu1 %6638 }
0x39f1   :  { %v6636_v19 = vpop.xlane.xlu0 %6635 }
0x39f2   :  { %v6643_v27 = vsub.f32 %v13450_v49, %v6636_v19 }
0x39f4   :  { %v6646_v30 = vmul.f32 1.442695, %v6643_v27 }
0x39f5   :  { %v6642_v50 = vpop.xlane.xlu0 %6641 }
0x39f6   :  { %v11411_v29 = vpop.eup %11410  ;;  %v6645_v10 = vsub.f32 %v13448_v21, %v6642_v50 }
0x39f7   :  { %v6763_v2 = vmul.f32 %v11411_v29, %v11405_v59  ;;  %v7050_v59 = vpack.c.bf16 %v7048_v14, %v7048_v14 }
0x39f8   :  { %v6650_v20 = vmul.f32 1.442695, %v6645_v10 }
0x39f9   :  { %v7147_v40 = vand.u32 %v7050_v59, %v11860_v18 }
0x39fa   :  { %v11413_v33 = vpop.eup %11412 }
0x39fb   :  { %v11415_v32 = vpop.eup %11414  ;;  %v6765_v42 = vmul.f32 %v11413_v33, %v11407_v12  ;;  %v6884_v12 = vmul.f32 %v11821_v61, %v13404_v3 }
0x39fc   :  { %v6764_v56 = vmul.f32 %v11415_v32, %v11409_v36  ;;  %v6644_v36 = vsub.f32 %v6623_v1, %v6639_v43 }
0x39fd   :  { %v6767_v17 = vpack.c.bf16 %v6765_v42, %v6765_v42  ;;  %v6886_v60 = vpack.c.bf16 %v6884_v12, %v6884_v12 }
0x39fe   :  { %v6766_v37 = vpack.c.bf16 %v6764_v56, %v6763_v2  ;;  %v6648_v23 = vmul.f32 1.442695, %v6644_v36 }
0x3a00   :  { %10678 = vmatprep.mubr.msk.bf16.mxu1 %vm791_vm15, %v6766_v37  ;;  %11416 = vpow2.f32 %v6648_v23 }
0x3a01   :  { %10679 = vmatmul.mubr.msk.bf16.vlgmr.msra.gmra.mxu1 %vm791_vm15, %v6767_v17  ;;  %11418 = vpow2.f32 %v6646_v30 }
0x3a02   :  { %10691 = vmatpush3.bf16.xpose.msra.mxu1 %v13393_v48  ;;  %10694 = vmatprep.mubr.msk.bf16.mxu1 %vm448_vm2, %v6885_v24  ;;  %11420 = vpow2.f32 %v6650_v20 }
0x3a03   :  { %10945 = vmatprep.subr.msk.bf16.mxu1 %vm448_vm2, %v13400_v45 }
0x3a0a   :  { %10693 = vmatpush3.bf16.xpose.msra.mxu1 %v13418_v57 }
0x3a0b   :  { %10714 = vmatprep.subr.bf16.mxu1 %v7147_v40 }
0x3a0d   :  { %v11417_v49 = vpop.eup %11416 }
0x3a0e   :  { %v11419_v17 = vpop.eup %11418  ;;  %v6655_v37 = vsel %vm791_vm15, %v11417_v49, 0.0 }
0x3a0f   :  { %v6652_v21 = vsel %vm791_vm15, %v11419_v17, 0.0  ;;  %v11421_v14 = vpop.eup %11420 }
0x3a10   :  { %v6658_v59 = vsel %vm798_vm4, %v11421_v14, 0.0 }
0x3a11   :  { %10695 = vmatmul.mubr.msk.bf16.vlgmr.msra.gmra.mxu1 %vm448_vm2, %v6886_v60 }
0x3a12   :  { %10715 = vmatpush3.bf16.msra.mxu1 %v7147_v40 }
0x3a13   :  { %10716 = vmatprep.subr.bf16.mxu1 %v13434_v9 }
0x3a16   :  { %10717 = vmatpush3.bf16.msra.mxu1 %v13434_v9 }
0x3ac1   :  { %v13481_v24 = vpop.f32.mrf.mxu1 }
0x3ac3   :  { %v13483_v38 = vpop.f32.mrf.mxu1 }
0x3ac5   :  { %v10681_v58 = vpop.f32.mrf.mxu1 }
0x3ac7   :  { %v13487_v29 = vpop.f32.mrf.mxu1 }
0x3ad1   :  { %v10696_v9 = vpop.f32.mrf.mxu1 }
0x3ad2   :  { %v6952_v56 = vsel %vm798_vm4, %v10696_v9, -inf }
0x3ad3   :  { %v6932_v33 = vpop.f32.mrf.mxu1 }
0x3ad4   :  { %v6946_v1 = vsel %vm791_vm15, %v6932_v33, -inf }
0x3ad5   :  { %v10697_v32 = vpop.f32.mrf.mxu1  ;;  %6947 = vmax.xlane.f32.xlu1 %v6946_v1 }
0x3ad7   :  { %v6935_v42 = vpop.f32.mrf.mxu1 }
0x3ad8   :  { %v6949_v2 = vsel %vm791_vm15, %v6935_v42, -inf }
0x3ad9   :  { %6950 = vmax.xlane.f32.xlu0 %v6949_v2  ;;  %6953 = vmax.xlane.f32.xlu1 %v6952_v56 }
0x3add   :  { %6653 = vadd.xlane.f32.xlu0 %v6652_v21  ;;  %6656 = vadd.xlane.f32.xlu1 %v6655_v37 }
0x3ae1   :  { %6659 = vadd.xlane.f32.xlu0 %v6658_v59 }
0x3b5e   :  { %v6948_v40 = vpop.xlane.xlu1 %6947 }
0x3b5f   :  { %v6955_v12 = vsub.f32 %v6932_v33, %v6948_v40 }
0x3b61   :  { %v6958_v60 = vmul.f32 1.442695, %v6955_v12 }
0x3b62   :  { %v6951_v19 = vpop.xlane.xlu0 %6950  ;;  %v6954_v43 = vpop.xlane.xlu1 %6953 }
0x3b63   :  { %11422 = vpow2.f32 %v6958_v60  ;;  %v6956_v36 = vsub.f32 %v6935_v42, %v6951_v19  ;;  %v6957_v27 = vsub.f32 %v10696_v9, %v6954_v43 }
0x3b65   :  { %v6960_v50 = vmul.f32 1.442695, %v6956_v36  ;;  %v6962_v58 = vmul.f32 1.442695, %v6957_v27 }
0x3b66   :  { %v6654_v23 = vpop.xlane.xlu0 %6653  ;;  %v6657_v30 = vpop.xlane.xlu1 %6656 }
0x3b67   :  { %11424 = vpow2.f32 %v6960_v50 }
0x3b68   :  { %11426 = vpow2.f32 %v6962_v58 }
0x3b69   :  { %11428 = vrcp.f32 %v6654_v23 }
0x3b6a   :  { %11430 = vrcp.f32 %v6657_v30  ;;  %v6660_v10 = vpop.xlane.xlu0 %6659 }
0x3b6b   :  { %11432 = vrcp.f32 %v6660_v10 }
0x3b70   :  { %v11423_v20 = vpop.eup %11422 }
0x3b71   :  { %v6964_v1 = vsel %vm791_vm15, %v11423_v20, 0.0 }
0x3b72   :  { %6965 = vadd.xlane.f32.xlu1 %v6964_v1 }
0x3b74   :  { %v11425_v33 = vpop.eup %11424 }
0x3b75   :  { %v11427_v32 = vpop.eup %11426  ;;  %v6967_v2 = vsel %vm791_vm15, %v11425_v33, 0.0 }
0x3b76   :  { %v11429_v42 = vpop.eup %11428  ;;  %6968 = vadd.xlane.f32.xlu0 %v6967_v2  ;;  %v6970_v9 = vsel %vm798_vm4, %v11427_v32, 0.0 }
0x3b77   :  { %v11431_v56 = vpop.eup %11430  ;;  %6971 = vadd.xlane.f32.xlu1 %v6970_v9  ;;  %v6664_v21 = vmul.f32 %v11429_v42, %v11419_v17 }
0x3b78   :  { %v11433_v37 = vpop.eup %11432  ;;  %v6665_v59 = vmul.f32 %v11431_v56, %v11417_v49 }
0x3b79   :  { %v6666_v40 = vmul.f32 %v11433_v37, %v11421_v14 }
0x3b7a   :  { %v6667_v12 = vpack.c.bf16 %v6665_v59, %v6664_v21 }
0x3b7b   :  { %v6668_v60 = vpack.c.bf16 %v6666_v40, %v6666_v40 }
0x3b7c   :  { %10686 = vmatprep.mubr.msk.bf16.mxu0 %vm791_vm15, %v6667_v12 }
0x3b7d   :  { %10687 = vmatmul.mubr.msk.bf16.vlgmr.msra.gmra.mxu0 %vm791_vm15, %v6668_v60 }
0x3b7e   :  { %10699 = vmatpush3.bf16.msra.mxu0 %v13443_v47 }
0x3b7f   :  { %10700 = vmatprep.subr.bf16.mxu0 %v13438_v4 }
0x3b82   :  { %10701 = vmatpush3.bf16.msra.mxu0 %v13438_v4 }
0x3b83   :  { %10946 = vmatprep.subr.msk.bf16.mxu0 %vm448_vm2, %v13381_v5  ;;  %v7043_v5 = vmul.f32 %v11773_v7, %v13404_v3 }
0x3b85   :  { %v7045_v4 = vpack.c.bf16 %v7043_v5, %v7043_v5 }
0x3bfb   :  { %v6966_v19 = vpop.xlane.xlu1 %6965 }
0x3bfc   :  { %11434 = vrcp.f32 %v6966_v19 }
0x3bff   :  { %v6969_v17 = vpop.xlane.xlu0 %6968 }
0x3c00   :  { %11436 = vrcp.f32 %v6969_v17  ;;  %v6972_v49 = vpop.xlane.xlu1 %6971 }
0x3c01   :  { %11438 = vrcp.f32 %v6972_v49 }
0x3c09   :  { %v11435_v14 = vpop.eup %11434 }
0x3c0a   :  { %v6976_v27 = vmul.f32 %v11435_v14, %v11423_v20 }
0x3c0d   :  { %v11437_v43 = vpop.eup %11436 }
0x3c0e   :  { %v11439_v36 = vpop.eup %11438  ;;  %v6977_v50 = vmul.f32 %v11437_v43, %v11425_v33 }
0x3c0f   :  { %v6978_v58 = vmul.f32 %v11439_v36, %v11427_v32 }
0x3c10   :  { %v6979_v47 = vpack.c.bf16 %v6977_v50, %v6976_v27 }
0x3c11   :  { %v6980_v23 = vpack.c.bf16 %v6978_v58, %v6978_v58 }
0x3c12   :  { %10702 = vmatprep.mubr.msk.bf16.mxu0 %vm791_vm15, %v6979_v47 }
0x3c13   :  { %10703 = vmatmul.mubr.msk.bf16.vlgmr.msra.gmra.mxu0 %vm791_vm15, %v6980_v23 }
0x3c14   :  { %10707 = vmatpush3.bf16.xpose.msra.mxu0 %v13393_v48  ;;  %10710 = vmatprep.mubr.msk.bf16.mxu0 %vm448_vm2, %v7044_v63 }
0x3c15   :  { %10947 = vmatprep.subr.msk.bf16.mxu0 %vm448_vm2, %v13400_v45 }
0x3c1c   :  { %10709 = vmatpush3.bf16.xpose.msra.mxu0 %v13418_v57 }
0x3c23   :  { %10711 = vmatmul.mubr.msk.bf16.vlgmr.msra.gmra.mxu0 %vm448_vm2, %v7045_v4 }
0x3c3d   :  { %v10688_v30 = vpop.f32.mrf.mxu0 }
0x3c3e   :  { %v6877_v31 = vadd.f32 %v10688_v30, %v13481_v24 }
0x3c3f   :  { %v6868_v10 = vpop.f32.mrf.mxu0 }
0x3c40   :  { %v6869_v63 = vadd.f32 %v6868_v10, %v13483_v38 }
0x3c41   :  { %v10689_v20 = vpop.f32.mrf.mxu0 }
0x3c43   :  { %v13518_v48 = vpop.f32.mrf.mxu0 }
0x3cd3   :  { %v10704_v11 = vpop.f32.mrf.mxu0 }
0x3cd4   :  { %v13522_v1 = vadd.f32 %v10704_v11, %v6877_v31 }
0x3cd5   :  { %v7024_v45 = vpop.f32.mrf.mxu0 }
0x3cd6   :  { %v13524_v57 = vadd.f32 %v7024_v45, %v6869_v63 }
0x3cd7   :  { %v10705_v33 = vpop.f32.mrf.mxu0 }
0x3cd8   :  { %v11053_v33 = vld [vmem:[%s14150_s3 + $0xe0] sm:$0xff]  }
0x3cd9   :  { %v7027_v3 = vpop.f32.mrf.mxu0  ;;  %10722 = vmatprep.subr.bf16.mxu1 %v11053_v33 }
0x3ce3   :  { %v10712_v32 = vpop.f32.mrf.mxu0 }
0x3ce4   :  { %v7111_v21 = vsel %vm798_vm4, %v10712_v32, -inf }
0x3ce5   :  { %v7091_v2 = vpop.f32.mrf.mxu0 }
0x3ce6   :  { %v7105_v42 = vsel %vm791_vm15, %v7091_v2, -inf }
0x3ce7   :  { %7106 = vmax.xlane.f32.xlu0 %v7105_v42  ;;  %v10713_v9 = vpop.f32.mrf.mxu0 }
0x3ce8   :  { %v6872_v9 = vadd.f32 %v13518_v48, %v13487_v29  ;;  %v9512_v48 = vld [vmem:[%s14152_s2 + $0x5f] ss:$0 sm:$0xff] }
0x3ce9   :  { %v7094_v56 = vpop.f32.mrf.mxu0 }
0x3cea   :  { %v7108_v24 = vsel %vm791_vm15, %v7094_v56, -inf }
0x3ceb   :  { %7112 = vmax.xlane.f32.xlu0 %v7111_v21  ;;  %7109 = vmax.xlane.f32.xlu1 %v7108_v24  ;;  %v7039_v21 = vadd.f32 %v7027_v3, %v6872_v9 }
0x3d70   :  { %v7107_v38 = vpop.xlane.xlu0 %7106 }
0x3d71   :  { %v7114_v37 = vsub.f32 %v7091_v2, %v7107_v38 }
0x3d73   :  { %v7117_v59 = vmul.f32 1.442695, %v7114_v37 }
0x3d74   :  { %v7113_v40 = vpop.xlane.xlu0 %7112  ;;  %v7110_v12 = vpop.xlane.xlu1 %7109 }
0x3d75   :  { %11440 = vpow2.f32 %v7117_v59  ;;  %v7116_v60 = vsub.f32 %v10712_v32, %v7113_v40  ;;  %v7115_v19 = vsub.f32 %v7094_v56, %v7110_v12  ;;  %v11054_v32 = vld [vmem:[%s14150_s3 + $0xd8] sm:$0xff]  }
0x3d77   :  { %v7121_v17 = vmul.f32 1.442695, %v7116_v60  ;;  %v7119_v49 = vmul.f32 1.442695, %v7115_v19 }
0x3d79   :  { %11442 = vpow2.f32 %v7121_v17 }
0x3d7a   :  { %11444 = vpow2.f32 %v7119_v49 }
0x3d82   :  { %v11441_v14 = vpop.eup %11440 }
0x3d83   :  { %v7123_v43 = vsel %vm791_vm15, %v11441_v14, 0.0 }
0x3d84   :  { %7124 = vadd.xlane.f32.xlu1 %v7123_v43 }
0x3d86   :  { %v11443_v36 = vpop.eup %11442 }
0x3d87   :  { %v11445_v27 = vpop.eup %11444  ;;  %v7129_v50 = vsel %vm798_vm4, %v11443_v36, 0.0 }
0x3d88   :  { %7130 = vadd.xlane.f32.xlu1 %v7129_v50  ;;  %v7126_v58 = vsel %vm791_vm15, %v11445_v27, 0.0 }
0x3d89   :  { %7127 = vadd.xlane.f32.xlu0 %v7126_v58 }
0x3e0d   :  { %v7125_v47 = vpop.xlane.xlu1 %7124 }
0x3e0e   :  { %11446 = vrcp.f32 %v7125_v47  ;;  %v9532_v47 = vld [vmem:[%s14149_s1 + $0xd8] sm:$0xff] }
0x3e11   :  { %v7131_v23 = vpop.xlane.xlu1 %7130 }
0x3e12   :  { %v7128_v5 = vpop.xlane.xlu0 %7127  ;;  %11448 = vrcp.f32 %v7131_v23  ;;  %v9531_v23 = vld [vmem:[%s14149_s1 + $0xd0] sm:$0xff] }
0x3e13   :  { %11450 = vrcp.f32 %v7128_v5  ;;  %v7587_v5 = vsel %vm78_vm0, %v9532_v47, 0.0 }
0x3e1b   :  { %v11447_v4 = vpop.eup %11446 }
0x3e1c   :  { %v7135_v31 = vmul.f32 %v11447_v4, %v11441_v14  ;;  %v7584_v4 = vsel %vm78_vm0, %v9531_v23, 0.0 }
0x3e1f   :  { %v11449_v30 = vpop.eup %11448 }
0x3e20   :  { %v11451_v10 = vpop.eup %11450  ;;  %v7137_v20 = vmul.f32 %v11449_v30, %v11443_v36  ;;  %v9534_v30 = vld [vmem:[%s14149_s1 + $0xe8] sm:$0xff] }
0x3e21   :  { %v7136_v11 = vmul.f32 %v11451_v10, %v11445_v27  ;;  %v9533_v10 = vld [vmem:[%s14149_s1 + $0xe0] sm:$0xff] }
0x3e22   :  { %v7139_v63 = vpack.c.bf16 %v7137_v20, %v7137_v20  ;;  %v7593_v20 = vsel %vm78_vm0, %v9534_v30, 0.0 }
0x3e23   :  { %v7138_v45 = vpack.c.bf16 %v7136_v11, %v7135_v31  ;;  %v7590_v31 = vsel %vm78_vm0, %v9533_v10, 0.0  ;;  %v9536_v11 = vld [vmem:[%s14149_s1 + $0xf8] sm:$0xff] }
0x3e25   :  { %10718 = vmatprep.mubr.msk.bf16.mxu1 %vm791_vm15, %v7138_v45  ;;  %v7599_v45 = vsel %vm78_vm0, %v9536_v11, 0.0 }
0x3e26   :  { %10719 = vmatmul.mubr.msk.bf16.vlgmr.msra.gmra.mxu1 %vm791_vm15, %v7139_v63  ;;  %v9535_v63 = vld [vmem:[%s14149_s1 + $0xf0] sm:$0xff] }
0x3e27   :  { %10723 = vmatpush3.bf16.msra.mxu1 %v11053_v33  ;;  %v7596_v33 = vsel %vm78_vm0, %v9535_v63, 0.0 }
0x3e28   :  { %10724 = vmatprep.subr.bf16.mxu1 %v11054_v32 }
0x3e2b   :  { %10725 = vmatpush3.bf16.msra.mxu1 %v11054_v32 }
0x3ee6   :  { %v10720_v2 = vpop.f32.mrf.mxu1 }
0x3ee7   :  { %v7199_v24 = vadd.f32 %v10720_v2, %v13522_v1 }
0x3ee8   :  { %v7183_v42 = vpop.f32.mrf.mxu1 }
0x3ee9   :  { %v7197_v37 = vadd.f32 %v7183_v42, %v13524_v57  ;;  %v7205_v12 = vpack.c.bf16 %v7199_v24, %v7199_v24 }
0x3eea   :  { %v10721_v56 = vpop.f32.mrf.mxu1 }
0x3eec   :  { %v7186_v38 = vpop.f32.mrf.mxu1 }
0x3eed   :  { %v7198_v59 = vadd.f32 %v7186_v38, %v7039_v21 }
0x3eef   :  { %v7204_v40 = vpack.c.bf16 %v7198_v59, %v7197_v37 }
0x3ef1   :  { %10726 = vmatprep.mubr.msk.bf16.mxu1 %vm448_vm2, %v7204_v40 }
0x3ef2   :  { %10727 = vmatmul.mubr.msk.bf16.vlgmr.msra.gmra.mxu1 %vm448_vm2, %v7205_v12 }
0x3fb2   :  { %v10728_v60 = vpop.f32.mrf.mxu1 }
0x3fb3   :  { %v7274_v17 = vadd.f32 %v10728_v60, %v13308_v22  ;;  %v9529_v22 = vld [vmem:[%s14149_s1 + $0xc0] sm:$0xff] }
0x3fb4   :  { %v7258_v19 = vpop.f32.mrf.mxu1  ;;  %v7578_v58 = vsel %vm78_vm0, %v9529_v22, 0.0 }
0x3fb5   :  { %v7272_v29 = vadd.f32 %v7258_v19, %v13302_v39  ;;  %v13553_v49 = vadd.f32 %v9512_v48, %v7274_v17  ;;  %v9530_v39 = vld [vmem:[%s14149_s1 + $0xc8] sm:$0xff] }
0x3fb6   :  { %v10729_v1 = vpop.f32.mrf.mxu1  ;;  %v7581_v50 = vsel %vm78_vm0, %v9530_v39, 0.0 }
0x3fb7   :  { %v13551_v3 = vadd.f32 %v9512_v48, %v7272_v29  ;;  %v7291_v27 = vsel %vm455_vm3, %v13553_v49, 0.0 }
0x3fb8   :  { %v7261_v57 = vpop.f32.mrf.mxu1 }
0x3fb9   :  { %v7273_v14 = vadd.f32 %v7261_v57, %v13315_v0  ;;  %v7285_v43 = vsel %vm448_vm2, %v13551_v3, 0.0 }
0x3fba   :  { %7286 = vadd.xlane.f32.xlu0 %v7285_v43 }
0x3fbb   :  { %v13558_v36 = vadd.f32 %v9512_v48, %v7273_v14 }
0x3fbd   :  { %v7288_v0 = vsel %vm448_vm2, %v13558_v36, 0.0 }
0x3fbe   :  { %7292 = vadd.xlane.f32.xlu0 %v7291_v27  ;;  %7289 = vadd.xlane.f32.xlu1 %v7288_v0 }
0x3fc2   :  { %7582 = vadd.xlane.f32.xlu0 %v7581_v50  ;;  %7579 = vadd.xlane.f32.xlu1 %v7578_v58 }
0x3fc6   :  { %7588 = vadd.xlane.f32.xlu0 %v7587_v5  ;;  %7585 = vadd.xlane.f32.xlu1 %v7584_v4 }
0x3fca   :  { %7594 = vadd.xlane.f32.xlu0 %v7593_v20  ;;  %7591 = vadd.xlane.f32.xlu1 %v7590_v31 }
0x3fce   :  { %7600 = vadd.xlane.f32.xlu0 %v7599_v45  ;;  %7597 = vadd.xlane.f32.xlu1 %v7596_v33 }
0x4043   :  { %v7287_v32 = vpop.xlane.xlu0 %7286 }
0x4044   :  { %v7294_v2 = vmul.f32 0.03125, %v7287_v32 }
0x4046   :  { %v13597_v42 = vsub.f32 %v13551_v3, %v7294_v2 }
0x4047   :  { %v7293_v9 = vpop.xlane.xlu0 %7292  ;;  %v7290_v56 = vpop.xlane.xlu1 %7289 }
0x4048   :  { %v7296_v21 = vmul.f32 0.03125, %v7293_v9  ;;  %v7295_v24 = vmul.f32 0.03125, %v7290_v56  ;;  %v7300_v38 = vmul.f32 %v13597_v42, %v13597_v42 }
0x404a   :  { %v13602_v37 = vsub.f32 %v13553_v49, %v7296_v21  ;;  %v13605_v59 = vsub.f32 %v13558_v36, %v7295_v24  ;;  %v7303_v40 = vsel %vm448_vm2, %v7300_v38, 0.0 }
0x404b   :  { %v7583_v12 = vpop.xlane.xlu0 %7582  ;;  %7304 = vadd.xlane.f32.xlu1 %v7303_v40  ;;  %v7580_v60 = vpop.xlane.xlu1 %7579 }
0x404c   :  { %v7603_v19 = vmul.f32 0.020833334, %v7583_v12  ;;  %v7602_v17 = vmul.f32 0.020833334, %v7580_v60  ;;  %v7302_v29 = vmul.f32 %v13602_v37, %v13602_v37  ;;  %v7301_v48 = vmul.f32 %v13605_v59, %v13605_v59 }
0x404e   :  { %v13612_v1 = vsub.f32 %v9530_v39, %v7603_v19  ;;  %v13614_v57 = vsub.f32 %v9529_v22, %v7602_v17  ;;  %v7309_v14 = vsel %vm455_vm3, %v7302_v29, 0.0  ;;  %v7306_v43 = vsel %vm448_vm2, %v7301_v48, 0.0 }
0x404f   :  { %v7589_v27 = vpop.xlane.xlu0 %7588  ;;  %7310 = vadd.xlane.f32.xlu1 %v7309_v14  ;;  %7307 = vadd.xlane.f32.xlu0 %v7306_v43  ;;  %v7586_v0 = vpop.xlane.xlu1 %7585 }
0x4050   :  { %v7605_v50 = vmul.f32 0.020833334, %v7589_v27  ;;  %v7604_v58 = vmul.f32 0.020833334, %v7586_v0  ;;  %v7619_v5 = vmul.f32 %v13612_v1, %v13612_v1  ;;  %v7618_v4 = vmul.f32 %v13614_v57, %v13614_v57 }
0x4052   :  { %v13622_v39 = vsub.f32 %v9532_v47, %v7605_v50  ;;  %v13624_v22 = vsub.f32 %v9531_v23, %v7604_v58  ;;  %v7629_v20 = vsel %vm78_vm0, %v7619_v5, 0.0  ;;  %v7626_v31 = vsel %vm78_vm0, %v7618_v4, 0.0  ;;  %v13663_v50 = vld [vmem:[%s14150_s3 + $0x1f0] sm:$0xff]  }
0x4053   :  { %v7595_v45 = vpop.xlane.xlu0 %7594  ;;  %7630 = vadd.xlane.f32.xlu1 %v7629_v20  ;;  %7627 = vadd.xlane.f32.xlu0 %v7626_v31  ;;  %v7592_v33 = vpop.xlane.xlu1 %7591 }
0x4054   :  { %v7607_v32 = vmul.f32 0.020833334, %v7595_v45  ;;  %v7606_v2 = vmul.f32 0.020833334, %v7592_v33  ;;  %v7621_v9 = vmul.f32 %v13622_v39, %v13622_v39  ;;  %v7620_v56 = vmul.f32 %v13624_v22, %v13624_v22 }
0x4056   :  { %v13632_v47 = vsub.f32 %v9534_v30, %v7607_v32  ;;  %v13634_v23 = vsub.f32 %v9533_v10, %v7606_v2  ;;  %v7635_v21 = vsel %vm78_vm0, %v7621_v9, 0.0  ;;  %v7632_v24 = vsel %vm78_vm0, %v7620_v56, 0.0 }
0x4057   :  { %v7601_v38 = vpop.xlane.xlu0 %7600  ;;  %7636 = vadd.xlane.f32.xlu1 %v7635_v21  ;;  %7633 = vadd.xlane.f32.xlu0 %v7632_v24  ;;  %v7598_v40 = vpop.xlane.xlu1 %7597 }
0x4058   :  { %v7609_v12 = vmul.f32 0.020833334, %v7601_v38  ;;  %v7608_v60 = vmul.f32 0.020833334, %v7598_v40  ;;  %v7623_v19 = vmul.f32 %v13632_v47, %v13632_v47  ;;  %v7622_v17 = vmul.f32 %v13634_v23, %v13634_v23 }
0x405a   :  { %v13642_v30 = vsub.f32 %v9536_v11, %v7609_v12  ;;  %v13644_v10 = vsub.f32 %v9535_v63, %v7608_v60  ;;  %v7641_v29 = vsel %vm78_vm0, %v7623_v19, 0.0  ;;  %v7638_v48 = vsel %vm78_vm0, %v7622_v17, 0.0  ;;  %v11055_v11 = vld [vmem:[%s14150_s3 + $0xf0] sm:$0xff]   ;;  %v11056_v63 = vld [vmem:[%s14150_s3 + $0xe8] sm:$0xff]  }
0x405b   :  { %7642 = vadd.xlane.f32.xlu1 %v7641_v29  ;;  %7639 = vadd.xlane.f32.xlu0 %v7638_v48 }
0x405c   :  { %v7625_v14 = vmul.f32 %v13642_v30, %v13642_v30  ;;  %v7624_v43 = vmul.f32 %v13644_v10, %v13644_v10  ;;  %10730 = vmatprep.subr.bf16.mxu0 %v11055_v11 }
0x405d   :  { %10731 = vmatpush3.bf16.msra.mxu0 %v11055_v11 }
0x405e   :  { %v7647_v27 = vsel %vm78_vm0, %v7625_v14, 0.0  ;;  %v7644_v0 = vsel %vm78_vm0, %v7624_v43, 0.0  ;;  %10732 = vmatprep.subr.bf16.mxu0 %v11056_v63 }
0x405f   :  { %7648 = vadd.xlane.f32.xlu1 %v7647_v27  ;;  %7645 = vadd.xlane.f32.xlu0 %v7644_v0 }
0x4061   :  { %10733 = vmatpush3.bf16.msra.mxu0 %v11056_v63 }
0x4062   :  { %10758 = vmatprep.subr.bf16.mxu0 %v13663_v50 }
0x40d4   :  { %v7305_v58 = vpop.xlane.xlu1 %7304 }
0x40d5   :  { %v7312_v5 = vmul.f32 0.03125, %v7305_v58 }
0x40d7   :  { %v7315_v4 = vadd.f32 1e-06, %v7312_v5 }
0x40d8   :  { %v7308_v20 = vpop.xlane.xlu0 %7307  ;;  %v7311_v31 = vpop.xlane.xlu1 %7310 }
0x40d9   :  { %11452 = vrsqrt.f32 %v7315_v4  ;;  %v7313_v45 = vmul.f32 0.03125, %v7308_v20  ;;  %v7314_v33 = vmul.f32 0.03125, %v7311_v31  ;;  %v9513_v31 = vld [vmem:[%s14152_s2 + $0x5a] ss:$0 sm:$0xff] }
0x40db   :  { %v7316_v32 = vadd.f32 1e-06, %v7313_v45  ;;  %v7317_v2 = vadd.f32 1e-06, %v7314_v33 }
0x40dc   :  { %v7628_v9 = vpop.xlane.xlu0 %7627  ;;  %v7631_v56 = vpop.xlane.xlu1 %7630 }
0x40dd   :  { %11454 = vrsqrt.f32 %v7316_v32  ;;  %v7650_v21 = vmul.f32 0.020833334, %v7628_v9  ;;  %v7651_v24 = vmul.f32 0.020833334, %v7631_v56 }
0x40de   :  { %11456 = vrsqrt.f32 %v7317_v2 }
0x40df   :  { %v7658_v38 = vadd.f32 1e-06, %v7650_v21  ;;  %v7659_v40 = vadd.f32 1e-06, %v7651_v24 }
0x40e0   :  { %v7634_v12 = vpop.xlane.xlu0 %7633  ;;  %v7637_v60 = vpop.xlane.xlu1 %7636 }
0x40e1   :  { %11458 = vrsqrt.f32 %v7658_v38  ;;  %v7652_v19 = vmul.f32 0.020833334, %v7634_v12  ;;  %v7653_v17 = vmul.f32 0.020833334, %v7637_v60  ;;  %v9537_v60 = vld [vmem:[%s14152_s2 + $0x80] ss:$0 sm:$0xff] }
0x40e2   :  { %11460 = vrsqrt.f32 %v7659_v40 }
0x40e3   :  { %v7660_v29 = vadd.f32 1e-06, %v7652_v19  ;;  %v7661_v48 = vadd.f32 1e-06, %v7653_v17 }
0x40e4   :  { %v7640_v14 = vpop.xlane.xlu0 %7639  ;;  %v7643_v43 = vpop.xlane.xlu1 %7642 }
0x40e5   :  { %11462 = vrsqrt.f32 %v7660_v29  ;;  %v7654_v27 = vmul.f32 0.020833334, %v7640_v14  ;;  %v7655_v0 = vmul.f32 0.020833334, %v7643_v43 }
0x40e6   :  { %v11453_v11 = vpop.eup %11452  ;;  %11464 = vrsqrt.f32 %v7661_v48 }
0x40e7   :  { %v7662_v63 = vadd.f32 1e-06, %v7654_v27  ;;  %v7663_v58 = vadd.f32 1e-06, %v7655_v0  ;;  %v7321_v5 = vmul.f32 %v11453_v11, %v13597_v42  ;;  %v9514_v42 = vld [vmem:[%s14152_s2 + $0x5b] ss:$0 sm:$0xff] }
0x40e8   :  { %v7646_v4 = vpop.xlane.xlu0 %7645  ;;  %v7649_v20 = vpop.xlane.xlu1 %7648 }
0x40e9   :  { %11466 = vrsqrt.f32 %v7662_v63  ;;  %v7656_v45 = vmul.f32 0.020833334, %v7646_v4  ;;  %v7657_v33 = vmul.f32 0.020833334, %v7649_v20  ;;  %v7328_v24 = vmul.f32 %v9513_v31, %v7321_v5 }
0x40ea   :  { %v11455_v32 = vpop.eup %11454  ;;  %11468 = vrsqrt.f32 %v7663_v58  ;;  %v11058_v58 = vld [vmem:[%s14150_s3 + $0x1e8] sm:$0xff]  }
0x40eb   :  { %v11457_v2 = vpop.eup %11456  ;;  %v7664_v9 = vadd.f32 1e-06, %v7656_v45  ;;  %v7665_v56 = vadd.f32 1e-06, %v7657_v33  ;;  %v7322_v21 = vmul.f32 %v11455_v32, %v13605_v59  ;;  %v7335_v29 = vadd.f32 %v9514_v42, %v7328_v24 }
0x40ec   :  { %v7323_v38 = vmul.f32 %v11457_v2, %v13602_v37  ;;  %v9538_v37 = vld [vmem:[%s14152_s2 + $0x81] ss:$0 sm:$0xff] }
0x40ed   :  { %11470 = vrsqrt.f32 %v7664_v9  ;;  %v7329_v40 = vmul.f32 %v9513_v31, %v7322_v21  ;;  %v11059_v9 = vld [vmem:[%s14150_s3 + $0x1e0] sm:$0xff]  }
0x40ee   :  { %v11459_v12 = vpop.eup %11458  ;;  %11472 = vrsqrt.f32 %v7665_v56  ;;  %v7330_v19 = vmul.f32 %v9513_v31, %v7323_v38 }
0x40ef   :  { %v11461_v17 = vpop.eup %11460  ;;  %v7336_v48 = vadd.f32 %v9514_v42, %v7329_v40  ;;  %v7674_v59 = vmul.f32 %v11459_v12, %v13614_v57 }
0x40f0   :  { %v7337_v14 = vadd.f32 %v9514_v42, %v7330_v19  ;;  %v7675_v43 = vmul.f32 %v11461_v17, %v13612_v1 }
0x40f1   :  { %v7342_v27 = vpack.c.bf16 %v7336_v48, %v7335_v29  ;;  %v7686_v0 = vmul.f32 %v9537_v60, %v7674_v59 }
0x40f2   :  { %v11463_v11 = vpop.eup %11462  ;;  %v7343_v63 = vpack.c.bf16 %v7337_v14, %v7337_v14  ;;  %v7687_v5 = vmul.f32 %v9537_v60, %v7675_v43 }
0x40f3   :  { %v11465_v4 = vpop.eup %11464  ;;  %v7676_v20 = vmul.f32 %v11463_v11, %v13624_v22  ;;  %10734 = vmatprep.mubr.msk.bf16.mxu0 %vm448_vm2, %v7342_v27  ;;  %v7698_v57 = vadd.f32 %v9538_v37, %v7686_v0  ;;  %v11065_v0 = vld [vmem:[%s14150_s3 + $0x108] sm:$0xff]   ;;  %v11066_v11 = vld [vmem:[%s14150_s3 + $0x100] sm:$0xff]  }
0x40f4   :  { %v7677_v31 = vmul.f32 %v11465_v4, %v13622_v39  ;;  %10735 = vmatmul.mubr.msk.bf16.vlgmr.msra.gmra.mxu0 %vm448_vm2, %v7343_v63  ;;  %v7699_v1 = vadd.f32 %v9538_v37, %v7687_v5  ;;  %v11067_v63 = vld [vmem:[%s14150_s3 + $0xf8] sm:$0xff]  }
0x40f5   :  { %10759 = vmatpush3.bf16.msra.mxu0 %v13663_v50  ;;  %v7688_v33 = vmul.f32 %v9537_v60, %v7676_v20 }
0x40f6   :  { %v11467_v45 = vpop.eup %11466  ;;  %v7689_v32 = vmul.f32 %v9537_v60, %v7677_v31  ;;  %10760 = vmatprep.subr.bf16.mxu0 %v11058_v58  ;;  %v7712_v2 = vpack.c.bf16 %v7699_v1, %v7698_v57 }
0x40f7   :  { %v11469_v22 = vpop.eup %11468  ;;  %v7678_v56 = vmul.f32 %v11467_v45, %v13634_v23  ;;  %v7700_v50 = vadd.f32 %v9538_v37, %v7688_v33 }
0x40f8   :  { %10764 = vmatprep.mubr.msk.bf16.mxu0 %vm78_vm0, %v7712_v2  ;;  %v7679_v39 = vmul.f32 %v11469_v22, %v13632_v47  ;;  %v7701_v38 = vadd.f32 %v9538_v37, %v7689_v32 }
0x40f9   :  { %10761 = vmatpush3.bf16.msra.mxu0 %v11058_v58  ;;  %v7690_v21 = vmul.f32 %v9537_v60, %v7678_v56  ;;  %v9515_v58 = vld [vmem:[%s14152_s2 + $0x60] ss:$0 sm:$0xff] }
0x40fa   :  { %v11471_v24 = vpop.eup %11470  ;;  %10762 = vmatprep.subr.bf16.mxu0 %v11059_v9  ;;  %v7691_v42 = vmul.f32 %v9537_v60, %v7679_v39  ;;  %v7713_v23 = vpack.c.bf16 %v7701_v38, %v7700_v50 }
0x40fb   :  { %v11473_v40 = vpop.eup %11472  ;;  %v7680_v12 = vmul.f32 %v11471_v24, %v13644_v10  ;;  %v7702_v19 = vadd.f32 %v9538_v37, %v7690_v21  ;;  %v11061_v10 = vld [vmem:[%s14150_s3 + $0x128] sm:$0xff]  }
0x40fc   :  { %v7681_v17 = vmul.f32 %v11473_v40, %v13642_v30  ;;  %v7703_v29 = vadd.f32 %v9538_v37, %v7691_v42  ;;  %v11060_v30 = vld [vmem:[%s14150_s3 + $0x130] sm:$0xff]  }
0x40fd   :  { %10763 = vmatpush3.bf16.msra.mxu0 %v11059_v9  ;;  %v7692_v59 = vmul.f32 %v9537_v60, %v7680_v12  ;;  %10738 = vmatprep.subr.bf16.mxu1 %v11060_v30 }
0x40fe   :  { %v7714_v48 = vpack.c.bf16 %v7703_v29, %v7702_v19  ;;  %v7693_v14 = vmul.f32 %v9537_v60, %v7681_v17  ;;  %10739 = vmatpush3.bf16.msra.mxu1 %v11060_v30  ;;  %v11062_v60 = vld [vmem:[%s14150_s3 + $0x120] sm:$0xff]  }
0x40ff   :  { %v7704_v47 = vadd.f32 %v9538_v37, %v7692_v59  ;;  %10740 = vmatprep.subr.bf16.mxu1 %v11061_v10 }
0x4100   :  { %10765 = vmatmul.mubr.msk.bf16.vlgmr.msra.gmra.mxu0 %vm78_vm0, %v7713_v23  ;;  %v7705_v43 = vadd.f32 %v9538_v37, %v7693_v14  ;;  %v11064_v37 = vld [vmem:[%s14150_s3 + $0x110] sm:$0xff]  }
0x4101   :  { %10768 = vmatprep.mubr.msk.bf16.mxu0 %vm78_vm0, %v7714_v48 }
0x4102   :  { %v7715_v27 = vpack.c.bf16 %v7705_v43, %v7704_v47  ;;  %10741 = vmatpush3.bf16.msra.mxu1 %v11061_v10  ;;  %v9539_v47 = vld [vmem:[%s14152_s2 + $0x82] ss:$0 sm:$0xff] }
0x4103   :  { %10742 = vmatprep.subr.bf16.mxu1 %v11062_v60 }
0x4106   :  { %10743 = vmatpush3.bf16.msra.mxu1 %v11062_v60 }
0x4108   :  { %10769 = vmatmul.mubr.msk.bf16.gmra.mxu0 %vm78_vm0, %v7715_v27  ;;  %vm4619_vm0 = vcmask 785408  }
0x4109   :  { %10780 = vmatprep.mubr.msk.bf16.mxu0 %vm388_vm1, %v11712_v6  ;;  %v11063_v6 = vld [vmem:[%s14150_s3 + $0x118] sm:$0xff]  }
0x410a   :  { %10744 = vmatprep.subr.bf16.mxu1 %v11063_v6 }
0x410b   :  { %10745 = vmatpush3.bf16.msra.mxu1 %v11063_v6 }
0x410c   :  { %10746 = vmatprep.subr.bf16.mxu1 %v11064_v37 }
0x410f   :  { %10747 = vmatpush3.bf16.msra.mxu1 %v11064_v37 }
0x4110   :  { %10748 = vmatprep.subr.bf16.mxu1 %v11065_v0 }
0x4113   :  { %10749 = vmatpush3.bf16.msra.mxu1 %v11065_v0 }
0x4114   :  { %10750 = vmatprep.subr.bf16.mxu1 %v11066_v11 }
0x4117   :  { %10751 = vmatpush3.bf16.msra.mxu1 %v11066_v11 }
0x4118   :  { %10752 = vmatprep.subr.bf16.mxu1 %v11067_v63 }
0x411b   :  { %10753 = vmatpush3.bf16.msra.mxu1 %v11067_v63 }
0x41b4   :  { %v10736_v5 = vpop.f32.mrf.mxu0 }
0x41b5   :  { %v7410_v4 = vadd.f32 %v10736_v5, %v9515_v58 }
0x41b6   :  { %v7401_v20 = vpop.f32.mrf.mxu0 }
0x41b7   :  { %v7420_v57 = vmul.f32 %v7410_v4, %v7410_v4  ;;  %v7402_v31 = vadd.f32 %v9515_v58, %v7401_v20 }
0x41b8   :  { %v10737_v1 = vpop.f32.mrf.mxu0 }
0x41b9   :  { %v7423_v45 = vmul.f32 %v7420_v57, %v7410_v4  ;;  %v7418_v33 = vmul.f32 %v7402_v31, %v7402_v31 }
0x41ba   :  { %v7404_v32 = vpop.f32.mrf.mxu0 }
0x41bb   :  { %v7426_v2 = vmul.f32 0.044715, %v7423_v45  ;;  %v7421_v9 = vmul.f32 %v7418_v33, %v7402_v31  ;;  %v7405_v22 = vadd.f32 %v9515_v58, %v7404_v32  ;;  %v7417_v45 = vmul.f32 0.5, %v7410_v4 }
0x41bc   :  { %v7415_v33 = vmul.f32 0.5, %v7402_v31 }
0x41bd   :  { %v7429_v56 = vadd.f32 %v7426_v2, %v7410_v4  ;;  %v7424_v39 = vmul.f32 0.044715, %v7421_v9  ;;  %v7419_v21 = vmul.f32 %v7405_v22, %v7405_v22  ;;  %v7416_v9 = vmul.f32 0.5, %v7405_v22 }
0x41bf   :  { %v7432_v24 = vmul.f32 0.7978846, %v7429_v56  ;;  %v7427_v50 = vadd.f32 %v7424_v39, %v7402_v31  ;;  %v7422_v38 = vmul.f32 %v7419_v21, %v7405_v22 }
0x41c0   :  { %v10766_v42 = vpop.f32.mrf.mxu0 }
0x41c1   :  { %v7430_v40 = vmul.f32 0.7978846, %v7427_v50  ;;  %v7425_v12 = vmul.f32 0.044715, %v7422_v38  ;;  %11474 = vtanh.f32 %v7432_v24  ;;  %v7794_v20 = vadd.f32 %v10766_v42, %v9539_v47 }
0x41c2   :  { %v7785_v19 = vpop.f32.mrf.mxu0 }
0x41c3   :  { %11476 = vtanh.f32 %v7430_v40  ;;  %v7428_v17 = vadd.f32 %v7425_v12, %v7405_v22  ;;  %v7786_v21 = vadd.f32 %v9539_v47, %v7785_v19  ;;  %v9528_v22 = vld [vmem:[%s14152_s2 + $0x61] ss:$0 sm:$0xff] }
0x41c4   :  { %v10767_v29 = vpop.f32.mrf.mxu0 }
0x41c5   :  { %v7431_v23 = vmul.f32 0.7978846, %v7428_v17  ;;  %v7797_v63 = vadd.f32 %v10767_v29, %v9539_v47 }
0x41c6   :  { %v7788_v48 = vpop.f32.mrf.mxu0 }
0x41c7   :  { %11478 = vtanh.f32 %v7431_v23  ;;  %v7817_v32 = vpack.c.bf16 %v7797_v63, %v7794_v20  ;;  %v7789_v2 = vadd.f32 %v9539_v47, %v7788_v48 }
0x41c8   :  { %v10770_v59 = vpop.f32.mrf.mxu0 }
0x41c9   :  { %v7810_v27 = vadd.f32 %v10770_v59, %v9539_v47  ;;  %v7816_v38 = vpack.c.bf16 %v7789_v2, %v7786_v21 }
0x41ca   :  { %v7801_v14 = vpop.f32.mrf.mxu0 }
0x41cb   :  { %v7802_v6 = vadd.f32 %v9539_v47, %v7801_v14 }
0x41cc   :  { %v10771_v43 = vpop.f32.mrf.mxu0 }
0x41cd   :  { %v7813_v30 = vadd.f32 %v10771_v43, %v9539_v47 }
0x41ce   :  { %v7804_v10 = vpop.f32.mrf.mxu0  ;;  %v11475_v60 = vpop.eup %11474 }
0x41cf   :  { %v7819_v37 = vpack.c.bf16 %v7813_v30, %v7810_v27  ;;  %v7805_v0 = vadd.f32 %v9539_v47, %v7804_v10  ;;  %v7438_v5 = vadd.f32 1.0, %v11475_v60  ;;  %v11555_v30 = vld [vmem:[%s14152_s2 + $0x18] sm:$0xff]  ;;  %v11556_v60 = vld [vmem:[%s14152_s2 + $0x28] sm:$0x1] }
0x41d0   :  { %v11477_v11 = vpop.eup %11476 }
0x41d1   :  { %v7818_v58 = vpack.c.bf16 %v7805_v0, %v7802_v6  ;;  %10772 = vmatprep.subr.bf16.mxu0 %v7819_v37  ;;  %v7436_v57 = vadd.f32 1.0, %v11477_v11  ;;  %v7441_v39 = vmul.f32 %v7438_v5, %v7417_v45  ;;  %v11557_v0 = vld [vmem:[%s14152_s2 + $0x20] sm:$0xff] }
0x41d2   :  { %10773 = vmatpush3.bf16.msra.mxu0 %v7819_v37 }
0x41d3   :  { %10774 = vmatprep.subr.bf16.mxu0 %v7818_v58  ;;  %v7439_v24 = vmul.f32 %v7436_v57, %v7415_v33  ;;  %v7459_v12 = vpack.c.bf16 %v7441_v39, %v7441_v39 }
0x41d4   :  { %v11479_v1 = vpop.eup %11478 }
0x41d5   :  { %v7437_v56 = vadd.f32 1.0, %v11479_v1 }
0x41d6   :  { %10775 = vmatpush3.bf16.msra.mxu0 %v7818_v58 }
0x41d7   :  { %10776 = vmatprep.subr.bf16.mxu0 %v7817_v32  ;;  %v7440_v50 = vmul.f32 %v7437_v56, %v7416_v9 }
0x41d9   :  { %v7458_v40 = vpack.c.bf16 %v7440_v50, %v7439_v24 }
0x41da   :  { %10777 = vmatpush3.bf16.msra.mxu0 %v7817_v32 }
0x41db   :  { %10778 = vmatprep.subr.bf16.mxu0 %v7816_v38  ;;  %10754 = vmatprep.mubr.bf16.mxu1 %v7458_v40  ;;  %v11068_v40 = vld [vmem:[%s14150_s3 + $0x140] sm:$0xff]  }
0x41dc   :  { %10755 = vmatmul.mubr.bf16.vlgmr.msra.gmra.mxu1 %v7459_v12  ;;  %v11069_v12 = vld [vmem:[%s14150_s3 + $0x150] sm:$0xff]  }
0x41dd   :  { %10792 = vmatprep.subr.bf16.mxu1 %v11069_v12 }
0x41de   :  { %10779 = vmatpush3.bf16.msra.mxu0 %v7816_v38  ;;  %10793 = vmatpush3.bf16.msra.mxu1 %v11069_v12 }
0x41df   :  { %10784 = vmatprep.subr.bf16.mxu0 %v11068_v40 }
0x41e1   :  { %10781 = vmatmul.mubr.msk.bf16.vlgmr.msra.gmra.mxu0 %vm388_vm1, %v11722_v34 }
0x41e2   :  { %10785 = vmatpush3.bf16.msra.mxu0 %v11068_v40 }
0x429c   :  { %v10756_v4 = vpop.f32.mrf.mxu1 }
0x429d   :  { %v7558_v31 = vadd.f32 %v10756_v4, %v13553_v49  ;;  %v11070_v4 = vld [vmem:[%s14150_s3 + $0x138] sm:$0xff]  }
0x429e   :  { %v7542_v42 = vpop.f32.mrf.mxu1  ;;  %10786 = vmatprep.subr.bf16.mxu0 %v11070_v4 }
0x429f   :  { %v7556_v19 = vadd.f32 %v7542_v42, %v13551_v3  ;;  %v7566_v29 = vadd.f32 %v9528_v22, %v7558_v31  ;;  %v11071_v31 = vld [vmem:[%s14150_s3 + $0x148] sm:$0xff]   ;;  %10787 = vmatpush3.bf16.msra.mxu0 %v11070_v4 }
0x42a0   :  { %v10757_v17 = vpop.f32.mrf.mxu1  ;;  %10794 = vmatprep.subr.bf16.mxu1 %v11071_v31 }
0x42a1   :  { %v10782_v23 = vpop.f32.mrf.mxu0  ;;  %v7564_v48 = vadd.f32 %v9528_v22, %v7556_v19  ;;  %10795 = vmatpush3.bf16.msra.mxu1 %v11071_v31 }
0x42a2   :  { %v7545_v59 = vpop.f32.mrf.mxu1  ;;  %v13742_v43 = vadd.f32 %v10782_v23, %v7566_v29 }
0x42a3   :  { %v7557_v14 = vadd.f32 %v7545_v59, %v13558_v36  ;;  %v7854_v47 = vpop.f32.mrf.mxu0 }
0x42a4   :  { %v13744_v34 = vadd.f32 %v7854_v47, %v7564_v48  ;;  %v13756_v36 = vadd.f32 %v11556_v60, %v13742_v43 }
0x42a5   :  { %v10783_v49 = vpop.f32.mrf.mxu0  ;;  %v7565_v27 = vadd.f32 %v9528_v22, %v7557_v14  ;;  %v11072_v22 = vld [vmem:[%s14150_s3 + $0x160] sm:$0xff]  }
0x42a6   :  { %v13750_v3 = vadd.f32 %v11555_v30, %v13744_v34  ;;  %v7882_v63 = vsel %vm455_vm3, %v13756_v36, 0.0  ;;  %10800 = vmatprep.subr.bf16.mxu0 %v11072_v22  ;;  %v9549_v30 = vld [vmem:[%s14152_s2 + $0x68] ss:$0 sm:$0xff] }
0x42a7   :  { %v7857_v10 = vpop.f32.mrf.mxu0 }
0x42a8   :  { %v13758_v6 = vadd.f32 %v7857_v10, %v7565_v27  ;;  %v7876_v37 = vsel %vm448_vm2, %v13750_v3, 0.0 }
0x42a9   :  { %7877 = vadd.xlane.f32.xlu0 %v7876_v37 }
0x42aa   :  { %v13766_v11 = vadd.f32 %v11557_v0, %v13758_v6 }
0x42ac   :  { %v7879_v58 = vsel %vm448_vm2, %v13766_v11, 0.0 }
0x42ad   :  { %7883 = vadd.xlane.f32.xlu0 %v7882_v63  ;;  %7880 = vadd.xlane.f32.xlu1 %v7879_v58  ;;  %v9550_v58 = vld [vmem:[%s14152_s2 + $0x69] ss:$0 sm:$0xff] }
0x4332   :  { %v7878_v5 = vpop.xlane.xlu0 %7877 }
0x4333   :  { %v7885_v20 = vmul.f32 0.03125, %v7878_v5 }
0x4335   :  { %v7888_v57 = vsub.f32 %v13750_v3, %v7885_v20 }
0x4336   :  { %v7884_v1 = vpop.xlane.xlu0 %7883  ;;  %v7881_v45 = vpop.xlane.xlu1 %7880 }
0x4337   :  { %v7887_v33 = vmul.f32 0.03125, %v7884_v1  ;;  %v7886_v32 = vmul.f32 0.03125, %v7881_v45  ;;  %v7891_v2 = vmul.f32 %v7888_v57, %v7888_v57 }
0x4339   :  { %v7890_v9 = vsub.f32 %v13756_v36, %v7887_v33  ;;  %v7889_v56 = vsub.f32 %v13766_v11, %v7886_v32  ;;  %v7894_v39 = vsel %vm448_vm2, %v7891_v2, 0.0  ;;  %v11073_v2 = vld [vmem:[%s14150_s3 + $0x158] sm:$0xff]  }
0x433a   :  { %7895 = vadd.xlane.f32.xlu1 %v7894_v39 }
0x433b   :  { %v7893_v21 = vmul.f32 %v7890_v9, %v7890_v9  ;;  %v7892_v24 = vmul.f32 %v7889_v56, %v7889_v56 }
0x433d   :  { %v7900_v50 = vsel %vm455_vm3, %v7893_v21, 0.0  ;;  %v7897_v38 = vsel %vm448_vm2, %v7892_v24, 0.0 }
0x433e   :  { %7901 = vadd.xlane.f32.xlu1 %v7900_v50  ;;  %7898 = vadd.xlane.f32.xlu0 %v7897_v38  ;;  %v9551_v38 = vld [vmem:[%s14152_s2 + $0x6c] ss:$0 sm:$0xff] }
0x43c3   :  { %v7896_v42 = vpop.xlane.xlu1 %7895 }
0x43c4   :  { %v7903_v19 = vmul.f32 0.03125, %v7896_v42 }
0x43c6   :  { %v7906_v17 = vadd.f32 1e-06, %v7903_v19 }
0x43c7   :  { %v7899_v29 = vpop.xlane.xlu0 %7898  ;;  %v7902_v23 = vpop.xlane.xlu1 %7901 }
0x43c8   :  { %11480 = vrsqrt.f32 %v7906_v17  ;;  %v7904_v48 = vmul.f32 0.03125, %v7899_v29  ;;  %v7905_v59 = vmul.f32 0.03125, %v7902_v23  ;;  %v9561_v23 = vld [vmem:[%s14152_s2 + $0x6e] ss:$0 sm:$0xff] }
0x43ca   :  { %v7907_v14 = vadd.f32 1e-06, %v7904_v48  ;;  %v7908_v47 = vadd.f32 1e-06, %v7905_v59 }
0x43cc   :  { %11482 = vrsqrt.f32 %v7907_v14 }
0x43cd   :  { %11484 = vrsqrt.f32 %v7908_v47 }
0x43d5   :  { %v11481_v49 = vpop.eup %11480 }
0x43d6   :  { %v7912_v27 = vmul.f32 %v11481_v49, %v7888_v57 }
0x43d8   :  { %v7919_v0 = vmul.f32 %v9549_v30, %v7912_v27 }
0x43d9   :  { %v11483_v10 = vpop.eup %11482 }
0x43da   :  { %v11485_v60 = vpop.eup %11484  ;;  %v7913_v37 = vmul.f32 %v11483_v10, %v7889_v56  ;;  %v7926_v1 = vadd.f32 %v9550_v58, %v7919_v0 }
0x43db   :  { %v7914_v63 = vmul.f32 %v11485_v60, %v7890_v9  ;;  %v9556_v9 = vld [vmem:[%s14152_s2 + $0x6d] ss:$0 sm:$0xff] }
0x43dc   :  { %v7920_v5 = vmul.f32 %v9549_v30, %v7913_v37 }
0x43dd   :  { %v7921_v20 = vmul.f32 %v9549_v30, %v7914_v63 }
0x43de   :  { %v7927_v45 = vadd.f32 %v9550_v58, %v7920_v5 }
0x43df   :  { %v7928_v33 = vadd.f32 %v9550_v58, %v7921_v20 }
0x43e0   :  { %v7933_v32 = vpack.c.bf16 %v7927_v45, %v7926_v1 }
0x43e1   :  { %v7934_v57 = vpack.c.bf16 %v7928_v33, %v7928_v33 }
0x43e2   :  { %10788 = vmatprep.mubr.msk.bf16.mxu0 %vm448_vm2, %v7933_v32  ;;  %10796 = vmatprep.mubr.msk.bf16.mxu1 %vm448_vm2, %v7933_v32 }
0x43e3   :  { %10789 = vmatmul.mubr.msk.bf16.vlgmr.msra.gmra.mxu0 %vm448_vm2, %v7934_v57  ;;  %10797 = vmatmul.mubr.msk.bf16.vlgmr.msra.gmra.mxu1 %vm448_vm2, %v7934_v57 }
0x43e4   :  { %10801 = vmatpush3.bf16.msra.mxu0 %v11072_v22  ;;  %10804 = vmatprep.mubr.msk.bf16.mxu0 %vm448_vm2, %v7933_v32 }
0x43e5   :  { %10802 = vmatprep.subr.bf16.mxu0 %v11073_v2 }
0x43e8   :  { %10803 = vmatpush3.bf16.msra.mxu0 %v11073_v2 }
0x43eb   :  { %10805 = vmatmul.mubr.msk.bf16.vlgmr.msra.gmra.mxu0 %vm448_vm2, %v7934_v57 }
0x44a3   :  { %v10790_v56 = vpop.f32.mrf.mxu0  ;;  %v10798_v39 = vpop.f32.mrf.mxu1 }
0x44a4   :  { %v8070_v21 = vadd.f32 %v10798_v39, %v9556_v9  ;;  %v13856_v32 = vadd.f32 %v10790_v56, %v9551_v38 }
0x44a5   :  { %v7992_v24 = vpop.f32.mrf.mxu0  ;;  %v8061_v50 = vpop.f32.mrf.mxu1 }
0x44a6   :  { %v13814_v40 = vpack.c.bf16 %v8070_v21, %v8070_v21  ;;  %v7993_v12 = vadd.f32 %v9551_v38, %v7992_v24  ;;  %v8062_v14 = vadd.f32 %v9556_v9, %v8061_v50 }
0x44a7   :  { %v10791_v4 = vpop.f32.mrf.mxu0  ;;  %v10799_v31 = vpop.f32.mrf.mxu1 }
0x44a8   :  { %10948 = vmatprep.subr.msk.bf16.mxu1 %vm448_vm2, %v13814_v40  ;;  %10950 = vmatprep.subr.msk.bf16.mxu0 %vm448_vm2, %v13814_v40  ;;  %v13822_v29 = vsel %vm448_vm2, %v13814_v40, 0  ;;  %v8146_v48 = vmul.f32 %v11804_v54, %v7993_v12  ;;  %v8251_v59 = vmul.f32 %v11807_v55, %v7993_v12  ;;  %v13832_v49 = vmul.f32 %v11821_v61, %v7993_v12 }
0x44a9   :  { %v7995_v22 = vpop.f32.mrf.mxu0  ;;  %v8064_v42 = vpop.f32.mrf.mxu1  ;;  %10809 = vmatpush3.bf16.xpose.msra.mxu1 %v13822_v29  ;;  %10817 = vmatpush3.bf16.xpose.msra.mxu0 %v13822_v29  ;;  %v13859_v57 = vmul.f32 %v11773_v7, %v7993_v12  ;;  %v8148_v4 = vmul.f32 %v11804_v54, %v13856_v32  ;;  %v8253_v31 = vmul.f32 %v11807_v55, %v13856_v32 }
0x44aa   :  { %v7996_v19 = vadd.f32 %v9551_v38, %v7995_v22  ;;  %v8065_v17 = vadd.f32 %v9556_v9, %v8064_v42 }
0x44ab   :  { %v10806_v47 = vpop.f32.mrf.mxu0 }
0x44ac   :  { %v8147_v27 = vmul.f32 %v11804_v54, %v7996_v19  ;;  %v8252_v30 = vmul.f32 %v11807_v55, %v7996_v19  ;;  %v13837_v10 = vmul.f32 %v11821_v61, %v7996_v19  ;;  %v13839_v60 = vpack.c.bf16 %v8065_v17, %v8062_v14 }
0x44ad   :  { %v13841_v37 = vadd.f32 %v10806_v47, %v9561_v23  ;;  %v8130_v0 = vpop.f32.mrf.mxu0  ;;  %v13844_v63 = vmul.f32 %v11773_v7, %v7996_v19 }
0x44ae   :  { %v8149_v58 = vpack.c.bf16 %v8147_v27, %v8146_v48  ;;  %v8254_v5 = vpack.c.bf16 %v8252_v30, %v8251_v59  ;;  %v8467_v20 = vpack.c.bf16 %v13837_v10, %v13832_v49  ;;  %10949 = vmatprep.subr.msk.bf16.mxu1 %vm448_vm2, %v13839_v60  ;;  %10951 = vmatprep.subr.msk.bf16.mxu0 %vm448_vm2, %v13839_v60  ;;  %v13865_v50 = vsel %vm448_vm2, %v13839_v60, 0 }
0x44af   :  { %v10807_v1 = vpop.f32.mrf.mxu0  ;;  %v8258_v45 = vmul.f32 %v11807_v55, %v13841_v37  ;;  %v8153_v33 = vmul.f32 %v11804_v54, %v13841_v37  ;;  %v8131_v2 = vadd.f32 %v9561_v23, %v8130_v0  ;;  %v8626_v56 = vpack.c.bf16 %v13844_v63, %v13859_v57 }
0x44b0   :  { %10812 = vmatprep.mubr.msk.bf16.mxu1 %vm448_vm2, %v8149_v58  ;;  %10820 = vmatprep.mubr.msk.bf16.mxu0 %vm448_vm2, %v8254_v5  ;;  %v8471_v59 = vmul.f32 %v11821_v61, %v13841_v37  ;;  %v8150_v27 = vpack.c.bf16 %v8148_v4, %v8148_v4  ;;  %v8255_v30 = vpack.c.bf16 %v8253_v31, %v8253_v31 }
0x44b1   :  { %v8133_v9 = vpop.f32.mrf.mxu0  ;;  %v8260_v39 = vpack.c.bf16 %v8258_v45, %v8258_v45  ;;  %v8155_v21 = vpack.c.bf16 %v8153_v33, %v8153_v33  ;;  %10811 = vmatpush3.bf16.xpose.msra.mxu1 %v13865_v50  ;;  %10819 = vmatpush3.bf16.xpose.msra.mxu0 %v13865_v50  ;;  %v8628_v22 = vmul.f32 %v11773_v7, %v8131_v2 }
0x44b2   :  { %v8134_v24 = vadd.f32 %v9561_v23, %v8133_v9  ;;  %v8469_v19 = vmul.f32 %v11821_v61, %v8131_v2  ;;  %v8256_v0 = vmul.f32 %v11807_v55, %v8131_v2  ;;  %v8151_v58 = vmul.f32 %v11804_v54, %v8131_v2 }
0x44b3   :  { %v8357_v38 = vand.u32 %v8260_v39, %v11860_v18  ;;  %v8414_v12 = vand.u32 %v8155_v21, %v11860_v18  ;;  %v8473_v45 = vpack.c.bf16 %v8471_v59, %v8471_v59 }
0x44b4   :  { %v8629_v42 = vmul.f32 %v11773_v7, %v8134_v24  ;;  %v8470_v17 = vmul.f32 %v11821_v61, %v8134_v24  ;;  %v8257_v23 = vmul.f32 %v11807_v55, %v8134_v24  ;;  %v8152_v48 = vmul.f32 %v11804_v54, %v8134_v24 }
0x44b5   :  { %10824 = vmatprep.subr.bf16.mxu1 %v8357_v38  ;;  %10832 = vmatprep.subr.bf16.mxu0 %v8414_v12  ;;  %v13894_v33 = vand.u32 %v8473_v45, %v11860_v18 }
0x44b6   :  { %v13885_v14 = vpack.c.bf16 %v8629_v42, %v8628_v22  ;;  %v13887_v47 = vpack.c.bf16 %v8470_v17, %v8469_v19  ;;  %v8259_v5 = vpack.c.bf16 %v8257_v23, %v8256_v0  ;;  %v8154_v1 = vpack.c.bf16 %v8152_v48, %v8151_v58 }
0x44b8   :  { %10813 = vmatmul.mubr.msk.bf16.vlgmr.msra.gmra.mxu1 %vm448_vm2, %v8150_v27  ;;  %10821 = vmatmul.mubr.msk.bf16.vlgmr.msra.gmra.mxu0 %vm448_vm2, %v8255_v30 }
0x44b9   :  { %10825 = vmatpush3.bf16.msra.mxu1 %v8357_v38  ;;  %10833 = vmatpush3.bf16.msra.mxu0 %v8414_v12 }
0x44ba   :  { %10826 = vmatprep.subr.bf16.mxu1 %v8259_v5  ;;  %10834 = vmatprep.subr.bf16.mxu0 %v8154_v1 }
0x44bd   :  { %10827 = vmatpush3.bf16.msra.mxu1 %v8259_v5  ;;  %10835 = vmatpush3.bf16.msra.mxu0 %v8154_v1 }
0x44be   :  { %10952 = vmatprep.subr.msk.bf16.mxu1 %vm448_vm2, %v13814_v40  ;;  %10848 = vmatprep.subr.bf16.mxu0 %v13894_v33 }
0x4578   :  { %v13899_v54 = vpop.f32.mrf.mxu1  ;;  %v10822_v55 = vpop.f32.mrf.mxu0 }
0x4579   :  { %v8321_v12 = vsel %vm798_vm4, %v10822_v55, -inf }
0x457a   :  { %v13901_v2 = vpop.f32.mrf.mxu1  ;;  %v8301_v9 = vpop.f32.mrf.mxu0 }
0x457b   :  { %v8315_v39 = vsel %vm791_vm15, %v8301_v9, -inf }
0x457c   :  { %8316 = vmax.xlane.f32.xlu0 %v8315_v39  ;;  %v10815_v21 = vpop.f32.mrf.mxu1  ;;  %v10823_v24 = vpop.f32.mrf.mxu0  ;;  %v8216_v39 = vsel %vm791_vm15, %v13901_v2, -inf }
0x457d   :  { %v8222_v21 = vsel %vm798_vm4, %v13899_v54, -inf }
0x457e   :  { %v8304_v38 = vpop.f32.mrf.mxu0  ;;  %v8205_v45 = vpop.f32.mrf.mxu1 }
0x457f   :  { %v8318_v4 = vsel %vm791_vm15, %v8304_v38, -inf }
0x4580   :  { %8322 = vmax.xlane.f32.xlu0 %v8321_v12  ;;  %8319 = vmax.xlane.f32.xlu1 %v8318_v4 }
0x4605   :  { %v8317_v31 = vpop.xlane.xlu0 %8316 }
0x4606   :  { %v8324_v22 = vsub.f32 %v8301_v9, %v8317_v31 }
0x4608   :  { %v8327_v42 = vmul.f32 1.442695, %v8324_v22 }
0x4609   :  { %v8323_v19 = vpop.xlane.xlu0 %8322  ;;  %v8320_v17 = vpop.xlane.xlu1 %8319 }
0x460a   :  { %11486 = vpow2.f32 %v8327_v42  ;;  %v8326_v23 = vsub.f32 %v10822_v55, %v8323_v19  ;;  %v8325_v48 = vsub.f32 %v8304_v38, %v8320_v17  ;;  %v8219_v55 = vsel %vm791_vm15, %v8205_v45, -inf }
0x460c   :  { %v8331_v59 = vmul.f32 1.442695, %v8326_v23  ;;  %v8329_v27 = vmul.f32 1.442695, %v8325_v48 }
0x460e   :  { %11488 = vpow2.f32 %v8331_v59  ;;  %v8630_v59 = vmul.f32 %v11773_v7, %v13841_v37 }
0x460f   :  { %11490 = vpow2.f32 %v8329_v27 }
0x4610   :  { %v8632_v27 = vpack.c.bf16 %v8630_v59, %v8630_v59 }
0x4617   :  { %v11487_v30 = vpop.eup %11486 }
0x4618   :  { %v8333_v0 = vsel %vm791_vm15, %v11487_v30, 0.0 }
0x4619   :  { %8334 = vadd.xlane.f32.xlu1 %v8333_v0  ;;  %v8466_v0 = vmul.f32 %v11821_v61, %v13856_v32 }
0x461b   :  { %v11489_v58 = vpop.eup %11488  ;;  %v8468_v37 = vpack.c.bf16 %v8466_v0, %v8466_v0 }
0x461c   :  { %v11491_v5 = vpop.eup %11490  ;;  %v8339_v1 = vsel %vm798_vm4, %v11489_v58, 0.0 }
0x461d   :  { %8340 = vadd.xlane.f32.xlu1 %v8339_v1  ;;  %v8336_v9 = vsel %vm791_vm15, %v11491_v5, 0.0 }
0x461e   :  { %8337 = vadd.xlane.f32.xlu0 %v8336_v9 }
0x4621   :  { %8220 = vmax.xlane.f32.xlu1 %v8219_v55 }
0x4622   :  { %8217 = vmax.xlane.f32.xlu0 %v8216_v39 }
0x4626   :  { %8223 = vmax.xlane.f32.xlu0 %v8222_v21 }
0x46a2   :  { %v8335_v24 = vpop.xlane.xlu1 %8334 }
0x46a3   :  { %11492 = vrcp.f32 %v8335_v24 }
0x46a6   :  { %v8341_v38 = vpop.xlane.xlu1 %8340 }
0x46a7   :  { %v8338_v12 = vpop.xlane.xlu0 %8337  ;;  %11494 = vrcp.f32 %v8341_v38 }
0x46a8   :  { %11496 = vrcp.f32 %v8338_v12 }
0x46aa   :  { %v8221_v10 = vpop.xlane.xlu1 %8220 }
0x46ab   :  { %v8218_v49 = vpop.xlane.xlu0 %8217 }
0x46af   :  { %v8224_v1 = vpop.xlane.xlu0 %8223 }
0x46b0   :  { %v11493_v4 = vpop.eup %11492  ;;  %v8227_v39 = vsub.f32 %v13899_v54, %v8224_v1 }
0x46b1   :  { %v8345_v19 = vmul.f32 %v11493_v4, %v11487_v30  ;;  %v8729_v30 = vand.u32 %v8632_v27, %v11860_v18 }
0x46b2   :  { %v8232_v21 = vmul.f32 1.442695, %v8227_v39 }
0x46b4   :  { %v11495_v31 = vpop.eup %11494 }
0x46b5   :  { %v11497_v22 = vpop.eup %11496  ;;  %v8347_v42 = vmul.f32 %v11495_v31, %v11489_v58  ;;  %v8226_v58 = vsub.f32 %v8205_v45, %v8221_v10 }
0x46b6   :  { %v8346_v17 = vmul.f32 %v11497_v22, %v11491_v5  ;;  %v8225_v5 = vsub.f32 %v13901_v2, %v8218_v49 }
0x46b7   :  { %v8349_v23 = vpack.c.bf16 %v8347_v42, %v8347_v42  ;;  %v8230_v9 = vmul.f32 1.442695, %v8226_v58 }
0x46b8   :  { %v8348_v48 = vpack.c.bf16 %v8346_v17, %v8345_v19  ;;  %v8228_v55 = vmul.f32 1.442695, %v8225_v5 }
0x46b9   :  { %11498 = vpow2.f32 %v8230_v9 }
0x46ba   :  { %10828 = vmatprep.mubr.msk.bf16.mxu1 %vm791_vm15, %v8348_v48  ;;  %11500 = vpow2.f32 %v8228_v55 }
0x46bb   :  { %10829 = vmatmul.mubr.msk.bf16.vlgmr.msra.gmra.mxu1 %vm791_vm15, %v8349_v23  ;;  %11502 = vpow2.f32 %v8232_v21 }
0x46bc   :  { %10841 = vmatpush3.bf16.xpose.msra.mxu1 %v13822_v29  ;;  %10844 = vmatprep.mubr.msk.bf16.mxu1 %vm448_vm2, %v8467_v20 }
0x46bd   :  { %10953 = vmatprep.subr.msk.bf16.mxu1 %vm448_vm2, %v13839_v60 }
0x46c4   :  { %10843 = vmatpush3.bf16.xpose.msra.mxu1 %v13865_v50 }
0x46c5   :  { %10864 = vmatprep.subr.bf16.mxu1 %v8729_v30 }
0x46c6   :  { %v11499_v2 = vpop.eup %11498 }
0x46c7   :  { %v11501_v42 = vpop.eup %11500  ;;  %v8237_v19 = vsel %vm791_vm15, %v11499_v2, 0.0 }
0x46c8   :  { %v8234_v54 = vsel %vm791_vm15, %v11501_v42, 0.0  ;;  %v11503_v17 = vpop.eup %11502 }
0x46c9   :  { %v8240_v23 = vsel %vm798_vm4, %v11503_v17, 0.0 }
0x46cb   :  { %10845 = vmatmul.mubr.msk.bf16.vlgmr.msra.gmra.mxu1 %vm448_vm2, %v8468_v37 }
0x46cc   :  { %10865 = vmatpush3.bf16.msra.mxu1 %v8729_v30 }
0x46cd   :  { %10866 = vmatprep.subr.bf16.mxu1 %v13885_v14 }
0x46d0   :  { %10867 = vmatpush3.bf16.msra.mxu1 %v13885_v14 }
0x477b   :  { %v13932_v20 = vpop.f32.mrf.mxu1 }
0x477d   :  { %v13934_v18 = vpop.f32.mrf.mxu1 }
0x477f   :  { %v10831_v61 = vpop.f32.mrf.mxu1 }
0x4781   :  { %v13938_v24 = vpop.f32.mrf.mxu1 }
0x478b   :  { %v10846_v14 = vpop.f32.mrf.mxu1 }
0x478c   :  { %v8534_v22 = vsel %vm798_vm4, %v10846_v14, -inf }
0x478d   :  { %v8514_v38 = vpop.f32.mrf.mxu1 }
0x478e   :  { %v8528_v45 = vsel %vm791_vm15, %v8514_v38, -inf }
0x478f   :  { %v10847_v12 = vpop.f32.mrf.mxu1  ;;  %8529 = vmax.xlane.f32.xlu1 %v8528_v45 }
0x4791   :  { %v8517_v4 = vpop.f32.mrf.mxu1 }
0x4792   :  { %v8531_v31 = vsel %vm791_vm15, %v8517_v4, -inf }
0x4793   :  { %8532 = vmax.xlane.f32.xlu0 %v8531_v31  ;;  %8535 = vmax.xlane.f32.xlu1 %v8534_v22 }
0x4797   :  { %8235 = vadd.xlane.f32.xlu0 %v8234_v54  ;;  %8238 = vadd.xlane.f32.xlu1 %v8237_v19 }
0x479b   :  { %8241 = vadd.xlane.f32.xlu0 %v8240_v23 }
0x4818   :  { %v8530_v48 = vpop.xlane.xlu1 %8529 }
0x4819   :  { %v8537_v59 = vsub.f32 %v8514_v38, %v8530_v48 }
0x481b   :  { %v8540_v27 = vmul.f32 1.442695, %v8537_v59 }
0x481c   :  { %v8533_v30 = vpop.xlane.xlu0 %8532  ;;  %v8536_v0 = vpop.xlane.xlu1 %8535 }
0x481d   :  { %11504 = vpow2.f32 %v8540_v27  ;;  %v8538_v37 = vsub.f32 %v8517_v4, %v8533_v30  ;;  %v8539_v49 = vsub.f32 %v10846_v14, %v8536_v0 }
0x481f   :  { %v8542_v10 = vmul.f32 1.442695, %v8538_v37  ;;  %v8544_v58 = vmul.f32 1.442695, %v8539_v49 }
0x4820   :  { %v8236_v5 = vpop.xlane.xlu0 %8235  ;;  %v8239_v1 = vpop.xlane.xlu1 %8238 }
0x4821   :  { %11506 = vpow2.f32 %v8542_v10 }
0x4822   :  { %11508 = vpow2.f32 %v8544_v58 }
0x4823   :  { %11510 = vrcp.f32 %v8236_v5 }
0x4824   :  { %11512 = vrcp.f32 %v8239_v1  ;;  %v8242_v61 = vpop.xlane.xlu0 %8241 }
0x4825   :  { %11514 = vrcp.f32 %v8242_v61 }
0x482a   :  { %v11505_v9 = vpop.eup %11504 }
0x482b   :  { %v8546_v55 = vsel %vm791_vm15, %v11505_v9, 0.0 }
0x482c   :  { %8547 = vadd.xlane.f32.xlu1 %v8546_v55 }
0x482e   :  { %v11507_v39 = vpop.eup %11506 }
0x482f   :  { %v11509_v21 = vpop.eup %11508  ;;  %v8549_v38 = vsel %vm791_vm15, %v11507_v39, 0.0 }
0x4830   :  { %v11511_v45 = vpop.eup %11510  ;;  %8550 = vadd.xlane.f32.xlu0 %v8549_v38  ;;  %v8552_v14 = vsel %vm798_vm4, %v11509_v21, 0.0 }
0x4831   :  { %v11513_v12 = vpop.eup %11512  ;;  %8553 = vadd.xlane.f32.xlu1 %v8552_v14  ;;  %v8246_v4 = vmul.f32 %v11511_v45, %v11501_v42 }
0x4832   :  { %v11515_v31 = vpop.eup %11514  ;;  %v8247_v22 = vmul.f32 %v11513_v12, %v11499_v2 }
0x4833   :  { %v8248_v54 = vmul.f32 %v11515_v31, %v11503_v17 }
0x4834   :  { %v8249_v19 = vpack.c.bf16 %v8247_v22, %v8246_v4 }
0x4835   :  { %v8250_v23 = vpack.c.bf16 %v8248_v54, %v8248_v54 }
0x4836   :  { %10836 = vmatprep.mubr.msk.bf16.mxu0 %vm791_vm15, %v8249_v19 }
0x4837   :  { %10837 = vmatmul.mubr.msk.bf16.vlgmr.msra.gmra.mxu0 %vm791_vm15, %v8250_v23 }
0x4838   :  { %10849 = vmatpush3.bf16.msra.mxu0 %v13894_v33 }
0x4839   :  { %10850 = vmatprep.subr.bf16.mxu0 %v13887_v47 }
0x483c   :  { %10851 = vmatpush3.bf16.msra.mxu0 %v13887_v47 }
0x483d   :  { %10954 = vmatprep.subr.msk.bf16.mxu0 %vm448_vm2, %v13814_v40  ;;  %v8625_v40 = vmul.f32 %v11773_v7, %v13856_v32 }
0x483f   :  { %v8627_v47 = vpack.c.bf16 %v8625_v40, %v8625_v40 }
0x48b5   :  { %v8548_v48 = vpop.xlane.xlu1 %8547 }
0x48b6   :  { %11516 = vrcp.f32 %v8548_v48 }
0x48b9   :  { %v8551_v42 = vpop.xlane.xlu0 %8550 }
0x48ba   :  { %11518 = vrcp.f32 %v8551_v42  ;;  %v8554_v2 = vpop.xlane.xlu1 %8553 }
0x48bb   :  { %11520 = vrcp.f32 %v8554_v2 }
0x48c3   :  { %v11517_v17 = vpop.eup %11516 }
0x48c4   :  { %v8558_v30 = vmul.f32 %v11517_v17, %v11505_v9 }
0x48c7   :  { %v11519_v59 = vpop.eup %11518 }
0x48c8   :  { %v11521_v27 = vpop.eup %11520  ;;  %v8559_v0 = vmul.f32 %v11519_v59, %v11507_v39 }
0x48c9   :  { %v8560_v37 = vmul.f32 %v11521_v27, %v11509_v21 }
0x48ca   :  { %v8561_v33 = vpack.c.bf16 %v8559_v0, %v8558_v30 }
0x48cb   :  { %v8562_v49 = vpack.c.bf16 %v8560_v37, %v8560_v37 }
0x48cc   :  { %10852 = vmatprep.mubr.msk.bf16.mxu0 %vm791_vm15, %v8561_v33 }
0x48cd   :  { %10853 = vmatmul.mubr.msk.bf16.vlgmr.msra.gmra.mxu0 %vm791_vm15, %v8562_v49 }
0x48ce   :  { %10857 = vmatpush3.bf16.xpose.msra.mxu0 %v13822_v29  ;;  %10860 = vmatprep.mubr.msk.bf16.mxu0 %vm448_vm2, %v8626_v56 }
0x48cf   :  { %10955 = vmatprep.subr.msk.bf16.mxu0 %vm448_vm2, %v13839_v60 }
0x48d6   :  { %10859 = vmatpush3.bf16.xpose.msra.mxu0 %v13865_v50 }
0x48dd   :  { %10861 = vmatmul.mubr.msk.bf16.vlgmr.msra.gmra.mxu0 %vm448_vm2, %v8627_v47 }
0x48f7   :  { %v10838_v10 = vpop.f32.mrf.mxu0 }
0x48f8   :  { %v8459_v63 = vadd.f32 %v10838_v10, %v13932_v20 }
0x48f9   :  { %v8450_v58 = vpop.f32.mrf.mxu0 }
0x48fa   :  { %v8451_v56 = vadd.f32 %v8450_v58, %v13934_v18 }
0x48fb   :  { %v10839_v5 = vpop.f32.mrf.mxu0 }
0x48fd   :  { %v13969_v29 = vpop.f32.mrf.mxu0 }
0x498d   :  { %v10854_v57 = vpop.f32.mrf.mxu0 }
0x498e   :  { %v13973_v1 = vadd.f32 %v10854_v57, %v8459_v63  ;;  %v11074_v63 = vld [vmem:[%s14150_s3 + $0x170] sm:$0xff]   ;;  %v11075_v57 = vld [vmem:[%s14150_s3 + $0x168] sm:$0xff]  }
0x498f   :  { %v8606_v60 = vpop.f32.mrf.mxu0  ;;  %10872 = vmatprep.subr.bf16.mxu1 %v11074_v63 }
0x4990   :  { %v13975_v50 = vadd.f32 %v8606_v60, %v8451_v56 }
0x4991   :  { %v10855_v61 = vpop.f32.mrf.mxu0 }
0x4992   :  { %v8454_v61 = vadd.f32 %v13969_v29, %v13938_v24  ;;  %v9586_v29 = vld [vmem:[%s14152_s2 + $0x6f] ss:$0 sm:$0xff] }
0x4993   :  { %v8609_v7 = vpop.f32.mrf.mxu0 }
0x499d   :  { %v10862_v32 = vpop.f32.mrf.mxu0 }
0x499e   :  { %v8693_v38 = vsel %vm798_vm4, %v10862_v32, -inf }
0x499f   :  { %v8673_v9 = vpop.f32.mrf.mxu0 }
0x49a0   :  { %v8687_v55 = vsel %vm791_vm15, %v8673_v9, -inf }
0x49a1   :  { %8688 = vmax.xlane.f32.xlu0 %v8687_v55  ;;  %v10863_v39 = vpop.f32.mrf.mxu0 }
0x49a3   :  { %v8676_v21 = vpop.f32.mrf.mxu0 }
0x49a4   :  { %v8690_v20 = vsel %vm791_vm15, %v8676_v21, -inf }
0x49a5   :  { %8694 = vmax.xlane.f32.xlu0 %v8693_v38  ;;  %8691 = vmax.xlane.f32.xlu1 %v8690_v20 }
0x4a2a   :  { %v8689_v18 = vpop.xlane.xlu0 %8688 }
0x4a2b   :  { %v8696_v45 = vsub.f32 %v8673_v9, %v8689_v18  ;;  %v8621_v9 = vadd.f32 %v8609_v7, %v8454_v61 }
0x4a2d   :  { %v8699_v14 = vmul.f32 1.442695, %v8696_v45 }
0x4a2e   :  { %v8695_v12 = vpop.xlane.xlu0 %8694  ;;  %v8692_v4 = vpop.xlane.xlu1 %8691 }
0x4a2f   :  { %11522 = vpow2.f32 %v8699_v14  ;;  %v8698_v31 = vsub.f32 %v10862_v32, %v8695_v12  ;;  %v8697_v22 = vsub.f32 %v8676_v21, %v8692_v4 }
0x4a31   :  { %v8703_v54 = vmul.f32 1.442695, %v8698_v31  ;;  %v8701_v19 = vmul.f32 1.442695, %v8697_v22 }
0x4a33   :  { %11524 = vpow2.f32 %v8703_v54 }
0x4a34   :  { %11526 = vpow2.f32 %v8701_v19 }
0x4a3c   :  { %v11523_v23 = vpop.eup %11522 }
0x4a3d   :  { %v8705_v48 = vsel %vm791_vm15, %v11523_v23, 0.0 }
0x4a3e   :  { %8706 = vadd.xlane.f32.xlu1 %v8705_v48 }
0x4a40   :  { %v11525_v42 = vpop.eup %11524 }
0x4a41   :  { %v11527_v2 = vpop.eup %11526  ;;  %v8711_v17 = vsel %vm798_vm4, %v11525_v42, 0.0 }
0x4a42   :  { %8712 = vadd.xlane.f32.xlu1 %v8711_v17  ;;  %v8708_v59 = vsel %vm791_vm15, %v11527_v2, 0.0 }
0x4a43   :  { %8709 = vadd.xlane.f32.xlu0 %v8708_v59 }
0x4ac7   :  { %v8707_v27 = vpop.xlane.xlu1 %8706 }
0x4ac8   :  { %11528 = vrcp.f32 %v8707_v27 }
0x4acb   :  { %v8713_v30 = vpop.xlane.xlu1 %8712 }
0x4acc   :  { %v8710_v0 = vpop.xlane.xlu0 %8709  ;;  %11530 = vrcp.f32 %v8713_v30 }
0x4acd   :  { %11532 = vrcp.f32 %v8710_v0 }
0x4ad5   :  { %v11529_v37 = vpop.eup %11528 }
0x4ad6   :  { %v8717_v47 = vmul.f32 %v11529_v37, %v11523_v23 }
0x4ad9   :  { %v11531_v33 = vpop.eup %11530 }
0x4ada   :  { %v11533_v49 = vpop.eup %11532  ;;  %v8719_v40 = vmul.f32 %v11531_v33, %v11525_v42 }
0x4adb   :  { %v8718_v10 = vmul.f32 %v11533_v49, %v11527_v2 }
0x4adc   :  { %v8721_v58 = vpack.c.bf16 %v8719_v40, %v8719_v40 }
0x4add   :  { %v8720_v5 = vpack.c.bf16 %v8718_v10, %v8717_v47  ;;  %v11076_v47 = vld [vmem:[%s14150_s3 + $0x180] sm:$0xff]  }
0x4ade   :  { %10880 = vmatprep.subr.bf16.mxu0 %v11076_v47 }
0x4adf   :  { %10868 = vmatprep.mubr.msk.bf16.mxu1 %vm791_vm15, %v8720_v5  ;;  %10881 = vmatpush3.bf16.msra.mxu0 %v11076_v47 }
0x4ae0   :  { %10869 = vmatmul.mubr.msk.bf16.vlgmr.msra.gmra.mxu1 %vm791_vm15, %v8721_v58 }
0x4ae1   :  { %10873 = vmatpush3.bf16.msra.mxu1 %v11074_v63  ;;  %v9392_v63 = vld [vmem:[%s14152_s2 + $0x71] ss:$0 sm:$0xff] }
0x4ae2   :  { %10874 = vmatprep.subr.bf16.mxu1 %v11075_v57 }
0x4ae5   :  { %10875 = vmatpush3.bf16.msra.mxu1 %v11075_v57  ;;  %v4580_v57 = vadd.f32 %v12976_v41, %v12771_v26 }
0x4ba0   :  { %v10870_v56 = vpop.f32.mrf.mxu1 }
0x4ba1   :  { %v8781_v55 = vadd.f32 %v10870_v56, %v13973_v1 }
0x4ba2   :  { %v8765_v60 = vpop.f32.mrf.mxu1 }
0x4ba3   :  { %v8779_v21 = vadd.f32 %v8765_v60, %v13975_v50  ;;  %v8787_v18 = vpack.c.bf16 %v8781_v55, %v8781_v55  ;;  %v4579_v55 = vadd.f32 %v13038_v15, %v12776_v53 }
0x4ba4   :  { %v10871_v32 = vpop.f32.mrf.mxu1 }
0x4ba5   :  { %v4587_v15 = vadd.f32 %v9392_v63, %v4579_v55 }
0x4ba6   :  { %v8768_v39 = vpop.f32.mrf.mxu1 }
0x4ba7   :  { %v8780_v38 = vadd.f32 %v8768_v39, %v8621_v9  ;;  %v4588_v9 = vadd.f32 %v9392_v63, %v4580_v57 }
0x4ba9   :  { %v8786_v20 = vpack.c.bf16 %v8780_v38, %v8779_v21 }
0x4bab   :  { %10876 = vmatprep.mubr.msk.bf16.mxu1 %vm448_vm2, %v8786_v20  ;;  %v9587_v20 = vld [vmem:[%s14152_s2 + $0x6a] ss:$0 sm:$0xff] }
0x4bac   :  { %10877 = vmatmul.mubr.msk.bf16.vlgmr.msra.gmra.mxu1 %vm448_vm2, %v8787_v18 }
0x4c6c   :  { %v10878_v45 = vpop.f32.mrf.mxu1 }
0x4c6d   :  { %v8856_v12 = vadd.f32 %v10878_v45, %v13756_v36 }
0x4c6e   :  { %v8840_v14 = vpop.f32.mrf.mxu1 }
0x4c6f   :  { %v8854_v24 = vadd.f32 %v8840_v14, %v13750_v3  ;;  %v14004_v4 = vadd.f32 %v9586_v29, %v8856_v12 }
0x4c70   :  { %v10879_v1 = vpop.f32.mrf.mxu1 }
0x4c71   :  { %v14002_v7 = vadd.f32 %v9586_v29, %v8854_v24  ;;  %v8873_v3 = vsel %vm455_vm3, %v14004_v4, 0.0 }
0x4c72   :  { %v8843_v50 = vpop.f32.mrf.mxu1 }
0x4c73   :  { %v8855_v31 = vadd.f32 %v8843_v50, %v13766_v11  ;;  %v8867_v22 = vsel %vm448_vm2, %v14002_v7, 0.0 }
0x4c74   :  { %8868 = vadd.xlane.f32.xlu0 %v8867_v22 }
0x4c75   :  { %v14009_v54 = vadd.f32 %v9586_v29, %v8855_v31  ;;  %v9588_v31 = vld [vmem:[%s14152_s2 + $0x6b] ss:$0 sm:$0xff] }
0x4c77   :  { %v8870_v36 = vsel %vm448_vm2, %v14009_v54, 0.0 }
0x4c78   :  { %8874 = vadd.xlane.f32.xlu0 %v8873_v3  ;;  %8871 = vadd.xlane.f32.xlu1 %v8870_v36 }
0x4cfd   :  { %v8869_v19 = vpop.xlane.xlu0 %8868 }
0x4cfe   :  { %v8876_v23 = vmul.f32 0.03125, %v8869_v19 }
0x4d00   :  { %v14016_v48 = vsub.f32 %v14002_v7, %v8876_v23 }
0x4d01   :  { %v8875_v11 = vpop.xlane.xlu0 %8874  ;;  %v8872_v42 = vpop.xlane.xlu1 %8871 }
0x4d02   :  { %v8878_v2 = vmul.f32 0.03125, %v8875_v11  ;;  %v8877_v17 = vmul.f32 0.03125, %v8872_v42  ;;  %v8882_v59 = vmul.f32 %v14016_v48, %v14016_v48 }
0x4d04   :  { %v14021_v27 = vsub.f32 %v14004_v4, %v8878_v2  ;;  %v14024_v30 = vsub.f32 %v14009_v54, %v8877_v17  ;;  %v8885_v0 = vsel %vm448_vm2, %v8882_v59, 0.0  ;;  %v11078_v17 = vld [vmem:[%s14150_s3 + $0x1c0] sm:$0xff]   ;;  %v11079_v59 = vld [vmem:[%s14150_s3 + $0x1b8] sm:$0xff]  }
0x4d05   :  { %8886 = vadd.xlane.f32.xlu1 %v8885_v0  ;;  %10888 = vmatprep.subr.bf16.mxu1 %v11078_v17  ;;  %v11082_v0 = vld [vmem:[%s14150_s3 + $0x1a0] sm:$0xff]  }
0x4d06   :  { %v8884_v37 = vmul.f32 %v14021_v27, %v14021_v27  ;;  %v8883_v33 = vmul.f32 %v14024_v30, %v14024_v30  ;;  %10889 = vmatpush3.bf16.msra.mxu1 %v11078_v17 }
0x4d07   :  { %10890 = vmatprep.subr.bf16.mxu1 %v11079_v59 }
0x4d08   :  { %v8891_v49 = vsel %vm455_vm3, %v8884_v37, 0.0  ;;  %v8888_v40 = vsel %vm448_vm2, %v8883_v33, 0.0  ;;  %v11083_v37 = vld [vmem:[%s14150_s3 + $0x198] sm:$0xff]   ;;  %v11084_v33 = vld [vmem:[%s14150_s3 + $0x190] sm:$0xff]  }
0x4d09   :  { %8892 = vadd.xlane.f32.xlu1 %v8891_v49  ;;  %8889 = vadd.xlane.f32.xlu0 %v8888_v40  ;;  %v11085_v49 = vld [vmem:[%s14150_s3 + $0x188] sm:$0xff]   ;;  %v9589_v40 = vld [vmem:[%s14152_s2 + $0x70] ss:$0 sm:$0xff] }
0x4d0a   :  { %10891 = vmatpush3.bf16.msra.mxu1 %v11079_v59 }
0x4d1a   :  { %4594 = vrot.lane.b32.xlu1 %v11741_v51, %s11560_s20 }
0x4d1e   :  { %4596 = vrot.lane.b32.xlu1 %v11737_v46, %s11560_s20  ;;  %v11077_v46 = vld [vmem:[%s14150_s3 + $0x178] sm:$0xff]  }
0x4d1f   :  { %4592 = vrot.lane.b32.xlu0 %v11735_v44, %s11560_s20  ;;  %10882 = vmatprep.subr.bf16.mxu0 %v11077_v46 }
0x4d20   :  { %10883 = vmatpush3.bf16.msra.mxu0 %v11077_v46 }
0x4d22   :  { %9152 = vrot.lane.b32.xlu1 %v12987_v16, %s11560_s20 }
0x4d23   :  { %9154 = vrot.lane.b32.xlu0 %v12996_v25, %s11560_s20 }
0x4d26   :  { %9156 = vrot.lane.b32.xlu1 %v12992_v28, %s11560_s20 }
0x4d27   :  { %4604 = vrot.lane.b32.xlu0 %v12511_v13, %s11561_s23 }
0x4d2a   :  { %4606 = vrot.lane.b32.xlu1 %v12525_v35, %s11561_s23 }
0x4d2b   :  { %4608 = vrot.lane.b32.xlu0 %v12509_v52, %s11561_s23 }
0x4d2e   :  { %9164 = vrot.lane.b32.xlu1 %v13744_v34, %s11561_s23  ;;  %v4578_v34 = vadd.f32 %v12978_v62, %v12769_v8 }
0x4d2f   :  { %9166 = vrot.lane.b32.xlu0 %v13758_v6, %s11561_s23 }
0x4d30   :  { %v4586_v56 = vadd.f32 %v9392_v63, %v4578_v34 }
0x4d32   :  { %9168 = vrot.lane.b32.xlu1 %v13742_v43, %s11561_s23 }
0x4d8e   :  { %v8887_v44 = vpop.xlane.xlu1 %8886 }
0x4d8f   :  { %v8894_v51 = vmul.f32 0.03125, %v8887_v44 }
0x4d91   :  { %v8897_v13 = vadd.f32 1e-06, %v8894_v51 }
0x4d92   :  { %v8890_v16 = vpop.xlane.xlu0 %8889  ;;  %v8893_v28 = vpop.xlane.xlu1 %8892 }
0x4d93   :  { %11534 = vrsqrt.f32 %v8897_v13  ;;  %v8895_v25 = vmul.f32 0.03125, %v8890_v16  ;;  %v8896_v10 = vmul.f32 0.03125, %v8893_v28 }
0x4d95   :  { %v8898_v58 = vadd.f32 1e-06, %v8895_v25  ;;  %v8899_v35 = vadd.f32 1e-06, %v8896_v10 }
0x4d96   :  { %v4593_v5 = vpop.permute.xlu0 %4592  ;;  %v4595_v52 = vpop.permute.xlu1 %4594 }
0x4d97   :  { %11536 = vrsqrt.f32 %v8898_v58  ;;  %v4613_v60 = vsel %vm448_vm2, %v4586_v56, %v4593_v5  ;;  %v4614_v1 = vsel %vm448_vm2, %v4587_v15, %v4595_v52 }
0x4d98   :  { %11538 = vrsqrt.f32 %v8899_v35 }
0x4d9a   :  { %v14053_v6 = vpop.permute.xlu0 %9154  ;;  %v4597_v43 = vpop.permute.xlu1 %4596 }
0x4d9b   :  { %v4615_v41 = vsel %vm448_vm2, %v4588_v9, %v4597_v43 }
0x4d9e   :  { %v4605_v61 = vpop.permute.xlu0 %4604  ;;  %v14061_v32 = vpop.permute.xlu1 %9152 }
0x4d9f   :  { %v4616_v8 = vsel %vm388_vm1, %v4613_v60, %v4605_v61 }
0x4da0   :  { %v11535_v62 = vpop.eup %11534  ;;  %v4620_v39 = vsel %vm4619_vm0, %v4616_v8, 0.0 }
0x4da1   :  { %4623 = vst [vmem:[%s14153_s4] sm:$0xff] %v4620_v39  ;;  %v8903_v26 = vmul.f32 %v11535_v62, %v14016_v48 }
0x4da2   :  { %v4609_v21 = vpop.permute.xlu0 %4608  ;;  %v14072_v38 = vpop.permute.xlu1 %9156 }
0x4da3   :  { %v4618_v18 = vsel %vm388_vm1, %v4615_v41, %v4609_v21  ;;  %v8910_v24 = vmul.f32 %v9587_v20, %v8903_v26 }
0x4da4   :  { %v11537_v53 = vpop.eup %11536  ;;  %v4622_v45 = vsel %vm4619_vm0, %v4618_v18, 0.0 }
0x4da5   :  { %v11539_v14 = vpop.eup %11538  ;;  %4625 = vst [vmem:[%s14153_s4 + $0x10] sm:$0x1] %v4622_v45  ;;  %v8904_v12 = vmul.f32 %v11537_v53, %v14024_v30  ;;  %v8917_v23 = vadd.f32 %v9588_v31, %v8910_v24  ;;  %v11081_v30 = vld [vmem:[%s14150_s3 + $0x1a8] sm:$0xff]  }
0x4da6   :  { %v8905_v29 = vmul.f32 %v11539_v14, %v14021_v27  ;;  %v4607_v50 = vpop.permute.xlu1 %4606  ;;  %v11080_v27 = vld [vmem:[%s14150_s3 + $0x1b0] sm:$0xff]  }
0x4da7   :  { %v4617_v22 = vsel %vm388_vm1, %v4614_v1, %v4607_v50  ;;  %v8911_v3 = vmul.f32 %v9587_v20, %v8904_v12  ;;  %10892 = vmatprep.subr.bf16.mxu1 %v11080_v27  ;;  %v9602_v50 = vld [vmem:[%s14152_s2 + $0x71] ss:$0 sm:$0xff] }
0x4da8   :  { %v4621_v36 = vsel %vm4619_vm0, %v4617_v22, 0.0  ;;  %v8912_v19 = vmul.f32 %v9587_v20, %v8905_v29  ;;  %10893 = vmatpush3.bf16.msra.mxu1 %v11080_v27 }
0x4da9   :  { %4624 = vst [vmem:[%s14153_s4 + $0x8] sm:$0xff] %v4621_v36  ;;  %v8918_v48 = vadd.f32 %v9588_v31, %v8911_v3  ;;  %10894 = vmatprep.subr.bf16.mxu1 %v11081_v30 }
0x4daa   :  { %v8919_v11 = vadd.f32 %v9588_v31, %v8912_v19  ;;  %v9165_v29 = vpop.permute.xlu1 %9164 }
0x4dab   :  { %v8924_v42 = vpack.c.bf16 %v8918_v48, %v8917_v23 }
0x4dac   :  { %v8925_v2 = vpack.c.bf16 %v8919_v11, %v8919_v11  ;;  %10895 = vmatpush3.bf16.msra.mxu1 %v11081_v30  ;;  %v9167_v30 = vpop.permute.xlu0 %9166 }
0x4dad   :  { %10884 = vmatprep.mubr.msk.bf16.mxu0 %vm448_vm2, %v8924_v42  ;;  %10896 = vmatprep.subr.bf16.mxu1 %v11082_v0 }
0x4dae   :  { %10885 = vmatmul.mubr.msk.bf16.vlgmr.msra.gmra.mxu0 %vm448_vm2, %v8925_v2  ;;  %v9169_v23 = vpop.permute.xlu1 %9168 }
0x4db0   :  { %10897 = vmatpush3.bf16.msra.mxu1 %v11082_v0 }
0x4db1   :  { %10898 = vmatprep.subr.bf16.mxu1 %v11083_v37 }
0x4db4   :  { %10899 = vmatpush3.bf16.msra.mxu1 %v11083_v37 }
0x4db5   :  { %10900 = vmatprep.subr.bf16.mxu1 %v11084_v33 }
0x4db8   :  { %10901 = vmatpush3.bf16.msra.mxu1 %v11084_v33 }
0x4db9   :  { %10902 = vmatprep.subr.bf16.mxu1 %v11085_v49 }
0x4dbc   :  { %10903 = vmatpush3.bf16.msra.mxu1 %v11085_v49 }
0x4e6e   :  { %v10886_v47 = vpop.f32.mrf.mxu0 }
0x4e6f   :  { %v8992_v46 = vadd.f32 %v10886_v47, %v9589_v40 }
0x4e70   :  { %v8983_v44 = vpop.f32.mrf.mxu0 }
0x4e71   :  { %v9002_v51 = vmul.f32 %v8992_v46, %v8992_v46  ;;  %v8984_v13 = vadd.f32 %v9589_v40, %v8983_v44  ;;  %v8999_v21 = vmul.f32 0.5, %v8992_v46 }
0x4e72   :  { %v10887_v16 = vpop.f32.mrf.mxu0 }
0x4e73   :  { %v9005_v28 = vmul.f32 %v9002_v51, %v8992_v46  ;;  %v9000_v25 = vmul.f32 %v8984_v13, %v8984_v13  ;;  %v8997_v20 = vmul.f32 0.5, %v8984_v13 }
0x4e74   :  { %v8986_v10 = vpop.f32.mrf.mxu0 }
0x4e75   :  { %v9008_v58 = vmul.f32 0.044715, %v9005_v28  ;;  %v9003_v35 = vmul.f32 %v9000_v25, %v8984_v13  ;;  %v8987_v5 = vadd.f32 %v9589_v40, %v8986_v10 }
0x4e77   :  { %v9011_v52 = vadd.f32 %v9008_v58, %v8992_v46  ;;  %v9006_v34 = vmul.f32 0.044715, %v9003_v35  ;;  %v9001_v43 = vmul.f32 %v8987_v5, %v8987_v5  ;;  %v8998_v18 = vmul.f32 0.5, %v8987_v5 }
0x4e79   :  { %v9014_v63 = vmul.f32 0.7978846, %v9011_v52  ;;  %v9009_v57 = vadd.f32 %v9006_v34, %v8984_v13  ;;  %v9004_v56 = vmul.f32 %v9001_v43, %v8987_v5 }
0x4e7b   :  { %v9012_v60 = vmul.f32 0.7978846, %v9009_v57  ;;  %v9007_v61 = vmul.f32 0.044715, %v9004_v56  ;;  %11540 = vtanh.f32 %v9014_v63 }
0x4e7d   :  { %11542 = vtanh.f32 %v9012_v60  ;;  %v9010_v8 = vadd.f32 %v9007_v61, %v8987_v5 }
0x4e7f   :  { %v9013_v62 = vmul.f32 0.7978846, %v9010_v8 }
0x4e81   :  { %11544 = vtanh.f32 %v9013_v62 }
0x4e88   :  { %v11541_v9 = vpop.eup %11540 }
0x4e89   :  { %v9020_v39 = vadd.f32 1.0, %v11541_v9 }
0x4e8a   :  { %v11543_v55 = vpop.eup %11542 }
0x4e8b   :  { %v9018_v26 = vadd.f32 1.0, %v11543_v55  ;;  %v9023_v15 = vmul.f32 %v9020_v39, %v8999_v21 }
0x4e8d   :  { %v9021_v45 = vmul.f32 %v9018_v26, %v8997_v20  ;;  %v9041_v24 = vpack.c.bf16 %v9023_v15, %v9023_v15 }
0x4e8e   :  { %v11545_v41 = vpop.eup %11544 }
0x4e8f   :  { %v9019_v53 = vadd.f32 1.0, %v11545_v41 }
0x4e91   :  { %v9022_v14 = vmul.f32 %v9019_v53, %v8998_v18 }
0x4e93   :  { %v9040_v12 = vpack.c.bf16 %v9022_v14, %v9021_v45 }
0x4e95   :  { %10904 = vmatprep.mubr.bf16.mxu1 %v9040_v12 }
0x4e96   :  { %10905 = vmatmul.mubr.bf16.vlgmr.msra.gmra.mxu1 %v9041_v24 }
0x4f56   :  { %v10906_v1 = vpop.f32.mrf.mxu1 }
0x4f57   :  { %v9140_v31 = vadd.f32 %v10906_v1, %v14004_v4 }
0x4f58   :  { %v9124_v22 = vpop.f32.mrf.mxu1 }
0x4f59   :  { %v9148_v3 = vadd.f32 %v9602_v50, %v9140_v31  ;;  %v9138_v36 = vadd.f32 %v9124_v22, %v14002_v7 }
0x4f5a   :  { %v10907_v19 = vpop.f32.mrf.mxu1 }
0x4f5b   :  { %v9175_v48 = vsel %vm448_vm2, %v9148_v3, %v14072_v38  ;;  %v9146_v11 = vadd.f32 %v9602_v50, %v9138_v36 }
0x4f5c   :  { %v9178_v42 = vsel %vm388_vm1, %v9175_v48, %v9169_v23  ;;  %v9127_v2 = vpop.f32.mrf.mxu1 }
0x4f5d   :  { %v9181_v17 = vsel %vm4619_vm0, %v9178_v42, 0.0  ;;  %v9173_v59 = vsel %vm448_vm2, %v9146_v11, %v14061_v32  ;;  %v9139_v4 = vadd.f32 %v9127_v2, %v14009_v54 }
0x4f5e   :  { %9605 = vst [vmem:[%s14153_s4 + $0x28] sm:$0x1] %v9181_v17  ;;  %v9176_v7 = vsel %vm388_vm1, %v9173_v59, %v9165_v29 }
0x4f5f   :  { %v9179_v27 = vsel %vm4619_vm0, %v9176_v7, 0.0  ;;  %v9147_v38 = vadd.f32 %v9602_v50, %v9139_v4 }
0x4f60   :  { %9603 = vst [vmem:[%s14153_s4 + $0x18] sm:$0xff] %v9179_v27 }
0x4f61   :  { %v9174_v0 = vsel %vm448_vm2, %v9147_v38, %v14053_v6 }
0x4f62   :  { %v9177_v32 = vsel %vm388_vm1, %v9174_v0, %v9167_v30 }
0x4f63   :  { %v9180_v54 = vsel %vm4619_vm0, %v9177_v32, 0.0 }
0x4f64   :  { %9604 = vst [vmem:[%s14153_s4 + $0x20] sm:$0xff] %v9180_v54 }

</bundles_post_ra>
